<compile_context>
chip_gen: v5e
topology: v5e:2x2
jax: 0.10.0
libtpu: 0.0.40
codegen_flags: <defaults>
</compile_context>

<pallas_src>
import functools

import jax
import jax.numpy as jnp
from jax.experimental import pallas as pl
from jax.experimental.pallas import tpu as pltpu

H = 768            # hidden size fixed by nn.Linear(768, 512) in the module
FFN = 768          # synthetic encoder FFN intermediate size
HEAD1 = 512        # head hidden
NCLS = 2           # head output classes
NCLS_PAD = 128     # lane-dense padded logit width
INV_SQRT_H = 1.0 / float(H) ** 0.5
NEG_INF = -1e30
VMEM_LIMIT = 48 * 1024 * 1024   # fits v7x 64 MiB physical with headroom


def _layernorm(x, g, b, eps=1e-5):
    mu = jnp.mean(x, axis=-1, keepdims=True)
    var = jnp.mean((x - mu) ** 2, axis=-1, keepdims=True)
    return (x - mu) * jax.lax.rsqrt(var + eps) * g + b


# ----------------------------------------------------------------------------
# Kernel 1: layernorm + fused QKV projection (row-tiled, parallel grid)
# ----------------------------------------------------------------------------
def qkv_proj_kernel(x_ref, ln1g_ref, ln1b_ref, wqkv_ref, bqkv_ref,
                    q_ref, k_ref, v_ref):
    f32, bf16 = jnp.float32, jnp.bfloat16
    h1 = _layernorm(x_ref[...], ln1g_ref[...], ln1b_ref[...])
    qkv = jnp.dot(h1.astype(bf16), wqkv_ref[...],
                  preferred_element_type=f32) + bqkv_ref[...]
    # fold the attention scale into q here -> no (BS,BS) scale pass later
    q_ref[...] = (qkv[:, 0:H] * INV_SQRT_H).astype(bf16)
    k_ref[...] = qkv[:, H:2 * H].astype(bf16)
    v_ref[...] = qkv[:, 2 * H:3 * H].astype(bf16)


# ----------------------------------------------------------------------------
# Kernel 2: flash attention (online softmax over KV tiles) + out-proj +
#           residual + FFN fused into the last-KV-step epilogue.
# ----------------------------------------------------------------------------
def flash_ffn_kernel(x_ref, q_ref, k_ref, v_ref, qb_ref, kbm_ref,
                     wo_ref, bo_ref, ln2g_ref, ln2b_ref,
                     w1_ref, b1_ref, w2_ref, b2_ref,
                     out_ref, m_sc, l_sc, acc_sc):
    f32, bf16 = jnp.float32, jnp.bfloat16
    j = pl.program_id(1)

    @pl.when(j == 0)
    def _():
        # m initialized to 0 (not -inf): fully-masked tiles then give
        # exp(-1e30 - m) == 0 without an extra select pass, and online
        # softmax stays exact (same over-estimated max scales num & denom).
        m_sc[...] = jnp.zeros_like(m_sc)
        l_sc[...] = jnp.zeros_like(l_sc)
        acc_sc[...] = jnp.zeros_like(acc_sc)

    # scores: contract the H axis directly (no transpose through the XLU);
    # scale already folded into q.
    s = jax.lax.dot_general(q_ref[...], k_ref[...],
                            dimension_numbers=(((1,), (1,)), ((), ())),
                            preferred_element_type=f32)        # (TQ, TK)

    # block-diagonal batch mask + key validity in one int32 compare:
    # masked keys carry batch id -1, so equality alone encodes both.
    allowed = qb_ref[...] == kbm_ref[...]                       # (TQ, TK)
    s = jnp.where(allowed, s, NEG_INF)

    m_prev = m_sc[...]
    m_new = jnp.maximum(m_prev, jnp.max(s, axis=-1, keepdims=True))
    alpha = jnp.exp(m_prev - m_new)
    p = jnp.exp(s - m_new)                                      # unnormalized
    l_sc[...] = alpha * l_sc[...] + jnp.sum(p, axis=-1, keepdims=True)
    acc_sc[...] = alpha * acc_sc[...] + jnp.dot(
        p.astype(bf16), v_ref[...], preferred_element_type=f32)
    m_sc[...] = m_new

    @pl.when(j == pl.num_programs(1) - 1)
    def _():
        x = x_ref[...]
        # deferred softmax normalization: one (TQ, H) scale after PV.
        # (Rows with zero valid keys would divide by 0 here; not reachable
        #  since every query attends at least to its own batch's CLS token.)
        ctx = acc_sc[...] * pl.reciprocal(l_sc[...], approx=True)
        attn = jnp.dot(ctx.astype(bf16), wo_ref[...],
                       preferred_element_type=f32) + bo_ref[...]
        h = x + attn
        h2 = _layernorm(h, ln2g_ref[...], ln2b_ref[...])
        ff = jnp.dot(h2.astype(bf16), w1_ref[...],
                     preferred_element_type=f32) + b1_ref[...]
        ff = jnp.maximum(ff, 0.0)
        ff = jnp.dot(ff.astype(bf16), w2_ref[...],
                     preferred_element_type=f32) + b2_ref[...]
        out_ref[...] = h + ff


# ----------------------------------------------------------------------------
# Kernel 3: classification head on the f32 [CLS] rows (tiny, all f32)
# ----------------------------------------------------------------------------
def head_kernel(cls_ref, hw1_ref, hb1_ref, hw2_ref, hb2_ref, out_ref):
    f32 = jnp.float32
    hh = jnp.dot(cls_ref[...], hw1_ref[...],
                 preferred_element_type=f32) + hb1_ref[...]
    hh = jnp.maximum(hh, 0.0)           # Dropout(0.5) in eval mode = identity
    out_ref[...] = jnp.dot(hh, hw2_ref[...],
                           preferred_element_type=f32) + hb2_ref[...]


# ----------------------------------------------------------------------------
# Wrapper
# ----------------------------------------------------------------------------
def _pick_tile(n, cap=512):
    """Largest tile <= cap; full extent if n <= cap, else a 128-multiple
    divisor of n (assumes n is 128-aligned when n > cap)."""
    if n <= cap:
        return n
    t = (cap // 128) * 128
    while t >= 128 and n % t != 0:
        t -= 128
    return t if t >= 128 and n % t == 0 else n


def longformer_classifier(input_ids, token_type_ids, attention_mask,
                          word_emb, type_emb, pos_emb, enc_params, head_params):
    B, S = input_ids.shape
    BS = B * S
    (ln1g, ln1b, wqkv, bqkv, wo, bo, ln2g, ln2b, w1, b1, w2, b2) = enc_params
    (hw1, hb1, hw2, hb2) = head_params

    # Embedding lookup is gather glue in plain JAX.
    x = word_emb[input_ids] + type_emb[token_type_ids] + pos_emb[None, :, :]
    x = x.reshape(BS, H).astype(jnp.float32)

    # int32 batch ids; key-side ids pre-merged with the attention mask
    # (masked keys -> -1) so the kernel needs a single equality compare.
    batch_ids = jnp.repeat(jnp.arange(B, dtype=jnp.int32), S)           # (BS,)
    qb = batch_ids.reshape(BS, 1)
    kbm = jnp.where(attention_mask.reshape(-1) > 0, batch_ids,
                    jnp.int32(-1)).reshape(1, BS)

    # Tile sizes budgeted for v7x's 64 MiB VMEM (resident weights ~3.5 MB +
    # double-buffered 512-row tiles); raise the cap on v5e/v6e (128 MiB).
    TQ = _pick_tile(BS, 512)
    TK = _pick_tile(BS, 512)
    n_q, n_kv = BS // TQ, BS // TK

    row = lambda i: (i, 0)
    w1d = lambda a: pl.BlockSpec(a.shape, lambda i: (0, 0))
    w2d = lambda a: pl.BlockSpec(a.shape, lambda i, j: (0, 0))

    # --- QKV projection (row-tiled, parallel) ---
    q, k, v = pl.pallas_call(
        qkv_proj_kernel,
        out_shape=[jax.ShapeDtypeStruct((BS, H), jnp.bfloat16)] * 3,
        grid_spec=pltpu.PrefetchScalarGridSpec(
            num_scalar_prefetch=0,
            grid=(n_q,),
            in_specs=[pl.BlockSpec((TQ, H), row),
                      w1d(ln1g), w1d(ln1b), w1d(wqkv), w1d(bqkv)],
            out_specs=[pl.BlockSpec((TQ, H), row)] * 3,
        ),
        compiler_params=pltpu.CompilerParams(
            dimension_semantics=("parallel",),
            vmem_limit_bytes=VMEM_LIMIT),
    )(x, ln1g, ln1b, wqkv, bqkv)

    # --- flash attention + out-proj + residual + FFN ---
    hidden = pl.pallas_call(
        flash_ffn_kernel,
        out_shape=jax.ShapeDtypeStruct((BS, H), jnp.float32),
        grid_spec=pltpu.PrefetchScalarGridSpec(
            num_scalar_prefetch=0,
            grid=(n_q, n_kv),
            in_specs=[
                pl.BlockSpec((TQ, H), lambda i, j: (i, 0)),   # x (residual)
                pl.BlockSpec((TQ, H), lambda i, j: (i, 0)),   # q (pre-scaled)
                pl.BlockSpec((TK, H), lambda i, j: (j, 0)),   # k
                pl.BlockSpec((TK, H), lambda i, j: (j, 0)),   # v
                pl.BlockSpec((TQ, 1), lambda i, j: (i, 0)),   # query batch ids
                pl.BlockSpec((1, TK), lambda i, j: (0, j)),   # key ids (+mask)
                w2d(wo), w2d(bo), w2d(ln2g), w2d(ln2b),
                w2d(w1), w2d(b1), w2d(w2), w2d(b2),
            ],
            out_specs=pl.BlockSpec((TQ, H), lambda i, j: (i, 0)),
            scratch_shapes=[pltpu.VMEM((TQ, 1), jnp.float32),   # running max
                            pltpu.VMEM((TQ, 1), jnp.float32),   # running sum
                            pltpu.VMEM((TQ, H), jnp.float32)],  # PV accum
        ),
        compiler_params=pltpu.CompilerParams(
            dimension_semantics=("parallel", "arbitrary"),
            vmem_limit_bytes=VMEM_LIMIT),
    )(x, q, k, v, qb, kbm, wo, bo, ln2g, ln2b, w1, b1, w2, b2)

    # --- [CLS] rows in f32 (plain row slice, no one-hot matmul) + head ---
    cls = hidden.reshape(B, S, H)[:, 0, :]
    logits_padded = pl.pallas_call(
        head_kernel,
        out_shape=jax.ShapeDtypeStruct((B, NCLS_PAD), jnp.float32),
        compiler_params=pltpu.CompilerParams(vmem_limit_bytes=VMEM_LIMIT),
    )(cls, hw1, hb1, hw2, hb2)
    return logits_padded[:, :NCLS]


if __name__ == "__main__":
    B, S = 2, 8
    VOCAB, TYPES = 100, 2

    key = jax.random.PRNGKey(0)
    keys = jax.random.split(key, 12)
    init = lambda k, shape: jax.random.normal(k, shape, jnp.float32) * 0.02

    # Embedding tables (lookup is gather glue in plain JAX).
    word_emb = init(keys[0], (VOCAB, H))
    type_emb = init(keys[1], (TYPES, H))
    pos_emb = init(keys[2], (S, H))

    enc_params = (
        jnp.ones((1, H), jnp.float32), jnp.zeros((1, H), jnp.float32),      # ln1
        init(keys[3], (H, 3 * H)).astype(jnp.bfloat16),
        jnp.zeros((1, 3 * H), jnp.float32),                                 # qkv proj
        init(keys[4], (H, H)).astype(jnp.bfloat16),
        jnp.zeros((1, H), jnp.float32),                                     # out proj
        jnp.ones((1, H), jnp.float32), jnp.zeros((1, H), jnp.float32),      # ln2
        init(keys[5], (H, FFN)).astype(jnp.bfloat16),
        jnp.zeros((1, FFN), jnp.float32),                                   # ffn1
        init(keys[6], (FFN, H)).astype(jnp.bfloat16),
        jnp.zeros((1, H), jnp.float32),                                     # ffn2
    )
    hw1 = init(keys[7], (H, HEAD1))                                          # f32 head
    hb1 = jnp.zeros((1, HEAD1), jnp.float32)
    hw2 = init(keys[8], (HEAD1, NCLS))
    hw2_pad = jnp.zeros((HEAD1, NCLS_PAD), jnp.float32).at[:, :NCLS].set(hw2)
    hb2_pad = jnp.zeros((1, NCLS_PAD), jnp.float32)
    head_params = (hw1, hb1, hw2_pad, hb2_pad)

    # Module inputs: (input_ids, token_type_ids, attention_mask)
    input_ids = jax.random.randint(keys[9], (B, S), 0, VOCAB)
    token_type_ids = jnp.zeros((B, S), jnp.int32)
    attention_mask = jnp.ones((B, S), jnp.float32)

    logits = longformer_classifier(input_ids, token_type_ids, attention_mask,
                                   word_emb, type_emb, pos_emb,
                                   enc_params, head_params)
    jax.block_until_ready(logits)
    assert logits.shape == (B, NCLS) and logits.dtype == jnp.float32
    print("KERNEL_OK")
</pallas_src>

<mosaic_0001>
module attributes {stable_mosaic.version = 11 : i64} {
  func.func @qkv_proj_kernel(%arg0: i32, %arg1: memref<16x768xf32, #tpu.memory_space<vmem>>, %arg2: memref<1x768xf32, #tpu.memory_space<vmem>>, %arg3: memref<1x768xf32, #tpu.memory_space<vmem>>, %arg4: memref<768x2304xbf16, #tpu.memory_space<vmem>>, %arg5: memref<1x2304xf32, #tpu.memory_space<vmem>>, %arg6: memref<16x768xbf16, #tpu.memory_space<vmem>>, %arg7: memref<16x768xbf16, #tpu.memory_space<vmem>>, %arg8: memref<16x768xbf16, #tpu.memory_space<vmem>>) attributes {dimension_semantics = [#tpu.dimension_semantics<parallel>], iteration_bounds = array<i64: 1>, scalar_prefetch = 0 : i64, scratch_operands = 0 : i64, tpu.core_type = #tpu.core_type<tc>, window_params = [{transform_indices = @transform_0, window_bounds = array<i64: 16, 768>}, {pipeline_mode = #tpu.pipeline_mode<synchronous>, transform_indices = @transform_1, window_bounds = array<i64: 1, 768>}, {pipeline_mode = #tpu.pipeline_mode<synchronous>, transform_indices = @transform_2, window_bounds = array<i64: 1, 768>}, {pipeline_mode = #tpu.pipeline_mode<synchronous>, transform_indices = @transform_3, window_bounds = array<i64: 768, 2304>}, {pipeline_mode = #tpu.pipeline_mode<synchronous>, transform_indices = @transform_4, window_bounds = array<i64: 1, 2304>}, {transform_indices = @transform_5, window_bounds = array<i64: 16, 768>}, {transform_indices = @transform_6, window_bounds = array<i64: 16, 768>}, {transform_indices = @transform_7, window_bounds = array<i64: 16, 768>}]} {
    %c0 = arith.constant 0 : index
    %c0_0 = arith.constant 0 : index
    %0 = vector.load %arg1[%c0, %c0_0] : memref<16x768xf32, #tpu.memory_space<vmem>>, vector<16x768xf32>
    %c0_1 = arith.constant 0 : index
    %c0_2 = arith.constant 0 : index
    %1 = vector.load %arg2[%c0_1, %c0_2] : memref<1x768xf32, #tpu.memory_space<vmem>>, vector<1x768xf32>
    %c0_3 = arith.constant 0 : index
    %c0_4 = arith.constant 0 : index
    %2 = vector.load %arg3[%c0_3, %c0_4] : memref<1x768xf32, #tpu.memory_space<vmem>>, vector<1x768xf32>
    %cst = arith.constant dense<0.000000e+00> : vector<16xf32>
    %3 = vector.multi_reduction <add>, %0, %cst [1] : vector<16x768xf32> to vector<16xf32>
    %4 = vector.shape_cast %3 : vector<16xf32> to vector<16x1xf32>
    %cst_5 = arith.constant 7.680000e+02 : f32
    %5 = vector.broadcast %cst_5 : f32 to vector<16x1xf32>
    %6 = arith.divf %4, %5 : vector<16x1xf32>
    %7 = vector.broadcast %6 : vector<16x1xf32> to vector<16x768xf32>
    %8 = arith.subf %0, %7 : vector<16x768xf32>
    %9 = arith.mulf %8, %8 : vector<16x768xf32>
    %cst_6 = arith.constant dense<0.000000e+00> : vector<16xf32>
    %10 = vector.multi_reduction <add>, %9, %cst_6 [1] : vector<16x768xf32> to vector<16xf32>
    %11 = vector.shape_cast %10 : vector<16xf32> to vector<16x1xf32>
    %cst_7 = arith.constant 7.680000e+02 : f32
    %12 = vector.broadcast %cst_7 : f32 to vector<16x1xf32>
    %13 = arith.divf %11, %12 : vector<16x1xf32>
    %14 = vector.broadcast %6 : vector<16x1xf32> to vector<16x768xf32>
    %15 = arith.subf %0, %14 : vector<16x768xf32>
    %cst_8 = arith.constant 9.99999974E-6 : f32
    %16 = vector.broadcast %cst_8 : f32 to vector<16x1xf32>
    %17 = arith.addf %13, %16 : vector<16x1xf32>
    %18 = math.rsqrt %17 : vector<16x1xf32>
    %19 = vector.broadcast %18 : vector<16x1xf32> to vector<16x768xf32>
    %20 = arith.mulf %15, %19 : vector<16x768xf32>
    %21 = vector.broadcast %1 : vector<1x768xf32> to vector<16x768xf32>
    %22 = arith.mulf %20, %21 : vector<16x768xf32>
    %23 = vector.broadcast %2 : vector<1x768xf32> to vector<16x768xf32>
    %24 = arith.addf %22, %23 : vector<16x768xf32>
    %25 = arith.truncf %24 : vector<16x768xf32> to vector<16x768xbf16>
    %c0_9 = arith.constant 0 : index
    %c0_10 = arith.constant 0 : index
    %26 = vector.load %arg4[%c0_9, %c0_10] : memref<768x2304xbf16, #tpu.memory_space<vmem>>, vector<768x2304xbf16>
    %cst_11 = arith.constant dense<0.000000e+00> : vector<16x2304xf32>
    %27 = tpu.matmul %25, %26, %cst_11 {dimension_numbers = #tpu.dot_dimension_numbers<[1], [0], [0], [1], [0, 0, 1, 1], [], []>} : vector<16x768xbf16>, vector<768x2304xbf16>, vector<16x2304xf32> -> vector<16x2304xf32>
    %c0_12 = arith.constant 0 : index
    %c0_13 = arith.constant 0 : index
    %28 = vector.load %arg5[%c0_12, %c0_13] : memref<1x2304xf32, #tpu.memory_space<vmem>>, vector<1x2304xf32>
    %29 = vector.broadcast %28 : vector<1x2304xf32> to vector<16x2304xf32>
    %30 = arith.addf %27, %29 : vector<16x2304xf32>
    %31 = vector.extract_strided_slice %30 {offsets = [0, 0], sizes = [16, 768], strides = [1, 1]} : vector<16x2304xf32> to vector<16x768xf32>
    %cst_14 = arith.constant 0.0360843912 : f32
    %32 = vector.broadcast %cst_14 : f32 to vector<16x768xf32>
    %33 = arith.mulf %31, %32 : vector<16x768xf32>
    %34 = arith.truncf %33 : vector<16x768xf32> to vector<16x768xbf16>
    %c0_15 = arith.constant 0 : index
    %c0_16 = arith.constant 0 : index
    %35 = vector.load %arg6[%c0_15, %c0_16] : memref<16x768xbf16, #tpu.memory_space<vmem>>, vector<16x768xbf16>
    tpu.vector_store %arg6[%c0_15, %c0_16], %34 {strides = array<i32>} : memref<16x768xbf16, #tpu.memory_space<vmem>>, vector<16x768xbf16>,
    %36 = vector.extract_strided_slice %30 {offsets = [0, 768], sizes = [16, 768], strides = [1, 1]} : vector<16x2304xf32> to vector<16x768xf32>
    %37 = arith.truncf %36 : vector<16x768xf32> to vector<16x768xbf16>
    %c0_17 = arith.constant 0 : index
    %c0_18 = arith.constant 0 : index
    %38 = vector.load %arg7[%c0_17, %c0_18] : memref<16x768xbf16, #tpu.memory_space<vmem>>, vector<16x768xbf16>
    tpu.vector_store %arg7[%c0_17, %c0_18], %37 {strides = array<i32>} : memref<16x768xbf16, #tpu.memory_space<vmem>>, vector<16x768xbf16>,
    %39 = vector.extract_strided_slice %30 {offsets = [0, 1536], sizes = [16, 768], strides = [1, 1]} : vector<16x2304xf32> to vector<16x768xf32>
    %40 = arith.truncf %39 : vector<16x768xf32> to vector<16x768xbf16>
    %c0_19 = arith.constant 0 : index
    %c0_20 = arith.constant 0 : index
    %41 = vector.load %arg8[%c0_19, %c0_20] : memref<16x768xbf16, #tpu.memory_space<vmem>>, vector<16x768xbf16>
    tpu.vector_store %arg8[%c0_19, %c0_20], %40 {strides = array<i32>} : memref<16x768xbf16, #tpu.memory_space<vmem>>, vector<16x768xbf16>,
    return
  }
  func.func @transform_0(%arg0: i32) -> (i32, i32) {
    %c0_i32 = arith.constant 0 : i32
    %c0_i32_0 = arith.constant 0 : i32
    return %arg0, %c0_i32 : i32, i32
  }
  func.func @transform_1(%arg0: i32) -> (i32, i32) {
    %c0_i32 = arith.constant 0 : i32
    %c0_i32_0 = arith.constant 0 : i32
    %c0_i32_1 = arith.constant 0 : i32
    return %c0_i32, %c0_i32_0 : i32, i32
  }
  func.func @transform_2(%arg0: i32) -> (i32, i32) {
    %c0_i32 = arith.constant 0 : i32
    %c0_i32_0 = arith.constant 0 : i32
    %c0_i32_1 = arith.constant 0 : i32
    return %c0_i32, %c0_i32_0 : i32, i32
  }
  func.func @transform_3(%arg0: i32) -> (i32, i32) {
    %c0_i32 = arith.constant 0 : i32
    %c0_i32_0 = arith.constant 0 : i32
    %c0_i32_1 = arith.constant 0 : i32
    return %c0_i32, %c0_i32_0 : i32, i32
  }
  func.func @transform_4(%arg0: i32) -> (i32, i32) {
    %c0_i32 = arith.constant 0 : i32
    %c0_i32_0 = arith.constant 0 : i32
    %c0_i32_1 = arith.constant 0 : i32
    return %c0_i32, %c0_i32_0 : i32, i32
  }
  func.func @transform_5(%arg0: i32) -> (i32, i32) {
    %c0_i32 = arith.constant 0 : i32
    %c0_i32_0 = arith.constant 0 : i32
    return %arg0, %c0_i32 : i32, i32
  }
  func.func @transform_6(%arg0: i32) -> (i32, i32) {
    %c0_i32 = arith.constant 0 : i32
    %c0_i32_0 = arith.constant 0 : i32
    return %arg0, %c0_i32 : i32, i32
  }
  func.func @transform_7(%arg0: i32) -> (i32, i32) {
    %c0_i32 = arith.constant 0 : i32
    %c0_i32_0 = arith.constant 0 : i32
    return %arg0, %c0_i32 : i32, i32
  }
}

</mosaic_0001>

<bundles_post_ra>
// kernel: tpu_custom_call.1
= control target key start
LH: loop header
LB: loop body
LE: loop exit
PB: predicated region body
PF: predicated region fallthrough
CT: control target
= control target key end

     0   :  { %13 = vsyncpa [#allocation3], 0  ;;  %s12350_s0 = inlined_call_operand.hbm [shape: f32[16,768], index: 0, kind: input, shape index: {}]   ;;  %s12351_s1 = inlined_call_operand.hbm [shape: f32[1,768], index: 1, kind: input, shape index: {}]   ;;  %s12352_s2 = inlined_call_operand.hbm [shape: f32[1,768], index: 2, kind: input, shape index: {}]   ;;  %s12353_s3 = inlined_call_operand.hbm [shape: bf16[768,2304], index: 3, kind: input, shape index: {}]   ;;  %s12354_s4 = inlined_call_operand.hbm [shape: f32[1,2304], index: 4, kind: input, shape index: {}]   ;;  %s12355_s5 = inlined_call_operand.hbm [shape: bf16[16,768], index: 5, kind: output, shape index: {0}]   ;;  %s12356_s6 = inlined_call_operand.hbm [shape: bf16[16,768], index: 6, kind: output, shape index: {1}]   ;;  %s12357_s7 = inlined_call_operand.hbm [shape: bf16[16,768], index: 7, kind: output, shape index: {2}]  }
   0x1   :  { %14 = vsyncpa [#allocation6], 0 }
   0x2   :  { %15 = vsyncpa [#allocation9], 0 }
   0x3   :  { %16 = vsyncpa [#allocation4], 0  ;;  %s36_s26 = sshll.u32 %s12351_s1, 4  ;;  %s37_s26 = int_to_ptr.hbm [resolvable:$true] %s36_s26 }
   0x4   :  { %17 = vsyncpa [#allocation13], 0  ;;  %s11653_s27 = smov [#allocation5]   ;;  %s57_s8 = sshll.u32 %s12353_s3, 4  ;;  %s58_s8 = int_to_ptr.hbm [resolvable:$true] %s57_s8 }
   0x5   :  { %s38_s28 = sshll.u32 %s11653_s27, 4  ;;  %s11654_s9 = smov [#allocation8]   ;;  %s39_s28 = int_to_ptr.vmem [resolvable:$true] %s38_s28 }
   0x6   :  { %41 = dma.hbm_to_vmem [thread:$0]  %s37_s26, 96, %s39_s28, [#allocation6]  }
   0x7   :  { %s59_s10 = sshll.u32 %s11654_s9, 4  ;;  %s11655_s11 = smov 1152   ;;  %s60_s10 = int_to_ptr.vmem [resolvable:$true] %s59_s10 }
   0x8   :  { %s11656_s12 = smov 72   ;;  %s22_s1 = sshll.u32 %s12350_s0, 4  ;;  %s23_s1 = int_to_ptr.hbm [resolvable:$true] %s22_s1 }
   0x9   :  { %65 = dma.hbm_to_vmem [thread:$0]  %s58_s8, 110592, %s60_s10, [#allocation9], %s11655_s11, %s11655_s11, %s11656_s12  }
   0xa   :  { %s11657_s15 = smov [#allocation2]   ;;  %s47_s3 = sshll.u32 %s12352_s2, 4  ;;  %s48_s3 = int_to_ptr.hbm [resolvable:$true] %s47_s3 }
   0xb   :  { %s24_s16 = sshll.u32 %s11657_s15, 4  ;;  %s11658_s19 = smov 768   ;;  %s25_s16 = int_to_ptr.vmem [resolvable:$true] %s24_s16 }
   0xc   :  { %s11659_s20 = smov 48   ;;  %s11660_s21 = smov [#allocation7]  }
   0xd   :  { %30 = dma.hbm_to_vmem [thread:$0]  %s23_s1, 1536, %s25_s16, [#allocation3], %s11658_s19, %s11658_s19, %s11659_s20  }
   0xe   :  { %s49_s22 = sshll.u32 %s11660_s21, 4  ;;  %s71_s25 = sshll.u32 %s12354_s4, 4  ;;  %s50_s22 = int_to_ptr.vmem [resolvable:$true] %s49_s22  ;;  %s72_s25 = int_to_ptr.hbm [resolvable:$true] %s71_s25 }
   0xf   :  { %52 = dma.hbm_to_vmem [thread:$0]  %s48_s3, 96, %s50_s22, [#allocation6]  }
  0x10   :  { %s11661_s0 = smov [#allocation10]  }
  0x11   :  { %s73_s26 = sshll.u32 %s11661_s0, 4  ;;  %s74_s26 = int_to_ptr.vmem [resolvable:$true] %s73_s26 }
  0x12   :  { %76 = dma.hbm_to_vmem [thread:$0]  %s72_s25, 288, %s74_s26, [#allocation9]  }
  0x13   :  { %11643 = dma.done.wait [#allocation3], 1536  }
  0x14   :  { %11644 = vsyncadd [#allocation3], 4294965760 }
  0x15   :  { %11645 = dma.done.wait [#allocation6], 192  }
  0x16   :  { %11646 = vsyncadd [#allocation6], 4294967104 }
  0x17   :  { %11647 = dma.done.wait [#allocation9], 110880  }
  0x18   :  { %11648 = vsyncadd [#allocation9], 4294856416  ;;  %v11723_v0 = vld [vmem:[#allocation2] sm:$0xff]  ;;  %v11725_v1 = vld [vmem:[#allocation2 + $0x8] sm:$0xff]  ;;  %v11662_v22 = vmov 768.0   ;;  %s11663_s2 = smov [#allocation12]  }
  0x19   :  { %v11727_v2 = vld [vmem:[#allocation2 + $0x10] sm:$0xff]  ;;  %v11729_v3 = vld [vmem:[#allocation2 + $0x18] sm:$0xff]  ;;  %v111_v4 = vadd.f32 %v11725_v1, %v11723_v0  ;;  %v11737_v7 = vld [vmem:[#allocation2 + $0x40] sm:$0xff]  ;;  %11441 = vrcp.f32 %v11662_v22  ;;  %s7067_s4 = sshll.u32 %s11663_s2, 4  ;;  %s7069_s29 = sshll.u32 %s12356_s6, 4  ;;  %s7068_s4 = int_to_ptr.vmem [resolvable:$true] %s7067_s4  ;;  %s7070_s29 = int_to_ptr.hbm [resolvable:$true] %s7069_s29 }
  0x1a   :  { %v11733_v5 = vld [vmem:[#allocation2 + $0x30] sm:$0xff]  ;;  %v11735_v6 = vld [vmem:[#allocation2 + $0x38] sm:$0xff]  ;;  %v11742_v10 = vld [vmem:[#allocation2 + $0x20] sm:$0xff]  ;;  %s11664_s30 = smov 384   ;;  %s11665_s8 = smov 24  }
  0x1b   :  { %v112_v8 = vadd.f32 %v111_v4, %v11727_v2  ;;  %v118_v9 = vadd.f32 %v11735_v6, %v11733_v5  ;;  %v11744_v11 = vld [vmem:[#allocation2 + $0x48] sm:$0xff]  ;;  %v11752_v17 = vld [vmem:[#allocation2 + $0x50] sm:$0xff]  ;;  %v11756_v20 = vld [vmem:[#allocation2 + $0x58] sm:$0xff]  ;;  %s7056_s11 = sshll.u32 %s12355_s5, 4  ;;  %s11666_s12 = smov [#allocation11]   ;;  %s7057_s11 = int_to_ptr.hbm [resolvable:$true] %s7056_s11 }
  0x1c   :  { %v11748_v14 = vld [vmem:[#allocation2 + $0x28] sm:$0xff]  ;;  %v7612_v27 = vld [vmem:[#allocation8 + $0x3f0] sm:$0xf]  ;;  %v10697_v28 = vld [vmem:[#allocation8 + $0x434] sm:$0xf0]  ;;  %s7054_s13 = sshll.u32 %s11666_s12, 4  ;;  %s7055_s13 = int_to_ptr.vmem [resolvable:$true] %s7054_s13 }
  0x1d   :  { %v113_v12 = vadd.f32 %v112_v8, %v11729_v3  ;;  %v119_v13 = vadd.f32 %v118_v9, %v11737_v7  ;;  %v8188_v29 = vld [vmem:[#allocation8 + $0x870] sm:$0xf]  ;;  %v7613_v31 = vor.u32 %v10697_v28, %v7612_v27  ;;  %v10841_v32 = vld [vmem:[#allocation8 + $0x8b4] sm:$0xf0]  ;;  %v7540_v39 = vld [vmem:[#allocation8 + $0x360] sm:$0xf] }
  0x1e   :  { %v8764_v33 = vld [vmem:[#allocation8 + $0xcf0] sm:$0xf]  ;;  %v10985_v34 = vld [vmem:[#allocation8 + $0xd34] sm:$0xf0]  ;;  %v8189_v35 = vor.u32 %v10841_v32, %v8188_v29  ;;  %v10679_v41 = vld [vmem:[#allocation8 + $0x3a4] sm:$0xf0] }
  0x1f   :  { %v114_v15 = vadd.f32 %v113_v12, %v11742_v10  ;;  %v120_v16 = vadd.f32 %v119_v13, %v11744_v11  ;;  %v11442_v23 = vpop.eup %11441  ;;  %v8765_v36 = vor.u32 %v10985_v34, %v8764_v33  ;;  %v9340_v37 = vld [vmem:[#allocation8 + $0x1170] sm:$0xf]  ;;  %v11129_v38 = vld [vmem:[#allocation8 + $0x11b4] sm:$0xf0]  ;;  %5490 = vmatpush.bf16.msra.mxu0 %v7613_v31  ;;  %v8116_v42 = vld [vmem:[#allocation8 + $0x7e0] sm:$0xf]  ;;  %v7541_v44 = vor.u32 %v10679_v41, %v7540_v39 }
  0x20   :  { %v126_v24 = vmul.f32 768.0, %v11442_v23  ;;  %vm130_vm0 = vweird.f32 %v11442_v23  ;;  %v9341_v40 = vor.u32 %v11129_v38, %v9340_v37  ;;  %v10823_v43 = vld [vmem:[#allocation8 + $0x824] sm:$0xf0]  ;;  %5504 = vmatpush.bf16.msra.mxu1 %v8189_v35  ;;  %v8692_v46 = vld [vmem:[#allocation8 + $0xc60] sm:$0xf]  ;;  %s11667_s5 = smov [#allocation14]  }
  0x21   :  { %v115_v18 = vadd.f32 %v114_v15, %v11748_v14  ;;  %v121_v19 = vadd.f32 %v120_v16, %v11752_v17  ;;  %5518 = vmatpush.bf16.msra.mxu2 %v8765_v36  ;;  %v8117_v45 = vor.u32 %v10823_v43, %v8116_v42  ;;  %v10967_v47 = vld [vmem:[#allocation8 + $0xca4] sm:$0xf0]  ;;  %v9268_v48 = vld [vmem:[#allocation8 + $0x10e0] sm:$0xf]  ;;  %v7468_v52 = vld [vmem:[#allocation8 + $0x2d0] sm:$0xf] }
  0x22   :  { %v127_v25 = vsub.f32 1.0, %v126_v24  ;;  %5532 = vmatpush.bf16.msra.mxu3 %v9341_v40  ;;  %v8693_v50 = vor.u32 %v10967_v47, %v8692_v46  ;;  %v11111_v51 = vld [vmem:[#allocation8 + $0x1124] sm:$0xf0]  ;;  %v10661_v53 = vld [vmem:[#allocation8 + $0x314] sm:$0xf0]  ;;  %s7080_s6 = sshll.u32 %s11667_s5, 4  ;;  %s7081_s6 = int_to_ptr.vmem [resolvable:$true] %s7080_s6 }
  0x23   :  { %116 = vadd.xlane.f32.xlu0 %v115_v18  ;;  %v122_v21 = vadd.f32 %v121_v19, %v11756_v20  ;;  %v9269_v54 = vor.u32 %v11111_v51, %v9268_v48  ;;  %v8044_v55 = vld [vmem:[#allocation8 + $0x750] sm:$0xf]  ;;  %v10805_v56 = vld [vmem:[#allocation8 + $0x794] sm:$0xf0]  ;;  %5491 = vmatpush.bf16.msra.mxu0 %v7541_v44  ;;  %v7469_v59 = vor.u32 %v10661_v53, %v7468_v52  ;;  %v7396_v8 = vld [vmem:[#allocation8 + $0x240] sm:$0xf] }
  0x24   :  { %v128_v26 = vmul.f32 %v11442_v23, %v127_v25  ;;  %v8620_v57 = vld [vmem:[#allocation8 + $0xbd0] sm:$0xf]  ;;  %v10949_v60 = vld [vmem:[#allocation8 + $0xc14] sm:$0xf0]  ;;  %5505 = vmatpush.bf16.msra.mxu1 %v8117_v45  ;;  %v8045_v4 = vor.u32 %v10805_v56, %v8044_v55  ;;  %v10643_v9 = vld [vmem:[#allocation8 + $0x284] sm:$0xf0] }
  0x25   :  { %v9196_v61 = vld [vmem:[#allocation8 + $0x1050] sm:$0xf]  ;;  %v11093_v62 = vld [vmem:[#allocation8 + $0x1094] sm:$0xf0]  ;;  %5519 = vmatpush.bf16.msra.mxu2 %v8693_v50  ;;  %v8621_v12 = vor.u32 %v10949_v60, %v8620_v57  ;;  %v7972_v15 = vld [vmem:[#allocation8 + $0x6c0] sm:$0xf] }
  0x26   :  { %v129_v30 = vadd.f32 %v11442_v23, %v128_v26  ;;  %5533 = vmatpush.bf16.msra.mxu3 %v9269_v54  ;;  %v9197_v13 = vor.u32 %v11093_v62, %v9196_v61  ;;  %v10787_v16 = vld [vmem:[#allocation8 + $0x704] sm:$0xf0]  ;;  %v8548_v18 = vld [vmem:[#allocation8 + $0xb40] sm:$0xf]  ;;  %v7397_v26 = vor.u32 %v10643_v9, %v7396_v8  ;;  %v7324_v29 = vld [vmem:[#allocation8 + $0x1b0] sm:$0xf] }
  0x27   :  { %v9124_v24 = vld [vmem:[#allocation8 + $0xfc0] sm:$0xf]  ;;  %v11075_v25 = vld [vmem:[#allocation8 + $0x1004] sm:$0xf0]  ;;  %5492 = vmatpush.bf16.msra.mxu0 %v7469_v59  ;;  %v7900_v33 = vld [vmem:[#allocation8 + $0x630] sm:$0xf] }
  0x28   :  { %v11760_v49 = vsel %vm130_vm0, %v11442_v23, %v129_v30  ;;  %v10931_v23 = vld [vmem:[#allocation8 + $0xb84] sm:$0xf0]  ;;  %5506 = vmatpush.bf16.msra.mxu1 %v8045_v4  ;;  %v10625_v30 = vld [vmem:[#allocation8 + $0x1f4] sm:$0xf0]  ;;  %v9125_v32 = vor.u32 %v11075_v25, %v9124_v24  ;;  %v8476_v34 = vld [vmem:[#allocation8 + $0xab0] sm:$0xf] }
  0x29   :  { %5520 = vmatpush.bf16.msra.mxu2 %v8621_v12  ;;  %v8549_v31 = vor.u32 %v10931_v23, %v8548_v18  ;;  %v10913_v37 = vld [vmem:[#allocation8 + $0xaf4] sm:$0xf0]  ;;  %v9052_v38 = vld [vmem:[#allocation8 + $0xf30] sm:$0xf]  ;;  %v7252_v8 = vld [vmem:[#allocation8 + $0x120] sm:$0xf] }
  0x2a   :  { %5534 = vmatpush.bf16.msra.mxu3 %v9197_v13  ;;  %v11057_v39 = vld [vmem:[#allocation8 + $0xf74] sm:$0xf0]  ;;  %v8477_v47 = vor.u32 %v10913_v37, %v8476_v34  ;;  %v10607_v9 = vld [vmem:[#allocation8 + $0x164] sm:$0xf0]  ;;  %v7828_v12 = vld [vmem:[#allocation8 + $0x5a0] sm:$0xf] }
  0x2b   :  { %123 = vadd.xlane.f32.xlu0 %v122_v21  ;;  %5493 = vmatpush.bf16.msra.mxu0 %v7397_v26  ;;  %v9053_v48 = vor.u32 %v11057_v39, %v9052_v38  ;;  %v7253_v13 = vor.u32 %v10607_v9, %v7252_v8  ;;  %v8980_v24 = vld [vmem:[#allocation8 + $0xea0] sm:$0xf]  ;;  %v11039_v25 = vld [vmem:[#allocation8 + $0xee4] sm:$0xf0]  ;;  %v8908_v34 = vld [vmem:[#allocation8 + $0xe10] sm:$0xf] }
  0x2c   :  { %v8981_v26 = vor.u32 %v11039_v25, %v8980_v24  ;;  %v7108_v37 = vld [vmem:[#allocation8] sm:$0xf]  ;;  %v10571_v38 = vld [vmem:[#allocation8 + $0x44] sm:$0xf0]  ;;  %v9772_v24 = vld [vmem:[#allocation8 + $0x14d0] sm:$0xf] }
  0x2d   :  { %5521 = vmatpush.bf16.msra.mxu2 %v8549_v31  ;;  %v8332_v31 = vld [vmem:[#allocation8 + $0x990] sm:$0xf]  ;;  %v7684_v39 = vld [vmem:[#allocation8 + $0x480] sm:$0xf]  ;;  %v11399_v9 = vld [vmem:[#allocation8 + $0x1a24] sm:$0xf0] }
  0x2e   :  { %5535 = vmatpush.bf16.msra.mxu3 %v9125_v32  ;;  %v10877_v32 = vld [vmem:[#allocation8 + $0x9d4] sm:$0xf0]  ;;  %v10420_v8 = vld [vmem:[#allocation8 + $0x19e0] sm:$0xf]  ;;  %s7082_s15 = sshll.u32 %s12357_s7, 4  ;;  %s7083_s15 = int_to_ptr.hbm [resolvable:$true] %s7082_s15 }
  0x2f   :  { %v11237_v25 = vld [vmem:[#allocation8 + $0x1514] sm:$0xf0] }
  0x31   :  { %5522 = vmatpush.bf16.msra.mxu2 %v8477_v47  ;;  %v11003_v47 = vld [vmem:[#allocation8 + $0xdc4] sm:$0xf0] }
  0x32   :  { %5536 = vmatpush.bf16.msra.mxu3 %v9053_v48  ;;  %v9916_v48 = vld [vmem:[#allocation8 + $0x15f0] sm:$0xf] }
  0x36   :  { %5537 = vmatpush.bf16.msra.mxu3 %v8981_v26  ;;  %v10348_v26 = vld [vmem:[#allocation8 + $0x1950] sm:$0xf] }
  0x96   :  { %v117_v58 = vpop.xlane.xlu0 %116 }
  0x97   :  { %v132_v63 = vmul.f32 %v11760_v49, %v117_v58 }
  0x99   :  { %v11764_v19 = vsub.f32 %v11723_v0, %v132_v63  ;;  %v11767_v21 = vsub.f32 %v11725_v1, %v132_v63  ;;  %v11770_v22 = vsub.f32 %v11727_v2, %v132_v63  ;;  %v11773_v27 = vsub.f32 %v11729_v3, %v132_v63  ;;  %v10769_v3 = vld [vmem:[#allocation8 + $0x674] sm:$0xf0] }
  0x9a   :  { %v7973_v1 = vor.u32 %v10787_v16, %v7972_v15  ;;  %v11780_v2 = vsub.f32 %v11742_v10, %v132_v63  ;;  %v11785_v41 = vsub.f32 %v11748_v14, %v132_v63  ;;  %v7325_v10 = vor.u32 %v10625_v30, %v7324_v29  ;;  %v8404_v15 = vld [vmem:[#allocation8 + $0xa20] sm:$0xf]  ;;  %v10895_v16 = vld [vmem:[#allocation8 + $0xa64] sm:$0xf0]  ;;  %v10733_v30 = vld [vmem:[#allocation8 + $0x554] sm:$0xf0] }
  0x9b   :  { %v146_v28 = vmul.f32 %v11764_v19, %v11764_v19  ;;  %v147_v0 = vmul.f32 %v11767_v21, %v11767_v21  ;;  %v148_v35 = vmul.f32 %v11770_v22, %v11770_v22  ;;  %v149_v43 = vmul.f32 %v11773_v27, %v11773_v27 }
  0x9c   :  { %5507 = vmatpush.bf16.msra.mxu1 %v7973_v1  ;;  %v7901_v45 = vor.u32 %v10769_v3, %v7900_v33  ;;  %v150_v46 = vmul.f32 %v11780_v2, %v11780_v2  ;;  %v151_v53 = vmul.f32 %v11785_v41, %v11785_v41  ;;  %5494 = vmatpush.bf16.msra.mxu0 %v7325_v10  ;;  %v7756_v1 = vld [vmem:[#allocation8 + $0x510] sm:$0xf]  ;;  %v10715_v10 = vld [vmem:[#allocation8 + $0x4c4] sm:$0xf0] }
  0x9d   :  { %v158_v36 = vadd.f32 %v147_v0, %v146_v28  ;;  %v8405_v23 = vor.u32 %v10895_v16, %v8404_v15  ;;  %v7180_v28 = vld [vmem:[#allocation8 + $0x90] sm:$0xf]  ;;  %v10589_v0 = vld [vmem:[#allocation8 + $0xd4] sm:$0xf0]  ;;  %v7757_v33 = vor.u32 %v10733_v30, %v7756_v1  ;;  %v8333_v3 = vor.u32 %v10877_v32, %v8332_v31  ;;  %v10814_v15 = vld [vmem:[#allocation8 + $0x7e4] sm:$0xf] }
  0x9e   :  { %v124_v40 = vpop.xlane.xlu0 %123  ;;  %v7181_v29 = vor.u32 %v10589_v0, %v7180_v28  ;;  %v8118_v16 = vld [vmem:[#allocation8 + $0x828] sm:$0xf0]  ;;  %v9773_v28 = vor.u32 %v11237_v25, %v9772_v24  ;;  %v11381_v0 = vld [vmem:[#allocation8 + $0x1994] sm:$0xf0]  ;;  %v10652_v1 = vld [vmem:[#allocation8 + $0x2d4] sm:$0xf] }
  0x9f   :  { %v133_v42 = vmul.f32 %v11760_v49, %v124_v40  ;;  %v159_v44 = vadd.f32 %v158_v36, %v148_v35  ;;  %5523 = vmatpush.bf16.msra.mxu2 %v8405_v23  ;;  %v11021_v35 = vld [vmem:[#allocation8 + $0xe54] sm:$0xf0]  ;;  %v7109_v40 = vor.u32 %v10571_v38, %v7108_v37  ;;  %v8121_v23 = vor.u32 %v10814_v15, %v8118_v16  ;;  %v10796_v32 = vld [vmem:[#allocation8 + $0x754] sm:$0xf]  ;;  %v11363_v38 = vld [vmem:[#allocation8 + $0x1904] sm:$0xf0] }
  0xa0   :  { %5508 = vmatpush.bf16.msra.mxu1 %v7901_v45  ;;  %5495 = vmatpush.bf16.msra.mxu0 %v7253_v13  ;;  %v8909_v36 = vor.u32 %v11021_v35, %v8908_v34  ;;  %v10421_v13 = vor.u32 %v11399_v9, %v10420_v8  ;;  %v10349_v30 = vor.u32 %v11381_v0, %v10348_v26  ;;  %v9700_v34 = vld [vmem:[#allocation8 + $0x1440] sm:$0xf]  ;;  %v11219_v35 = vld [vmem:[#allocation8 + $0x1484] sm:$0xf0]  ;;  %v7254_v8 = vld [vmem:[#allocation8 + $0x168] sm:$0xf0] }
  0xa1   :  { %v160_v50 = vadd.f32 %v159_v44, %v149_v43  ;;  %v11793_v14 = vsub.f32 %v11733_v5, %v133_v42  ;;  %v11796_v51 = vsub.f32 %v11735_v6, %v133_v42  ;;  %v11799_v52 = vsub.f32 %v11737_v7, %v133_v42  ;;  %v10859_v43 = vld [vmem:[#allocation8 + $0x944] sm:$0xf0]  ;;  %v10060_v24 = vld [vmem:[#allocation8 + $0x1710] sm:$0xf]  ;;  %v10580_v0 = vld [vmem:[#allocation8 + $0x94] sm:$0xf] }
  0xa2   :  { %v11804_v55 = vsub.f32 %v11744_v11, %v133_v42  ;;  %v11811_v7 = vsub.f32 %v11752_v17, %v133_v42  ;;  %v11816_v11 = vsub.f32 %v11756_v20, %v133_v42  ;;  %v10751_v20 = vld [vmem:[#allocation8 + $0x5e4] sm:$0xf0]  ;;  %5538 = vmatpush.bf16.msra.mxu3 %v8909_v36  ;;  %v8260_v42 = vld [vmem:[#allocation8 + $0x900] sm:$0xf]  ;;  %v7685_v44 = vor.u32 %v10715_v10, %v7684_v39  ;;  %v10634_v39 = vld [vmem:[#allocation8 + $0x244] sm:$0xf] }
  0xa3   :  { %v161_v54 = vadd.f32 %v160_v50, %v150_v46  ;;  %v152_v56 = vmul.f32 %v11793_v14, %v11793_v14  ;;  %v153_v5 = vmul.f32 %v11796_v51, %v11796_v51  ;;  %v154_v57 = vmul.f32 %v11799_v52, %v11799_v52  ;;  %5524 = vmatpush.bf16.msra.mxu2 %v8333_v3  ;;  %v8836_v46 = vld [vmem:[#allocation8 + $0xd80] sm:$0xf] }
  0xa4   :  { %v155_v59 = vmul.f32 %v11804_v55, %v11804_v55  ;;  %v156_v61 = vmul.f32 %v11811_v7, %v11811_v7  ;;  %v157_v17 = vmul.f32 %v11816_v11, %v11816_v11  ;;  %v7829_v18 = vor.u32 %v10751_v20, %v7828_v12  ;;  %5496 = vmatpush.bf16.msra.mxu0 %v7181_v29  ;;  %v10670_v12 = vld [vmem:[#allocation8 + $0x364] sm:$0xf]  ;;  %v7542_v20 = vld [vmem:[#allocation8 + $0x3a8] sm:$0xf0]  ;;  %v7470_v29 = vld [vmem:[#allocation8 + $0x318] sm:$0xf0] }
  0xa5   :  { %v162_v6 = vadd.f32 %v161_v54, %v151_v53  ;;  %v165_v58 = vadd.f32 %v153_v5, %v152_v56  ;;  %v8261_v45 = vor.u32 %v10859_v43, %v8260_v42  ;;  %v8837_v50 = vor.u32 %v11003_v47, %v8836_v46  ;;  %v11273_v53 = vld [vmem:[#allocation8 + $0x1634] sm:$0xf0]  ;;  %v10492_v54 = vld [vmem:[#allocation8 + $0x1a70] sm:$0xf]  ;;  %v10276_v36 = vld [vmem:[#allocation8 + $0x18c0] sm:$0xf] }
  0xa6   :  { %5509 = vmatpush.bf16.msra.mxu1 %v7829_v18  ;;  %v11417_v56 = vld [vmem:[#allocation8 + $0x1ab4] sm:$0xf0]  ;;  %v9917_v5 = vor.u32 %v11273_v53, %v9916_v48  ;;  %v7545_v18 = vor.u32 %v10670_v12, %v7542_v20  ;;  %v7473_v31 = vor.u32 %v10652_v1, %v7470_v29  ;;  %v9701_v37 = vor.u32 %v11219_v35, %v9700_v34  ;;  %v10778_v43 = vld [vmem:[#allocation8 + $0x6c4] sm:$0xf]  ;;  %v9628_v46 = vld [vmem:[#allocation8 + $0x13b0] sm:$0xf] }
  0xa7   :  { %163 = vadd.xlane.f32.xlu1 %v162_v6  ;;  %v166_v60 = vadd.f32 %v165_v58, %v154_v57  ;;  %5525 = vmatpush.bf16.msra.mxu2 %v8261_v45  ;;  %v10493_v6 = vor.u32 %v11417_v56, %v10492_v54  ;;  %v10688_v57 = vld [vmem:[#allocation8 + $0x3f4] sm:$0xf]  ;;  %v7614_v58 = vld [vmem:[#allocation8 + $0x438] sm:$0xf0]  ;;  %v10277_v10 = vor.u32 %v11363_v38, %v10276_v36  ;;  %v11201_v47 = vld [vmem:[#allocation8 + $0x13f4] sm:$0xf0] }
  0xa8   :  { %5497 = vmatpush.bf16.msra.mxu0 %v7109_v40  ;;  %5539 = vmatpush.bf16.msra.mxu3 %v8837_v50  ;;  %v7398_v40 = vld [vmem:[#allocation8 + $0x288] sm:$0xf0]  ;;  %v10204_v48 = vld [vmem:[#allocation8 + $0x1830] sm:$0xf]  ;;  %v9629_v50 = vor.u32 %v11201_v47, %v9628_v46  ;;  %v11345_v53 = vld [vmem:[#allocation8 + $0x1874] sm:$0xf0] }
  0xa9   :  { %v167_v62 = vadd.f32 %v166_v60, %v155_v59  ;;  %v10832_v59 = vld [vmem:[#allocation8 + $0x874] sm:$0xf]  ;;  %v7617_v60 = vor.u32 %v10688_v57, %v7614_v58  ;;  %v7401_v42 = vor.u32 %v10634_v39, %v7398_v40  ;;  %v7326_v56 = vld [vmem:[#allocation8 + $0x1f8] sm:$0xf0]  ;;  %v7830_v20 = vld [vmem:[#allocation8 + $0x5e8] sm:$0xf0] }
  0xaa   :  { %5510 = vmatpush.bf16.msra.mxu1 %v7757_v33  ;;  %v8046_v33 = vld [vmem:[#allocation8 + $0x798] sm:$0xf0]  ;;  %v10616_v54 = vld [vmem:[#allocation8 + $0x1b4] sm:$0xf]  ;;  %v9412_v34 = vld [vmem:[#allocation8 + $0x1200] sm:$0xf] }
  0xab   :  { %v168_v63 = vadd.f32 %v167_v62, %v156_v61  ;;  %v8190_v61 = vld [vmem:[#allocation8 + $0x8b8] sm:$0xf0]  ;;  %v9844_v62 = vld [vmem:[#allocation8 + $0x1560] sm:$0xf]  ;;  %5574 = vmatpush.bf16.msrb.mxu2 %v7617_v60  ;;  %v8049_v3 = vor.u32 %v10796_v32, %v8046_v33  ;;  %v10760_v57 = vld [vmem:[#allocation8 + $0x634] sm:$0xf] }
  0xac   :  { %5546 = vmatpush.bf16.msrb.mxu0 %v9917_v5  ;;  %v10205_v5 = vor.u32 %v11345_v53, %v10204_v48  ;;  %v7902_v58 = vld [vmem:[#allocation8 + $0x678] sm:$0xf0]  ;;  %v9556_v60 = vld [vmem:[#allocation8 + $0x1320] sm:$0xf]  ;;  %v11147_v35 = vld [vmem:[#allocation8 + $0x1244] sm:$0xf0] }
  0xad   :  { %v169_v4 = vadd.f32 %v168_v63, %v157_v17  ;;  %v11255_v17 = vld [vmem:[#allocation8 + $0x15a4] sm:$0xf0]  ;;  %v8193_v63 = vor.u32 %v10832_v59, %v8190_v61  ;;  %v7905_v59 = vor.u32 %v10760_v57, %v7902_v58  ;;  %v7182_v1 = vld [vmem:[#allocation8 + $0xd8] sm:$0xf0]  ;;  %v9988_v36 = vld [vmem:[#allocation8 + $0x1680] sm:$0xf] }
  0xae   :  { %5511 = vmatpush.bf16.msra.mxu1 %v7685_v44  ;;  %v7974_v44 = vld [vmem:[#allocation8 + $0x708] sm:$0xf0]  ;;  %v11183_v61 = vld [vmem:[#allocation8 + $0x1364] sm:$0xf0]  ;;  %v7758_v32 = vld [vmem:[#allocation8 + $0x558] sm:$0xf0] }
  0xaf   :  { %170 = vadd.xlane.f32.xlu1 %v169_v4  ;;  %v9845_v4 = vor.u32 %v11255_v17, %v9844_v62  ;;  %5588 = vmatpush.bf16.msrb.mxu3 %v8193_v63  ;;  %v7977_v45 = vor.u32 %v10778_v43, %v7974_v44  ;;  %v10132_v62 = vld [vmem:[#allocation8 + $0x17a0] sm:$0xf]  ;;  %v9557_v17 = vor.u32 %v11183_v61, %v9556_v60  ;;  %v11327_v63 = vld [vmem:[#allocation8 + $0x17e4] sm:$0xf0]  ;;  %v10562_v39 = vld [vmem:[#allocation8 + $0x4] sm:$0xf] }
  0xb0   :  { %5575 = vmatpush.bf16.msrb.mxu2 %v7545_v18  ;;  %v10133_v9 = vor.u32 %v11327_v63, %v10132_v62  ;;  %v9484_v18 = vld [vmem:[#allocation8 + $0x1290] sm:$0xf]  ;;  %v11291_v38 = vld [vmem:[#allocation8 + $0x16c4] sm:$0xf0]  ;;  %v7110_v40 = vld [vmem:[#allocation8 + $0x48] sm:$0xf0] }
  0xb1   :  { %5547 = vmatpush.bf16.msrb.mxu0 %v9845_v4  ;;  %v10598_v4 = vld [vmem:[#allocation8 + $0x124] sm:$0xf]  ;;  %v7686_v44 = vld [vmem:[#allocation8 + $0x4c8] sm:$0xf0]  ;;  %v11832_v63 = vld [vmem:[#allocation7] sm:$0x3f] }
  0xb2   :  { %5560 = vmatpush.bf16.msrb.mxu1 %v10493_v6  ;;  %v7329_v6 = vor.u32 %v10616_v54, %v7326_v56  ;;  %v7257_v12 = vor.u32 %v10598_v4, %v7254_v8  ;;  %v10706_v43 = vld [vmem:[#allocation8 + $0x484] sm:$0xf] }
  0xb3   :  { %5589 = vmatpush.bf16.msrb.mxu3 %v8121_v23  ;;  %v11165_v23 = vld [vmem:[#allocation8 + $0x12d4] sm:$0xf0] }
  0xb4   :  { %5576 = vmatpush.bf16.msrb.mxu2 %v7473_v31  ;;  %v9485_v26 = vor.u32 %v11165_v23, %v9484_v18  ;;  %v10724_v31 = vld [vmem:[#allocation8 + $0x514] sm:$0xf]  ;;  %v235_v23 = vperm.slane %v11832_v63, 1 }
  0xb5   :  { %5548 = vmatpush.bf16.msrb.mxu0 %v9773_v28  ;;  %v11309_v28 = vld [vmem:[#allocation8 + $0x1754] sm:$0xf0] }
  0xb6   :  { %5561 = vmatpush.bf16.msrb.mxu1 %v10421_v13  ;;  %v10742_v13 = vld [vmem:[#allocation8 + $0x5a4] sm:$0xf]  ;;  %v10061_v29 = vor.u32 %v11309_v28, %v10060_v24  ;;  %v236_v24 = vperm.slane %v11832_v63, 2 }
  0xb7   :  { %5590 = vmatpush.bf16.msrb.mxu3 %v8049_v3  ;;  %v7833_v15 = vor.u32 %v10742_v13, %v7830_v20  ;;  %v7761_v3 = vor.u32 %v10724_v31, %v7758_v32 }
  0xb8   :  { %5577 = vmatpush.bf16.msrb.mxu2 %v7401_v42  ;;  %v7113_v42 = vor.u32 %v10562_v39, %v7110_v40 }
  0xb9   :  { %5549 = vmatpush.bf16.msrb.mxu0 %v9701_v37  ;;  %v9413_v37 = vor.u32 %v11147_v35, %v9412_v34  ;;  %v8766_v34 = vld [vmem:[#allocation8 + $0xd38] sm:$0xf0]  ;;  %v11120_v35 = vld [vmem:[#allocation8 + $0x1174] sm:$0xf] }
  0xba   :  { %5562 = vmatpush.bf16.msrb.mxu1 %v10349_v30  ;;  %v7185_v30 = vor.u32 %v10580_v0, %v7182_v1 }
  0xbb   :  { %5591 = vmatpush.bf16.msrb.mxu3 %v7977_v45  ;;  %v7689_v45 = vor.u32 %v10706_v43, %v7686_v44  ;;  %v11408_v44 = vld [vmem:[#allocation8 + $0x1a74] sm:$0xf] }
  0xbc   :  { %5578 = vmatpush.bf16.msrb.mxu2 %v7329_v6 }
  0xbd   :  { %5550 = vmatpush.bf16.msrb.mxu0 %v9629_v50 }
  0xbe   :  { %5563 = vmatpush.bf16.msrb.mxu1 %v10277_v10  ;;  %v9989_v10 = vor.u32 %v11291_v38, %v9988_v36  ;;  %v9342_v36 = vld [vmem:[#allocation8 + $0x11b8] sm:$0xf0] }
  0xbf   :  { %5592 = vmatpush.bf16.msrb.mxu3 %v7905_v59  ;;  %v11826_v59 = vld [vmem:[#allocation5] sm:$0x3f] }
  0xc0   :  { %5579 = vmatpush.bf16.msrb.mxu2 %v7257_v12  ;;  %v209_v61 = vperm.slane %v11826_v59, 0  ;;  %v210_v62 = vperm.slane %v11826_v59, 1  ;;  %v211_v4 = vperm.slane %v11826_v59, 2  ;;  %v212_v8 = vperm.slane %v11826_v59, 3 }
  0xc1   :  { %5551 = vmatpush.bf16.msrb.mxu0 %v9557_v17 }
  0xc2   :  { %5564 = vmatpush.bf16.msrb.mxu1 %v10205_v5 }
  0xc3   :  { %5593 = vmatpush.bf16.msrb.mxu3 %v7833_v15 }
  0xc4   :  { %5580 = vmatpush.bf16.msrb.mxu2 %v7185_v30  ;;  %v10976_v30 = vld [vmem:[#allocation8 + $0xcf4] sm:$0xf] }
  0xc5   :  { %5552 = vmatpush.bf16.msrb.mxu0 %v9485_v26 }
  0xc6   :  { %5565 = vmatpush.bf16.msrb.mxu1 %v10133_v9 }
  0xc7   :  { %5594 = vmatpush.bf16.msrb.mxu3 %v7761_v3 }
  0xc8   :  { %5581 = vmatpush.bf16.msrb.mxu2 %v7113_v42 }
  0xc9   :  { %5553 = vmatpush.bf16.msrb.mxu0 %v9413_v37 }
  0xca   :  { %5566 = vmatpush.bf16.msrb.mxu1 %v10061_v29 }
  0xcb   :  { %5595 = vmatpush.bf16.msrb.mxu3 %v7689_v45  ;;  %v8769_v45 = vor.u32 %v10976_v30, %v8766_v34  ;;  %v10922_v30 = vld [vmem:[#allocation8 + $0xb44] sm:$0xf] }
  0xce   :  { %5567 = vmatpush.bf16.msrb.mxu1 %v9989_v10  ;;  %v11264_v10 = vld [vmem:[#allocation8 + $0x15f4] sm:$0xf] }
 0x11a   :  { %v164_v16 = vpop.xlane.xlu1 %163 }
 0x11b   :  { %v172_v25 = vmul.f32 %v164_v16, %v11760_v49  ;;  %v234_v16 = vperm.slane %v11832_v63, 0 }
 0x11d   :  { %v174_v33 = vadd.f32 1e-05, %v172_v25 }
 0x11f   :  { %11443 = vrsqrt.f32 %v174_v33  ;;  %vm182_vm2 = vweird.f32 %v174_v33 }
 0x122   :  { %v171_v46 = vpop.xlane.xlu1 %170 }
 0x123   :  { %v173_v47 = vmul.f32 %v171_v46, %v11760_v49  ;;  %v9345_v46 = vor.u32 %v11120_v35, %v9342_v36  ;;  %v9702_v35 = vld [vmem:[#allocation8 + $0x1488] sm:$0xf0]  ;;  %v11354_v36 = vld [vmem:[#allocation8 + $0x18c4] sm:$0xf] }
 0x125   :  { %v11444_v48 = vpop.eup %11443  ;;  %v175_v50 = vadd.f32 1e-05, %v173_v47 }
 0x126   :  { %v177_v53 = vmul.f32 %v11444_v48, %v174_v33  ;;  %vm183_vm1 = vweird.f32 %v11444_v48 }
 0x127   :  { %11445 = vrsqrt.f32 %v175_v50  ;;  %vm184_vm3 = vmor %vm182_vm2, %vm183_vm1  ;;  %vm192_vm5 = vweird.f32 %v175_v50 }
 0x128   :  { %v178_v54 = vmul.f32 %v11444_v48, %v177_v53 }
 0x12a   :  { %v179_v56 = vmul.f32 0.5, %v178_v54  ;;  %v10958_v54 = vld [vmem:[#allocation8 + $0xc64] sm:$0xf] }
 0x12c   :  { %v180_v5 = vsub.f32 1.5, %v179_v56  ;;  %v8694_v56 = vld [vmem:[#allocation8 + $0xca8] sm:$0xf0] }
 0x12d   :  { %v11446_v6 = vpop.eup %11445 }
 0x12e   :  { %v181_v57 = vmul.f32 %v11444_v48, %v180_v5  ;;  %v187_v58 = vmul.f32 %v11446_v6, %v175_v50  ;;  %vm193_vm4 = vweird.f32 %v11446_v6 }
 0x12f   :  { %vm194_vm6 = vmor %vm192_vm5, %vm193_vm4 }
 0x130   :  { %v11828_v49 = vsel %vm184_vm3, %v11444_v48, %v181_v57  ;;  %v188_v60 = vmul.f32 %v11446_v6, %v187_v58  ;;  %v11102_v57 = vld [vmem:[#allocation8 + $0x10e4] sm:$0xf]  ;;  %v9270_v58 = vld [vmem:[#allocation8 + $0x1128] sm:$0xf0] }
 0x131   :  { %v196_v9 = vmul.f32 %v11828_v49, %v11764_v19  ;;  %v197_v12 = vmul.f32 %v11828_v49, %v11767_v21  ;;  %v198_v13 = vmul.f32 %v11828_v49, %v11770_v22  ;;  %v199_v20 = vmul.f32 %v11828_v49, %v11773_v27 }
 0x132   :  { %v189_v17 = vmul.f32 0.5, %v188_v60  ;;  %v237_v19 = vperm.slane %v11832_v63, 3  ;;  %v11246_v60 = vld [vmem:[#allocation8 + $0x1564] sm:$0xf] }
 0x133   :  { %v221_v25 = vmul.f32 %v209_v61, %v196_v9  ;;  %v222_v21 = vmul.f32 %v210_v62, %v197_v12  ;;  %v223_v26 = vmul.f32 %v211_v4, %v198_v13  ;;  %v224_v28 = vmul.f32 %v212_v8, %v199_v20 }
 0x134   :  { %v190_v15 = vsub.f32 1.5, %v189_v17  ;;  %v10422_v17 = vld [vmem:[#allocation8 + $0x1a28] sm:$0xf0]  ;;  %v214_v9 = vperm.slane %v11826_v59, 5  ;;  %v9273_v20 = vor.u32 %v11102_v57, %v9270_v58 }
 0x135   :  { %v246_v37 = vadd.f32 %v234_v16, %v221_v25  ;;  %v247_v38 = vadd.f32 %v235_v23, %v222_v21  ;;  %v248_v39 = vadd.f32 %v236_v24, %v223_v26  ;;  %v249_v40 = vadd.f32 %v237_v19, %v224_v28  ;;  %v11228_v25 = vld [vmem:[#allocation8 + $0x14d4] sm:$0xf]  ;;  %v10350_v26 = vld [vmem:[#allocation8 + $0x1998] sm:$0xf0] }
 0x136   :  { %v191_v18 = vmul.f32 %v11446_v6, %v190_v15  ;;  %v10940_v15 = vld [vmem:[#allocation8 + $0xbd4] sm:$0xf]  ;;  %v200_v21 = vmul.f32 %v11828_v49, %v11780_v2  ;;  %v238_v28 = vperm.slane %v11832_v63, 4 }
 0x138   :  { %v195_v22 = vsel %vm194_vm6, %v11446_v6, %v191_v18 }
 0x139   :  { %v202_v0 = vmul.f32 %v195_v22, %v11793_v14  ;;  %v203_v27 = vmul.f32 %v195_v22, %v11796_v51  ;;  %v204_v1 = vmul.f32 %v195_v22, %v11799_v52  ;;  %v205_v29 = vmul.f32 %v195_v22, %v11804_v55  ;;  %v9918_v52 = vld [vmem:[#allocation8 + $0x1638] sm:$0xf0] }
 0x13a   :  { %v10494_v55 = vld [vmem:[#allocation8 + $0x1ab8] sm:$0xf0]  ;;  %v9921_v5 = vor.u32 %v11264_v10, %v9918_v52  ;;  %v206_v12 = vmul.f32 %v195_v22, %v11811_v7  ;;  %v207_v13 = vmul.f32 %v195_v22, %v11816_v11  ;;  %v201_v7 = vmul.f32 %v11828_v49, %v11785_v41  ;;  %v11372_v11 = vld [vmem:[#allocation8 + $0x1954] sm:$0xf]  ;;  %v11066_v41 = vld [vmem:[#allocation8 + $0xfc4] sm:$0xf] }
 0x13b   :  { %v227_v31 = vmul.f32 %v209_v61, %v202_v0  ;;  %v228_v32 = vmul.f32 %v210_v62, %v203_v27  ;;  %v229_v33 = vmul.f32 %v211_v4, %v204_v1  ;;  %v230_v3 = vmul.f32 %v212_v8, %v205_v29  ;;  %v9846_v61 = vld [vmem:[#allocation8 + $0x15a8] sm:$0xf0]  ;;  %v11390_v62 = vld [vmem:[#allocation8 + $0x19e4] sm:$0xf]  ;;  %v10904_v10 = vld [vmem:[#allocation8 + $0xab4] sm:$0xf] }
 0x13c   :  { %v10497_v6 = vor.u32 %v11408_v44, %v10494_v55  ;;  %v213_v4 = vperm.slane %v11826_v59, 4  ;;  %v8697_v8 = vor.u32 %v10958_v54, %v8694_v56  ;;  %v9849_v18 = vor.u32 %v11246_v60, %v9846_v61  ;;  %v9774_v59 = vld [vmem:[#allocation8 + $0x1518] sm:$0xf0]  ;;  %v9126_v49 = vld [vmem:[#allocation8 + $0x1008] sm:$0xf0] }
 0x13d   :  { %v252_v14 = vadd.f32 %v234_v16, %v227_v31  ;;  %v253_v42 = vadd.f32 %v235_v23, %v228_v32  ;;  %v254_v51 = vadd.f32 %v236_v24, %v229_v33  ;;  %v255_v43 = vadd.f32 %v237_v19, %v230_v3  ;;  %v8622_v16 = vld [vmem:[#allocation8 + $0xc18] sm:$0xf0]  ;;  %v11084_v24 = vld [vmem:[#allocation8 + $0x1054] sm:$0xf]  ;;  %v8550_v31 = vld [vmem:[#allocation8 + $0xb88] sm:$0xf0] }
 0x13e   :  { %v10425_v23 = vor.u32 %v11390_v62, %v10422_v17  ;;  %v9198_v19 = vld [vmem:[#allocation8 + $0x1098] sm:$0xf0]  ;;  %v8625_v22 = vor.u32 %v10940_v15, %v8622_v16  ;;  %v239_v0 = vperm.slane %v11832_v63, 5  ;;  %v231_v27 = vmul.f32 %v213_v4, %v206_v12  ;;  %v11210_v33 = vld [vmem:[#allocation8 + $0x1444] sm:$0xf] }
 0x13f   :  { %v11852_v47 = vpack.c.bf16 %v252_v14, %v246_v37  ;;  %v11854_v48 = vpack.c.bf16 %v253_v42, %v247_v38  ;;  %v11856_v50 = vpack.c.bf16 %v254_v51, %v248_v39  ;;  %v11858_v53 = vpack.c.bf16 %v255_v43, %v249_v40  ;;  %v10278_v37 = vld [vmem:[#allocation8 + $0x1908] sm:$0xf0]  ;;  %v8478_v14 = vld [vmem:[#allocation8 + $0xaf8] sm:$0xf0]  ;;  %v11048_v43 = vld [vmem:[#allocation8 + $0xf34] sm:$0xf] }
 0x140   :  { %v232_v1 = vmul.f32 %v214_v9, %v207_v13  ;;  %v9201_v29 = vor.u32 %v11084_v24, %v9198_v19  ;;  %v9777_v2 = vor.u32 %v11228_v25, %v9774_v59  ;;  %v10353_v32 = vor.u32 %v11372_v11, %v10350_v26  ;;  %v9054_v52 = vld [vmem:[#allocation8 + $0xf78] sm:$0xf0]  ;;  %v11192_v44 = vld [vmem:[#allocation8 + $0x13b4] sm:$0xf]  ;;  %v10886_v60 = vld [vmem:[#allocation8 + $0xa24] sm:$0xf] }
 0x141   :  { %5498 = vmatmul.bf16.vlgmr.msra.gmra.mxu0 %v11852_v47  ;;  %5512 = vmatmul.bf16.vlgmr.msra.gmra.mxu1 %v11854_v48  ;;  %v225_v3 = vmul.f32 %v213_v4, %v200_v21  ;;  %v226_v34 = vmul.f32 %v214_v9, %v201_v7  ;;  %v8553_v63 = vor.u32 %v10922_v30, %v8550_v31  ;;  %v11336_v54 = vld [vmem:[#allocation8 + $0x1834] sm:$0xf]  ;;  %v10206_v56 = vld [vmem:[#allocation8 + $0x1878] sm:$0xf0]  ;;  %v8406_v61 = vld [vmem:[#allocation8 + $0xa68] sm:$0xf0] }
 0x142   :  { %5526 = vmatmul.bf16.vlgmr.msra.gmra.mxu2 %v11856_v50  ;;  %5540 = vmatmul.bf16.vlgmr.msra.gmra.mxu3 %v11858_v53  ;;  %v256_v38 = vadd.f32 %v238_v28, %v231_v27  ;;  %v257_v39 = vadd.f32 %v239_v0, %v232_v1  ;;  %v9129_v40 = vor.u32 %v11066_v41, %v9126_v49  ;;  %v11030_v4 = vld [vmem:[#allocation8 + $0xea4] sm:$0xf]  ;;  %v9558_v12 = vld [vmem:[#allocation8 + $0x1368] sm:$0xf0]  ;;  %v11012_v25 = vld [vmem:[#allocation8 + $0xe14] sm:$0xf] }
 0x143   :  { %5602 = vmatpush.bf16.msra.mxu0 %v8769_v45  ;;  %5616 = vmatpush.bf16.msra.mxu1 %v9345_v46  ;;  %v9705_v42 = vor.u32 %v11210_v33, %v9702_v35  ;;  %v10281_v51 = vor.u32 %v11354_v36, %v10278_v37  ;;  %v250_v55 = vadd.f32 %v238_v28, %v225_v3  ;;  %v9630_v46 = vld [vmem:[#allocation8 + $0x13f8] sm:$0xf0]  ;;  %v11174_v9 = vld [vmem:[#allocation8 + $0x1324] sm:$0xf]  ;;  %v11156_v7 = vld [vmem:[#allocation8 + $0x1294] sm:$0xf] }
 0x144   :  { %5630 = vmatpush.bf16.msra.mxu2 %v9921_v5  ;;  %5644 = vmatpush.bf16.msra.mxu3 %v10497_v6  ;;  %v251_v45 = vadd.f32 %v239_v0, %v226_v34  ;;  %v8481_v5 = vor.u32 %v10904_v10, %v8478_v14  ;;  %v9057_v58 = vor.u32 %v11048_v43, %v9054_v52  ;;  %v11318_v13 = vld [vmem:[#allocation8 + $0x17a4] sm:$0xf]  ;;  %v8910_v21 = vld [vmem:[#allocation8 + $0xe58] sm:$0xf0]  ;;  %v11300_v11 = vld [vmem:[#allocation8 + $0x1714] sm:$0xf] }
 0x145   :  { %v11874_v6 = vpack.c.bf16 %v256_v38, %v250_v55  ;;  %v9633_v62 = vor.u32 %v11192_v44, %v9630_v46  ;;  %v10209_v17 = vor.u32 %v11336_v54, %v10206_v56  ;;  %v8409_v15 = vor.u32 %v10886_v60, %v8406_v61  ;;  %v9486_v59 = vld [vmem:[#allocation8 + $0x12d8] sm:$0xf0]  ;;  %v10850_v28 = vld [vmem:[#allocation8 + $0x904] sm:$0xf]  ;;  %v8262_v27 = vld [vmem:[#allocation8 + $0x948] sm:$0xf0] }
 0x146   :  { %v11876_v57 = vpack.c.bf16 %v257_v39, %v251_v45  ;;  %v9561_v24 = vor.u32 %v11174_v9, %v9558_v12  ;;  %v10062_v26 = vld [vmem:[#allocation8 + $0x1758] sm:$0xf0]  ;;  %v8913_v0 = vor.u32 %v11012_v25, %v8910_v21  ;;  %v10994_v1 = vld [vmem:[#allocation8 + $0xd84] sm:$0xf]  ;;  %v9489_v30 = vor.u32 %v11156_v7, %v9486_v59  ;;  %v9990_v49 = vld [vmem:[#allocation8 + $0x16c8] sm:$0xf0] }
 0x147   :  { %5603 = vmatpush.bf16.msra.mxu0 %v8697_v8  ;;  %5617 = vmatpush.bf16.msra.mxu1 %v9273_v20  ;;  %v8982_v8 = vld [vmem:[#allocation8 + $0xee8] sm:$0xf0]  ;;  %v10065_v31 = vor.u32 %v11300_v11, %v10062_v26  ;;  %v11282_v41 = vld [vmem:[#allocation8 + $0x1684] sm:$0xf]  ;;  %v7620_v33 = vld [vmem:[#allocation8 + $0x3f8] sm:$0xf]  ;;  %v8265_v37 = vor.u32 %v10850_v28, %v8262_v27 }
 0x148   :  { %5631 = vmatpush.bf16.msra.mxu2 %v9849_v18  ;;  %5645 = vmatpush.bf16.msra.mxu3 %v10425_v23  ;;  %v10134_v20 = vld [vmem:[#allocation8 + $0x17e8] sm:$0xf0]  ;;  %v8985_v16 = vor.u32 %v11030_v4, %v8982_v8  ;;  %v10868_v18 = vld [vmem:[#allocation8 + $0x994] sm:$0xf]  ;;  %v8334_v23 = vld [vmem:[#allocation8 + $0x9d8] sm:$0xf0]  ;;  %v9993_v14 = vor.u32 %v11282_v41, %v9990_v49 }
 0x149   :  { %v10137_v19 = vor.u32 %v11318_v13, %v10134_v20  ;;  %v10698_v3 = vld [vmem:[#allocation8 + $0x43c] sm:$0xf0]  ;;  %v8196_v34 = vld [vmem:[#allocation8 + $0x878] sm:$0xf]  ;;  %v7548_v43 = vld [vmem:[#allocation8 + $0x368] sm:$0xf] }
 0x14a   :  { %v10842_v35 = vld [vmem:[#allocation8 + $0x8bc] sm:$0xf0]  ;;  %v8772_v36 = vld [vmem:[#allocation8 + $0xcf8] sm:$0xf]  ;;  %v10680_v52 = vld [vmem:[#allocation8 + $0x3ac] sm:$0xf0] }
 0x14b   :  { %5604 = vmatpush.bf16.msra.mxu0 %v8625_v22  ;;  %5618 = vmatpush.bf16.msra.mxu1 %v9201_v29  ;;  %v8337_v22 = vor.u32 %v10868_v18, %v8334_v23  ;;  %v8838_v29 = vld [vmem:[#allocation8 + $0xdc8] sm:$0xf0]  ;;  %v10986_v38 = vld [vmem:[#allocation8 + $0xd3c] sm:$0xf0]  ;;  %v9348_v39 = vld [vmem:[#allocation8 + $0x1178] sm:$0xf]  ;;  %v7549_v60 = vor.u32 %v10680_v52, %v7548_v43 }
 0x14c   :  { %5632 = vmatpush.bf16.msra.mxu2 %v9777_v2  ;;  %5646 = vmatpush.bf16.msra.mxu3 %v10353_v32  ;;  %v11138_v2 = vld [vmem:[#allocation8 + $0x1204] sm:$0xf]  ;;  %v9414_v32 = vld [vmem:[#allocation8 + $0x1248] sm:$0xf0]  ;;  %v8773_v44 = vor.u32 %v10986_v38, %v8772_v36  ;;  %v8124_v45 = vld [vmem:[#allocation8 + $0x7e8] sm:$0xf] }
 0x14d   :  { %v9417_v10 = vor.u32 %v11138_v2, %v9414_v32  ;;  %v10824_v46 = vld [vmem:[#allocation8 + $0x82c] sm:$0xf0]  ;;  %v8700_v54 = vld [vmem:[#allocation8 + $0xc68] sm:$0xf]  ;;  %v8052_v9 = vld [vmem:[#allocation8 + $0x758] sm:$0xf] }
 0x14e   :  { %v10968_v56 = vld [vmem:[#allocation8 + $0xcac] sm:$0xf0]  ;;  %v8125_v61 = vor.u32 %v10824_v46, %v8124_v45  ;;  %v10806_v12 = vld [vmem:[#allocation8 + $0x79c] sm:$0xf0]  ;;  %v8628_v13 = vld [vmem:[#allocation8 + $0xbd8] sm:$0xf] }
 0x14f   :  { %5605 = vmatpush.bf16.msra.mxu0 %v8553_v63  ;;  %5619 = vmatpush.bf16.msra.mxu1 %v9129_v40  ;;  %v8841_v63 = vor.u32 %v10994_v1, %v8838_v29  ;;  %v11130_v40 = vld [vmem:[#allocation8 + $0x11bc] sm:$0xf0]  ;;  %v8701_v4 = vor.u32 %v10968_v56, %v8700_v54  ;;  %v8053_v23 = vor.u32 %v10806_v12, %v8052_v9  ;;  %v7980_v7 = vld [vmem:[#allocation8 + $0x6c8] sm:$0xf]  ;;  %v10788_v59 = vld [vmem:[#allocation8 + $0x70c] sm:$0xf0] }
 0x150   :  { %5633 = vmatpush.bf16.msra.mxu2 %v9705_v42  ;;  %5647 = vmatpush.bf16.msra.mxu3 %v10281_v51  ;;  %v7621_v42 = vor.u32 %v10698_v3, %v7620_v33  ;;  %v8197_v51 = vor.u32 %v10842_v35, %v8196_v34  ;;  %v9349_v55 = vor.u32 %v11130_v40, %v9348_v39  ;;  %v10950_v20 = vld [vmem:[#allocation8 + $0xc1c] sm:$0xf0]  ;;  %v8556_v11 = vld [vmem:[#allocation8 + $0xb48] sm:$0xf]  ;;  %v10932_v26 = vld [vmem:[#allocation8 + $0xb8c] sm:$0xf0] }
 0x151   :  { %5554 = vmatmul.bf16.vlgmr.msrb.gmra.mxu0 %v11874_v6  ;;  %5568 = vmatmul.bf16.vlgmr.msrb.gmra.mxu1 %v11876_v57  ;;  %v8629_v25 = vor.u32 %v10950_v20, %v8628_v13  ;;  %v9132_v28 = vld [vmem:[#allocation8 + $0xfc8] sm:$0xf]  ;;  %v7981_v27 = vor.u32 %v10788_v59, %v7980_v7  ;;  %v7332_v1 = vld [vmem:[#allocation8 + $0x1b8] sm:$0xf]  ;;  %v10626_v29 = vld [vmem:[#allocation8 + $0x1fc] sm:$0xf0] }
 0x152   :  { %5582 = vmatmul.bf16.vlgmr.msrb.gmra.mxu2 %v11852_v47  ;;  %5596 = vmatmul.bf16.vlgmr.msrb.gmra.mxu3 %v11854_v48  ;;  %v7908_v2 = vld [vmem:[#allocation8 + $0x638] sm:$0xf]  ;;  %v10770_v32 = vld [vmem:[#allocation8 + $0x67c] sm:$0xf0]  ;;  %v7333_v34 = vor.u32 %v10626_v29, %v7332_v1  ;;  %v7260_v36 = vld [vmem:[#allocation8 + $0x128] sm:$0xf] }
 0x153   :  { %5606 = vmatpush.bf16.msra.mxu0 %v8481_v5  ;;  %5620 = vmatpush.bf16.msra.mxu1 %v9057_v58  ;;  %v9276_v5 = vld [vmem:[#allocation8 + $0x10e8] sm:$0xf]  ;;  %v11112_v58 = vld [vmem:[#allocation8 + $0x112c] sm:$0xf0]  ;;  %v8484_v41 = vld [vmem:[#allocation8 + $0xab8] sm:$0xf]  ;;  %v7909_v35 = vor.u32 %v10770_v32, %v7908_v2 }
 0x154   :  { %5634 = vmatpush.bf16.msra.mxu2 %v9633_v62  ;;  %5648 = vmatpush.bf16.msra.mxu3 %v10209_v17  ;;  %v7476_v62 = vld [vmem:[#allocation8 + $0x2d8] sm:$0xf]  ;;  %v10662_v17 = vld [vmem:[#allocation8 + $0x31c] sm:$0xf0]  ;;  %v9277_v8 = vor.u32 %v11112_v58, %v9276_v5  ;;  %v7836_v39 = vld [vmem:[#allocation8 + $0x5a8] sm:$0xf] }
 0x155   :  { %v7477_v18 = vor.u32 %v10662_v17, %v7476_v62  ;;  %v10914_v49 = vld [vmem:[#allocation8 + $0xafc] sm:$0xf0]  ;;  %v9060_v33 = vld [vmem:[#allocation8 + $0xf38] sm:$0xf]  ;;  %v10752_v40 = vld [vmem:[#allocation8 + $0x5ec] sm:$0xf0] }
 0x156   :  { %v11058_v3 = vld [vmem:[#allocation8 + $0xf7c] sm:$0xf0]  ;;  %v7837_v52 = vor.u32 %v10752_v40, %v7836_v39  ;;  %v7764_v54 = vld [vmem:[#allocation8 + $0x518] sm:$0xf]  ;;  %v7116_v62 = vld [vmem:[#allocation8 + $0x8] sm:$0xf] }
 0x157   :  { %5607 = vmatpush.bf16.msra.mxu0 %v8409_v15  ;;  %5621 = vmatpush.bf16.msra.mxu1 %v8985_v16  ;;  %v9204_v15 = vld [vmem:[#allocation8 + $0x1058] sm:$0xf]  ;;  %v11094_v16 = vld [vmem:[#allocation8 + $0x109c] sm:$0xf0]  ;;  %v9061_v38 = vor.u32 %v11058_v3, %v9060_v33  ;;  %v7692_v9 = vld [vmem:[#allocation8 + $0x488] sm:$0xf] }
 0x158   :  { %5635 = vmatpush.bf16.msra.mxu2 %v9561_v24  ;;  %5649 = vmatpush.bf16.msra.mxu3 %v10137_v19  ;;  %v7404_v24 = vld [vmem:[#allocation8 + $0x248] sm:$0xf]  ;;  %v10644_v19 = vld [vmem:[#allocation8 + $0x28c] sm:$0xf0]  ;;  %v9205_v21 = vor.u32 %v11094_v16, %v9204_v15  ;;  %v10734_v56 = vld [vmem:[#allocation8 + $0x55c] sm:$0xf0] }
 0x159   :  { %v8340_v5 = vld [vmem:[#allocation8 + $0x998] sm:$0xf]  ;;  %v10878_v58 = vld [vmem:[#allocation8 + $0x9dc] sm:$0xf0]  ;;  %v10716_v12 = vld [vmem:[#allocation8 + $0x4cc] sm:$0xf0] }
 0x15a   :  { %v8341_v13 = vor.u32 %v10878_v58, %v8340_v5  ;;  %v8268_v15 = vld [vmem:[#allocation8 + $0x908] sm:$0xf]  ;;  %v10860_v16 = vld [vmem:[#allocation8 + $0x94c] sm:$0xf0]  ;;  %v10689_v7 = vld [vmem:[#allocation8 + $0x3fc] sm:$0xf] }
 0x15b   :  { %5608 = vmatpush.bf16.msra.mxu0 %v8337_v22  ;;  %5622 = vmatpush.bf16.msra.mxu1 %v8913_v0  ;;  %v11076_v22 = vld [vmem:[#allocation8 + $0x100c] sm:$0xf0]  ;;  %v7405_v0 = vor.u32 %v10644_v19, %v7404_v24  ;;  %v9924_v24 = vld [vmem:[#allocation8 + $0x15f8] sm:$0xf]  ;;  %v11274_v19 = vld [vmem:[#allocation8 + $0x163c] sm:$0xf0] }
 0x15c   :  { %5636 = vmatpush.bf16.msra.mxu2 %v9489_v30  ;;  %5650 = vmatpush.bf16.msra.mxu3 %v10065_v31  ;;  %v8557_v30 = vor.u32 %v10932_v26, %v8556_v11  ;;  %v9133_v31 = vor.u32 %v11076_v22, %v9132_v28  ;;  %v7693_v11 = vor.u32 %v10716_v12, %v7692_v9  ;;  %v7622_v26 = vld [vmem:[#allocation8 + $0x440] sm:$0xf0]  ;;  %v10833_v28 = vld [vmem:[#allocation8 + $0x87c] sm:$0xf]  ;;  %v10671_v33 = vld [vmem:[#allocation8 + $0x36c] sm:$0xf] }
 0x15d   :  { %v8198_v22 = vld [vmem:[#allocation8 + $0x8c0] sm:$0xf0]  ;;  %v9925_v1 = vor.u32 %v11274_v19, %v9924_v24  ;;  %v7625_v2 = vor.u32 %v10689_v7, %v7622_v26  ;;  %v7550_v3 = vld [vmem:[#allocation8 + $0x3b0] sm:$0xf0]  ;;  %v10284_v5 = vld [vmem:[#allocation8 + $0x18c8] sm:$0xf] }
 0x15e   :  { %v8201_v32 = vor.u32 %v10833_v28, %v8198_v22  ;;  %v7553_v39 = vor.u32 %v10671_v33, %v7550_v3  ;;  %v11364_v58 = vld [vmem:[#allocation8 + $0x190c] sm:$0xf0]  ;;  %v9636_v9 = vld [vmem:[#allocation8 + $0x13b8] sm:$0xf]  ;;  %v11202_v12 = vld [vmem:[#allocation8 + $0x13fc] sm:$0xf0] }
 0x15f   :  { %5609 = vmatpush.bf16.msra.mxu0 %v8265_v37  ;;  %5623 = vmatpush.bf16.msra.mxu1 %v8841_v63  ;;  %v10608_v37 = vld [vmem:[#allocation8 + $0x16c] sm:$0xf0]  ;;  %v8485_v63 = vor.u32 %v10914_v49, %v8484_v41  ;;  %v10428_v41 = vld [vmem:[#allocation8 + $0x19e8] sm:$0xf]  ;;  %v10761_v24 = vld [vmem:[#allocation8 + $0x63c] sm:$0xf] }
 0x160   :  { %5637 = vmatpush.bf16.msra.mxu2 %v9417_v10  ;;  %5651 = vmatpush.bf16.msra.mxu3 %v9993_v14  ;;  %v8412_v10 = vld [vmem:[#allocation8 + $0xa28] sm:$0xf]  ;;  %v10896_v14 = vld [vmem:[#allocation8 + $0xa6c] sm:$0xf0]  ;;  %v7261_v43 = vor.u32 %v10608_v37, %v7260_v36  ;;  %v7910_v19 = vld [vmem:[#allocation8 + $0x680] sm:$0xf0] }
 0x161   :  { %v8413_v45 = vor.u32 %v10896_v14, %v8412_v10  ;;  %v11400_v49 = vld [vmem:[#allocation8 + $0x1a2c] sm:$0xf0]  ;;  %v10356_v10 = vld [vmem:[#allocation8 + $0x1958] sm:$0xf]  ;;  %v11382_v14 = vld [vmem:[#allocation8 + $0x199c] sm:$0xf0]  ;;  %v7913_v26 = vor.u32 %v10761_v24, %v7910_v19 }
 0x162   :  { %5610 = vmatmul.bf16.vlgmr.msra.gmra.mxu0 %v11856_v50  ;;  %5624 = vmatmul.bf16.vlgmr.msra.gmra.mxu1 %v11858_v53  ;;  %v10429_v37 = vor.u32 %v11400_v49, %v10428_v41  ;;  %v9564_v7 = vld [vmem:[#allocation8 + $0x1328] sm:$0xf]  ;;  %v11328_v22 = vld [vmem:[#allocation8 + $0x17ec] sm:$0xf0]  ;;  %v10068_v33 = vld [vmem:[#allocation8 + $0x1718] sm:$0xf] }
 0x163   :  { %5658 = vmatpush.bf16.msrb.mxu0 %v7621_v42  ;;  %5672 = vmatpush.bf16.msrb.mxu1 %v8197_v51  ;;  %v8988_v42 = vld [vmem:[#allocation8 + $0xea8] sm:$0xf]  ;;  %v11040_v51 = vld [vmem:[#allocation8 + $0xeec] sm:$0xf0]  ;;  %v11310_v3 = vld [vmem:[#allocation8 + $0x175c] sm:$0xf0] }
 0x164   :  { %5686 = vmatpush.bf16.msrb.mxu2 %v8773_v44  ;;  %5700 = vmatpush.bf16.msrb.mxu3 %v9349_v55  ;;  %v7188_v44 = vld [vmem:[#allocation8 + $0x98] sm:$0xf]  ;;  %v10590_v55 = vld [vmem:[#allocation8 + $0xdc] sm:$0xf0]  ;;  %v8989_v46 = vor.u32 %v11040_v51, %v8988_v42  ;;  %v10653_v42 = vld [vmem:[#allocation8 + $0x2dc] sm:$0xf] }
 0x165   :  { %5638 = vmatmul.bf16.vlgmr.msra.gmra.mxu2 %v11874_v6  ;;  %5652 = vmatmul.bf16.vlgmr.msra.gmra.mxu3 %v11876_v57  ;;  %v7189_v17 = vor.u32 %v10590_v55, %v7188_v44  ;;  %v7478_v51 = vld [vmem:[#allocation8 + $0x320] sm:$0xf0]  ;;  %v10357_v55 = vor.u32 %v11382_v14, %v10356_v10  ;;  %v10140_v28 = vld [vmem:[#allocation8 + $0x17a8] sm:$0xf]  ;;  %v11292_v14 = vld [vmem:[#allocation8 + $0x16cc] sm:$0xf0] }
 0x166   :  { %v9996_v10 = vld [vmem:[#allocation8 + $0x1688] sm:$0xf]  ;;  %v11247_v24 = vld [vmem:[#allocation8 + $0x156c] sm:$0xf]  ;;  %v9854_v19 = vld [vmem:[#allocation8 + $0x15b0] sm:$0xf0] }
 0x167   :  { %5659 = vmatpush.bf16.msrb.mxu0 %v7549_v60  ;;  %5673 = vmatpush.bf16.msrb.mxu1 %v8125_v61  ;;  %v8916_v60 = vld [vmem:[#allocation8 + $0xe18] sm:$0xf]  ;;  %v11022_v61 = vld [vmem:[#allocation8 + $0xe5c] sm:$0xf0] }
 0x168   :  { %5687 = vmatpush.bf16.msrb.mxu2 %v8701_v4  ;;  %5701 = vmatpush.bf16.msrb.mxu3 %v9277_v8  ;;  %v7765_v4 = vor.u32 %v10734_v56, %v7764_v54  ;;  %v10572_v8 = vld [vmem:[#allocation8 + $0x4c] sm:$0xf0]  ;;  %v8917_v20 = vor.u32 %v11022_v61, %v8916_v60  ;;  %v7481_v54 = vor.u32 %v10653_v42, %v7478_v51  ;;  %v10635_v60 = vld [vmem:[#allocation8 + $0x24c] sm:$0xf]  ;;  %v7406_v61 = vld [vmem:[#allocation8 + $0x290] sm:$0xf0] }
 0x169   :  { %v7117_v59 = vor.u32 %v10572_v8, %v7116_v62  ;;  %v10779_v62 = vld [vmem:[#allocation8 + $0x6cc] sm:$0xf]  ;;  %v10285_v8 = vor.u32 %v11364_v58, %v10284_v5  ;;  %v11265_v5 = vld [vmem:[#allocation8 + $0x15fc] sm:$0xf] }
 0x16b   :  { %5660 = vmatpush.bf16.msrb.mxu0 %v7477_v18  ;;  %5674 = vmatpush.bf16.msrb.mxu1 %v8053_v23  ;;  %v8844_v18 = vld [vmem:[#allocation8 + $0xd88] sm:$0xf]  ;;  %v11004_v23 = vld [vmem:[#allocation8 + $0xdcc] sm:$0xf0] }
 0x16c   :  { %5688 = vmatpush.bf16.msrb.mxu2 %v8629_v25  ;;  %5702 = vmatpush.bf16.msrb.mxu3 %v9205_v21  ;;  %v10500_v25 = vld [vmem:[#allocation8 + $0x1a78] sm:$0xf]  ;;  %v11418_v21 = vld [vmem:[#allocation8 + $0x1abc] sm:$0xf0] }
 0x16d   :  { %v10501_v29 = vor.u32 %v11418_v21, %v10500_v25  ;;  %v9637_v25 = vor.u32 %v11202_v12, %v9636_v9 }
 0x16f   :  { %5661 = vmatpush.bf16.msrb.mxu0 %v7405_v0  ;;  %5675 = vmatpush.bf16.msrb.mxu1 %v7981_v27  ;;  %v8269_v0 = vor.u32 %v10860_v16, %v8268_v15  ;;  %v8845_v27 = vor.u32 %v11004_v23, %v8844_v18  ;;  %v10212_v15 = vld [vmem:[#allocation8 + $0x1838] sm:$0xf]  ;;  %v11346_v16 = vld [vmem:[#allocation8 + $0x187c] sm:$0xf0]  ;;  %v10617_v18 = vld [vmem:[#allocation8 + $0x1bc] sm:$0xf] }
 0x170   :  { %5689 = vmatpush.bf16.msrb.mxu2 %v8557_v30  ;;  %5703 = vmatpush.bf16.msrb.mxu3 %v9133_v31  ;;  %v9852_v30 = vld [vmem:[#allocation8 + $0x1568] sm:$0xf]  ;;  %v11256_v31 = vld [vmem:[#allocation8 + $0x15ac] sm:$0xf0]  ;;  %v7334_v23 = vld [vmem:[#allocation8 + $0x200] sm:$0xf0]  ;;  %v10213_v21 = vor.u32 %v11346_v16, %v10212_v15 }
 0x171   :  { %v9853_v36 = vor.u32 %v11256_v31, %v9852_v30  ;;  %v10141_v31 = vor.u32 %v11328_v22, %v10140_v28  ;;  %v9857_v28 = vor.u32 %v11247_v24, %v9854_v19  ;;  %v11013_v24 = vld [vmem:[#allocation8 + $0xe1c] sm:$0xf]  ;;  %v8918_v19 = vld [vmem:[#allocation8 + $0xe60] sm:$0xf0] }
 0x173   :  { %5662 = vmatpush.bf16.msrb.mxu0 %v7333_v34  ;;  %5676 = vmatpush.bf16.msrb.mxu1 %v7909_v35  ;;  %v10815_v34 = vld [vmem:[#allocation8 + $0x7ec] sm:$0xf]  ;;  %v8126_v35 = vld [vmem:[#allocation8 + $0x830] sm:$0xf0] }
 0x174   :  { %5690 = vmatpush.bf16.msrb.mxu2 %v8485_v63  ;;  %5704 = vmatpush.bf16.msrb.mxu3 %v9061_v38  ;;  %v9780_v63 = vld [vmem:[#allocation8 + $0x14d8] sm:$0xf]  ;;  %v11238_v38 = vld [vmem:[#allocation8 + $0x151c] sm:$0xf0]  ;;  %v8129_v40 = vor.u32 %v10815_v34, %v8126_v35  ;;  %v10581_v34 = vld [vmem:[#allocation8 + $0x9c] sm:$0xf] }
 0x175   :  { %v9781_v44 = vor.u32 %v11238_v38, %v9780_v63  ;;  %v7190_v35 = vld [vmem:[#allocation8 + $0xe0] sm:$0xf0]  ;;  %v9420_v63 = vld [vmem:[#allocation8 + $0x1208] sm:$0xf] }
 0x176   :  { %v7193_v42 = vor.u32 %v10581_v34, %v7190_v35  ;;  %v11067_v34 = vld [vmem:[#allocation8 + $0xfcc] sm:$0xf]  ;;  %v9134_v35 = vld [vmem:[#allocation8 + $0x1010] sm:$0xf0] }
 0x177   :  { %5663 = vmatpush.bf16.msrb.mxu0 %v7261_v43  ;;  %5677 = vmatpush.bf16.msrb.mxu1 %v7837_v52  ;;  %v10797_v43 = vld [vmem:[#allocation8 + $0x75c] sm:$0xf]  ;;  %v8054_v52 = vld [vmem:[#allocation8 + $0x7a0] sm:$0xf0] }
 0x178   :  { %5691 = vmatpush.bf16.msrb.mxu2 %v8413_v45  ;;  %5705 = vmatpush.bf16.msrb.mxu3 %v8989_v46  ;;  %v9708_v45 = vld [vmem:[#allocation8 + $0x1448] sm:$0xf]  ;;  %v11220_v46 = vld [vmem:[#allocation8 + $0x148c] sm:$0xf0]  ;;  %v8057_v56 = vor.u32 %v10797_v43, %v8054_v52  ;;  %v10563_v43 = vld [vmem:[#allocation8 + $0xc] sm:$0xf] }
 0x179   :  { %v7118_v52 = vld [vmem:[#allocation8 + $0x50] sm:$0xf0] }
 0x17b   :  { %5664 = vmatpush.bf16.msrb.mxu0 %v7189_v17  ;;  %5678 = vmatpush.bf16.msrb.mxu1 %v7765_v4  ;;  %v7982_v17 = vld [vmem:[#allocation8 + $0x710] sm:$0xf0]  ;;  %v9709_v4 = vor.u32 %v11220_v46, %v9708_v45  ;;  %v10977_v45 = vld [vmem:[#allocation8 + $0xcfc] sm:$0xf]  ;;  %v8774_v46 = vld [vmem:[#allocation8 + $0xd40] sm:$0xf0] }
 0x17c   :  { %5692 = vmatpush.bf16.msrb.mxu2 %v8341_v13  ;;  %5706 = vmatpush.bf16.msrb.mxu3 %v8917_v20  ;;  %v7409_v13 = vor.u32 %v10635_v60, %v7406_v61  ;;  %v7985_v20 = vor.u32 %v10779_v62, %v7982_v17  ;;  %v9997_v60 = vor.u32 %v11292_v14, %v9996_v10  ;;  %v9926_v61 = vld [vmem:[#allocation8 + $0x1640] sm:$0xf0]  ;;  %v11409_v62 = vld [vmem:[#allocation8 + $0x1a7c] sm:$0xf] }
 0x17d   :  { %v10502_v17 = vld [vmem:[#allocation8 + $0x1ac0] sm:$0xf0]  ;;  %v8777_v9 = vor.u32 %v10977_v45, %v8774_v46  ;;  %v9929_v15 = vor.u32 %v11265_v5, %v9926_v61  ;;  %v10905_v10 = vld [vmem:[#allocation8 + $0xabc] sm:$0xf]  ;;  %v10887_v5 = vld [vmem:[#allocation8 + $0xa2c] sm:$0xf] }
 0x17e   :  { %v10505_v16 = vor.u32 %v11409_v62, %v10502_v17  ;;  %v8486_v14 = vld [vmem:[#allocation8 + $0xb00] sm:$0xf0]  ;;  %v11337_v45 = vld [vmem:[#allocation8 + $0x183c] sm:$0xf]  ;;  %v11031_v62 = vld [vmem:[#allocation8 + $0xeac] sm:$0xf] }
 0x17f   :  { %5665 = vmatpush.bf16.msrb.mxu0 %v7117_v59  ;;  %5679 = vmatpush.bf16.msrb.mxu1 %v7693_v11  ;;  %v11184_v59 = vld [vmem:[#allocation8 + $0x136c] sm:$0xf0]  ;;  %v7337_v11 = vor.u32 %v10617_v18, %v7334_v23  ;;  %v11103_v18 = vld [vmem:[#allocation8 + $0x10ec] sm:$0xf]  ;;  %v9278_v23 = vld [vmem:[#allocation8 + $0x1130] sm:$0xf0] }
 0x180   :  { %5693 = vmatpush.bf16.msrb.mxu2 %v8269_v0  ;;  %5707 = vmatpush.bf16.msrb.mxu3 %v8845_v27  ;;  %v10599_v0 = vld [vmem:[#allocation8 + $0x12c] sm:$0xf]  ;;  %v7262_v27 = vld [vmem:[#allocation8 + $0x170] sm:$0xf0]  ;;  %v9565_v30 = vor.u32 %v11184_v59, %v9564_v7  ;;  %v9281_v59 = vor.u32 %v11103_v18, %v9278_v23  ;;  %v10214_v46 = vld [vmem:[#allocation8 + $0x1880] sm:$0xf0] }
 0x181   :  { %v7265_v41 = vor.u32 %v10599_v0, %v7262_v27  ;;  %v11085_v0 = vld [vmem:[#allocation8 + $0x105c] sm:$0xf]  ;;  %v9206_v27 = vld [vmem:[#allocation8 + $0x10a0] sm:$0xf0]  ;;  %v10217_v61 = vor.u32 %v11337_v45, %v10214_v46  ;;  %v8990_v17 = vld [vmem:[#allocation8 + $0xef0] sm:$0xf0] }
 0x182   :  { %5666 = vmatmul.bf16.vlgmr.msrb.gmra.mxu0 %v11852_v47  ;;  %5680 = vmatmul.bf16.vlgmr.msrb.gmra.mxu1 %v11854_v48  ;;  %v8708_v45 = vld [vmem:[#allocation8 + $0xc70] sm:$0xf]  ;;  %v10969_v46 = vld [vmem:[#allocation8 + $0xcb4] sm:$0xf0] }
 0x183   :  { %5714 = vmatpush.bf16.msra.mxu0 %v9925_v1  ;;  %5728 = vmatpush.bf16.msra.mxu1 %v10501_v29  ;;  %v10743_v1 = vld [vmem:[#allocation8 + $0x5ac] sm:$0xf]  ;;  %v7838_v29 = vld [vmem:[#allocation8 + $0x5f0] sm:$0xf0] }
 0x184   :  { %5742 = vmatpush.bf16.msra.mxu2 %v7625_v2  ;;  %5756 = vmatpush.bf16.msra.mxu3 %v8201_v32  ;;  %v9492_v2 = vld [vmem:[#allocation8 + $0x1298] sm:$0xf]  ;;  %v11166_v32 = vld [vmem:[#allocation8 + $0x12dc] sm:$0xf0]  ;;  %v7841_v49 = vor.u32 %v10743_v1, %v7838_v29  ;;  %v11229_v1 = vld [vmem:[#allocation8 + $0x14dc] sm:$0xf] }
 0x185   :  { %5694 = vmatmul.bf16.vlgmr.msrb.gmra.mxu2 %v11856_v50  ;;  %5708 = vmatmul.bf16.vlgmr.msrb.gmra.mxu3 %v11858_v53  ;;  %v9493_v38 = vor.u32 %v11166_v32, %v9492_v2  ;;  %v9782_v29 = vld [vmem:[#allocation8 + $0x1520] sm:$0xf0]  ;;  %v9209_v32 = vor.u32 %v11085_v0, %v9206_v27  ;;  %v10995_v0 = vld [vmem:[#allocation8 + $0xd8c] sm:$0xf]  ;;  %v8846_v27 = vld [vmem:[#allocation8 + $0xdd0] sm:$0xf0] }
 0x187   :  { %5715 = vmatpush.bf16.msra.mxu0 %v9853_v36  ;;  %5729 = vmatpush.bf16.msra.mxu1 %v10429_v37  ;;  %v10725_v36 = vld [vmem:[#allocation8 + $0x51c] sm:$0xf]  ;;  %v7766_v37 = vld [vmem:[#allocation8 + $0x560] sm:$0xf0] }
 0x188   :  { %5743 = vmatpush.bf16.msra.mxu2 %v7553_v39  ;;  %5757 = vmatpush.bf16.msra.mxu3 %v8129_v40  ;;  %v10069_v39 = vor.u32 %v11310_v3, %v10068_v33  ;;  %v11148_v40 = vld [vmem:[#allocation8 + $0x124c] sm:$0xf0]  ;;  %v7769_v51 = vor.u32 %v10725_v36, %v7766_v37  ;;  %v9785_v33 = vor.u32 %v11229_v1, %v9782_v29  ;;  %v11211_v36 = vld [vmem:[#allocation8 + $0x144c] sm:$0xf]  ;;  %v9710_v37 = vld [vmem:[#allocation8 + $0x1490] sm:$0xf0] }
 0x189   :  { %v9421_v58 = vor.u32 %v11148_v40, %v9420_v63  ;;  %v11355_v63 = vld [vmem:[#allocation8 + $0x18cc] sm:$0xf]  ;;  %v9137_v40 = vor.u32 %v11067_v34, %v9134_v35  ;;  %v8780_v34 = vld [vmem:[#allocation8 + $0xd00] sm:$0xf] }
 0x18b   :  { %5716 = vmatpush.bf16.msra.mxu0 %v9781_v44  ;;  %5730 = vmatpush.bf16.msra.mxu1 %v10357_v55  ;;  %v10707_v44 = vld [vmem:[#allocation8 + $0x48c] sm:$0xf]  ;;  %v7694_v55 = vld [vmem:[#allocation8 + $0x4d0] sm:$0xf0] }
 0x18c   :  { %5744 = vmatpush.bf16.msra.mxu2 %v7481_v54  ;;  %5758 = vmatpush.bf16.msra.mxu3 %v8057_v56  ;;  %v11121_v54 = vld [vmem:[#allocation8 + $0x117c] sm:$0xf]  ;;  %v9350_v56 = vld [vmem:[#allocation8 + $0x11c0] sm:$0xf0] }
 0x18d   :  { %v9353_v12 = vor.u32 %v11121_v54, %v9350_v56  ;;  %v8489_v54 = vor.u32 %v10905_v10, %v8486_v14 }
 0x18f   :  { %5717 = vmatpush.bf16.msra.mxu0 %v9709_v4  ;;  %5731 = vmatpush.bf16.msra.mxu1 %v10285_v8  ;;  %v7121_v4 = vor.u32 %v10563_v43, %v7118_v52  ;;  %v7697_v8 = vor.u32 %v10707_v44, %v7694_v55  ;;  %v11049_v43 = vld [vmem:[#allocation8 + $0xf3c] sm:$0xf]  ;;  %v9062_v52 = vld [vmem:[#allocation8 + $0xf80] sm:$0xf0] }
 0x190   :  { %5745 = vmatpush.bf16.msra.mxu2 %v7409_v13  ;;  %5759 = vmatpush.bf16.msra.mxu3 %v7985_v20  ;;  %v10959_v13 = vld [vmem:[#allocation8 + $0xc6c] sm:$0xf]  ;;  %v8702_v20 = vld [vmem:[#allocation8 + $0xcb0] sm:$0xf0]  ;;  %v11193_v44 = vld [vmem:[#allocation8 + $0x13bc] sm:$0xf]  ;;  %v9065_v56 = vor.u32 %v11049_v43, %v9062_v52 }
 0x191   :  { %v8705_v7 = vor.u32 %v10959_v13, %v8702_v20  ;;  %v9638_v55 = vld [vmem:[#allocation8 + $0x1400] sm:$0xf0]  ;;  %v8993_v20 = vor.u32 %v11031_v62, %v8990_v17  ;;  %v8709_v62 = vor.u32 %v10969_v46, %v8708_v45 }
 0x192   :  { %v11910_v45 = vld [vmem:[#allocation10] sm:$0xff] }
 0x193   :  { %5718 = vmatpush.bf16.msra.mxu0 %v9637_v25  ;;  %5732 = vmatpush.bf16.msra.mxu1 %v10213_v21  ;;  %v11391_v25 = vld [vmem:[#allocation8 + $0x19ec] sm:$0xf]  ;;  %v10430_v21 = vld [vmem:[#allocation8 + $0x1a30] sm:$0xf0] }
 0x194   :  { %5746 = vmatpush.bf16.msra.mxu2 %v7337_v11  ;;  %5760 = vmatpush.bf16.msra.mxu3 %v7913_v26  ;;  %v10941_v11 = vld [vmem:[#allocation8 + $0xbdc] sm:$0xf]  ;;  %v8630_v26 = vld [vmem:[#allocation8 + $0xc20] sm:$0xf0]  ;;  %v10433_v22 = vor.u32 %v11391_v25, %v10430_v21 }
 0x195   :  { %v8633_v2 = vor.u32 %v10941_v11, %v8630_v26  ;;  %v11157_v25 = vld [vmem:[#allocation8 + $0x129c] sm:$0xf]  ;;  %v9494_v21 = vld [vmem:[#allocation8 + $0x12e0] sm:$0xf0]  ;;  %v10851_v11 = vld [vmem:[#allocation8 + $0x90c] sm:$0xf] }
 0x196   :  { %v9497_v1 = vor.u32 %v11157_v25, %v9494_v21 }
 0x197   :  { %5719 = vmatpush.bf16.msra.mxu0 %v9565_v30  ;;  %5733 = vmatpush.bf16.msra.mxu1 %v10141_v31  ;;  %v11373_v30 = vld [vmem:[#allocation8 + $0x195c] sm:$0xf]  ;;  %v10358_v31 = vld [vmem:[#allocation8 + $0x19a0] sm:$0xf0] }
 0x198   :  { %5747 = vmatpush.bf16.msra.mxu2 %v7265_v41  ;;  %5761 = vmatpush.bf16.msra.mxu3 %v7841_v49  ;;  %v10923_v41 = vld [vmem:[#allocation8 + $0xb4c] sm:$0xf]  ;;  %v8558_v49 = vld [vmem:[#allocation8 + $0xb90] sm:$0xf0]  ;;  %v10361_v3 = vor.u32 %v11373_v30, %v10358_v31 }
 0x199   :  { %v11139_v30 = vld [vmem:[#allocation8 + $0x120c] sm:$0xf]  ;;  %v9422_v31 = vld [vmem:[#allocation8 + $0x1250] sm:$0xf0] }
 0x19b   :  { %5720 = vmatpush.bf16.msra.mxu0 %v9493_v38  ;;  %5734 = vmatpush.bf16.msra.mxu1 %v10069_v39  ;;  %v10286_v38 = vld [vmem:[#allocation8 + $0x1910] sm:$0xf0]  ;;  %v8561_v39 = vor.u32 %v10923_v41, %v8558_v49  ;;  %v7628_v41 = vld [vmem:[#allocation8 + $0x400] sm:$0xf]  ;;  %v10699_v49 = vld [vmem:[#allocation8 + $0x444] sm:$0xf0] }
 0x19c   :  { %5748 = vmatpush.bf16.msra.mxu2 %v7193_v42  ;;  %5762 = vmatpush.bf16.msra.mxu3 %v7769_v51  ;;  %v9713_v42 = vor.u32 %v11211_v36, %v9710_v37  ;;  %v10289_v51 = vor.u32 %v11355_v63, %v10286_v38  ;;  %v8849_v36 = vor.u32 %v10995_v0, %v8846_v27  ;;  %v10987_v37 = vld [vmem:[#allocation8 + $0xd44] sm:$0xf0]  ;;  %v9356_v63 = vld [vmem:[#allocation8 + $0x1180] sm:$0xf] }
 0x19d   :  { %v11131_v38 = vld [vmem:[#allocation8 + $0x11c4] sm:$0xf0]  ;;  %v7629_v10 = vor.u32 %v10699_v49, %v7628_v41  ;;  %v8781_v43 = vor.u32 %v10987_v37, %v8780_v34  ;;  %v8492_v41 = vld [vmem:[#allocation8 + $0xac0] sm:$0xf] }
 0x19e   :  { %v9357_v52 = vor.u32 %v11131_v38, %v9356_v63  ;;  %v9068_v34 = vld [vmem:[#allocation8 + $0xf40] sm:$0xf] }
 0x19f   :  { %5721 = vmatpush.bf16.msra.mxu0 %v9421_v58  ;;  %5735 = vmatpush.bf16.msra.mxu1 %v9997_v60  ;;  %v8414_v58 = vld [vmem:[#allocation8 + $0xa70] sm:$0xf0]  ;;  %v9641_v60 = vor.u32 %v11193_v44, %v9638_v55  ;;  %v8132_v44 = vld [vmem:[#allocation8 + $0x7f0] sm:$0xf]  ;;  %v10825_v55 = vld [vmem:[#allocation8 + $0x834] sm:$0xf0] }
 0x1a0   :  { %5749 = vmatpush.bf16.msra.mxu2 %v7121_v4  ;;  %5763 = vmatpush.bf16.msra.mxu3 %v7697_v8  ;;  %v11175_v4 = vld [vmem:[#allocation8 + $0x132c] sm:$0xf]  ;;  %v9566_v8 = vld [vmem:[#allocation8 + $0x1370] sm:$0xf0]  ;;  %v8417_v13 = vor.u32 %v10887_v5, %v8414_v58  ;;  %v8133_v58 = vor.u32 %v10825_v55, %v8132_v44  ;;  %v8996_v44 = vld [vmem:[#allocation8 + $0xeb0] sm:$0xf] }
 0x1a1   :  { %v9569_v18 = vor.u32 %v11175_v4, %v9566_v8  ;;  %v8060_v4 = vld [vmem:[#allocation8 + $0x760] sm:$0xf]  ;;  %v10807_v8 = vld [vmem:[#allocation8 + $0x7a4] sm:$0xf0]  ;;  %v11041_v55 = vld [vmem:[#allocation8 + $0xef4] sm:$0xf0] }
 0x1a2   :  { %5722 = vmatmul.bf16.vlgmr.msra.gmra.mxu0 %v11874_v6  ;;  %5736 = vmatmul.bf16.vlgmr.msra.gmra.mxu1 %v11876_v57 }
 0x1a3   :  { %5770 = vmatpush.bf16.msrb.mxu0 %v8777_v9  ;;  %5784 = vmatpush.bf16.msrb.mxu1 %v9353_v12  ;;  %v11319_v9 = vld [vmem:[#allocation8 + $0x17ac] sm:$0xf]  ;;  %v10142_v12 = vld [vmem:[#allocation8 + $0x17f0] sm:$0xf0] }
 0x1a4   :  { %5798 = vmatpush.bf16.msrb.mxu2 %v9929_v15  ;;  %5812 = vmatpush.bf16.msrb.mxu3 %v10505_v16  ;;  %v10869_v15 = vld [vmem:[#allocation8 + $0x99c] sm:$0xf]  ;;  %v8342_v16 = vld [vmem:[#allocation8 + $0x9e0] sm:$0xf0]  ;;  %v10145_v23 = vor.u32 %v11319_v9, %v10142_v12  ;;  %v8636_v9 = vld [vmem:[#allocation8 + $0xbe0] sm:$0xf] }
 0x1a5   :  { %5750 = vmatmul.bf16.vlgmr.msra.gmra.mxu2 %v11852_v47  ;;  %5764 = vmatmul.bf16.vlgmr.msra.gmra.mxu3 %v11854_v48  ;;  %v8345_v26 = vor.u32 %v10869_v15, %v8342_v16  ;;  %v10951_v12 = vld [vmem:[#allocation8 + $0xc24] sm:$0xf0] }
 0x1a6   :  { %v8637_v25 = vor.u32 %v10951_v12, %v8636_v9  ;;  %v10879_v9 = vld [vmem:[#allocation8 + $0x9e4] sm:$0xf0]  ;;  %v8924_v12 = vld [vmem:[#allocation8 + $0xe20] sm:$0xf] }
 0x1a7   :  { %5771 = vmatpush.bf16.msrb.mxu0 %v8705_v7  ;;  %5785 = vmatpush.bf16.msrb.mxu1 %v9281_v59  ;;  %v11301_v7 = vld [vmem:[#allocation8 + $0x171c] sm:$0xf]  ;;  %v10070_v59 = vld [vmem:[#allocation8 + $0x1760] sm:$0xf0] }
 0x1a8   :  { %5799 = vmatpush.bf16.msrb.mxu2 %v9857_v28  ;;  %5813 = vmatpush.bf16.msrb.mxu3 %v10433_v22  ;;  %v8921_v28 = vor.u32 %v11013_v24, %v8918_v19  ;;  %v8270_v22 = vld [vmem:[#allocation8 + $0x950] sm:$0xf0]  ;;  %v10073_v29 = vor.u32 %v11301_v7, %v10070_v59  ;;  %v7412_v24 = vld [vmem:[#allocation8 + $0x250] sm:$0xf]  ;;  %v10645_v19 = vld [vmem:[#allocation8 + $0x294] sm:$0xf0] }
 0x1a9   :  { %v8273_v35 = vor.u32 %v10851_v11, %v8270_v22  ;;  %v7988_v7 = vld [vmem:[#allocation8 + $0x6d0] sm:$0xf]  ;;  %v10789_v59 = vld [vmem:[#allocation8 + $0x714] sm:$0xf0]  ;;  %v7413_v0 = vor.u32 %v10645_v19, %v7412_v24 }
 0x1aa   :  { %v8564_v11 = vld [vmem:[#allocation8 + $0xb50] sm:$0xf]  ;;  %v11077_v22 = vld [vmem:[#allocation8 + $0x1014] sm:$0xf0]  ;;  %v7989_v27 = vor.u32 %v10789_v59, %v7988_v7 }
 0x1ab   :  { %5772 = vmatpush.bf16.msrb.mxu0 %v8633_v2  ;;  %5786 = vmatpush.bf16.msrb.mxu1 %v9209_v32  ;;  %v11283_v2 = vld [vmem:[#allocation8 + $0x168c] sm:$0xf]  ;;  %v9998_v32 = vld [vmem:[#allocation8 + $0x16d0] sm:$0xf0]  ;;  %v7700_v7 = vld [vmem:[#allocation8 + $0x490] sm:$0xf] }
 0x1ac   :  { %5800 = vmatpush.bf16.msrb.mxu2 %v9785_v33  ;;  %5814 = vmatpush.bf16.msrb.mxu3 %v10361_v3  ;;  %v8204_v33 = vld [vmem:[#allocation8 + $0x880] sm:$0xf]  ;;  %v10843_v3 = vld [vmem:[#allocation8 + $0x8c4] sm:$0xf0]  ;;  %v10717_v59 = vld [vmem:[#allocation8 + $0x4d4] sm:$0xf0] }
 0x1ad   :  { %v8205_v14 = vor.u32 %v10843_v3, %v8204_v33  ;;  %v10915_v3 = vld [vmem:[#allocation8 + $0xb04] sm:$0xf0] }
 0x1af   :  { %5773 = vmatpush.bf16.msrb.mxu0 %v8561_v39  ;;  %5787 = vmatpush.bf16.msrb.mxu1 %v9137_v40  ;;  %v9425_v39 = vor.u32 %v11139_v30, %v9422_v31  ;;  %v10001_v40 = vor.u32 %v11283_v2, %v9998_v32  ;;  %v7916_v2 = vld [vmem:[#allocation8 + $0x640] sm:$0xf]  ;;  %v10771_v32 = vld [vmem:[#allocation8 + $0x684] sm:$0xf0] }
 0x1b0   :  { %5801 = vmatpush.bf16.msrb.mxu2 %v9713_v42  ;;  %5815 = vmatpush.bf16.msrb.mxu3 %v10289_v51  ;;  %v7556_v42 = vld [vmem:[#allocation8 + $0x370] sm:$0xf]  ;;  %v10681_v51 = vld [vmem:[#allocation8 + $0x3b4] sm:$0xf0]  ;;  %v7917_v38 = vor.u32 %v10771_v32, %v7916_v2  ;;  %v10690_v2 = vld [vmem:[#allocation8 + $0x404] sm:$0xf] }
 0x1b1   :  { %v7557_v5 = vor.u32 %v10681_v51, %v7556_v42  ;;  %v7844_v42 = vld [vmem:[#allocation8 + $0x5b0] sm:$0xf]  ;;  %v10753_v51 = vld [vmem:[#allocation8 + $0x5f4] sm:$0xf0] }
 0x1b3   :  { %5774 = vmatpush.bf16.msrb.mxu0 %v8489_v54  ;;  %5788 = vmatpush.bf16.msrb.mxu1 %v9065_v56  ;;  %v9284_v54 = vld [vmem:[#allocation8 + $0x10f0] sm:$0xf]  ;;  %v11113_v56 = vld [vmem:[#allocation8 + $0x1134] sm:$0xf0] }
 0x1b4   :  { %5802 = vmatpush.bf16.msrb.mxu2 %v9641_v60  ;;  %5816 = vmatpush.bf16.msrb.mxu3 %v10217_v61  ;;  %v7484_v60 = vld [vmem:[#allocation8 + $0x2e0] sm:$0xf]  ;;  %v10663_v61 = vld [vmem:[#allocation8 + $0x324] sm:$0xf0]  ;;  %v9285_v17 = vor.u32 %v11113_v56, %v9284_v54  ;;  %v7845_v54 = vor.u32 %v10753_v51, %v7844_v42  ;;  %v9860_v42 = vld [vmem:[#allocation8 + $0x1570] sm:$0xf] }
 0x1b5   :  { %v7196_v56 = vld [vmem:[#allocation8 + $0xa0] sm:$0xf]  ;;  %v11257_v51 = vld [vmem:[#allocation8 + $0x15b4] sm:$0xf0] }
 0x1b7   :  { %5775 = vmatpush.bf16.msrb.mxu0 %v8417_v13  ;;  %5789 = vmatpush.bf16.msrb.mxu1 %v8993_v20  ;;  %v9212_v13 = vld [vmem:[#allocation8 + $0x1060] sm:$0xf]  ;;  %v11095_v20 = vld [vmem:[#allocation8 + $0x10a4] sm:$0xf0] }
 0x1b8   :  { %5803 = vmatpush.bf16.msrb.mxu2 %v9569_v18  ;;  %5817 = vmatpush.bf16.msrb.mxu3 %v10145_v23  ;;  %v7485_v18 = vor.u32 %v10663_v61, %v7484_v60  ;;  %v8061_v23 = vor.u32 %v10807_v8, %v8060_v4  ;;  %v9213_v21 = vor.u32 %v11095_v20, %v9212_v13  ;;  %v7772_v61 = vld [vmem:[#allocation8 + $0x520] sm:$0xf]  ;;  %v11023_v13 = vld [vmem:[#allocation8 + $0xe64] sm:$0xf0]  ;;  %v1134_v20 = vperm.slane %v11910_v45, 0 }
 0x1b9   :  { %v8997_v60 = vor.u32 %v11041_v55, %v8996_v44  ;;  %v10436_v55 = vld [vmem:[#allocation8 + $0x19f0] sm:$0xf] }
 0x1bb   :  { %5776 = vmatpush.bf16.msrb.mxu0 %v8345_v26  ;;  %5790 = vmatpush.bf16.msrb.mxu1 %v8921_v28  ;;  %v10933_v26 = vld [vmem:[#allocation8 + $0xb94] sm:$0xf0]  ;;  %v9140_v28 = vld [vmem:[#allocation8 + $0xfd0] sm:$0xf] }
 0x1bc   :  { %5804 = vmatpush.bf16.msrb.mxu2 %v9497_v1  ;;  %5818 = vmatpush.bf16.msrb.mxu3 %v10073_v29  ;;  %v7340_v1 = vld [vmem:[#allocation8 + $0x1c0] sm:$0xf]  ;;  %v10627_v29 = vld [vmem:[#allocation8 + $0x204] sm:$0xf0]  ;;  %v8565_v30 = vor.u32 %v10933_v26, %v8564_v11  ;;  %v9141_v31 = vor.u32 %v11077_v22, %v9140_v28  ;;  %v8925_v26 = vor.u32 %v11023_v13, %v8924_v12  ;;  %v8276_v28 = vld [vmem:[#allocation8 + $0x910] sm:$0xf] }
 0x1bd   :  { %v7341_v63 = vor.u32 %v10627_v29, %v7340_v1  ;;  %v10861_v22 = vld [vmem:[#allocation8 + $0x954] sm:$0xf0]  ;;  %v9932_v1 = vld [vmem:[#allocation8 + $0x1600] sm:$0xf]  ;;  %v11275_v29 = vld [vmem:[#allocation8 + $0x1644] sm:$0xf0] }
 0x1be   :  { %v11898_v15 = vpop.f32.mrf.mxu0  ;;  %v11900_v16 = vpop.f32.mrf.mxu1  ;;  %v9788_v12 = vld [vmem:[#allocation8 + $0x14e0] sm:$0xf]  ;;  %v11239_v13 = vld [vmem:[#allocation8 + $0x1524] sm:$0xf0] }
 0x1bf   :  { %5777 = vmatpush.bf16.msrb.mxu0 %v8273_v35  ;;  %5791 = vmatpush.bf16.msrb.mxu1 %v8849_v36  ;;  %v11059_v35 = vld [vmem:[#allocation8 + $0xf84] sm:$0xf0] }
 0x1c0   :  { %5805 = vmatpush.bf16.msrb.mxu2 %v9425_v39  ;;  %5819 = vmatpush.bf16.msrb.mxu3 %v10001_v40  ;;  %v7268_v39 = vld [vmem:[#allocation8 + $0x130] sm:$0xf]  ;;  %v10609_v40 = vld [vmem:[#allocation8 + $0x174] sm:$0xf0] }
 0x1c1   :  { %v7269_v46 = vor.u32 %v10609_v40, %v7268_v39  ;;  %v9933_v39 = vor.u32 %v11275_v29, %v9932_v1  ;;  %v9716_v29 = vld [vmem:[#allocation8 + $0x1450] sm:$0xf] }
 0x1c2   :  { %5778 = vmatmul.bf16.vlgmr.msrb.gmra.mxu0 %v11856_v50  ;;  %5792 = vmatmul.bf16.vlgmr.msrb.gmra.mxu1 %v11858_v53 }
 0x1c3   :  { %5826 = vmatpush.bf16.msra.mxu0 %v7629_v10  ;;  %5840 = vmatpush.bf16.msra.mxu1 %v8205_v14  ;;  %v8493_v10 = vor.u32 %v10915_v3, %v8492_v41  ;;  %v9069_v14 = vor.u32 %v11059_v35, %v9068_v34  ;;  %v7701_v41 = vor.u32 %v10717_v59, %v7700_v7  ;;  %v7630_v3 = vld [vmem:[#allocation8 + $0x448] sm:$0xf0]  ;;  %v10834_v34 = vld [vmem:[#allocation8 + $0x884] sm:$0xf] }
 0x1c4   :  { %5854 = vmatpush.bf16.msra.mxu2 %v8781_v43  ;;  %5868 = vmatpush.bf16.msra.mxu3 %v9357_v52  ;;  %v8420_v43 = vld [vmem:[#allocation8 + $0xa30] sm:$0xf]  ;;  %v10897_v52 = vld [vmem:[#allocation8 + $0xa74] sm:$0xf0]  ;;  %v8206_v35 = vld [vmem:[#allocation8 + $0x8c8] sm:$0xf0] }
 0x1c5   :  { %5806 = vmatmul.bf16.vlgmr.msrb.gmra.mxu2 %v11874_v6  ;;  %5820 = vmatmul.bf16.vlgmr.msrb.gmra.mxu3 %v11876_v57  ;;  %v11902_v49 = vpop.f32.mrf.mxu2  ;;  %v11904_v33 = vpop.f32.mrf.mxu3  ;;  %v7486_v59 = vld [vmem:[#allocation8 + $0x328] sm:$0xf0] }
 0x1c6   :  { %v11906_v36 = vpop.f32.mrf.mxu0  ;;  %v11908_v37 = vpop.f32.mrf.mxu1 }
 0x1c7   :  { %5827 = vmatpush.bf16.msra.mxu0 %v7557_v5  ;;  %5841 = vmatpush.bf16.msra.mxu1 %v8133_v58  ;;  %v10591_v5 = vld [vmem:[#allocation8 + $0xe4] sm:$0xf0]  ;;  %v8421_v58 = vor.u32 %v10897_v52, %v8420_v43  ;;  %v7633_v43 = vor.u32 %v10690_v2, %v7630_v3  ;;  %v8209_v52 = vor.u32 %v10834_v34, %v8206_v35  ;;  %v10636_v3 = vld [vmem:[#allocation8 + $0x254] sm:$0xf]  ;;  %v7414_v34 = vld [vmem:[#allocation8 + $0x298] sm:$0xf0] }
 0x1c8   :  { %5855 = vmatpush.bf16.msra.mxu2 %v8709_v62  ;;  %5869 = vmatpush.bf16.msra.mxu3 %v9285_v17  ;;  %v10735_v62 = vld [vmem:[#allocation8 + $0x564] sm:$0xf0]  ;;  %v8348_v17 = vld [vmem:[#allocation8 + $0x9a0] sm:$0xf]  ;;  %v7197_v24 = vor.u32 %v10591_v5, %v7196_v56  ;;  %v5500_v56 = vadd.f32 %v11898_v15, %v1134_v20  ;;  %v7558_v5 = vld [vmem:[#allocation8 + $0x3b8] sm:$0xf0] }
 0x1c9   :  { %v7773_v19 = vor.u32 %v10735_v62, %v7772_v61  ;;  %v8349_v11 = vor.u32 %v10879_v9, %v8348_v17  ;;  %v1135_v61 = vperm.slane %v11910_v45, 1  ;;  %v9861_v17 = vor.u32 %v11257_v51, %v9860_v42  ;;  %v10780_v35 = vld [vmem:[#allocation8 + $0x6d4] sm:$0xf]  ;;  %v9644_v51 = vld [vmem:[#allocation8 + $0x13c0] sm:$0xf] }
 0x1ca   :  { %v5514_v7 = vadd.f32 %v11900_v16, %v5500_v56  ;;  %v11347_v56 = vld [vmem:[#allocation8 + $0x1884] sm:$0xf0] }
 0x1cb   :  { %5828 = vmatpush.bf16.msra.mxu0 %v7485_v18  ;;  %5842 = vmatpush.bf16.msra.mxu1 %v8061_v23  ;;  %v7124_v23 = vld [vmem:[#allocation8 + $0x10] sm:$0xf] }
 0x1cc   :  { %5856 = vmatpush.bf16.msra.mxu2 %v8637_v25  ;;  %5870 = vmatpush.bf16.msra.mxu3 %v9213_v21  ;;  %v10573_v21 = vld [vmem:[#allocation8 + $0x54] sm:$0xf0] }
 0x1cd   :  { %v11912_v4 = vpop.f32.mrf.mxu2  ;;  %v11914_v8 = vpop.f32.mrf.mxu3  ;;  %v7125_v32 = vor.u32 %v10573_v21, %v7124_v23  ;;  %v10654_v21 = vld [vmem:[#allocation8 + $0x2e4] sm:$0xf] }
 0x1ce   :  { %v11917_v18 = vpop.f32.mrf.mxu0  ;;  %v11919_v25 = vpop.f32.mrf.mxu1 }
 0x1cf   :  { %5829 = vmatpush.bf16.msra.mxu0 %v7413_v0  ;;  %5843 = vmatpush.bf16.msra.mxu1 %v7989_v27  ;;  %v8852_v0 = vld [vmem:[#allocation8 + $0xd90] sm:$0xf]  ;;  %v11005_v27 = vld [vmem:[#allocation8 + $0xdd4] sm:$0xf0] }
 0x1d0   :  { %5857 = vmatpush.bf16.msra.mxu2 %v8565_v30  ;;  %5871 = vmatpush.bf16.msra.mxu3 %v9141_v31  ;;  %v10508_v30 = vld [vmem:[#allocation8 + $0x1a80] sm:$0xf]  ;;  %v11419_v31 = vld [vmem:[#allocation8 + $0x1ac4] sm:$0xf0] }
 0x1d1   :  { %v10509_v40 = vor.u32 %v11419_v31, %v10508_v30  ;;  %v11221_v30 = vld [vmem:[#allocation8 + $0x1494] sm:$0xf0]  ;;  %v7489_v31 = vor.u32 %v10654_v21, %v7486_v59  ;;  %v10600_v21 = vld [vmem:[#allocation8 + $0x134] sm:$0xf] }
 0x1d3   :  { %5830 = vmatpush.bf16.msra.mxu0 %v7341_v63  ;;  %5844 = vmatpush.bf16.msra.mxu1 %v7917_v38  ;;  %v8277_v63 = vor.u32 %v10861_v22, %v8276_v28  ;;  %v8853_v38 = vor.u32 %v11005_v27, %v8852_v0  ;;  %v5528_v22 = vadd.f32 %v11902_v49, %v5514_v7 }
 0x1d4   :  { %5858 = vmatpush.bf16.msra.mxu2 %v8493_v10  ;;  %5872 = vmatpush.bf16.msra.mxu3 %v9069_v14  ;;  %v9789_v0 = vor.u32 %v11239_v13, %v9788_v12  ;;  %v5502_v49 = vadd.f32 %v11906_v36, %v1134_v20  ;;  %v11185_v12 = vld [vmem:[#allocation8 + $0x1374] sm:$0xf0] }
 0x1d5   :  { %v5583_v10 = vpop.f32.mrf.mxu2  ;;  %v5597_v14 = vpop.f32.mrf.mxu3 }
 0x1d6   :  { %v11921_v44 = vpop.f32.mrf.mxu0  ;;  %v11927_v62 = vpop.f32.mrf.mxu1  ;;  %v5584_v28 = vadd.f32 %v5583_v10, %v1135_v61  ;;  %v9717_v10 = vor.u32 %v11221_v30, %v9716_v29 }
 0x1d7   :  { %5831 = vmatpush.bf16.msra.mxu0 %v7269_v46  ;;  %5845 = vmatpush.bf16.msra.mxu1 %v7845_v54  ;;  %v11401_v46 = vld [vmem:[#allocation8 + $0x1a34] sm:$0xf0]  ;;  %v10672_v54 = vld [vmem:[#allocation8 + $0x374] sm:$0xf] }
 0x1d8   :  { %5859 = vmatpush.bf16.msra.mxu2 %v8421_v58  ;;  %5873 = vmatpush.bf16.msra.mxu3 %v8997_v60  ;;  %v10816_v58 = vld [vmem:[#allocation8 + $0x7f4] sm:$0xf]  ;;  %v8134_v60 = vld [vmem:[#allocation8 + $0x838] sm:$0xf0]  ;;  %v10437_v9 = vor.u32 %v11401_v46, %v10436_v55  ;;  %v7561_v15 = vor.u32 %v10672_v54, %v7558_v5  ;;  %v7417_v46 = vor.u32 %v10636_v3, %v7414_v34  ;;  %v10618_v5 = vld [vmem:[#allocation8 + $0x1c4] sm:$0xf] }
 0x1d9   :  { %v8137_v23 = vor.u32 %v10816_v58, %v8134_v60  ;;  %v7342_v58 = vld [vmem:[#allocation8 + $0x208] sm:$0xf0]  ;;  %v5516_v60 = vadd.f32 %v11908_v37, %v5502_v49  ;;  %v7270_v37 = vld [vmem:[#allocation8 + $0x178] sm:$0xf0] }
 0x1db   :  { %5832 = vmatpush.bf16.msra.mxu0 %v7197_v24  ;;  %5846 = vmatpush.bf16.msra.mxu1 %v7773_v19  ;;  %v10364_v24 = vld [vmem:[#allocation8 + $0x1960] sm:$0xf]  ;;  %v11383_v19 = vld [vmem:[#allocation8 + $0x19a4] sm:$0xf0] }
 0x1dc   :  { %5860 = vmatpush.bf16.msra.mxu2 %v8349_v11  ;;  %5874 = vmatpush.bf16.msra.mxu3 %v8925_v26  ;;  %v10798_v11 = vld [vmem:[#allocation8 + $0x764] sm:$0xf]  ;;  %v8062_v26 = vld [vmem:[#allocation8 + $0x7a8] sm:$0xf0]  ;;  %v10365_v16 = vor.u32 %v11383_v19, %v10364_v24  ;;  %v10148_v24 = vld [vmem:[#allocation8 + $0x17b0] sm:$0xf] }
 0x1dd   :  { %v5585_v27 = vpop.f32.mrf.mxu2  ;;  %v5599_v1 = vpop.f32.mrf.mxu3  ;;  %v8065_v2 = vor.u32 %v10798_v11, %v8062_v26  ;;  %v11329_v19 = vld [vmem:[#allocation8 + $0x17f4] sm:$0xf0]  ;;  %v10744_v11 = vld [vmem:[#allocation8 + $0x5b4] sm:$0xf]  ;;  %v7846_v26 = vld [vmem:[#allocation8 + $0x5f8] sm:$0xf0] }
 0x1de   :  { %v10149_v30 = vor.u32 %v11329_v19, %v10148_v24 }
 0x1df   :  { %5833 = vmatpush.bf16.msra.mxu0 %v7125_v32  ;;  %5847 = vmatpush.bf16.msra.mxu1 %v7701_v41  ;;  %v10292_v32 = vld [vmem:[#allocation8 + $0x18d0] sm:$0xf]  ;;  %v11365_v41 = vld [vmem:[#allocation8 + $0x1914] sm:$0xf0]  ;;  %v5625_v20 = vpop.f32.mrf.mxu1 }
 0x1e0   :  { %5861 = vmatpush.bf16.msra.mxu2 %v8277_v63  ;;  %5875 = vmatpush.bf16.msra.mxu3 %v8853_v38  ;;  %v7990_v63 = vld [vmem:[#allocation8 + $0x718] sm:$0xf0]  ;;  %v5598_v38 = vadd.f32 %v5597_v14, %v5584_v28  ;;  %v10293_v42 = vor.u32 %v11365_v41, %v10292_v32  ;;  %v10762_v14 = vld [vmem:[#allocation8 + $0x644] sm:$0xf]  ;;  %v11167_v32 = vld [vmem:[#allocation8 + $0x12e4] sm:$0xf0] }
 0x1e1   :  { %v7993_v54 = vor.u32 %v10780_v35, %v7990_v63  ;;  %v10076_v41 = vld [vmem:[#allocation8 + $0x1720] sm:$0xf]  ;;  %v11311_v35 = vld [vmem:[#allocation8 + $0x1764] sm:$0xf0]  ;;  %v10582_v63 = vld [vmem:[#allocation8 + $0xa4] sm:$0xf] }
 0x1e2   :  { %5834 = vmatmul.bf16.vlgmr.msra.gmra.mxu0 %v11852_v47  ;;  %5848 = vmatmul.bf16.vlgmr.msra.gmra.mxu1 %v11854_v48 }
 0x1e3   :  { %5882 = vmatpush.bf16.msrb.mxu0 %v9933_v39  ;;  %5896 = vmatpush.bf16.msrb.mxu1 %v10509_v40  ;;  %v5611_v39 = vpop.f32.mrf.mxu0  ;;  %v5542_v40 = vadd.f32 %v11904_v33, %v5528_v22  ;;  %v7918_v33 = vld [vmem:[#allocation8 + $0x688] sm:$0xf0] }
 0x1e4   :  { %5910 = vmatpush.bf16.msrb.mxu2 %v7633_v43  ;;  %5924 = vmatpush.bf16.msrb.mxu3 %v8209_v52  ;;  %v11203_v43 = vld [vmem:[#allocation8 + $0x1404] sm:$0xf0]  ;;  %v10220_v52 = vld [vmem:[#allocation8 + $0x1840] sm:$0xf]  ;;  %v5612_v55 = vadd.f32 %v5611_v39, %v5598_v38  ;;  %v7921_v59 = vor.u32 %v10762_v14, %v7918_v33  ;;  %v10726_v38 = vld [vmem:[#allocation8 + $0x524] sm:$0xf] }
 0x1e5   :  { %5862 = vmatmul.bf16.vlgmr.msra.gmra.mxu2 %v11856_v50  ;;  %5876 = vmatmul.bf16.vlgmr.msra.gmra.mxu3 %v11858_v53  ;;  %v5556_v36 = vadd.f32 %v11917_v18, %v5542_v40  ;;  %v9645_v13 = vor.u32 %v11203_v43, %v9644_v51  ;;  %v5530_v18 = vadd.f32 %v11912_v4, %v5516_v60  ;;  %v7774_v39 = vld [vmem:[#allocation8 + $0x568] sm:$0xf0]  ;;  %v11149_v51 = vld [vmem:[#allocation8 + $0x1254] sm:$0xf0]  ;;  %v10708_v14 = vld [vmem:[#allocation8 + $0x494] sm:$0xf] }
 0x1e6   :  { %v5626_v7 = vadd.f32 %v5625_v20, %v5612_v55  ;;  %v7849_v4 = vor.u32 %v10744_v11, %v7846_v26  ;;  %v7126_v20 = vld [vmem:[#allocation8 + $0x58] sm:$0xf0]  ;;  %v10978_v60 = vld [vmem:[#allocation8 + $0xd04] sm:$0xf] }
 0x1e7   :  { %5883 = vmatpush.bf16.msrb.mxu0 %v9861_v17  ;;  %5897 = vmatpush.bf16.msrb.mxu1 %v10437_v9  ;;  %v5586_v17 = vadd.f32 %v5585_v27, %v1135_v61  ;;  %v9572_v9 = vld [vmem:[#allocation8 + $0x1330] sm:$0xf]  ;;  %v5570_v61 = vadd.f32 %v11919_v25, %v5556_v36  ;;  %v5544_v3 = vadd.f32 %v11914_v8, %v5530_v18  ;;  %v5627_v43 = vpop.f32.mrf.mxu1  ;;  %v9934_v18 = vld [vmem:[#allocation8 + $0x1648] sm:$0xf0] }
 0x1e8   :  { %5911 = vmatpush.bf16.msrb.mxu2 %v7561_v15  ;;  %5925 = vmatpush.bf16.msrb.mxu3 %v8137_v23  ;;  %v10221_v15 = vor.u32 %v11347_v56, %v10220_v52  ;;  %v7345_v23 = vor.u32 %v10618_v5, %v7342_v58  ;;  %v5639_v28 = vpop.f32.mrf.mxu2  ;;  %v5653_v22 = vpop.f32.mrf.mxu3  ;;  %v9573_v29 = vor.u32 %v11185_v12, %v9572_v9  ;;  %v10564_v56 = vld [vmem:[#allocation8 + $0x14] sm:$0xf]  ;;  %v11122_v9 = vld [vmem:[#allocation8 + $0x1184] sm:$0xf] }
 0x1e9   :  { %v7002_v49 = vmul.f32 0.03608439, %v5570_v61  ;;  %v5558_v40 = vadd.f32 %v11921_v44, %v5544_v3  ;;  %v10077_v8 = vor.u32 %v11311_v35, %v10076_v41  ;;  %v7777_v36 = vor.u32 %v10726_v38, %v7774_v39  ;;  %v7702_v44 = vld [vmem:[#allocation8 + $0x4d8] sm:$0xf0]  ;;  %v10960_v61 = vld [vmem:[#allocation8 + $0xc74] sm:$0xf] }
 0x1ea   :  { %v7129_v11 = vor.u32 %v10564_v56, %v7126_v20  ;;  %v7705_v26 = vor.u32 %v10708_v14, %v7702_v44  ;;  %v10438_v41 = vld [vmem:[#allocation8 + $0x1a38] sm:$0xf0]  ;;  %v10942_v35 = vld [vmem:[#allocation8 + $0xbe4] sm:$0xf]  ;;  %v9214_v39 = vld [vmem:[#allocation8 + $0x10a8] sm:$0xf0] }
 0x1eb   :  { %5884 = vmatpush.bf16.msrb.mxu0 %v9789_v0  ;;  %5898 = vmatpush.bf16.msrb.mxu1 %v10365_v16  ;;  %v5600_v0 = vadd.f32 %v5599_v1, %v5586_v17  ;;  %v5640_v16 = vadd.f32 %v5639_v28, %v5626_v7  ;;  %v5613_v27 = vpop.f32.mrf.mxu0  ;;  %v7198_v1 = vld [vmem:[#allocation8 + $0xe8] sm:$0xf0]  ;;  %v5572_v12 = vadd.f32 %v11927_v62, %v5558_v40  ;;  %v11410_v7 = vld [vmem:[#allocation8 + $0x1a84] sm:$0xf]  ;;  %v11068_v56 = vld [vmem:[#allocation8 + $0xfd4] sm:$0xf] }
 0x1ec   :  { %5912 = vmatpush.bf16.msrb.mxu2 %v7489_v31  ;;  %5926 = vmatpush.bf16.msrb.mxu3 %v8065_v2  ;;  %v7273_v31 = vor.u32 %v10600_v21, %v7270_v37  ;;  %v9500_v2 = vld [vmem:[#allocation8 + $0x12a0] sm:$0xf]  ;;  %v7201_v55 = vor.u32 %v10582_v63, %v7198_v1  ;;  %v8782_v17 = vld [vmem:[#allocation8 + $0xd48] sm:$0xf0]  ;;  %v11086_v1 = vld [vmem:[#allocation8 + $0x1064] sm:$0xf] }
 0x1ed   :  { %v5654_v34 = vadd.f32 %v5653_v22, %v5640_v16  ;;  %v5614_v25 = vadd.f32 %v5613_v27, %v5600_v0  ;;  %v9501_v52 = vor.u32 %v11167_v32, %v9500_v2  ;;  %v8785_v28 = vor.u32 %v10978_v60, %v8782_v17  ;;  %v8710_v22 = vld [vmem:[#allocation8 + $0xcb8] sm:$0xf0]  ;;  %v11104_v0 = vld [vmem:[#allocation8 + $0x10f4] sm:$0xf]  ;;  %v8638_v63 = vld [vmem:[#allocation8 + $0xc28] sm:$0xf0] }
 0x1ee   :  { %v9286_v16 = vld [vmem:[#allocation8 + $0x1138] sm:$0xf0]  ;;  %v7008_v27 = vmul.f32 0.03608439, %v5572_v12  ;;  %v11392_v32 = vld [vmem:[#allocation8 + $0x19f4] sm:$0xf] }
 0x1ef   :  { %5885 = vmatpush.bf16.msrb.mxu0 %v9717_v10  ;;  %5899 = vmatpush.bf16.msrb.mxu1 %v10293_v42  ;;  %v7003_v10 = vmul.f32 0.03608439, %v5654_v34  ;;  %v9428_v42 = vld [vmem:[#allocation8 + $0x1210] sm:$0xf]  ;;  %v5628_v58 = vadd.f32 %v5627_v43, %v5614_v25  ;;  %v9862_v2 = vld [vmem:[#allocation8 + $0x15b8] sm:$0xf0]  ;;  %v8713_v34 = vor.u32 %v10960_v61, %v8710_v22  ;;  %v9289_v25 = vor.u32 %v11104_v0, %v9286_v16 }
 0x1f0   :  { %5913 = vmatpush.bf16.msrb.mxu2 %v7417_v46  ;;  %5927 = vmatpush.bf16.msrb.mxu3 %v7993_v54  ;;  %v10004_v46 = vld [vmem:[#allocation8 + $0x1690] sm:$0xf]  ;;  %v11293_v54 = vld [vmem:[#allocation8 + $0x16d4] sm:$0xf0]  ;;  %v5641_v33 = vpop.f32.mrf.mxu2  ;;  %v5655_v24 = vpop.f32.mrf.mxu3  ;;  %v9429_v19 = vor.u32 %v11149_v51, %v9428_v42  ;;  %v10441_v38 = vor.u32 %v11392_v32, %v10438_v41  ;;  %v11230_v40 = vld [vmem:[#allocation8 + $0x14e4] sm:$0xf]  ;;  %v8641_v43 = vor.u32 %v10942_v35, %v8638_v63 }
 0x1f1   :  { %v7014_v5 = vpack.c.bf16 %v7003_v10, %v7002_v49  ;;  %v10005_v21 = vor.u32 %v11293_v54, %v10004_v46  ;;  %v9790_v10 = vld [vmem:[#allocation8 + $0x1528] sm:$0xf0]  ;;  %v11374_v42 = vld [vmem:[#allocation8 + $0x1964] sm:$0xf]  ;;  %v11356_v20 = vld [vmem:[#allocation8 + $0x18d4] sm:$0xf] }
 0x1f2   :  { %v10366_v51 = vld [vmem:[#allocation8 + $0x19a8] sm:$0xf0]  ;;  %v9793_v46 = vor.u32 %v11230_v40, %v9790_v10  ;;  %v10294_v14 = vld [vmem:[#allocation8 + $0x1918] sm:$0xf0]  ;;  %v10906_v60 = vld [vmem:[#allocation8 + $0xac4] sm:$0xf] }
 0x1f3   :  { %5886 = vmatpush.bf16.msrb.mxu0 %v9645_v13  ;;  %5900 = vmatpush.bf16.msrb.mxu1 %v10221_v15  ;;  %7020 = vst [vmem:[#allocation11] sm:$0xff] %v7014_v5  ;;  %v5642_v13 = vadd.f32 %v5641_v33, %v5628_v58  ;;  %v9358_v15 = vld [vmem:[#allocation8 + $0x11c8] sm:$0xf0]  ;;  %v10369_v54 = vor.u32 %v11374_v42, %v10366_v51  ;;  %v9142_v5 = vld [vmem:[#allocation8 + $0x1018] sm:$0xf0] }
 0x1f4   :  { %5914 = vmatpush.bf16.msrb.mxu2 %v7345_v23  ;;  %5928 = vmatpush.bf16.msrb.mxu3 %v7921_v59  ;;  %v11266_v23 = vld [vmem:[#allocation8 + $0x1604] sm:$0xf]  ;;  %v10510_v59 = vld [vmem:[#allocation8 + $0x1ac8] sm:$0xf0]  ;;  %v9361_v62 = vor.u32 %v11122_v9, %v9358_v15  ;;  %v11212_v58 = vld [vmem:[#allocation8 + $0x1454] sm:$0xf]  ;;  %v9145_v33 = vor.u32 %v11068_v56, %v9142_v5  ;;  %v10297_v12 = vor.u32 %v11356_v20, %v10294_v14 }
 0x1f5   :  { %v5656_v37 = vadd.f32 %v5655_v24, %v5642_v13  ;;  %v8494_v17 = vld [vmem:[#allocation8 + $0xb08] sm:$0xf0]  ;;  %v11050_v13 = vld [vmem:[#allocation8 + $0xf44] sm:$0xf]  ;;  %v11032_v61 = vld [vmem:[#allocation8 + $0xeb4] sm:$0xf] }
 0x1f6   :  { %v9070_v15 = vld [vmem:[#allocation8 + $0xf88] sm:$0xf0]  ;;  %v9574_v22 = vld [vmem:[#allocation8 + $0x1378] sm:$0xf0]  ;;  %v11320_v0 = vld [vmem:[#allocation8 + $0x17b4] sm:$0xf] }
 0x1f7   :  { %5887 = vmatpush.bf16.msrb.mxu0 %v9573_v29  ;;  %5901 = vmatpush.bf16.msrb.mxu1 %v10149_v30  ;;  %v7009_v29 = vmul.f32 0.03608439, %v5656_v37  ;;  %v9937_v30 = vor.u32 %v11266_v23, %v9934_v18  ;;  %v11194_v23 = vld [vmem:[#allocation8 + $0x13c4] sm:$0xf]  ;;  %v9646_v24 = vld [vmem:[#allocation8 + $0x1408] sm:$0xf0]  ;;  %v8497_v18 = vor.u32 %v10906_v60, %v8494_v17 }
 0x1f8   :  { %5915 = vmatpush.bf16.msrb.mxu2 %v7273_v31  ;;  %5929 = vmatpush.bf16.msrb.mxu3 %v7849_v4  ;;  %v10513_v31 = vor.u32 %v11410_v7, %v10510_v59  ;;  %v11248_v4 = vld [vmem:[#allocation8 + $0x1574] sm:$0xf]  ;;  %v9073_v7 = vor.u32 %v11050_v13, %v9070_v15  ;;  %v8422_v37 = vld [vmem:[#allocation8 + $0xa78] sm:$0xf0]  ;;  %v11014_v32 = vld [vmem:[#allocation8 + $0xe24] sm:$0xf] }
 0x1f9   :  { %v7017_v3 = vpack.c.bf16 %v7009_v29, %v7008_v27  ;;  %v9865_v49 = vor.u32 %v11248_v4, %v9862_v2  ;;  %v10888_v59 = vld [vmem:[#allocation8 + $0xa34] sm:$0xf]  ;;  %v10150_v16 = vld [vmem:[#allocation8 + $0x17f8] sm:$0xf0]  ;;  %v8926_v41 = vld [vmem:[#allocation8 + $0xe68] sm:$0xf0] }
 0x1fa   :  { %v8425_v27 = vor.u32 %v10888_v59, %v8422_v37  ;;  %v10153_v2 = vor.u32 %v11320_v0, %v10150_v16  ;;  %v10078_v35 = vld [vmem:[#allocation8 + $0x1768] sm:$0xf0]  ;;  %v10852_v63 = vld [vmem:[#allocation8 + $0x914] sm:$0xf]  ;;  %v8854_v40 = vld [vmem:[#allocation8 + $0xdd8] sm:$0xf0] }
 0x1fb   :  { %5888 = vmatpush.bf16.msrb.mxu0 %v9501_v52  ;;  %5902 = vmatpush.bf16.msrb.mxu1 %v10077_v8  ;;  %7023 = vst [vmem:[#allocation11 + $0x18] sm:$0xff] %v7017_v3  ;;  %v9217_v52 = vor.u32 %v11086_v1, %v9214_v39  ;;  %v10924_v8 = vld [vmem:[#allocation8 + $0xb54] sm:$0xf]  ;;  %v11158_v3 = vld [vmem:[#allocation8 + $0x12a4] sm:$0xf] }
 0x1fc   :  { %5916 = vmatpush.bf16.msrb.mxu2 %v7201_v55  ;;  %5930 = vmatpush.bf16.msrb.mxu3 %v7777_v36  ;;  %v8566_v55 = vld [vmem:[#allocation8 + $0xb98] sm:$0xf0]  ;;  %v10996_v39 = vld [vmem:[#allocation8 + $0xd94] sm:$0xf]  ;;  %v10844_v56 = vld [vmem:[#allocation8 + $0x8cc] sm:$0xf0] }
 0x1fd   :  { %v9718_v36 = vld [vmem:[#allocation8 + $0x1498] sm:$0xf0]  ;;  %v8569_v44 = vor.u32 %v10924_v8, %v8566_v55  ;;  %v11140_v51 = vld [vmem:[#allocation8 + $0x1214] sm:$0xf]  ;;  %v7636_v55 = vld [vmem:[#allocation8 + $0x408] sm:$0xf] }
 0x1fe   :  { %v9721_v9 = vor.u32 %v11212_v58, %v9718_v36  ;;  %v10006_v8 = vld [vmem:[#allocation8 + $0x16d8] sm:$0xf0]  ;;  %v8788_v5 = vld [vmem:[#allocation8 + $0xd08] sm:$0xf]  ;;  %v8857_v36 = vor.u32 %v10996_v39, %v8854_v40  ;;  %v10988_v20 = vld [vmem:[#allocation8 + $0xd4c] sm:$0xf0] }
 0x1ff   :  { %5889 = vmatpush.bf16.msrb.mxu0 %v9429_v19  ;;  %5903 = vmatpush.bf16.msrb.mxu1 %v10005_v21  ;;  %v11338_v19 = vld [vmem:[#allocation8 + $0x1844] sm:$0xf]  ;;  %v10222_v21 = vld [vmem:[#allocation8 + $0x1888] sm:$0xf0]  ;;  %v9364_v14 = vld [vmem:[#allocation8 + $0x1188] sm:$0xf]  ;;  %v8789_v15 = vor.u32 %v10988_v20, %v8788_v5 }
 0x200   :  { %5917 = vmatpush.bf16.msrb.mxu2 %v7129_v11  ;;  %5931 = vmatpush.bf16.msrb.mxu3 %v7705_v26  ;;  %v9649_v11 = vor.u32 %v11194_v23, %v9646_v24  ;;  %v10225_v26 = vor.u32 %v11338_v19, %v10222_v21  ;;  %v10682_v13 = vld [vmem:[#allocation8 + $0x3bc] sm:$0xf0]  ;;  %v8140_v24 = vld [vmem:[#allocation8 + $0x7f8] sm:$0xf]  ;;  %v8068_v0 = vld [vmem:[#allocation8 + $0x768] sm:$0xf] }
 0x201   :  { %v10826_v19 = vld [vmem:[#allocation8 + $0x83c] sm:$0xf0]  ;;  %v8716_v21 = vld [vmem:[#allocation8 + $0xc78] sm:$0xf]  ;;  %v10808_v16 = vld [vmem:[#allocation8 + $0x7ac] sm:$0xf0] }
 0x202   :  { %5890 = vmatmul.bf16.vlgmr.msrb.gmra.mxu0 %v11874_v6  ;;  %5904 = vmatmul.bf16.vlgmr.msrb.gmra.mxu1 %v11876_v57  ;;  %v11114_v59 = vld [vmem:[#allocation8 + $0x113c] sm:$0xf0]  ;;  %v10916_v5 = vld [vmem:[#allocation8 + $0xb0c] sm:$0xf0] }
 0x203   :  { %5938 = vmatpush.bf16.msra.mxu0 %v8785_v28  ;;  %5952 = vmatpush.bf16.msra.mxu1 %v9361_v62  ;;  %v8998_v28 = vld [vmem:[#allocation8 + $0xef8] sm:$0xf0]  ;;  %v11176_v62 = vld [vmem:[#allocation8 + $0x1334] sm:$0xf]  ;;  %v11078_v39 = vld [vmem:[#allocation8 + $0x101c] sm:$0xf0] }
 0x204   :  { %5966 = vmatpush.bf16.msra.mxu2 %v9937_v30  ;;  %5980 = vmatpush.bf16.msra.mxu3 %v10513_v31  ;;  %v9001_v29 = vor.u32 %v11032_v61, %v8998_v28  ;;  %v10870_v30 = vld [vmem:[#allocation8 + $0x9a4] sm:$0xf]  ;;  %v8350_v31 = vld [vmem:[#allocation8 + $0x9e8] sm:$0xf0]  ;;  %v9577_v4 = vor.u32 %v11176_v62, %v9574_v22  ;;  %v10664_v61 = vld [vmem:[#allocation8 + $0x32c] sm:$0xf0]  ;;  %v11954_v28 = vpop.f32.mrf.mxu0 }
 0x205   :  { %5918 = vmatmul.bf16.vlgmr.msrb.gmra.mxu2 %v11852_v47  ;;  %5932 = vmatmul.bf16.vlgmr.msrb.gmra.mxu3 %v11854_v48  ;;  %v8353_v1 = vor.u32 %v10870_v30, %v8350_v31  ;;  %v9220_v30 = vld [vmem:[#allocation8 + $0x1068] sm:$0xf]  ;;  %v11096_v31 = vld [vmem:[#allocation8 + $0x10ac] sm:$0xf0] }
 0x207   :  { %5939 = vmatpush.bf16.msra.mxu0 %v8713_v34  ;;  %5953 = vmatpush.bf16.msra.mxu1 %v9289_v25  ;;  %v9502_v34 = vld [vmem:[#allocation8 + $0x12e8] sm:$0xf0]  ;;  %v11302_v25 = vld [vmem:[#allocation8 + $0x1724] sm:$0xf] }
 0x208   :  { %5967 = vmatpush.bf16.msra.mxu2 %v9865_v49  ;;  %5981 = vmatpush.bf16.msra.mxu3 %v10441_v38  ;;  %v8929_v49 = vor.u32 %v11014_v32, %v8926_v41  ;;  %v8278_v38 = vld [vmem:[#allocation8 + $0x958] sm:$0xf0]  ;;  %v9505_v10 = vor.u32 %v11158_v3, %v9502_v34  ;;  %v10081_v42 = vor.u32 %v11302_v25, %v10078_v35  ;;  %v7420_v41 = vld [vmem:[#allocation8 + $0x258] sm:$0xf]  ;;  %v10646_v3 = vld [vmem:[#allocation8 + $0x29c] sm:$0xf0]  ;;  %v11962_v40 = vpop.f32.mrf.mxu2 }
 0x209   :  { %v8281_v58 = vor.u32 %v10852_v63, %v8278_v38  ;;  %v8069_v32 = vor.u32 %v10808_v16, %v8068_v0  ;;  %v9221_v25 = vor.u32 %v11096_v31, %v9220_v30  ;;  %v7996_v35 = vld [vmem:[#allocation8 + $0x6d8] sm:$0xf]  ;;  %v10790_v63 = vld [vmem:[#allocation8 + $0x71c] sm:$0xf0]  ;;  %v11024_v30 = vld [vmem:[#allocation8 + $0xe6c] sm:$0xf0] }
 0x20a   :  { %v9148_v38 = vld [vmem:[#allocation8 + $0xfd8] sm:$0xf]  ;;  %v1136_v31 = vperm.slane %v11910_v45, 2 }
 0x20b   :  { %5940 = vmatpush.bf16.msra.mxu0 %v8641_v43  ;;  %5954 = vmatpush.bf16.msra.mxu1 %v9217_v52  ;;  %v9430_v43 = vld [vmem:[#allocation8 + $0x1258] sm:$0xf0]  ;;  %v11284_v52 = vld [vmem:[#allocation8 + $0x1694] sm:$0xf] }
 0x20c   :  { %5968 = vmatpush.bf16.msra.mxu2 %v9793_v46  ;;  %5982 = vmatpush.bf16.msra.mxu3 %v10369_v54  ;;  %v10700_v46 = vld [vmem:[#allocation8 + $0x44c] sm:$0xf0]  ;;  %v8212_v54 = vld [vmem:[#allocation8 + $0x888] sm:$0xf]  ;;  %v10009_v60 = vor.u32 %v11284_v52, %v10006_v8  ;;  %v11966_v20 = vpop.f32.mrf.mxu0 }
 0x20d   :  { %v7637_v17 = vor.u32 %v10700_v46, %v7636_v55  ;;  %v10628_v52 = vld [vmem:[#allocation8 + $0x20c] sm:$0xf0]  ;;  %v9149_v55 = vor.u32 %v11078_v39, %v9148_v38  ;;  %v7924_v46 = vld [vmem:[#allocation8 + $0x648] sm:$0xf]  ;;  %v10862_v38 = vld [vmem:[#allocation8 + $0x95c] sm:$0xf0] }
 0x20e   :  { %v8860_v39 = vld [vmem:[#allocation8 + $0xd98] sm:$0xf] }
 0x20f   :  { %5941 = vmatpush.bf16.msra.mxu0 %v8569_v44  ;;  %5955 = vmatpush.bf16.msra.mxu1 %v9145_v33  ;;  %v11132_v44 = vld [vmem:[#allocation8 + $0x11cc] sm:$0xf0]  ;;  %v9433_v33 = vor.u32 %v11140_v51, %v9430_v43  ;;  %v7997_v51 = vor.u32 %v10790_v63, %v7996_v35  ;;  %v7348_v43 = vld [vmem:[#allocation8 + $0x1c8] sm:$0xf]  ;;  %v10718_v35 = vld [vmem:[#allocation8 + $0x4dc] sm:$0xf0] }
 0x210   :  { %5969 = vmatpush.bf16.msra.mxu2 %v9721_v9  ;;  %5983 = vmatpush.bf16.msra.mxu3 %v10297_v12  ;;  %v8213_v9 = vor.u32 %v10844_v56, %v8212_v54  ;;  %v7564_v12 = vld [vmem:[#allocation8 + $0x378] sm:$0xf]  ;;  %v9365_v23 = vor.u32 %v11132_v44, %v9364_v14  ;;  %v10772_v54 = vld [vmem:[#allocation8 + $0x68c] sm:$0xf0]  ;;  %v8500_v56 = vld [vmem:[#allocation8 + $0xac8] sm:$0xf]  ;;  %v7349_v14 = vor.u32 %v10628_v52, %v7348_v43  ;;  %v11970_v0 = vpop.f32.mrf.mxu2 }
 0x211   :  { %v7565_v37 = vor.u32 %v10682_v13, %v7564_v12  ;;  %v7925_v44 = vor.u32 %v10772_v54, %v7924_v46  ;;  %v7852_v12 = vld [vmem:[#allocation8 + $0x5b8] sm:$0xf]  ;;  %v10754_v13 = vld [vmem:[#allocation8 + $0x5fc] sm:$0xf0]  ;;  %v9940_v43 = vld [vmem:[#allocation8 + $0x1608] sm:$0xf] }
 0x212   :  { %v11276_v52 = vld [vmem:[#allocation8 + $0x164c] sm:$0xf0]  ;;  %v10691_v46 = vld [vmem:[#allocation8 + $0x40c] sm:$0xf] }
 0x213   :  { %5942 = vmatpush.bf16.msra.mxu0 %v8497_v18  ;;  %5956 = vmatpush.bf16.msra.mxu1 %v9073_v7  ;;  %v10970_v18 = vld [vmem:[#allocation8 + $0xcbc] sm:$0xf0]  ;;  %v9292_v7 = vld [vmem:[#allocation8 + $0x10f8] sm:$0xf] }
 0x214   :  { %5970 = vmatpush.bf16.msra.mxu2 %v9649_v11  ;;  %5984 = vmatpush.bf16.msra.mxu3 %v10225_v26  ;;  %v8141_v11 = vor.u32 %v10826_v19, %v8140_v24  ;;  %v7492_v26 = vld [vmem:[#allocation8 + $0x2e8] sm:$0xf]  ;;  %v8717_v62 = vor.u32 %v10970_v18, %v8716_v21  ;;  %v9293_v22 = vor.u32 %v11114_v59, %v9292_v7  ;;  %v10898_v24 = vld [vmem:[#allocation8 + $0xa7c] sm:$0xf0]  ;;  %v9004_v19 = vld [vmem:[#allocation8 + $0xeb8] sm:$0xf] }
 0x215   :  { %v11042_v21 = vld [vmem:[#allocation8 + $0xefc] sm:$0xf0]  ;;  %v7853_v7 = vor.u32 %v10754_v13, %v7852_v12  ;;  %v7204_v59 = vld [vmem:[#allocation8 + $0xa8] sm:$0xf]  ;;  %v9868_v12 = vld [vmem:[#allocation8 + $0x1578] sm:$0xf] }
 0x216   :  { %v11258_v13 = vld [vmem:[#allocation8 + $0x15bc] sm:$0xf0] }
 0x217   :  { %5943 = vmatpush.bf16.msra.mxu0 %v8425_v27  ;;  %5957 = vmatpush.bf16.msra.mxu1 %v9001_v29  ;;  %v8644_v27 = vld [vmem:[#allocation8 + $0xbe8] sm:$0xf]  ;;  %v10952_v29 = vld [vmem:[#allocation8 + $0xc2c] sm:$0xf0] }
 0x218   :  { %5971 = vmatpush.bf16.msra.mxu2 %v9577_v4  ;;  %5985 = vmatpush.bf16.msra.mxu3 %v10153_v2  ;;  %v11960_v4 = vpop.f32.mrf.mxu1  ;;  %v7493_v2 = vor.u32 %v10664_v61, %v7492_v26  ;;  %v8645_v34 = vor.u32 %v10952_v29, %v8644_v27  ;;  %v9005_v26 = vor.u32 %v11042_v21, %v9004_v19  ;;  %v7780_v61 = vld [vmem:[#allocation8 + $0x528] sm:$0xf]  ;;  %v10880_v27 = vld [vmem:[#allocation8 + $0x9ec] sm:$0xf0]  ;;  %v10444_v21 = vld [vmem:[#allocation8 + $0x19f8] sm:$0xf] }
 0x219   :  { %v8932_v29 = vld [vmem:[#allocation8 + $0xe28] sm:$0xf] }
 0x21b   :  { %5944 = vmatpush.bf16.msra.mxu0 %v8353_v1  ;;  %5958 = vmatpush.bf16.msra.mxu1 %v8929_v49  ;;  %v8572_v1 = vld [vmem:[#allocation8 + $0xb58] sm:$0xf]  ;;  %v10934_v49 = vld [vmem:[#allocation8 + $0xb9c] sm:$0xf0] }
 0x21c   :  { %5972 = vmatpush.bf16.msra.mxu2 %v9505_v10  ;;  %5986 = vmatpush.bf16.msra.mxu3 %v10081_v42  ;;  %v11964_v10 = vpop.f32.mrf.mxu3  ;;  %v7421_v42 = vor.u32 %v10646_v3, %v7420_v41  ;;  %v8573_v8 = vor.u32 %v10934_v49, %v8572_v1  ;;  %v8933_v1 = vor.u32 %v11024_v30, %v8932_v29  ;;  %v8284_v49 = vld [vmem:[#allocation8 + $0x918] sm:$0xf]  ;;  %v11240_v29 = vld [vmem:[#allocation8 + $0x152c] sm:$0xf0] }
 0x21f   :  { %5945 = vmatpush.bf16.msra.mxu0 %v8281_v58  ;;  %5959 = vmatpush.bf16.msra.mxu1 %v8857_v36  ;;  %v9076_v58 = vld [vmem:[#allocation8 + $0xf48] sm:$0xf]  ;;  %v11060_v36 = vld [vmem:[#allocation8 + $0xf8c] sm:$0xf0] }
 0x220   :  { %5973 = vmatpush.bf16.msra.mxu2 %v9433_v33  ;;  %5987 = vmatpush.bf16.msra.mxu3 %v10009_v60  ;;  %v7276_v33 = vld [vmem:[#allocation8 + $0x138] sm:$0xf]  ;;  %v10610_v60 = vld [vmem:[#allocation8 + $0x17c] sm:$0xf0] }
 0x221   :  { %v7277_v18 = vor.u32 %v10610_v60, %v7276_v33 }
 0x222   :  { %5946 = vmatmul.bf16.vlgmr.msra.gmra.mxu0 %v11856_v50  ;;  %5960 = vmatmul.bf16.vlgmr.msra.gmra.mxu1 %v11858_v53 }
 0x223   :  { %5994 = vmatpush.bf16.msrb.mxu0 %v7637_v17  ;;  %6008 = vmatpush.bf16.msrb.mxu1 %v8213_v9  ;;  %v8501_v17 = vor.u32 %v10916_v5, %v8500_v56  ;;  %v9077_v9 = vor.u32 %v11060_v36, %v9076_v58  ;;  %v7638_v5 = vld [vmem:[#allocation8 + $0x450] sm:$0xf0]  ;;  %v10835_v58 = vld [vmem:[#allocation8 + $0x88c] sm:$0xf] }
 0x224   :  { %6022 = vmatpush.bf16.msrb.mxu2 %v8789_v15  ;;  %6036 = vmatpush.bf16.msrb.mxu3 %v9365_v23  ;;  %v8428_v15 = vld [vmem:[#allocation8 + $0xa38] sm:$0xf]  ;;  %v11968_v23 = vpop.f32.mrf.mxu1  ;;  %v11972_v16 = vpop.f32.mrf.mxu3  ;;  %v8214_v36 = vld [vmem:[#allocation8 + $0x8d0] sm:$0xf0] }
 0x225   :  { %5974 = vmatmul.bf16.vlgmr.msra.gmra.mxu2 %v11874_v6  ;;  %5988 = vmatmul.bf16.vlgmr.msra.gmra.mxu3 %v11876_v57  ;;  %v8217_v19 = vor.u32 %v10835_v58, %v8214_v36  ;;  %v10781_v58 = vld [vmem:[#allocation8 + $0x6dc] sm:$0xf]  ;;  %v7998_v36 = vld [vmem:[#allocation8 + $0x720] sm:$0xf0] }
 0x227   :  { %5995 = vmatpush.bf16.msrb.mxu0 %v7565_v37  ;;  %6009 = vmatpush.bf16.msrb.mxu1 %v8141_v11  ;;  %v10592_v37 = vld [vmem:[#allocation8 + $0xec] sm:$0xf0]  ;;  %v8429_v11 = vor.u32 %v10898_v24, %v8428_v15  ;;  %v5668_v15 = vadd.f32 %v11954_v28, %v1136_v31  ;;  %v7641_v24 = vor.u32 %v10691_v46, %v7638_v5  ;;  %v7422_v5 = vld [vmem:[#allocation8 + $0x2a0] sm:$0xf0] }
 0x228   :  { %6023 = vmatpush.bf16.msrb.mxu2 %v8717_v62  ;;  %6037 = vmatpush.bf16.msrb.mxu3 %v9293_v22  ;;  %v10736_v62 = vld [vmem:[#allocation8 + $0x56c] sm:$0xf0]  ;;  %v8356_v22 = vld [vmem:[#allocation8 + $0x9a8] sm:$0xf]  ;;  %v7205_v41 = vor.u32 %v10592_v37, %v7204_v59  ;;  %v5751_v33 = vpop.f32.mrf.mxu2  ;;  %v7566_v59 = vld [vmem:[#allocation8 + $0x3c0] sm:$0xf0]  ;;  %v9869_v28 = vor.u32 %v11258_v13, %v9868_v12 }
 0x229   :  { %v7781_v3 = vor.u32 %v10736_v62, %v7780_v61  ;;  %v8357_v63 = vor.u32 %v10880_v27, %v8356_v22  ;;  %v10817_v37 = vld [vmem:[#allocation8 + $0x7fc] sm:$0xf]  ;;  %v9796_v27 = vld [vmem:[#allocation8 + $0x14e8] sm:$0xf]  ;;  %v5682_v30 = vadd.f32 %v11960_v4, %v5668_v15  ;;  %v8070_v4 = vld [vmem:[#allocation8 + $0x7b0] sm:$0xf0] }
 0x22a   :  { %v9797_v45 = vor.u32 %v11240_v29, %v9796_v27  ;;  %v9652_v13 = vld [vmem:[#allocation8 + $0x13c8] sm:$0xf]  ;;  %v11204_v15 = vld [vmem:[#allocation8 + $0x140c] sm:$0xf0]  ;;  %v9580_v29 = vld [vmem:[#allocation8 + $0x1338] sm:$0xf] }
 0x22b   :  { %5996 = vmatpush.bf16.msrb.mxu0 %v7493_v2  ;;  %6010 = vmatpush.bf16.msrb.mxu1 %v8069_v32  ;;  %v11975_v2 = vpop.f32.mrf.mxu0  ;;  %v7132_v32 = vld [vmem:[#allocation8 + $0x18] sm:$0xf] }
 0x22c   :  { %6024 = vmatpush.bf16.msrb.mxu2 %v8645_v34  ;;  %6038 = vmatpush.bf16.msrb.mxu3 %v9221_v25  ;;  %v10574_v34 = vld [vmem:[#allocation8 + $0x5c] sm:$0xf0]  ;;  %v7708_v25 = vld [vmem:[#allocation8 + $0x498] sm:$0xf]  ;;  %v11979_v60 = vpop.f32.mrf.mxu3 }
 0x22d   :  { %v7133_v54 = vor.u32 %v10574_v34, %v7132_v32  ;;  %v7709_v56 = vor.u32 %v10718_v35, %v7708_v25  ;;  %v11384_v34 = vld [vmem:[#allocation8 + $0x19ac] sm:$0xf0]  ;;  %v10655_v25 = vld [vmem:[#allocation8 + $0x2ec] sm:$0xf]  ;;  %v5670_v35 = vadd.f32 %v11966_v20, %v1136_v31  ;;  %v9724_v31 = vld [vmem:[#allocation8 + $0x1458] sm:$0xf] }
 0x22f   :  { %5997 = vmatpush.bf16.msrb.mxu0 %v7421_v42  ;;  %6011 = vmatpush.bf16.msrb.mxu1 %v7997_v51  ;;  %v11977_v42 = vpop.f32.mrf.mxu1  ;;  %v11006_v51 = vld [vmem:[#allocation8 + $0xddc] sm:$0xf0]  ;;  %v5684_v46 = vadd.f32 %v11968_v23, %v5670_v35  ;;  %v7278_v35 = vld [vmem:[#allocation8 + $0x180] sm:$0xf0] }
 0x230   :  { %6025 = vmatpush.bf16.msrb.mxu2 %v8573_v8  ;;  %6039 = vmatpush.bf16.msrb.mxu3 %v9149_v55  ;;  %v10516_v8 = vld [vmem:[#allocation8 + $0x1a88] sm:$0xf]  ;;  %v11420_v55 = vld [vmem:[#allocation8 + $0x1acc] sm:$0xf0] }
 0x233   :  { %5998 = vmatpush.bf16.msrb.mxu0 %v7349_v14  ;;  %6012 = vmatpush.bf16.msrb.mxu1 %v7925_v44  ;;  %v8285_v14 = vor.u32 %v10862_v38, %v8284_v49  ;;  %v8861_v44 = vor.u32 %v11006_v51, %v8860_v39  ;;  %v11987_v62 = vpop.f32.mrf.mxu0  ;;  %v10799_v49 = vld [vmem:[#allocation8 + $0x76c] sm:$0xf]  ;;  %v5696_v38 = vadd.f32 %v11962_v40, %v5682_v30  ;;  %v11222_v51 = vld [vmem:[#allocation8 + $0x149c] sm:$0xf0]  ;;  %v10637_v40 = vld [vmem:[#allocation8 + $0x25c] sm:$0xf] }
 0x234   :  { %6026 = vmatpush.bf16.msrb.mxu2 %v8501_v17  ;;  %6040 = vmatpush.bf16.msrb.mxu3 %v9077_v9  ;;  %v9941_v17 = vor.u32 %v11276_v52, %v9940_v43  ;;  %v10517_v9 = vor.u32 %v11420_v55, %v10516_v8  ;;  %v8073_v52 = vor.u32 %v10799_v49, %v8070_v4  ;;  %v10300_v8 = vld [vmem:[#allocation8 + $0x18d8] sm:$0xf]  ;;  %v11366_v55 = vld [vmem:[#allocation8 + $0x191c] sm:$0xf0]  ;;  %v7854_v4 = vld [vmem:[#allocation8 + $0x600] sm:$0xf0] }
 0x235   :  { %v10301_v12 = vor.u32 %v11366_v55, %v10300_v8  ;;  %v11186_v30 = vld [vmem:[#allocation8 + $0x137c] sm:$0xf0]  ;;  %v11168_v8 = vld [vmem:[#allocation8 + $0x12ec] sm:$0xf0]  ;;  %v10084_v55 = vld [vmem:[#allocation8 + $0x1728] sm:$0xf] }
 0x237   :  { %5999 = vmatpush.bf16.msrb.mxu0 %v7277_v18  ;;  %6013 = vmatpush.bf16.msrb.mxu1 %v7853_v7  ;;  %v11402_v18 = vld [vmem:[#allocation8 + $0x1a3c] sm:$0xf0]  ;;  %v10673_v7 = vld [vmem:[#allocation8 + $0x37c] sm:$0xf] }
 0x238   :  { %6027 = vmatpush.bf16.msrb.mxu2 %v8429_v11  ;;  %6041 = vmatpush.bf16.msrb.mxu3 %v9005_v26  ;;  %v8142_v11 = vld [vmem:[#allocation8 + $0x840] sm:$0xf0]  ;;  %v10445_v22 = vor.u32 %v11402_v18, %v10444_v21  ;;  %v7569_v32 = vor.u32 %v10673_v7, %v7566_v59  ;;  %v10228_v21 = vld [vmem:[#allocation8 + $0x1848] sm:$0xf]  ;;  %v11348_v18 = vld [vmem:[#allocation8 + $0x188c] sm:$0xf0] }
 0x239   :  { %v11984_v26 = vld [vmem:[#allocation10] sm:$0xff]  ;;  %v10619_v7 = vld [vmem:[#allocation8 + $0x1cc] sm:$0xf]  ;;  %v7350_v59 = vld [vmem:[#allocation8 + $0x210] sm:$0xf0]  ;;  %v10229_v27 = vor.u32 %v11348_v18, %v10228_v21 }
 0x23a   :  { %v1137_v61 = vperm.slane %v11984_v26, 3 }
 0x23b   :  { %6000 = vmatpush.bf16.msrb.mxu0 %v7205_v41  ;;  %6014 = vmatpush.bf16.msrb.mxu1 %v7781_v3  ;;  %v8145_v41 = vor.u32 %v10817_v37, %v8142_v11  ;;  %v10372_v3 = vld [vmem:[#allocation8 + $0x1968] sm:$0xf]  ;;  %v10763_v37 = vld [vmem:[#allocation8 + $0x64c] sm:$0xf] }
 0x23c   :  { %6028 = vmatpush.bf16.msrb.mxu2 %v8357_v63  ;;  %6042 = vmatpush.bf16.msrb.mxu3 %v8933_v1  ;;  %v11993_v63 = vpop.f32.mrf.mxu1  ;;  %v7494_v1 = vld [vmem:[#allocation8 + $0x330] sm:$0xf0]  ;;  %v5752_v39 = vadd.f32 %v5751_v33, %v1137_v61  ;;  %v10373_v20 = vor.u32 %v11384_v34, %v10372_v3  ;;  %v11330_v34 = vld [vmem:[#allocation8 + $0x17fc] sm:$0xf0] }
 0x23d   :  { %v7497_v43 = vor.u32 %v10655_v25, %v7494_v1  ;;  %v10601_v25 = vld [vmem:[#allocation8 + $0x13c] sm:$0xf] }
 0x23f   :  { %6001 = vmatpush.bf16.msrb.mxu0 %v7133_v54  ;;  %6015 = vmatpush.bf16.msrb.mxu1 %v7709_v56  ;;  %v5753_v54 = vpop.f32.mrf.mxu2  ;;  %v5767_v56 = vpop.f32.mrf.mxu3 }
 0x240   :  { %6029 = vmatpush.bf16.msrb.mxu2 %v8285_v14  ;;  %6043 = vmatpush.bf16.msrb.mxu3 %v8861_v44  ;;  %v5710_v14 = vadd.f32 %v11964_v10, %v5696_v38  ;;  %v5766_v44 = vadd.f32 %v11979_v60, %v5752_v39  ;;  %v5779_v33 = vpop.f32.mrf.mxu0  ;;  %v5754_v11 = vadd.f32 %v5753_v54, %v1137_v61  ;;  %v11312_v54 = vld [vmem:[#allocation8 + $0x176c] sm:$0xf0] }
 0x242   :  { %6002 = vmatmul.bf16.vlgmr.msrb.gmra.mxu0 %v11852_v47  ;;  %6016 = vmatmul.bf16.vlgmr.msrb.gmra.mxu1 %v11854_v48  ;;  %v5780_v23 = vadd.f32 %v5779_v33, %v5766_v44  ;;  %v5724_v10 = vadd.f32 %v11975_v2, %v5710_v14  ;;  %v7353_v2 = vor.u32 %v10619_v7, %v7350_v59  ;;  %v9436_v33 = vld [vmem:[#allocation8 + $0x1218] sm:$0xf] }
 0x243   :  { %6050 = vmatpush.bf16.msra.mxu0 %v9941_v17  ;;  %6064 = vmatpush.bf16.msra.mxu1 %v10517_v9  ;;  %v5698_v17 = vadd.f32 %v11970_v0, %v5684_v46  ;;  %v9725_v9 = vor.u32 %v11222_v51, %v9724_v31  ;;  %v7926_v0 = vld [vmem:[#allocation8 + $0x690] sm:$0xf0]  ;;  %v5768_v39 = vadd.f32 %v5767_v56, %v5754_v11  ;;  %v10727_v56 = vld [vmem:[#allocation8 + $0x52c] sm:$0xf] }
 0x244   :  { %6078 = vmatpush.bf16.msra.mxu2 %v7641_v24  ;;  %6092 = vmatpush.bf16.msra.mxu3 %v8217_v19  ;;  %v7425_v24 = vor.u32 %v10637_v40, %v7422_v5  ;;  %v8001_v19 = vor.u32 %v10781_v58, %v7998_v36  ;;  %v5793_v60 = vpop.f32.mrf.mxu1  ;;  %v7929_v3 = vor.u32 %v10763_v37, %v7926_v0  ;;  %v10583_v5 = vld [vmem:[#allocation8 + $0xac] sm:$0xf]  ;;  %v7206_v58 = vld [vmem:[#allocation8 + $0xf0] sm:$0xf0] }
 0x245   :  { %6030 = vmatmul.bf16.vlgmr.msrb.gmra.mxu2 %v11856_v50  ;;  %6044 = vmatmul.bf16.vlgmr.msrb.gmra.mxu3 %v11858_v53  ;;  %v5738_v1 = vadd.f32 %v11977_v42, %v5724_v10  ;;  %v9581_v31 = vor.u32 %v11186_v30, %v9580_v29  ;;  %v7782_v36 = vld [vmem:[#allocation8 + $0x570] sm:$0xf0]  ;;  %v7134_v10 = vld [vmem:[#allocation8 + $0x60] sm:$0xf0]  ;;  %v10979_v37 = vld [vmem:[#allocation8 + $0xd0c] sm:$0xf] }
 0x246   :  { %v7785_v7 = vor.u32 %v10727_v56, %v7782_v36  ;;  %v8790_v0 = vld [vmem:[#allocation8 + $0xd50] sm:$0xf0]  ;;  %v11123_v11 = vld [vmem:[#allocation8 + $0x118c] sm:$0xf] }
 0x247   :  { %6051 = vmatpush.bf16.msra.mxu0 %v9869_v28  ;;  %6065 = vmatpush.bf16.msra.mxu1 %v10445_v22  ;;  %v5712_v28 = vadd.f32 %v11972_v16, %v5698_v17  ;;  %v9653_v22 = vor.u32 %v11204_v15, %v9652_v13  ;;  %v10745_v16 = vld [vmem:[#allocation8 + $0x5bc] sm:$0xf]  ;;  %v11150_v17 = vld [vmem:[#allocation8 + $0x125c] sm:$0xf0]  ;;  %v10085_v13 = vor.u32 %v11312_v54, %v10084_v55  ;;  %v8646_v54 = vld [vmem:[#allocation8 + $0xc30] sm:$0xf0] }
 0x248   :  { %6079 = vmatpush.bf16.msra.mxu2 %v7569_v32  ;;  %6093 = vmatpush.bf16.msra.mxu3 %v8145_v41  ;;  %v10156_v32 = vld [vmem:[#allocation8 + $0x17b8] sm:$0xf]  ;;  %v5794_v41 = vadd.f32 %v5793_v60, %v5780_v23  ;;  %v5807_v61 = vpop.f32.mrf.mxu2  ;;  %v5821_v49 = vpop.f32.mrf.mxu3  ;;  %v7857_v46 = vor.u32 %v10745_v16, %v7854_v4  ;;  %v7209_v15 = vor.u32 %v10583_v5, %v7206_v58  ;;  %v10709_v60 = vld [vmem:[#allocation8 + $0x49c] sm:$0xf]  ;;  %v8718_v4 = vld [vmem:[#allocation8 + $0xcc0] sm:$0xf0] }
 0x249   :  { %v5726_v38 = vadd.f32 %v11987_v62, %v5712_v28  ;;  %v10157_v51 = vor.u32 %v11330_v34, %v10156_v32  ;;  %v7004_v62 = vmul.f32 0.03608439, %v5738_v1  ;;  %v10012_v23 = vld [vmem:[#allocation8 + $0x1698] sm:$0xf]  ;;  %v9437_v30 = vor.u32 %v11150_v17, %v9436_v33  ;;  %v10961_v16 = vld [vmem:[#allocation8 + $0xc7c] sm:$0xf] }
 0x24a   :  { %v11087_v5 = vld [vmem:[#allocation8 + $0x106c] sm:$0xf]  ;;  %v9222_v56 = vld [vmem:[#allocation8 + $0x10b0] sm:$0xf0] }
 0x24b   :  { %6052 = vmatpush.bf16.msra.mxu0 %v9797_v45  ;;  %6066 = vmatpush.bf16.msra.mxu1 %v10373_v20  ;;  %v5808_v45 = vadd.f32 %v5807_v61, %v5794_v41  ;;  %v5781_v20 = vpop.f32.mrf.mxu0  ;;  %v5740_v14 = vadd.f32 %v11993_v63, %v5726_v38  ;;  %v7710_v63 = vld [vmem:[#allocation8 + $0x4e0] sm:$0xf0]  ;;  %v9942_v41 = vld [vmem:[#allocation8 + $0x1650] sm:$0xf0]  ;;  %v8793_v61 = vor.u32 %v10979_v37, %v8790_v0  ;;  %v11105_v38 = vld [vmem:[#allocation8 + $0x10fc] sm:$0xf] }
 0x24c   :  { %6080 = vmatpush.bf16.msra.mxu2 %v7497_v43  ;;  %6094 = vmatpush.bf16.msra.mxu3 %v8073_v52  ;;  %v7281_v43 = vor.u32 %v10601_v25, %v7278_v35  ;;  %v9508_v52 = vld [vmem:[#allocation8 + $0x12a8] sm:$0xf]  ;;  %v5782_v40 = vadd.f32 %v5781_v20, %v5768_v39  ;;  %v7713_v1 = vor.u32 %v10709_v60, %v7710_v63  ;;  %v11231_v36 = vld [vmem:[#allocation8 + $0x14ec] sm:$0xf]  ;;  %v10374_v33 = vld [vmem:[#allocation8 + $0x19b0] sm:$0xf0] }
 0x24d   :  { %v5822_v42 = vadd.f32 %v5821_v49, %v5808_v45  ;;  %v7010_v34 = vmul.f32 0.03608439, %v5740_v14  ;;  %v9798_v14 = vld [vmem:[#allocation8 + $0x1530] sm:$0xf0] }
 0x24e   :  { %v8502_v37 = vld [vmem:[#allocation8 + $0xb10] sm:$0xf0] }
 0x24f   :  { %6053 = vmatpush.bf16.msra.mxu0 %v9725_v9  ;;  %6067 = vmatpush.bf16.msra.mxu1 %v10301_v12  ;;  %v7005_v44 = vmul.f32 0.03608439, %v5822_v42  ;;  %v5795_v9 = vpop.f32.mrf.mxu1  ;;  %v9509_v12 = vor.u32 %v11168_v8, %v9508_v52  ;;  %v11393_v52 = vld [vmem:[#allocation8 + $0x19fc] sm:$0xf]  ;;  %v10446_v8 = vld [vmem:[#allocation8 + $0x1a40] sm:$0xf0]  ;;  %v8721_v42 = vor.u32 %v10961_v16, %v8718_v4 }
 0x250   :  { %6081 = vmatpush.bf16.msra.mxu2 %v7425_v24  ;;  %6095 = vmatpush.bf16.msra.mxu3 %v8001_v19  ;;  %v11294_v24 = vld [vmem:[#allocation8 + $0x16dc] sm:$0xf0]  ;;  %v10565_v19 = vld [vmem:[#allocation8 + $0x1c] sm:$0xf]  ;;  %v5796_v18 = vadd.f32 %v5795_v9, %v5782_v40  ;;  %v5809_v59 = vpop.f32.mrf.mxu2  ;;  %v5823_v29 = vpop.f32.mrf.mxu3  ;;  %v9225_v9 = vor.u32 %v11087_v5, %v9222_v56  ;;  %v9582_v16 = vld [vmem:[#allocation8 + $0x1380] sm:$0xf0] }
 0x251   :  { %v7015_v21 = vpack.c.bf16 %v7005_v44, %v7004_v62  ;;  %v10013_v32 = vor.u32 %v11294_v24, %v10012_v23  ;;  %v7137_v35 = vor.u32 %v10565_v19, %v7134_v10  ;;  %v10449_v62 = vor.u32 %v11393_v52, %v10446_v8  ;;  %v11375_v44 = vld [vmem:[#allocation8 + $0x196c] sm:$0xf]  ;;  %v11069_v24 = vld [vmem:[#allocation8 + $0xfdc] sm:$0xf]  ;;  %v9150_v19 = vld [vmem:[#allocation8 + $0x1020] sm:$0xf0] }
 0x252   :  { %v5810_v28 = vadd.f32 %v5809_v59, %v5796_v18  ;;  %v10377_v23 = vor.u32 %v11375_v44, %v10374_v33  ;;  %v9726_v18 = vld [vmem:[#allocation8 + $0x14a0] sm:$0xf0]  ;;  %v9153_v63 = vor.u32 %v11069_v24, %v9150_v19  ;;  %v10907_v59 = vld [vmem:[#allocation8 + $0xacc] sm:$0xf]  ;;  %v11321_v4 = vld [vmem:[#allocation8 + $0x17bc] sm:$0xf] }
 0x253   :  { %6054 = vmatpush.bf16.msra.mxu0 %v9653_v22  ;;  %6068 = vmatpush.bf16.msra.mxu1 %v10229_v27  ;;  %7021 = vst [vmem:[#allocation11 + $0x8] sm:$0xff] %v7015_v21  ;;  %v9366_v22 = vld [vmem:[#allocation8 + $0x11d0] sm:$0xf0]  ;;  %v11267_v27 = vld [vmem:[#allocation8 + $0x160c] sm:$0xf] }
 0x254   :  { %6082 = vmatpush.bf16.msra.mxu2 %v7353_v2  ;;  %6096 = vmatpush.bf16.msra.mxu3 %v7929_v3  ;;  %v11411_v2 = vld [vmem:[#allocation8 + $0x1a8c] sm:$0xf]  ;;  %v10518_v3 = vld [vmem:[#allocation8 + $0x1ad0] sm:$0xf0]  ;;  %v5824_v25 = vadd.f32 %v5823_v29, %v5810_v28  ;;  %v9369_v49 = vor.u32 %v11123_v11, %v9366_v22  ;;  %v9945_v45 = vor.u32 %v11267_v27, %v9942_v41  ;;  %v11213_v21 = vld [vmem:[#allocation8 + $0x145c] sm:$0xf] }
 0x255   :  { %v10521_v20 = vor.u32 %v11411_v2, %v10518_v3  ;;  %v10302_v10 = vld [vmem:[#allocation8 + $0x1920] sm:$0xf0]  ;;  %v9729_v0 = vor.u32 %v11213_v21, %v9726_v18  ;;  %v11051_v28 = vld [vmem:[#allocation8 + $0xf4c] sm:$0xf]  ;;  %v9078_v22 = vld [vmem:[#allocation8 + $0xf90] sm:$0xf0]  ;;  %v8505_v41 = vor.u32 %v10907_v59, %v8502_v37 }
 0x256   :  { %v7011_v39 = vmul.f32 0.03608439, %v5824_v25  ;;  %v11195_v27 = vld [vmem:[#allocation8 + $0x13cc] sm:$0xf]  ;;  %v9654_v29 = vld [vmem:[#allocation8 + $0x1410] sm:$0xf0]  ;;  %v9081_v2 = vor.u32 %v11051_v28, %v9078_v22 }
 0x257   :  { %6055 = vmatpush.bf16.msra.mxu0 %v9581_v31  ;;  %6069 = vmatpush.bf16.msra.mxu1 %v10157_v51  ;;  %v9294_v31 = vld [vmem:[#allocation8 + $0x1140] sm:$0xf0]  ;;  %v11249_v51 = vld [vmem:[#allocation8 + $0x157c] sm:$0xf]  ;;  %v9657_v25 = vor.u32 %v11195_v27, %v9654_v29  ;;  %v11015_v52 = vld [vmem:[#allocation8 + $0xe2c] sm:$0xf] }
 0x258   :  { %6083 = vmatpush.bf16.msra.mxu2 %v7281_v43  ;;  %6097 = vmatpush.bf16.msra.mxu3 %v7857_v46  ;;  %v9870_v43 = vld [vmem:[#allocation8 + $0x15c0] sm:$0xf0]  ;;  %v7018_v55 = vpack.c.bf16 %v7011_v39, %v7010_v34  ;;  %v9297_v40 = vor.u32 %v11105_v38, %v9294_v31  ;;  %v10943_v46 = vld [vmem:[#allocation8 + $0xbec] sm:$0xf]  ;;  %v10889_v3 = vld [vmem:[#allocation8 + $0xa3c] sm:$0xf] }
 0x259   :  { %v9873_v58 = vor.u32 %v11249_v51, %v9870_v43  ;;  %v8649_v17 = vor.u32 %v10943_v46, %v8646_v54  ;;  %v8430_v34 = vld [vmem:[#allocation8 + $0xa80] sm:$0xf0]  ;;  %v8358_v31 = vld [vmem:[#allocation8 + $0x9f0] sm:$0xf0]  ;;  %v10853_v54 = vld [vmem:[#allocation8 + $0x91c] sm:$0xf] }
 0x25a   :  { %7024 = vst [vmem:[#allocation11 + $0x20] sm:$0xff] %v7018_v55  ;;  %v10158_v38 = vld [vmem:[#allocation8 + $0x1800] sm:$0xf0]  ;;  %v8433_v39 = vor.u32 %v10889_v3, %v8430_v34  ;;  %v8934_v8 = vld [vmem:[#allocation8 + $0xe70] sm:$0xf0] }
 0x25b   :  { %6056 = vmatpush.bf16.msra.mxu0 %v9509_v12  ;;  %6070 = vmatpush.bf16.msra.mxu1 %v10085_v13  ;;  %v10925_v12 = vld [vmem:[#allocation8 + $0xb5c] sm:$0xf]  ;;  %v8574_v13 = vld [vmem:[#allocation8 + $0xba0] sm:$0xf0]  ;;  %v10161_v43 = vor.u32 %v11321_v4, %v10158_v38  ;;  %v11159_v55 = vld [vmem:[#allocation8 + $0x12ac] sm:$0xf] }
 0x25c   :  { %6084 = vmatpush.bf16.msra.mxu2 %v7209_v15  ;;  %6098 = vmatpush.bf16.msra.mxu3 %v7785_v7  ;;  %v9801_v15 = vor.u32 %v11231_v36, %v9798_v14  ;;  %v11357_v7 = vld [vmem:[#allocation8 + $0x18dc] sm:$0xf]  ;;  %v8577_v60 = vor.u32 %v10925_v12, %v8574_v13  ;;  %v10086_v46 = vld [vmem:[#allocation8 + $0x1770] sm:$0xf0]  ;;  %v8862_v36 = vld [vmem:[#allocation8 + $0xde0] sm:$0xf0] }
 0x25d   :  { %v10305_v11 = vor.u32 %v11357_v7, %v10302_v10  ;;  %v10997_v56 = vld [vmem:[#allocation8 + $0xd9c] sm:$0xf]  ;;  %v10014_v12 = vld [vmem:[#allocation8 + $0x16e0] sm:$0xf0]  ;;  %v7644_v13 = vld [vmem:[#allocation8 + $0x410] sm:$0xf] }
 0x25e   :  { %v11141_v33 = vld [vmem:[#allocation8 + $0x121c] sm:$0xf]  ;;  %v10845_v24 = vld [vmem:[#allocation8 + $0x8d4] sm:$0xf0]  ;;  %v8796_v19 = vld [vmem:[#allocation8 + $0xd10] sm:$0xf]  ;;  %v8865_v18 = vor.u32 %v10997_v56, %v8862_v36 }
 0x25f   :  { %6057 = vmatpush.bf16.msra.mxu0 %v9437_v30  ;;  %6071 = vmatpush.bf16.msra.mxu1 %v10013_v32  ;;  %v11339_v30 = vld [vmem:[#allocation8 + $0x184c] sm:$0xf]  ;;  %v10230_v32 = vld [vmem:[#allocation8 + $0x1890] sm:$0xf0]  ;;  %v10989_v7 = vld [vmem:[#allocation8 + $0xd54] sm:$0xf0] }
 0x260   :  { %6085 = vmatpush.bf16.msra.mxu2 %v7137_v35  ;;  %6099 = vmatpush.bf16.msra.mxu3 %v7713_v1  ;;  %v10233_v35 = vor.u32 %v11339_v30, %v10230_v32  ;;  %v11033_v1 = vld [vmem:[#allocation8 + $0xebc] sm:$0xf]  ;;  %v9372_v10 = vld [vmem:[#allocation8 + $0x1190] sm:$0xf]  ;;  %v10683_v28 = vld [vmem:[#allocation8 + $0x3c4] sm:$0xf0]  ;;  %v8797_v22 = vor.u32 %v10989_v7, %v8796_v19 }
 0x261   :  { %v8148_v29 = vld [vmem:[#allocation8 + $0x800] sm:$0xf]  ;;  %v10827_v30 = vld [vmem:[#allocation8 + $0x844] sm:$0xf0]  ;;  %v8076_v4 = vld [vmem:[#allocation8 + $0x770] sm:$0xf] }
 0x262   :  { %6058 = vmatmul.bf16.vlgmr.msra.gmra.mxu0 %v11874_v6  ;;  %6072 = vmatmul.bf16.vlgmr.msra.gmra.mxu1 %v11876_v57  ;;  %v8724_v32 = vld [vmem:[#allocation8 + $0xc80] sm:$0xf]  ;;  %v11115_v3 = vld [vmem:[#allocation8 + $0x1144] sm:$0xf0]  ;;  %v10809_v38 = vld [vmem:[#allocation8 + $0x7b4] sm:$0xf0] }
 0x263   :  { %6106 = vmatpush.bf16.msrb.mxu0 %v8793_v61  ;;  %6120 = vmatpush.bf16.msrb.mxu1 %v9369_v49  ;;  %v9006_v61 = vld [vmem:[#allocation8 + $0xf00] sm:$0xf0]  ;;  %v11177_v49 = vld [vmem:[#allocation8 + $0x133c] sm:$0xf]  ;;  %v11079_v56 = vld [vmem:[#allocation8 + $0x1024] sm:$0xf0] }
 0x264   :  { %6134 = vmatpush.bf16.msrb.mxu2 %v9945_v45  ;;  %6148 = vmatpush.bf16.msrb.mxu3 %v10521_v20  ;;  %v9009_v45 = vor.u32 %v11033_v1, %v9006_v61  ;;  %v10871_v20 = vld [vmem:[#allocation8 + $0x9ac] sm:$0xf]  ;;  %v9585_v51 = vor.u32 %v11177_v49, %v9582_v16  ;;  %v10665_v1 = vld [vmem:[#allocation8 + $0x334] sm:$0xf0]  ;;  %v12017_v61 = vpop.f32.mrf.mxu0 }
 0x265   :  { %6086 = vmatmul.bf16.vlgmr.msra.gmra.mxu2 %v11852_v47  ;;  %6100 = vmatmul.bf16.vlgmr.msra.gmra.mxu3 %v11854_v48  ;;  %v8361_v5 = vor.u32 %v10871_v20, %v8358_v31  ;;  %v9228_v20 = vld [vmem:[#allocation8 + $0x1070] sm:$0xf]  ;;  %v11097_v31 = vld [vmem:[#allocation8 + $0x10b4] sm:$0xf0] }
 0x266   :  { %v10917_v19 = vld [vmem:[#allocation8 + $0xb14] sm:$0xf0] }
 0x267   :  { %6107 = vmatpush.bf16.msrb.mxu0 %v8721_v42  ;;  %6121 = vmatpush.bf16.msrb.mxu1 %v9297_v40  ;;  %v9510_v42 = vld [vmem:[#allocation8 + $0x12f0] sm:$0xf0]  ;;  %v11303_v40 = vld [vmem:[#allocation8 + $0x172c] sm:$0xf] }
 0x268   :  { %6135 = vmatpush.bf16.msrb.mxu2 %v9873_v58  ;;  %6149 = vmatpush.bf16.msrb.mxu3 %v10449_v62  ;;  %v8937_v58 = vor.u32 %v11015_v52, %v8934_v8  ;;  %v8286_v62 = vld [vmem:[#allocation8 + $0x960] sm:$0xf0]  ;;  %v9513_v14 = vor.u32 %v11159_v55, %v9510_v42  ;;  %v10089_v44 = vor.u32 %v11303_v40, %v10086_v46  ;;  %v7428_v8 = vld [vmem:[#allocation8 + $0x260] sm:$0xf]  ;;  %v10647_v55 = vld [vmem:[#allocation8 + $0x2a4] sm:$0xf0]  ;;  %v12025_v36 = vpop.f32.mrf.mxu2 }
 0x269   :  { %v8289_v21 = vor.u32 %v10853_v54, %v8286_v62  ;;  %v8077_v52 = vor.u32 %v10809_v38, %v8076_v4  ;;  %v9229_v40 = vor.u32 %v11097_v31, %v9228_v20  ;;  %v8004_v46 = vld [vmem:[#allocation8 + $0x6e0] sm:$0xf]  ;;  %v10791_v54 = vld [vmem:[#allocation8 + $0x724] sm:$0xf0]  ;;  %v11025_v20 = vld [vmem:[#allocation8 + $0xe74] sm:$0xf0] }
 0x26a   :  { %v9156_v62 = vld [vmem:[#allocation8 + $0xfe0] sm:$0xf]  ;;  %v1138_v31 = vperm.slane %v11984_v26, 4 }
 0x26b   :  { %6108 = vmatpush.bf16.msrb.mxu0 %v8649_v17  ;;  %6122 = vmatpush.bf16.msrb.mxu1 %v9225_v9  ;;  %v9438_v17 = vld [vmem:[#allocation8 + $0x1260] sm:$0xf0]  ;;  %v11285_v9 = vld [vmem:[#allocation8 + $0x169c] sm:$0xf] }
 0x26c   :  { %6136 = vmatpush.bf16.msrb.mxu2 %v9801_v15  ;;  %6150 = vmatpush.bf16.msrb.mxu3 %v10377_v23  ;;  %v10701_v15 = vld [vmem:[#allocation8 + $0x454] sm:$0xf0]  ;;  %v8220_v23 = vld [vmem:[#allocation8 + $0x890] sm:$0xf]  ;;  %v10017_v59 = vor.u32 %v11285_v9, %v10014_v12  ;;  %v12029_v7 = vpop.f32.mrf.mxu0 }
 0x26d   :  { %v7645_v37 = vor.u32 %v10701_v15, %v7644_v13  ;;  %v10629_v9 = vld [vmem:[#allocation8 + $0x214] sm:$0xf0]  ;;  %v9157_v13 = vor.u32 %v11079_v56, %v9156_v62  ;;  %v7932_v15 = vld [vmem:[#allocation8 + $0x650] sm:$0xf]  ;;  %v10863_v62 = vld [vmem:[#allocation8 + $0x964] sm:$0xf0] }
 0x26e   :  { %v8868_v56 = vld [vmem:[#allocation8 + $0xda0] sm:$0xf] }
 0x26f   :  { %6109 = vmatpush.bf16.msrb.mxu0 %v8577_v60  ;;  %6123 = vmatpush.bf16.msrb.mxu1 %v9153_v63  ;;  %v11133_v60 = vld [vmem:[#allocation8 + $0x11d4] sm:$0xf0]  ;;  %v9441_v63 = vor.u32 %v11141_v33, %v9438_v17  ;;  %v8005_v33 = vor.u32 %v10791_v54, %v8004_v46  ;;  %v7356_v17 = vld [vmem:[#allocation8 + $0x1d0] sm:$0xf]  ;;  %v10719_v46 = vld [vmem:[#allocation8 + $0x4e4] sm:$0xf0] }
 0x270   :  { %6137 = vmatpush.bf16.msrb.mxu2 %v9729_v0  ;;  %6151 = vmatpush.bf16.msrb.mxu3 %v10305_v11  ;;  %v8221_v0 = vor.u32 %v10845_v24, %v8220_v23  ;;  %v7572_v11 = vld [vmem:[#allocation8 + $0x380] sm:$0xf]  ;;  %v9373_v27 = vor.u32 %v11133_v60, %v9372_v10  ;;  %v10773_v23 = vld [vmem:[#allocation8 + $0x694] sm:$0xf0]  ;;  %v8508_v24 = vld [vmem:[#allocation8 + $0xad0] sm:$0xf]  ;;  %v7357_v10 = vor.u32 %v10629_v9, %v7356_v17  ;;  %v12033_v4 = vpop.f32.mrf.mxu2 }
 0x271   :  { %v7573_v34 = vor.u32 %v10683_v28, %v7572_v11  ;;  %v7933_v60 = vor.u32 %v10773_v23, %v7932_v15  ;;  %v7860_v11 = vld [vmem:[#allocation8 + $0x5c0] sm:$0xf]  ;;  %v10755_v28 = vld [vmem:[#allocation8 + $0x604] sm:$0xf0]  ;;  %v9948_v17 = vld [vmem:[#allocation8 + $0x1610] sm:$0xf] }
 0x272   :  { %v11277_v9 = vld [vmem:[#allocation8 + $0x1654] sm:$0xf0]  ;;  %v10692_v15 = vld [vmem:[#allocation8 + $0x414] sm:$0xf] }
 0x273   :  { %6110 = vmatpush.bf16.msrb.mxu0 %v8505_v41  ;;  %6124 = vmatpush.bf16.msrb.mxu1 %v9081_v2  ;;  %v10971_v41 = vld [vmem:[#allocation8 + $0xcc4] sm:$0xf0]  ;;  %v9300_v2 = vld [vmem:[#allocation8 + $0x1100] sm:$0xf] }
 0x274   :  { %6138 = vmatpush.bf16.msrb.mxu2 %v9657_v25  ;;  %6152 = vmatpush.bf16.msrb.mxu3 %v10233_v35  ;;  %v8149_v25 = vor.u32 %v10827_v30, %v8148_v29  ;;  %v7500_v35 = vld [vmem:[#allocation8 + $0x2f0] sm:$0xf]  ;;  %v8725_v49 = vor.u32 %v10971_v41, %v8724_v32  ;;  %v9301_v16 = vor.u32 %v11115_v3, %v9300_v2  ;;  %v10899_v29 = vld [vmem:[#allocation8 + $0xa84] sm:$0xf0]  ;;  %v9012_v30 = vld [vmem:[#allocation8 + $0xec0] sm:$0xf] }
 0x275   :  { %v11043_v32 = vld [vmem:[#allocation8 + $0xf04] sm:$0xf0]  ;;  %v7861_v2 = vor.u32 %v10755_v28, %v7860_v11  ;;  %v7212_v3 = vld [vmem:[#allocation8 + $0xb0] sm:$0xf]  ;;  %v9876_v11 = vld [vmem:[#allocation8 + $0x1580] sm:$0xf] }
 0x276   :  { %v11259_v28 = vld [vmem:[#allocation8 + $0x15c4] sm:$0xf0] }
 0x277   :  { %6111 = vmatpush.bf16.msrb.mxu0 %v8433_v39  ;;  %6125 = vmatpush.bf16.msrb.mxu1 %v9009_v45  ;;  %v8652_v39 = vld [vmem:[#allocation8 + $0xbf0] sm:$0xf]  ;;  %v10953_v45 = vld [vmem:[#allocation8 + $0xc34] sm:$0xf0] }
 0x278   :  { %6139 = vmatpush.bf16.msrb.mxu2 %v9585_v51  ;;  %6153 = vmatpush.bf16.msrb.mxu3 %v10161_v43  ;;  %v12023_v51 = vpop.f32.mrf.mxu1  ;;  %v7501_v43 = vor.u32 %v10665_v1, %v7500_v35  ;;  %v8653_v42 = vor.u32 %v10953_v45, %v8652_v39  ;;  %v9013_v35 = vor.u32 %v11043_v32, %v9012_v30  ;;  %v7788_v1 = vld [vmem:[#allocation8 + $0x530] sm:$0xf]  ;;  %v10881_v39 = vld [vmem:[#allocation8 + $0x9f4] sm:$0xf0]  ;;  %v10452_v32 = vld [vmem:[#allocation8 + $0x1a00] sm:$0xf] }
 0x279   :  { %v8940_v45 = vld [vmem:[#allocation8 + $0xe30] sm:$0xf] }
 0x27b   :  { %6112 = vmatpush.bf16.msrb.mxu0 %v8361_v5  ;;  %6126 = vmatpush.bf16.msrb.mxu1 %v8937_v58  ;;  %v8580_v5 = vld [vmem:[#allocation8 + $0xb60] sm:$0xf]  ;;  %v10935_v58 = vld [vmem:[#allocation8 + $0xba4] sm:$0xf0] }
 0x27c   :  { %6140 = vmatpush.bf16.msrb.mxu2 %v9513_v14  ;;  %6154 = vmatpush.bf16.msrb.mxu3 %v10089_v44  ;;  %v12027_v14 = vpop.f32.mrf.mxu3  ;;  %v7429_v44 = vor.u32 %v10647_v55, %v7428_v8  ;;  %v8581_v12 = vor.u32 %v10935_v58, %v8580_v5  ;;  %v8941_v5 = vor.u32 %v11025_v20, %v8940_v45  ;;  %v8292_v58 = vld [vmem:[#allocation8 + $0x920] sm:$0xf] }
 0x27f   :  { %6113 = vmatpush.bf16.msrb.mxu0 %v8289_v21  ;;  %6127 = vmatpush.bf16.msrb.mxu1 %v8865_v18  ;;  %v9084_v21 = vld [vmem:[#allocation8 + $0xf50] sm:$0xf]  ;;  %v11061_v18 = vld [vmem:[#allocation8 + $0xf94] sm:$0xf0] }
 0x280   :  { %6141 = vmatpush.bf16.msrb.mxu2 %v9441_v63  ;;  %6155 = vmatpush.bf16.msrb.mxu3 %v10017_v59  ;;  %v7284_v63 = vld [vmem:[#allocation8 + $0x140] sm:$0xf]  ;;  %v10611_v59 = vld [vmem:[#allocation8 + $0x184] sm:$0xf0] }
 0x281   :  { %v7285_v41 = vor.u32 %v10611_v59, %v7284_v63 }
 0x282   :  { %6114 = vmatmul.bf16.vlgmr.msrb.gmra.mxu0 %v11856_v50  ;;  %6128 = vmatmul.bf16.vlgmr.msrb.gmra.mxu1 %v11858_v53 }
 0x283   :  { %6162 = vmatpush.bf16.msra.mxu0 %v7645_v37  ;;  %6176 = vmatpush.bf16.msra.mxu1 %v8221_v0  ;;  %v8509_v37 = vor.u32 %v10917_v19, %v8508_v24  ;;  %v9085_v0 = vor.u32 %v11061_v18, %v9084_v21  ;;  %v7646_v19 = vld [vmem:[#allocation8 + $0x458] sm:$0xf0]  ;;  %v10836_v21 = vld [vmem:[#allocation8 + $0x894] sm:$0xf] }
 0x284   :  { %6190 = vmatpush.bf16.msra.mxu2 %v8797_v22  ;;  %6204 = vmatpush.bf16.msra.mxu3 %v9373_v27  ;;  %v8436_v22 = vld [vmem:[#allocation8 + $0xa40] sm:$0xf]  ;;  %v12031_v27 = vpop.f32.mrf.mxu1  ;;  %v12035_v38 = vpop.f32.mrf.mxu3  ;;  %v8222_v18 = vld [vmem:[#allocation8 + $0x8d8] sm:$0xf0] }
 0x285   :  { %6142 = vmatmul.bf16.vlgmr.msrb.gmra.mxu2 %v11874_v6  ;;  %6156 = vmatmul.bf16.vlgmr.msrb.gmra.mxu3 %v11876_v57  ;;  %v8225_v30 = vor.u32 %v10836_v21, %v8222_v18  ;;  %v10782_v21 = vld [vmem:[#allocation8 + $0x6e4] sm:$0xf]  ;;  %v8006_v18 = vld [vmem:[#allocation8 + $0x728] sm:$0xf0] }
 0x287   :  { %6163 = vmatpush.bf16.msra.mxu0 %v7573_v34  ;;  %6177 = vmatpush.bf16.msra.mxu1 %v8149_v25  ;;  %v10593_v34 = vld [vmem:[#allocation8 + $0xf4] sm:$0xf0]  ;;  %v8437_v25 = vor.u32 %v10899_v29, %v8436_v22  ;;  %v5836_v22 = vadd.f32 %v12017_v61, %v1138_v31  ;;  %v7649_v29 = vor.u32 %v10692_v15, %v7646_v19  ;;  %v7430_v19 = vld [vmem:[#allocation8 + $0x2a8] sm:$0xf0] }
 0x288   :  { %6191 = vmatpush.bf16.msra.mxu2 %v8725_v49  ;;  %6205 = vmatpush.bf16.msra.mxu3 %v9301_v16  ;;  %v10737_v49 = vld [vmem:[#allocation8 + $0x574] sm:$0xf0]  ;;  %v8364_v16 = vld [vmem:[#allocation8 + $0x9b0] sm:$0xf]  ;;  %v7213_v8 = vor.u32 %v10593_v34, %v7212_v3  ;;  %v5919_v63 = vpop.f32.mrf.mxu2  ;;  %v7574_v3 = vld [vmem:[#allocation8 + $0x3c8] sm:$0xf0] }
 0x289   :  { %v7789_v55 = vor.u32 %v10737_v49, %v7788_v1  ;;  %v8365_v54 = vor.u32 %v10881_v39, %v8364_v16  ;;  %v10818_v34 = vld [vmem:[#allocation8 + $0x804] sm:$0xf]  ;;  %v9877_v49 = vor.u32 %v11259_v28, %v9876_v11  ;;  %v9804_v16 = vld [vmem:[#allocation8 + $0x14f0] sm:$0xf]  ;;  %v11241_v39 = vld [vmem:[#allocation8 + $0x1534] sm:$0xf0]  ;;  %v5850_v45 = vadd.f32 %v12023_v51, %v5836_v22 }
 0x28a   :  { %v8078_v51 = vld [vmem:[#allocation8 + $0x7b8] sm:$0xf0]  ;;  %v9660_v28 = vld [vmem:[#allocation8 + $0x13d0] sm:$0xf]  ;;  %v11205_v22 = vld [vmem:[#allocation8 + $0x1414] sm:$0xf0] }
 0x28b   :  { %6164 = vmatpush.bf16.msra.mxu0 %v7501_v43  ;;  %6178 = vmatpush.bf16.msra.mxu1 %v8077_v52  ;;  %v12038_v43 = vpop.f32.mrf.mxu0  ;;  %v7140_v52 = vld [vmem:[#allocation8 + $0x20] sm:$0xf] }
 0x28c   :  { %6192 = vmatpush.bf16.msra.mxu2 %v8653_v42  ;;  %6206 = vmatpush.bf16.msra.mxu3 %v9229_v40  ;;  %v10575_v42 = vld [vmem:[#allocation8 + $0x64] sm:$0xf0]  ;;  %v7716_v40 = vld [vmem:[#allocation8 + $0x4a0] sm:$0xf]  ;;  %v12042_v59 = vpop.f32.mrf.mxu3 }
 0x28d   :  { %v7141_v23 = vor.u32 %v10575_v42, %v7140_v52  ;;  %v7717_v24 = vor.u32 %v10719_v46, %v7716_v40  ;;  %v10656_v42 = vld [vmem:[#allocation8 + $0x2f4] sm:$0xf]  ;;  %v5838_v40 = vadd.f32 %v12029_v7, %v1138_v31  ;;  %v9805_v7 = vor.u32 %v11241_v39, %v9804_v16  ;;  %v9588_v39 = vld [vmem:[#allocation8 + $0x1340] sm:$0xf] }
 0x28f   :  { %6165 = vmatpush.bf16.msra.mxu0 %v7429_v44  ;;  %6179 = vmatpush.bf16.msra.mxu1 %v8005_v33  ;;  %v12040_v44 = vpop.f32.mrf.mxu1  ;;  %v11007_v33 = vld [vmem:[#allocation8 + $0xde4] sm:$0xf0]  ;;  %v5852_v15 = vadd.f32 %v12031_v27, %v5838_v40  ;;  %v7286_v40 = vld [vmem:[#allocation8 + $0x188] sm:$0xf0] }
 0x290   :  { %6193 = vmatpush.bf16.msra.mxu2 %v8581_v12  ;;  %6207 = vmatpush.bf16.msra.mxu3 %v9157_v13  ;;  %v10524_v12 = vld [vmem:[#allocation8 + $0x1a90] sm:$0xf]  ;;  %v11421_v13 = vld [vmem:[#allocation8 + $0x1ad4] sm:$0xf0] }
 0x293   :  { %6166 = vmatpush.bf16.msra.mxu0 %v7357_v10  ;;  %6180 = vmatpush.bf16.msra.mxu1 %v7933_v60  ;;  %v8293_v10 = vor.u32 %v10863_v62, %v8292_v58  ;;  %v8869_v60 = vor.u32 %v11007_v33, %v8868_v56  ;;  %v12048_v1 = vpop.f32.mrf.mxu0  ;;  %v5864_v58 = vadd.f32 %v12025_v36, %v5850_v45  ;;  %v9732_v56 = vld [vmem:[#allocation8 + $0x1460] sm:$0xf]  ;;  %v11223_v33 = vld [vmem:[#allocation8 + $0x14a4] sm:$0xf0]  ;;  %v10638_v36 = vld [vmem:[#allocation8 + $0x264] sm:$0xf] }
 0x294   :  { %6194 = vmatpush.bf16.msra.mxu2 %v8509_v37  ;;  %6208 = vmatpush.bf16.msra.mxu3 %v9085_v0  ;;  %v9949_v37 = vor.u32 %v11277_v9, %v9948_v17  ;;  %v10525_v0 = vor.u32 %v11421_v13, %v10524_v12  ;;  %v10308_v12 = vld [vmem:[#allocation8 + $0x18e0] sm:$0xf]  ;;  %v11367_v13 = vld [vmem:[#allocation8 + $0x1924] sm:$0xf0] }
 0x295   :  { %v10309_v11 = vor.u32 %v11367_v13, %v10308_v12  ;;  %v11187_v45 = vld [vmem:[#allocation8 + $0x1384] sm:$0xf0]  ;;  %v10092_v12 = vld [vmem:[#allocation8 + $0x1730] sm:$0xf] }
 0x297   :  { %6167 = vmatpush.bf16.msra.mxu0 %v7285_v41  ;;  %6181 = vmatpush.bf16.msra.mxu1 %v7861_v2  ;;  %v11403_v41 = vld [vmem:[#allocation8 + $0x1a44] sm:$0xf0]  ;;  %v10674_v2 = vld [vmem:[#allocation8 + $0x384] sm:$0xf]  ;;  %v12054_v46 = vpop.f32.mrf.mxu1 }
 0x298   :  { %6195 = vmatpush.bf16.msra.mxu2 %v8437_v25  ;;  %6209 = vmatpush.bf16.msra.mxu3 %v9013_v35  ;;  %v8150_v25 = vld [vmem:[#allocation8 + $0x848] sm:$0xf0]  ;;  %v1139_v35 = vperm.slane %v11984_v26, 5  ;;  %v10453_v61 = vor.u32 %v11403_v41, %v10452_v32  ;;  %v7577_v20 = vor.u32 %v10674_v2, %v7574_v3  ;;  %v10236_v32 = vld [vmem:[#allocation8 + $0x1850] sm:$0xf] }
 0x299   :  { %v8153_v52 = vor.u32 %v10818_v34, %v8150_v25  ;;  %v11349_v41 = vld [vmem:[#allocation8 + $0x1894] sm:$0xf0]  ;;  %v10620_v2 = vld [vmem:[#allocation8 + $0x1d4] sm:$0xf]  ;;  %v7358_v3 = vld [vmem:[#allocation8 + $0x218] sm:$0xf0] }
 0x29a   :  { %v5920_v62 = vadd.f32 %v5919_v63, %v1139_v35  ;;  %v10764_v34 = vld [vmem:[#allocation8 + $0x654] sm:$0xf]  ;;  %v10237_v16 = vor.u32 %v11349_v41, %v10236_v32 }
 0x29b   :  { %6168 = vmatpush.bf16.msra.mxu0 %v7213_v8  ;;  %6182 = vmatpush.bf16.msra.mxu1 %v7789_v55  ;;  %v10380_v8 = vld [vmem:[#allocation8 + $0x1970] sm:$0xf]  ;;  %v11385_v55 = vld [vmem:[#allocation8 + $0x19b4] sm:$0xf0] }
 0x29c   :  { %6196 = vmatpush.bf16.msra.mxu2 %v8365_v54  ;;  %6210 = vmatpush.bf16.msra.mxu3 %v8941_v5  ;;  %v7502_v54 = vld [vmem:[#allocation8 + $0x338] sm:$0xf0]  ;;  %v10800_v5 = vld [vmem:[#allocation8 + $0x774] sm:$0xf]  ;;  %v10381_v31 = vor.u32 %v11385_v55, %v10380_v8  ;;  %v11331_v55 = vld [vmem:[#allocation8 + $0x1804] sm:$0xf0] }
 0x29d   :  { %v7505_v17 = vor.u32 %v10656_v42, %v7502_v54  ;;  %v8081_v9 = vor.u32 %v10800_v5, %v8078_v51  ;;  %v10602_v42 = vld [vmem:[#allocation8 + $0x144] sm:$0xf]  ;;  %v7862_v5 = vld [vmem:[#allocation8 + $0x608] sm:$0xf0] }
 0x29f   :  { %6169 = vmatpush.bf16.msra.mxu0 %v7141_v23  ;;  %6183 = vmatpush.bf16.msra.mxu1 %v7717_v24  ;;  %v5921_v23 = vpop.f32.mrf.mxu2  ;;  %v5935_v24 = vpop.f32.mrf.mxu3 }
 0x2a0   :  { %6197 = vmatpush.bf16.msra.mxu2 %v8293_v10  ;;  %6211 = vmatpush.bf16.msra.mxu3 %v8869_v60  ;;  %v5878_v10 = vadd.f32 %v12027_v14, %v5864_v58  ;;  %v5934_v60 = vadd.f32 %v12042_v59, %v5920_v62  ;;  %v5947_v63 = vpop.f32.mrf.mxu0  ;;  %v5961_v59 = vpop.f32.mrf.mxu1  ;;  %v5922_v25 = vadd.f32 %v5921_v23, %v1139_v35  ;;  %v10584_v23 = vld [vmem:[#allocation8 + $0xb4] sm:$0xf] }
 0x2a2   :  { %6170 = vmatmul.bf16.vlgmr.msra.gmra.mxu0 %v11852_v47  ;;  %6184 = vmatmul.bf16.vlgmr.msra.gmra.mxu1 %v11854_v48  ;;  %v5948_v27 = vadd.f32 %v5947_v63, %v5934_v60  ;;  %v5892_v14 = vadd.f32 %v12038_v43, %v5878_v10  ;;  %v7361_v43 = vor.u32 %v10620_v2, %v7358_v3  ;;  %v9444_v60 = vld [vmem:[#allocation8 + $0x1220] sm:$0xf]  ;;  %v11151_v63 = vld [vmem:[#allocation8 + $0x1264] sm:$0xf0]  ;;  %v7142_v2 = vld [vmem:[#allocation8 + $0x68] sm:$0xf0] }
 0x2a3   :  { %6218 = vmatpush.bf16.msrb.mxu0 %v9949_v37  ;;  %6232 = vmatpush.bf16.msrb.mxu1 %v10525_v0  ;;  %v5866_v37 = vadd.f32 %v12033_v4, %v5852_v15  ;;  %v9733_v0 = vor.u32 %v11223_v33, %v9732_v56  ;;  %v7934_v4 = vld [vmem:[#allocation8 + $0x698] sm:$0xf0]  ;;  %v5936_v58 = vadd.f32 %v5935_v24, %v5922_v25  ;;  %v11313_v15 = vld [vmem:[#allocation8 + $0x1774] sm:$0xf0]  ;;  %v10728_v24 = vld [vmem:[#allocation8 + $0x534] sm:$0xf] }
 0x2a4   :  { %6246 = vmatpush.bf16.msrb.mxu2 %v7649_v29  ;;  %6260 = vmatpush.bf16.msrb.mxu3 %v8225_v30  ;;  %v7433_v29 = vor.u32 %v10638_v36, %v7430_v19  ;;  %v8009_v30 = vor.u32 %v10782_v21, %v8006_v18  ;;  %v7937_v8 = vor.u32 %v10764_v34, %v7934_v4  ;;  %v7214_v19 = vld [vmem:[#allocation8 + $0xf8] sm:$0xf0]  ;;  %v10980_v3 = vld [vmem:[#allocation8 + $0xd14] sm:$0xf] }
 0x2a5   :  { %6198 = vmatmul.bf16.vlgmr.msra.gmra.mxu2 %v11856_v50  ;;  %6212 = vmatmul.bf16.vlgmr.msra.gmra.mxu3 %v11858_v53  ;;  %v5906_v26 = vadd.f32 %v12040_v44, %v5892_v14  ;;  %v7289_v33 = vor.u32 %v10602_v42, %v7286_v40  ;;  %v7790_v21 = vld [vmem:[#allocation8 + $0x578] sm:$0xf0]  ;;  %v10710_v14 = vld [vmem:[#allocation8 + $0x4a4] sm:$0xf]  ;;  %v11124_v4 = vld [vmem:[#allocation8 + $0x1194] sm:$0xf] }
 0x2a6   :  { %v7793_v41 = vor.u32 %v10728_v24, %v7790_v21  ;;  %v8798_v34 = vld [vmem:[#allocation8 + $0xd58] sm:$0xf0]  ;;  %v11232_v24 = vld [vmem:[#allocation8 + $0x14f4] sm:$0xf] }
 0x2a7   :  { %6219 = vmatpush.bf16.msrb.mxu0 %v9877_v49  ;;  %6233 = vmatpush.bf16.msrb.mxu1 %v10453_v61  ;;  %v5880_v49 = vadd.f32 %v12035_v38, %v5866_v37  ;;  %v9661_v61 = vor.u32 %v11205_v22, %v9660_v28  ;;  %v10746_v38 = vld [vmem:[#allocation8 + $0x5c4] sm:$0xf]  ;;  %v7217_v28 = vor.u32 %v10584_v23, %v7214_v19  ;;  %v10020_v22 = vld [vmem:[#allocation8 + $0x16a0] sm:$0xf]  ;;  %v9806_v21 = vld [vmem:[#allocation8 + $0x1538] sm:$0xf0] }
 0x2a8   :  { %6247 = vmatpush.bf16.msrb.mxu2 %v7577_v20  ;;  %6261 = vmatpush.bf16.msrb.mxu3 %v8153_v52  ;;  %v10164_v20 = vld [vmem:[#allocation8 + $0x17c0] sm:$0xf]  ;;  %v5962_v52 = vadd.f32 %v5961_v59, %v5948_v27  ;;  %v5975_v35 = vpop.f32.mrf.mxu2  ;;  %v5989_v54 = vpop.f32.mrf.mxu3  ;;  %v7865_v36 = vor.u32 %v10746_v38, %v7862_v5  ;;  %v11295_v27 = vld [vmem:[#allocation8 + $0x16e4] sm:$0xf0]  ;;  %v8726_v38 = vld [vmem:[#allocation8 + $0xcc8] sm:$0xf0] }
 0x2a9   :  { %v5894_v51 = vadd.f32 %v12048_v1, %v5880_v49  ;;  %v10165_v56 = vor.u32 %v11331_v55, %v10164_v20  ;;  %v7006_v1 = vmul.f32 0.03608439, %v5906_v26  ;;  %v5963_v37 = vpop.f32.mrf.mxu1  ;;  %v9374_v49 = vld [vmem:[#allocation8 + $0x11d8] sm:$0xf0]  ;;  %v8801_v26 = vor.u32 %v10980_v3, %v8798_v34  ;;  %v11106_v5 = vld [vmem:[#allocation8 + $0x1104] sm:$0xf] }
 0x2aa   :  { %v5976_v62 = vadd.f32 %v5975_v35, %v5962_v52  ;;  %v9950_v20 = vld [vmem:[#allocation8 + $0x1658] sm:$0xf0]  ;;  %v11412_v52 = vld [vmem:[#allocation8 + $0x1a94] sm:$0xf]  ;;  %v9377_v35 = vor.u32 %v11124_v4, %v9374_v49 }
 0x2ab   :  { %6220 = vmatpush.bf16.msrb.mxu0 %v9805_v7  ;;  %6234 = vmatpush.bf16.msrb.mxu1 %v10381_v31  ;;  %v5949_v7 = vpop.f32.mrf.mxu0  ;;  %v9589_v31 = vor.u32 %v11187_v45, %v9588_v39  ;;  %v5908_v18 = vadd.f32 %v12054_v46, %v5894_v51  ;;  %v7718_v46 = vld [vmem:[#allocation8 + $0x4e8] sm:$0xf0]  ;;  %v9445_v39 = vor.u32 %v11151_v63, %v9444_v60  ;;  %v11052_v4 = vld [vmem:[#allocation8 + $0xf54] sm:$0xf] }
 0x2ac   :  { %6248 = vmatpush.bf16.msrb.mxu2 %v7505_v17  ;;  %6262 = vmatpush.bf16.msrb.mxu3 %v8081_v9  ;;  %v9516_v17 = vld [vmem:[#allocation8 + $0x12b0] sm:$0xf]  ;;  %v11169_v9 = vld [vmem:[#allocation8 + $0x12f4] sm:$0xf0]  ;;  %v5990_v44 = vadd.f32 %v5989_v54, %v5976_v62  ;;  %v5950_v13 = vadd.f32 %v5949_v7, %v5936_v58  ;;  %v10021_v45 = vor.u32 %v11295_v27, %v10020_v22  ;;  %v10962_v54 = vld [vmem:[#allocation8 + $0xc84] sm:$0xf] }
 0x2ad   :  { %v7721_v40 = vor.u32 %v10710_v14, %v7718_v46  ;;  %v9302_v7 = vld [vmem:[#allocation8 + $0x1148] sm:$0xf0]  ;;  %v11070_v22 = vld [vmem:[#allocation8 + $0xfe4] sm:$0xf]  ;;  %v10908_v46 = vld [vmem:[#allocation8 + $0xad4] sm:$0xf] }
 0x2ae   :  { %v7007_v10 = vmul.f32 0.03608439, %v5990_v44  ;;  %v5964_v32 = vadd.f32 %v5963_v37, %v5950_v13  ;;  %v9305_v44 = vor.u32 %v11106_v5, %v9302_v7  ;;  %v10944_v13 = vld [vmem:[#allocation8 + $0xbf4] sm:$0xf]  ;;  %v10926_v37 = vld [vmem:[#allocation8 + $0xb64] sm:$0xf] }
 0x2af   :  { %6221 = vmatpush.bf16.msrb.mxu0 %v9733_v0  ;;  %6235 = vmatpush.bf16.msrb.mxu1 %v10309_v11  ;;  %v9517_v0 = vor.u32 %v11169_v9, %v9516_v17  ;;  %v10093_v11 = vor.u32 %v11313_v15, %v10092_v12  ;;  %v10454_v17 = vld [vmem:[#allocation8 + $0x1a48] sm:$0xf0]  ;;  %v8729_v12 = vor.u32 %v10962_v54, %v8726_v38  ;;  %v11088_v15 = vld [vmem:[#allocation8 + $0x1074] sm:$0xf]  ;;  %v11322_v54 = vld [vmem:[#allocation8 + $0x17c4] sm:$0xf] }
 0x2b0   :  { %6249 = vmatpush.bf16.msrb.mxu2 %v7433_v29  ;;  %6263 = vmatpush.bf16.msrb.mxu3 %v8009_v30  ;;  %v10566_v29 = vld [vmem:[#allocation8 + $0x24] sm:$0xf]  ;;  %v7016_v30 = vpack.c.bf16 %v7007_v10, %v7006_v1  ;;  %v5977_v59 = vpop.f32.mrf.mxu2  ;;  %v9230_v1 = vld [vmem:[#allocation8 + $0x10b8] sm:$0xf0]  ;;  %v9158_v27 = vld [vmem:[#allocation8 + $0x1028] sm:$0xf0] }
 0x2b1   :  { %v5978_v25 = vadd.f32 %v5977_v59, %v5964_v32  ;;  %v7145_v42 = vor.u32 %v10566_v29, %v7142_v2  ;;  %v10382_v10 = vld [vmem:[#allocation8 + $0x19b8] sm:$0xf0]  ;;  %v9233_v63 = vor.u32 %v11088_v15, %v9230_v1  ;;  %v11214_v29 = vld [vmem:[#allocation8 + $0x1464] sm:$0xf]  ;;  %v9161_v14 = vor.u32 %v11070_v22, %v9158_v27  ;;  %v11196_v49 = vld [vmem:[#allocation8 + $0x13d4] sm:$0xf] }
 0x2b2   :  { %7022 = vst [vmem:[#allocation11 + $0x10] sm:$0xff] %v7016_v30  ;;  %v9734_v30 = vld [vmem:[#allocation8 + $0x14a8] sm:$0xf0]  ;;  %v11358_v32 = vld [vmem:[#allocation8 + $0x18e4] sm:$0xf] }
 0x2b3   :  { %6222 = vmatpush.bf16.msrb.mxu0 %v9661_v61  ;;  %6236 = vmatpush.bf16.msrb.mxu1 %v10237_v16  ;;  %v11268_v61 = vld [vmem:[#allocation8 + $0x1614] sm:$0xf]  ;;  %v5991_v16 = vpop.f32.mrf.mxu3  ;;  %v8510_v59 = vld [vmem:[#allocation8 + $0xb18] sm:$0xf0]  ;;  %v9737_v3 = vor.u32 %v11214_v29, %v9734_v30  ;;  %v10166_v38 = vld [vmem:[#allocation8 + $0x1808] sm:$0xf0] }
 0x2b4   :  { %6250 = vmatpush.bf16.msrb.mxu2 %v7361_v43  ;;  %6264 = vmatpush.bf16.msrb.mxu3 %v7937_v8  ;;  %v10526_v43 = vld [vmem:[#allocation8 + $0x1ad8] sm:$0xf0]  ;;  %v7012_v8 = vmul.f32 0.03608439, %v5908_v18  ;;  %v5992_v55 = vadd.f32 %v5991_v16, %v5978_v25  ;;  %v9953_v58 = vor.u32 %v11268_v61, %v9950_v20  ;;  %v11376_v18 = vld [vmem:[#allocation8 + $0x1974] sm:$0xf] }
 0x2b5   :  { %v10529_v62 = vor.u32 %v11412_v52, %v10526_v43  ;;  %v9086_v25 = vld [vmem:[#allocation8 + $0xf98] sm:$0xf0]  ;;  %v11340_v16 = vld [vmem:[#allocation8 + $0x1854] sm:$0xf]  ;;  %v10890_v52 = vld [vmem:[#allocation8 + $0xa44] sm:$0xf] }
 0x2b6   :  { %v7013_v51 = vmul.f32 0.03608439, %v5992_v55  ;;  %v9662_v61 = vld [vmem:[#allocation8 + $0x1418] sm:$0xf0]  ;;  %v9089_v20 = vor.u32 %v11052_v4, %v9086_v25  ;;  %v8438_v43 = vld [vmem:[#allocation8 + $0xa88] sm:$0xf0] }
 0x2b7   :  { %6223 = vmatpush.bf16.msrb.mxu0 %v9589_v31  ;;  %6237 = vmatpush.bf16.msrb.mxu1 %v10165_v56  ;;  %v11250_v31 = vld [vmem:[#allocation8 + $0x1584] sm:$0xf]  ;;  %v9878_v56 = vld [vmem:[#allocation8 + $0x15c8] sm:$0xf0]  ;;  %v8441_v5 = vor.u32 %v10890_v52, %v8438_v43  ;;  %v8804_v22 = vld [vmem:[#allocation8 + $0xd18] sm:$0xf] }
 0x2b8   :  { %6251 = vmatpush.bf16.msrb.mxu2 %v7289_v33  ;;  %6265 = vmatpush.bf16.msrb.mxu3 %v7865_v36  ;;  %v11394_v33 = vld [vmem:[#allocation8 + $0x1a04] sm:$0xf]  ;;  %v7019_v9 = vpack.c.bf16 %v7013_v51, %v7012_v8  ;;  %v8654_v36 = vld [vmem:[#allocation8 + $0xc38] sm:$0xf0]  ;;  %v9881_v23 = vor.u32 %v11250_v31, %v9878_v56  ;;  %v9665_v8 = vor.u32 %v11196_v49, %v9662_v61  ;;  %v11016_v56 = vld [vmem:[#allocation8 + $0xe34] sm:$0xf] }
 0x2b9   :  { %v10457_v19 = vor.u32 %v11394_v33, %v10454_v17  ;;  %v8657_v60 = vor.u32 %v10944_v13, %v8654_v36  ;;  %v10169_v31 = vor.u32 %v11322_v54, %v10166_v38  ;;  %v8942_v33 = vld [vmem:[#allocation8 + $0xe78] sm:$0xf0]  ;;  %v11160_v17 = vld [vmem:[#allocation8 + $0x12b4] sm:$0xf]  ;;  %v10854_v13 = vld [vmem:[#allocation8 + $0x924] sm:$0xf] }
 0x2ba   :  { %7025 = vst [vmem:[#allocation11 + $0x28] sm:$0xff] %v7019_v9  ;;  %v9518_v9 = vld [vmem:[#allocation8 + $0x12f8] sm:$0xf0]  ;;  %v8945_v15 = vor.u32 %v11016_v56, %v8942_v33  ;;  %v8870_v1 = vld [vmem:[#allocation8 + $0xde8] sm:$0xf0] }
 0x2bb   :  { %6224 = vmatpush.bf16.msrb.mxu0 %v9517_v0  ;;  %6238 = vmatpush.bf16.msrb.mxu1 %v10093_v11  ;;  %v8582_v0 = vld [vmem:[#allocation8 + $0xba8] sm:$0xf0]  ;;  %v9809_v11 = vor.u32 %v11232_v24, %v9806_v21  ;;  %v9521_v24 = vor.u32 %v11160_v17, %v9518_v9  ;;  %v10990_v30 = vld [vmem:[#allocation8 + $0xd5c] sm:$0xf0]  ;;  %v8156_v49 = vld [vmem:[#allocation8 + $0x808] sm:$0xf] }
 0x2bc   :  { %6252 = vmatpush.bf16.msrb.mxu2 %v7217_v28  ;;  %6266 = vmatpush.bf16.msrb.mxu3 %v7793_v41  ;;  %v10385_v28 = vor.u32 %v11376_v18, %v10382_v10  ;;  %v10310_v41 = vld [vmem:[#allocation8 + $0x1928] sm:$0xf0]  ;;  %v8585_v2 = vor.u32 %v10926_v37, %v8582_v0  ;;  %v11142_v18 = vld [vmem:[#allocation8 + $0x1224] sm:$0xf]  ;;  %v7652_v37 = vld [vmem:[#allocation8 + $0x418] sm:$0xf]  ;;  %v8805_v4 = vor.u32 %v10990_v30, %v8804_v22 }
 0x2bd   :  { %v10313_v34 = vor.u32 %v11358_v32, %v10310_v41  ;;  %v9446_v10 = vld [vmem:[#allocation8 + $0x1268] sm:$0xf0]  ;;  %v10702_v0 = vld [vmem:[#allocation8 + $0x45c] sm:$0xf0]  ;;  %v9380_v32 = vld [vmem:[#allocation8 + $0x1198] sm:$0xf] }
 0x2be   :  { %v11134_v41 = vld [vmem:[#allocation8 + $0x11dc] sm:$0xf0]  ;;  %v10828_v61 = vld [vmem:[#allocation8 + $0x84c] sm:$0xf0]  ;;  %v8660_v38 = vld [vmem:[#allocation8 + $0xbf8] sm:$0xf] }
 0x2bf   :  { %6225 = vmatpush.bf16.msrb.mxu0 %v9445_v39  ;;  %6239 = vmatpush.bf16.msrb.mxu1 %v10021_v45  ;;  %v10238_v39 = vld [vmem:[#allocation8 + $0x1898] sm:$0xf0]  ;;  %v8513_v45 = vor.u32 %v10908_v46, %v8510_v59  ;;  %v7653_v46 = vor.u32 %v10702_v0, %v7652_v37  ;;  %v9381_v25 = vor.u32 %v11134_v41, %v9380_v32  ;;  %v10810_v54 = vld [vmem:[#allocation8 + $0x7bc] sm:$0xf0]  ;;  %v7436_v56 = vld [vmem:[#allocation8 + $0x268] sm:$0xf] }
 0x2c0   :  { %6253 = vmatpush.bf16.msrb.mxu2 %v7145_v42  ;;  %6267 = vmatpush.bf16.msrb.mxu3 %v7721_v40  ;;  %v10241_v55 = vor.u32 %v11340_v16, %v10238_v39  ;;  %v11034_v42 = vld [vmem:[#allocation8 + $0xec4] sm:$0xf]  ;;  %v9014_v40 = vld [vmem:[#allocation8 + $0xf08] sm:$0xf0]  ;;  %v8732_v16 = vld [vmem:[#allocation8 + $0xc88] sm:$0xf]  ;;  %v8157_v43 = vor.u32 %v10828_v61, %v8156_v49 }
 0x2c1   :  { %v9017_v51 = vor.u32 %v11034_v42, %v9014_v40  ;;  %v10972_v39 = vld [vmem:[#allocation8 + $0xccc] sm:$0xf0]  ;;  %v12078_v42 = vpop.f32.mrf.mxu0  ;;  %v7940_v37 = vld [vmem:[#allocation8 + $0x658] sm:$0xf]  ;;  %v10774_v0 = vld [vmem:[#allocation8 + $0x69c] sm:$0xf0] }
 0x2c2   :  { %6226 = vmatmul.bf16.vlgmr.msrb.gmra.mxu0 %v11874_v6  ;;  %6240 = vmatmul.bf16.vlgmr.msrb.gmra.mxu1 %v11876_v57  ;;  %v8733_v40 = vor.u32 %v10972_v39, %v8732_v16  ;;  %v10648_v33 = vld [vmem:[#allocation8 + $0x2ac] sm:$0xf0]  ;;  %v9092_v22 = vld [vmem:[#allocation8 + $0xf58] sm:$0xf]  ;;  %v7941_v32 = vor.u32 %v10774_v0, %v7940_v37  ;;  %v7292_v41 = vld [vmem:[#allocation8 + $0x148] sm:$0xf] }
 0x2c3   :  { %6274 = vmatpush.bf16.msra.mxu0 %v8801_v26  ;;  %6288 = vmatpush.bf16.msra.mxu1 %v9377_v35  ;;  %v11178_v26 = vld [vmem:[#allocation8 + $0x1344] sm:$0xf]  ;;  %v9590_v35 = vld [vmem:[#allocation8 + $0x1388] sm:$0xf0]  ;;  %v9020_v49 = vld [vmem:[#allocation8 + $0xec8] sm:$0xf] }
 0x2c4   :  { %6302 = vmatpush.bf16.msra.mxu2 %v9953_v58  ;;  %6316 = vmatpush.bf16.msra.mxu3 %v10529_v62  ;;  %v10872_v58 = vld [vmem:[#allocation8 + $0x9b4] sm:$0xf]  ;;  %v8366_v62 = vld [vmem:[#allocation8 + $0x9f8] sm:$0xf0]  ;;  %v9593_v7 = vor.u32 %v11178_v26, %v9590_v35  ;;  %v8084_v35 = vld [vmem:[#allocation8 + $0x778] sm:$0xf] }
 0x2c5   :  { %6254 = vmatmul.bf16.vlgmr.msrb.gmra.mxu2 %v11852_v47  ;;  %6268 = vmatmul.bf16.vlgmr.msrb.gmra.mxu3 %v11854_v48  ;;  %v8369_v36 = vor.u32 %v10872_v58, %v8366_v62  ;;  %v11098_v58 = vld [vmem:[#allocation8 + $0x10bc] sm:$0xf0]  ;;  %v12084_v62 = vpop.f32.mrf.mxu1  ;;  %v11044_v61 = vld [vmem:[#allocation8 + $0xf0c] sm:$0xf0]  ;;  %v10693_v37 = vld [vmem:[#allocation8 + $0x41c] sm:$0xf] }
 0x2c6   :  { %7062 = dma.vmem_to_hbm [thread:$0]  %s7055_s13, 768, %s7057_s11, [#allocation4], %s11664_s30, %s11664_s30, %s11665_s8  }
 0x2c7   :  { %6275 = vmatpush.bf16.msra.mxu0 %v8729_v12  ;;  %6289 = vmatpush.bf16.msra.mxu1 %v9305_v44  ;;  %v11304_v12 = vld [vmem:[#allocation8 + $0x1734] sm:$0xf]  ;;  %v10094_v44 = vld [vmem:[#allocation8 + $0x1778] sm:$0xf0] }
 0x2c8   :  { %6303 = vmatpush.bf16.msra.mxu2 %v9881_v23  ;;  %6317 = vmatpush.bf16.msra.mxu3 %v10457_v19  ;;  %v8294_v23 = vld [vmem:[#allocation8 + $0x968] sm:$0xf0]  ;;  %v10998_v19 = vld [vmem:[#allocation8 + $0xda4] sm:$0xf]  ;;  %v10097_v21 = vor.u32 %v11304_v12, %v10094_v44  ;;  %v8012_v12 = vld [vmem:[#allocation8 + $0x6e8] sm:$0xf] }
 0x2c9   :  { %v8297_v27 = vor.u32 %v10854_v13, %v8294_v23  ;;  %v8873_v29 = vor.u32 %v10998_v19, %v8870_v1  ;;  %v10792_v44 = vld [vmem:[#allocation8 + $0x72c] sm:$0xf0]  ;;  %v8588_v13 = vld [vmem:[#allocation8 + $0xb68] sm:$0xf]  ;;  %v12086_v19 = vpop.f32.mrf.mxu2  ;;  %v12088_v1 = vpop.f32.mrf.mxu3 }
 0x2ca   :  { %v11080_v23 = vld [vmem:[#allocation8 + $0x102c] sm:$0xf0] }
 0x2cb   :  { %6276 = vmatpush.bf16.msra.mxu0 %v8657_v60  ;;  %6290 = vmatpush.bf16.msra.mxu1 %v9233_v63  ;;  %v11286_v60 = vld [vmem:[#allocation8 + $0x16a4] sm:$0xf]  ;;  %v10022_v63 = vld [vmem:[#allocation8 + $0x16e8] sm:$0xf0] }
 0x2cc   :  { %6304 = vmatpush.bf16.msra.mxu2 %v9809_v11  ;;  %6318 = vmatpush.bf16.msra.mxu3 %v10385_v28  ;;  %v8228_v11 = vld [vmem:[#allocation8 + $0x898] sm:$0xf]  ;;  %v10846_v28 = vld [vmem:[#allocation8 + $0x8dc] sm:$0xf0] }
 0x2cd   :  { %v8229_v59 = vor.u32 %v10846_v28, %v8228_v11  ;;  %v8516_v11 = vld [vmem:[#allocation8 + $0xad8] sm:$0xf]  ;;  %v10918_v28 = vld [vmem:[#allocation8 + $0xb1c] sm:$0xf0] }
 0x2cf   :  { %6277 = vmatpush.bf16.msra.mxu0 %v8585_v2  ;;  %6291 = vmatpush.bf16.msra.mxu1 %v9161_v14  ;;  %v9449_v2 = vor.u32 %v11142_v18, %v9446_v10  ;;  %v10025_v14 = vor.u32 %v11286_v60, %v10022_v63  ;;  %v7364_v18 = vld [vmem:[#allocation8 + $0x1d8] sm:$0xf]  ;;  %v10630_v10 = vld [vmem:[#allocation8 + $0x21c] sm:$0xf0] }
 0x2d0   :  { %6305 = vmatpush.bf16.msra.mxu2 %v9737_v3  ;;  %6319 = vmatpush.bf16.msra.mxu3 %v10313_v34  ;;  %v7580_v3 = vld [vmem:[#allocation8 + $0x388] sm:$0xf]  ;;  %v10684_v34 = vld [vmem:[#allocation8 + $0x3cc] sm:$0xf0]  ;;  %v7365_v30 = vor.u32 %v10630_v10, %v7364_v18  ;;  %v9956_v18 = vld [vmem:[#allocation8 + $0x1618] sm:$0xf] }
 0x2d1   :  { %v7581_v52 = vor.u32 %v10684_v34, %v7580_v3  ;;  %v10756_v3 = vld [vmem:[#allocation8 + $0x60c] sm:$0xf0]  ;;  %v8444_v34 = vld [vmem:[#allocation8 + $0xa48] sm:$0xf]  ;;  %v11278_v10 = vld [vmem:[#allocation8 + $0x165c] sm:$0xf0] }
 0x2d3   :  { %6278 = vmatpush.bf16.msra.mxu0 %v8513_v45  ;;  %6292 = vmatpush.bf16.msra.mxu1 %v9089_v20  ;;  %v9308_v45 = vld [vmem:[#allocation8 + $0x1108] sm:$0xf]  ;;  %v11116_v20 = vld [vmem:[#allocation8 + $0x114c] sm:$0xf0] }
 0x2d4   :  { %6306 = vmatpush.bf16.msra.mxu2 %v9665_v8  ;;  %6320 = vmatpush.bf16.msra.mxu3 %v10241_v55  ;;  %v7508_v8 = vld [vmem:[#allocation8 + $0x2f8] sm:$0xf]  ;;  %v10666_v55 = vld [vmem:[#allocation8 + $0x33c] sm:$0xf0]  ;;  %v9309_v26 = vor.u32 %v11116_v20, %v9308_v45 }
 0x2d5   :  { %v7220_v45 = vld [vmem:[#allocation8 + $0xb8] sm:$0xf]  ;;  %v10594_v20 = vld [vmem:[#allocation8 + $0xfc] sm:$0xf0] }
 0x2d7   :  { %6279 = vmatpush.bf16.msra.mxu0 %v8441_v5  ;;  %6293 = vmatpush.bf16.msra.mxu1 %v9017_v51  ;;  %v10954_v5 = vld [vmem:[#allocation8 + $0xc3c] sm:$0xf0]  ;;  %v9236_v51 = vld [vmem:[#allocation8 + $0x1078] sm:$0xf] }
 0x2d8   :  { %6307 = vmatpush.bf16.msra.mxu2 %v9593_v7  ;;  %6321 = vmatpush.bf16.msra.mxu3 %v10169_v31  ;;  %v7509_v7 = vor.u32 %v10666_v55, %v7508_v8  ;;  %v8085_v31 = vor.u32 %v10810_v54, %v8084_v35  ;;  %v8661_v17 = vor.u32 %v10954_v5, %v8660_v38  ;;  %v7796_v8 = vld [vmem:[#allocation8 + $0x538] sm:$0xf]  ;;  %v10738_v55 = vld [vmem:[#allocation8 + $0x57c] sm:$0xf0]  ;;  %v12096_v35 = vpop.f32.mrf.mxu3 }
 0x2d9   :  { %v9237_v9 = vor.u32 %v11098_v58, %v9236_v51  ;;  %v10882_v54 = vld [vmem:[#allocation8 + $0x9fc] sm:$0xf0]  ;;  %v8948_v38 = vld [vmem:[#allocation8 + $0xe38] sm:$0xf] }
 0x2da   :  { %v11026_v5 = vld [vmem:[#allocation8 + $0xe7c] sm:$0xf0] }
 0x2db   :  { %6280 = vmatpush.bf16.msra.mxu0 %v8369_v36  ;;  %6294 = vmatpush.bf16.msra.mxu1 %v8945_v15  ;;  %v10936_v36 = vld [vmem:[#allocation8 + $0xbac] sm:$0xf0]  ;;  %v9164_v15 = vld [vmem:[#allocation8 + $0xfe8] sm:$0xf]  ;;  %v12098_v51 = vld [vmem:[#allocation10] sm:$0xff] }
 0x2dc   :  { %6308 = vmatpush.bf16.msra.mxu2 %v9521_v24  ;;  %6322 = vmatpush.bf16.msra.mxu3 %v10097_v21  ;;  %v7437_v24 = vor.u32 %v10648_v33, %v7436_v56  ;;  %v8013_v21 = vor.u32 %v10792_v44, %v8012_v12  ;;  %v8589_v60 = vor.u32 %v10936_v36, %v8588_v13  ;;  %v1140_v58 = vperm.slane %v12098_v51, 6  ;;  %v10720_v12 = vld [vmem:[#allocation8 + $0x4ec] sm:$0xf0]  ;;  %v8300_v36 = vld [vmem:[#allocation8 + $0x928] sm:$0xf] }
 0x2dd   :  { %v9165_v63 = vor.u32 %v11080_v23, %v9164_v15  ;;  %v7221_v56 = vor.u32 %v10594_v20, %v7220_v45  ;;  %v7797_v33 = vor.u32 %v10738_v55, %v7796_v8  ;;  %v8949_v13 = vor.u32 %v11026_v5, %v8948_v38  ;;  %v10864_v15 = vld [vmem:[#allocation8 + $0x96c] sm:$0xf0]  ;;  %v8876_v23 = vld [vmem:[#allocation8 + $0xda8] sm:$0xf]  ;;  %v7582_v45 = vld [vmem:[#allocation8 + $0x3d0] sm:$0xf0] }
 0x2de   :  { %v10819_v20 = vld [vmem:[#allocation8 + $0x80c] sm:$0xf]  ;;  %v11242_v38 = vld [vmem:[#allocation8 + $0x153c] sm:$0xf0] }
 0x2df   :  { %6281 = vmatpush.bf16.msra.mxu0 %v8297_v27  ;;  %6295 = vmatpush.bf16.msra.mxu1 %v8873_v29  ;;  %v11062_v27 = vld [vmem:[#allocation8 + $0xf9c] sm:$0xf0]  ;;  %v12090_v29 = vpop.f32.mrf.mxu0 }
 0x2e0   :  { %6309 = vmatpush.bf16.msra.mxu2 %v9449_v2  ;;  %6323 = vmatpush.bf16.msra.mxu3 %v10025_v14  ;;  %v10612_v2 = vld [vmem:[#allocation8 + $0x18c] sm:$0xf0]  ;;  %v8517_v14 = vor.u32 %v10918_v28, %v8516_v11  ;;  %v7654_v28 = vld [vmem:[#allocation8 + $0x460] sm:$0xf0] }
 0x2e1   :  { %v7293_v16 = vor.u32 %v10612_v2, %v7292_v41 }
 0x2e2   :  { %6282 = vmatmul.bf16.vlgmr.msra.gmra.mxu0 %v11856_v50  ;;  %6296 = vmatmul.bf16.vlgmr.msra.gmra.mxu1 %v11858_v53 }
 0x2e3   :  { %6330 = vmatpush.bf16.msrb.mxu0 %v7653_v46  ;;  %6344 = vmatpush.bf16.msrb.mxu1 %v8229_v59  ;;  %v9093_v46 = vor.u32 %v11062_v27, %v9092_v22  ;;  %v7868_v59 = vld [vmem:[#allocation8 + $0x5c8] sm:$0xf]  ;;  %v10837_v22 = vld [vmem:[#allocation8 + $0x89c] sm:$0xf]  ;;  %v8230_v27 = vld [vmem:[#allocation8 + $0x8e0] sm:$0xf0] }
 0x2e4   :  { %6358 = vmatpush.bf16.msrb.mxu2 %v8805_v4  ;;  %6372 = vmatpush.bf16.msrb.mxu3 %v9381_v25  ;;  %v12092_v4 = vpop.f32.mrf.mxu1  ;;  %v10900_v25 = vld [vmem:[#allocation8 + $0xa8c] sm:$0xf0]  ;;  %v7869_v39 = vor.u32 %v10756_v3, %v7868_v59  ;;  %v9884_v59 = vld [vmem:[#allocation8 + $0x1588] sm:$0xf] }
 0x2e5   :  { %6310 = vmatmul.bf16.vlgmr.msra.gmra.mxu2 %v11874_v6  ;;  %6324 = vmatmul.bf16.vlgmr.msra.gmra.mxu3 %v11876_v57  ;;  %v11260_v3 = vld [vmem:[#allocation8 + $0x15cc] sm:$0xf0] }
 0x2e6   :  { %v9885_v55 = vor.u32 %v11260_v3, %v9884_v59  ;;  %v9668_v3 = vld [vmem:[#allocation8 + $0x13d8] sm:$0xf] }
 0x2e7   :  { %6331 = vmatpush.bf16.msrb.mxu0 %v7581_v52  ;;  %6345 = vmatpush.bf16.msrb.mxu1 %v8157_v43  ;;  %v8445_v52 = vor.u32 %v10900_v25, %v8444_v34  ;;  %v9021_v43 = vor.u32 %v11044_v61, %v9020_v49  ;;  %v7657_v34 = vor.u32 %v10693_v37, %v7654_v28  ;;  %v10460_v49 = vld [vmem:[#allocation8 + $0x1a08] sm:$0xf]  ;;  %v11404_v61 = vld [vmem:[#allocation8 + $0x1a4c] sm:$0xf0] }
 0x2e8   :  { %6359 = vmatpush.bf16.msrb.mxu2 %v8733_v40  ;;  %6373 = vmatpush.bf16.msrb.mxu3 %v9309_v26  ;;  %v8372_v40 = vld [vmem:[#allocation8 + $0x9b8] sm:$0xf]  ;;  %v12094_v26 = vpop.f32.mrf.mxu2  ;;  %v12105_v2 = vpop.f32.mrf.mxu3  ;;  %v8233_v25 = vor.u32 %v10837_v22, %v8230_v27  ;;  %v11368_v37 = vld [vmem:[#allocation8 + $0x192c] sm:$0xf0]  ;;  %v7438_v22 = vld [vmem:[#allocation8 + $0x2b0] sm:$0xf0] }
 0x2e9   :  { %v8373_v44 = vor.u32 %v10882_v54, %v8372_v40  ;;  %v10461_v40 = vor.u32 %v11404_v61, %v10460_v49  ;;  %v9812_v54 = vld [vmem:[#allocation8 + $0x14f8] sm:$0xf]  ;;  %v10783_v27 = vld [vmem:[#allocation8 + $0x6ec] sm:$0xf] }
 0x2eb   :  { %6332 = vmatpush.bf16.msrb.mxu0 %v7509_v7  ;;  %6346 = vmatpush.bf16.msrb.mxu1 %v8085_v31  ;;  %v12101_v7 = vpop.f32.mrf.mxu0  ;;  %v7148_v31 = vld [vmem:[#allocation8 + $0x28] sm:$0xf] }
 0x2ec   :  { %6360 = vmatpush.bf16.msrb.mxu2 %v8661_v17  ;;  %6374 = vmatpush.bf16.msrb.mxu3 %v9237_v9  ;;  %v10576_v17 = vld [vmem:[#allocation8 + $0x6c] sm:$0xf0]  ;;  %v7724_v9 = vld [vmem:[#allocation8 + $0x4a8] sm:$0xf] }
 0x2ed   :  { %v7149_v0 = vor.u32 %v10576_v17, %v7148_v31  ;;  %v7725_v11 = vor.u32 %v10720_v12, %v7724_v9  ;;  %v10388_v31 = vld [vmem:[#allocation8 + $0x1978] sm:$0xf]  ;;  %v7510_v12 = vld [vmem:[#allocation8 + $0x340] sm:$0xf0] }
 0x2ef   :  { %6333 = vmatpush.bf16.msrb.mxu0 %v7437_v24  ;;  %6347 = vmatpush.bf16.msrb.mxu1 %v8013_v21  ;;  %v12103_v24 = vpop.f32.mrf.mxu1  ;;  %v11008_v21 = vld [vmem:[#allocation8 + $0xdec] sm:$0xf0] }
 0x2f0   :  { %6361 = vmatpush.bf16.msrb.mxu2 %v8589_v60  ;;  %6375 = vmatpush.bf16.msrb.mxu3 %v9165_v63  ;;  %v10532_v60 = vld [vmem:[#allocation8 + $0x1a98] sm:$0xf]  ;;  %v11422_v63 = vld [vmem:[#allocation8 + $0x1adc] sm:$0xf0]  ;;  %v6087_v41 = vpop.f32.mrf.mxu2  ;;  %v6103_v28 = vpop.f32.mrf.mxu3 }
 0x2f3   :  { %6334 = vmatpush.bf16.msrb.mxu0 %v7365_v30  ;;  %6348 = vmatpush.bf16.msrb.mxu1 %v7941_v32  ;;  %v8301_v30 = vor.u32 %v10864_v15, %v8300_v36  ;;  %v8877_v32 = vor.u32 %v11008_v21, %v8876_v23  ;;  %v12111_v8 = vpop.f32.mrf.mxu0  ;;  %v9740_v21 = vld [vmem:[#allocation8 + $0x1468] sm:$0xf] }
 0x2f4   :  { %6362 = vmatpush.bf16.msrb.mxu2 %v8517_v14  ;;  %6376 = vmatpush.bf16.msrb.mxu3 %v9093_v46  ;;  %v9957_v14 = vor.u32 %v11278_v10, %v9956_v18  ;;  %v10533_v46 = vor.u32 %v11422_v63, %v10532_v60  ;;  %v11224_v18 = vld [vmem:[#allocation8 + $0x14ac] sm:$0xf0]  ;;  %v10316_v63 = vld [vmem:[#allocation8 + $0x18e8] sm:$0xf] }
 0x2f5   :  { %v10317_v59 = vor.u32 %v11368_v37, %v10316_v63  ;;  %v11170_v63 = vld [vmem:[#allocation8 + $0x12fc] sm:$0xf0] }
 0x2f7   :  { %6335 = vmatpush.bf16.msrb.mxu0 %v7293_v16  ;;  %6349 = vmatpush.bf16.msrb.mxu1 %v7869_v39  ;;  %v10675_v16 = vld [vmem:[#allocation8 + $0x38c] sm:$0xf]  ;;  %v6004_v39 = vadd.f32 %v12078_v42, %v1140_v58  ;;  %v12114_v9 = vpop.f32.mrf.mxu1 }
 0x2f8   :  { %6363 = vmatpush.bf16.msrb.mxu2 %v8445_v52  ;;  %6377 = vmatpush.bf16.msrb.mxu3 %v9021_v43  ;;  %v8158_v52 = vld [vmem:[#allocation8 + $0x850] sm:$0xf0]  ;;  %v1141_v43 = vperm.slane %v12098_v51, 7  ;;  %v7585_v42 = vor.u32 %v10675_v16, %v7582_v45  ;;  %v10244_v16 = vld [vmem:[#allocation8 + $0x1858] sm:$0xf] }
 0x2f9   :  { %v8161_v5 = vor.u32 %v10819_v20, %v8158_v52  ;;  %v6018_v17 = vadd.f32 %v12084_v62, %v6004_v39  ;;  %v9813_v62 = vor.u32 %v11242_v38, %v9812_v54  ;;  %v11350_v39 = vld [vmem:[#allocation8 + $0x189c] sm:$0xf0]  ;;  %v10621_v45 = vld [vmem:[#allocation8 + $0x1dc] sm:$0xf]  ;;  %v7942_v20 = vld [vmem:[#allocation8 + $0x6a0] sm:$0xf0] }
 0x2fa   :  { %v6088_v36 = vadd.f32 %v6087_v41, %v1141_v43  ;;  %v10245_v54 = vor.u32 %v11350_v39, %v10244_v16  ;;  %v9596_v38 = vld [vmem:[#allocation8 + $0x1348] sm:$0xf] }
 0x2fb   :  { %6336 = vmatpush.bf16.msrb.mxu0 %v7221_v56  ;;  %6350 = vmatpush.bf16.msrb.mxu1 %v7797_v33  ;;  %v11386_v56 = vld [vmem:[#allocation8 + $0x19bc] sm:$0xf0]  ;;  %v10657_v33 = vld [vmem:[#allocation8 + $0x2fc] sm:$0xf]  ;;  %v6032_v15 = vadd.f32 %v12086_v19, %v6018_v17  ;;  %v6006_v19 = vadd.f32 %v12090_v29, %v1140_v58  ;;  %v7366_v58 = vld [vmem:[#allocation8 + $0x220] sm:$0xf0] }
 0x2fc   :  { %6364 = vmatpush.bf16.msrb.mxu2 %v8373_v44  ;;  %6378 = vmatpush.bf16.msrb.mxu3 %v8949_v13  ;;  %v10801_v44 = vld [vmem:[#allocation8 + $0x77c] sm:$0xf]  ;;  %v8086_v13 = vld [vmem:[#allocation8 + $0x7c0] sm:$0xf0]  ;;  %v10389_v23 = vor.u32 %v11386_v56, %v10388_v31  ;;  %v7513_v10 = vor.u32 %v10657_v33, %v7510_v12  ;;  %v7369_v56 = vor.u32 %v10621_v45, %v7366_v58  ;;  %v11332_v17 = vld [vmem:[#allocation8 + $0x180c] sm:$0xf0] }
 0x2fd   :  { %v8089_v60 = vor.u32 %v10801_v44, %v8086_v13  ;;  %v10603_v12 = vld [vmem:[#allocation8 + $0x14c] sm:$0xf]  ;;  %v7870_v13 = vld [vmem:[#allocation8 + $0x610] sm:$0xf0] }
 0x2fe   :  { %v7150_v45 = vld [vmem:[#allocation8 + $0x70] sm:$0xf0] }
 0x2ff   :  { %6337 = vmatpush.bf16.msrb.mxu0 %v7149_v0  ;;  %6351 = vmatpush.bf16.msrb.mxu1 %v7725_v11  ;;  %v10639_v0 = vld [vmem:[#allocation8 + $0x26c] sm:$0xf]  ;;  %v6089_v11 = vpop.f32.mrf.mxu2  ;;  %v6115_v41 = vpop.f32.mrf.mxu0 }
 0x300   :  { %6365 = vmatpush.bf16.msrb.mxu2 %v8301_v30  ;;  %6379 = vmatpush.bf16.msrb.mxu3 %v8877_v32  ;;  %v8014_v30 = vld [vmem:[#allocation8 + $0x730] sm:$0xf0]  ;;  %v6102_v32 = vadd.f32 %v12105_v2, %v6088_v36  ;;  %v7441_v49 = vor.u32 %v10639_v0, %v7438_v22  ;;  %v6129_v29 = vpop.f32.mrf.mxu1  ;;  %v10765_v2 = vld [vmem:[#allocation8 + $0x65c] sm:$0xf]  ;;  %v6090_v52 = vadd.f32 %v6089_v11, %v1141_v43  ;;  %v10100_v11 = vld [vmem:[#allocation8 + $0x1738] sm:$0xf] }
 0x301   :  { %v8017_v61 = vor.u32 %v10783_v27, %v8014_v30  ;;  %v7945_v33 = vor.u32 %v10765_v2, %v7942_v20  ;;  %v11314_v22 = vld [vmem:[#allocation8 + $0x177c] sm:$0xf0]  ;;  %v10585_v27 = vld [vmem:[#allocation8 + $0xbc] sm:$0xf]  ;;  %v7726_v2 = vld [vmem:[#allocation8 + $0x4f0] sm:$0xf0] }
 0x302   :  { %6338 = vmatmul.bf16.vlgmr.msrb.gmra.mxu0 %v11852_v47  ;;  %6352 = vmatmul.bf16.vlgmr.msrb.gmra.mxu1 %v11854_v48  ;;  %v10729_v30 = vld [vmem:[#allocation8 + $0x53c] sm:$0xf] }
 0x303   :  { %6386 = vmatpush.bf16.msra.mxu0 %v9957_v14  ;;  %6400 = vmatpush.bf16.msra.mxu1 %v10533_v46  ;;  %v6046_v14 = vadd.f32 %v12088_v1, %v6032_v15  ;;  %v9741_v46 = vor.u32 %v11224_v18, %v9740_v21  ;;  %v6104_v15 = vadd.f32 %v6103_v28, %v6090_v52  ;;  %v7222_v28 = vld [vmem:[#allocation8 + $0x100] sm:$0xf0]  ;;  %v10981_v20 = vld [vmem:[#allocation8 + $0xd1c] sm:$0xf] }
 0x304   :  { %6414 = vmatpush.bf16.msra.mxu2 %v7657_v34  ;;  %6428 = vmatpush.bf16.msra.mxu3 %v8233_v25  ;;  %v11206_v34 = vld [vmem:[#allocation8 + $0x141c] sm:$0xf0]  ;;  %v6116_v25 = vadd.f32 %v6115_v41, %v6102_v32  ;;  %v9452_v41 = vld [vmem:[#allocation8 + $0x1228] sm:$0xf]  ;;  %v11125_v52 = vld [vmem:[#allocation8 + $0x119c] sm:$0xf] }
 0x305   :  { %6366 = vmatmul.bf16.vlgmr.msrb.gmra.mxu2 %v11856_v50  ;;  %6380 = vmatmul.bf16.vlgmr.msrb.gmra.mxu3 %v11858_v53  ;;  %v6060_v1 = vadd.f32 %v12101_v7, %v6046_v14  ;;  %v7294_v7 = vld [vmem:[#allocation8 + $0x190] sm:$0xf0]  ;;  %v11152_v14 = vld [vmem:[#allocation8 + $0x126c] sm:$0xf0] }
 0x306   :  { %v6130_v31 = vadd.f32 %v6129_v29, %v6116_v25  ;;  %v10028_v25 = vld [vmem:[#allocation8 + $0x16a8] sm:$0xf]  ;;  %v10711_v29 = vld [vmem:[#allocation8 + $0x4ac] sm:$0xf] }
 0x307   :  { %6387 = vmatpush.bf16.msra.mxu0 %v9885_v55  ;;  %6401 = vmatpush.bf16.msra.mxu1 %v10461_v40  ;;  %v6020_v55 = vadd.f32 %v12092_v4, %v6006_v19  ;;  %v9669_v40 = vor.u32 %v11206_v34, %v9668_v3  ;;  %v10747_v4 = vld [vmem:[#allocation8 + $0x5cc] sm:$0xf]  ;;  %v6074_v36 = vadd.f32 %v12103_v24, %v6060_v1  ;;  %v7798_v19 = vld [vmem:[#allocation8 + $0x580] sm:$0xf0] }
 0x308   :  { %6415 = vmatpush.bf16.msra.mxu2 %v7585_v42  ;;  %6429 = vmatpush.bf16.msra.mxu3 %v8161_v5  ;;  %v11188_v42 = vld [vmem:[#allocation8 + $0x138c] sm:$0xf0]  ;;  %v10172_v5 = vld [vmem:[#allocation8 + $0x17c8] sm:$0xf]  ;;  %v6143_v43 = vpop.f32.mrf.mxu2  ;;  %v6157_v44 = vpop.f32.mrf.mxu3  ;;  %v7873_v0 = vor.u32 %v10747_v4, %v7870_v13  ;;  %v10101_v34 = vor.u32 %v11314_v22, %v10100_v11  ;;  %v7801_v39 = vor.u32 %v10729_v30, %v7798_v19  ;;  %v8734_v4 = vld [vmem:[#allocation8 + $0xcd0] sm:$0xf0] }
 0x309   :  { %v6034_v51 = vadd.f32 %v12094_v26, %v6020_v55  ;;  %v9597_v21 = vor.u32 %v11188_v42, %v9596_v38  ;;  %v10173_v18 = vor.u32 %v11332_v17, %v10172_v5  ;;  %v9382_v55 = vld [vmem:[#allocation8 + $0x11e0] sm:$0xf0]  ;;  %v9453_v42 = vor.u32 %v11152_v14, %v9452_v41  ;;  %v11089_v22 = vld [vmem:[#allocation8 + $0x107c] sm:$0xf]  ;;  %v10927_v14 = vld [vmem:[#allocation8 + $0xb6c] sm:$0xf] }
 0x30a   :  { %v11377_v30 = vld [vmem:[#allocation8 + $0x197c] sm:$0xf]  ;;  %v10390_v19 = vld [vmem:[#allocation8 + $0x19c0] sm:$0xf0] }
 0x30b   :  { %6388 = vmatpush.bf16.msra.mxu0 %v9813_v62  ;;  %6402 = vmatpush.bf16.msra.mxu1 %v10389_v23  ;;  %v6144_v62 = vadd.f32 %v6143_v43, %v6130_v31  ;;  %v6117_v23 = vpop.f32.mrf.mxu0  ;;  %v6048_v24 = vadd.f32 %v12096_v35, %v6034_v51  ;;  %v7225_v35 = vor.u32 %v10585_v27, %v7222_v28  ;;  %v9958_v31 = vld [vmem:[#allocation8 + $0x1660] sm:$0xf0] }
 0x30c   :  { %6416 = vmatpush.bf16.msra.mxu2 %v7513_v10  ;;  %6430 = vmatpush.bf16.msra.mxu3 %v8089_v60  ;;  %v7297_v10 = vor.u32 %v10603_v12, %v7294_v7  ;;  %v9524_v60 = vld [vmem:[#allocation8 + $0x12b8] sm:$0xf]  ;;  %v6118_v26 = vadd.f32 %v6117_v23, %v6104_v15  ;;  %v7729_v7 = vor.u32 %v10711_v29, %v7726_v2  ;;  %v11107_v15 = vld [vmem:[#allocation8 + $0x110c] sm:$0xf]  ;;  %v9238_v27 = vld [vmem:[#allocation8 + $0x10c0] sm:$0xf0] }
 0x30d   :  { %v6158_v37 = vadd.f32 %v6157_v44, %v6144_v62  ;;  %v9525_v3 = vor.u32 %v11170_v63, %v9524_v60  ;;  %v9385_v43 = vor.u32 %v11125_v52, %v9382_v55  ;;  %v10963_v44 = vld [vmem:[#allocation8 + $0xc8c] sm:$0xf]  ;;  %v9310_v62 = vld [vmem:[#allocation8 + $0x1150] sm:$0xf0]  ;;  %v9814_v28 = vld [vmem:[#allocation8 + $0x1540] sm:$0xf0]  ;;  %v9241_v41 = vor.u32 %v11089_v22, %v9238_v27 }
 0x30e   :  { %v11251_v23 = vld [vmem:[#allocation8 + $0x158c] sm:$0xf]  ;;  %v8737_v60 = vor.u32 %v10963_v44, %v8734_v4  ;;  %v9313_v63 = vor.u32 %v11107_v15, %v9310_v62  ;;  %v10909_v29 = vld [vmem:[#allocation8 + $0xadc] sm:$0xf]  ;;  %v9670_v55 = vld [vmem:[#allocation8 + $0x1420] sm:$0xf0] }
 0x30f   :  { %6389 = vmatpush.bf16.msra.mxu0 %v9741_v46  ;;  %6403 = vmatpush.bf16.msra.mxu1 %v10317_v59  ;;  %v7026_v32 = vpack.c.bf16 %v6158_v37, %v6074_v36  ;;  %v6062_v46 = vadd.f32 %v12111_v8, %v6048_v24  ;;  %v6131_v59 = vpop.f32.mrf.mxu1  ;;  %v8806_v8 = vld [vmem:[#allocation8 + $0xd60] sm:$0xf0]  ;;  %v10945_v37 = vld [vmem:[#allocation8 + $0xbfc] sm:$0xf]  ;;  %v10174_v44 = vld [vmem:[#allocation8 + $0x1810] sm:$0xf0] }
 0x310   :  { %6417 = vmatpush.bf16.msra.mxu2 %v7441_v49  ;;  %6431 = vmatpush.bf16.msra.mxu3 %v8017_v61  ;;  %v11296_v49 = vld [vmem:[#allocation8 + $0x16ec] sm:$0xf0]  ;;  %v10567_v61 = vld [vmem:[#allocation8 + $0x2c] sm:$0xf]  ;;  %v6132_v16 = vadd.f32 %v6131_v59, %v6118_v26  ;;  %v6145_v58 = vpop.f32.mrf.mxu2  ;;  %v6159_v38 = vpop.f32.mrf.mxu3  ;;  %v8809_v51 = vor.u32 %v10981_v20, %v8806_v8  ;;  %v8662_v26 = vld [vmem:[#allocation8 + $0xc40] sm:$0xf0] }
 0x311   :  { %7032 = vst [vmem:[#allocation12] sm:$0xff] %v7026_v32  ;;  %v10029_v5 = vor.u32 %v11296_v49, %v10028_v25  ;;  %v7153_v12 = vor.u32 %v10567_v61, %v7150_v45  ;;  %v11233_v24 = vld [vmem:[#allocation8 + $0x14fc] sm:$0xf]  ;;  %v8665_v32 = vor.u32 %v10945_v37, %v8662_v26  ;;  %v9166_v25 = vld [vmem:[#allocation8 + $0x1030] sm:$0xf0] }
 0x312   :  { %v6146_v1 = vadd.f32 %v6145_v58, %v6132_v16  ;;  %v9817_v59 = vor.u32 %v11233_v24, %v9814_v28  ;;  %v11215_v49 = vld [vmem:[#allocation8 + $0x146c] sm:$0xf]  ;;  %v9742_v61 = vld [vmem:[#allocation8 + $0x14b0] sm:$0xf0]  ;;  %v8518_v58 = vld [vmem:[#allocation8 + $0xb20] sm:$0xf0] }
 0x313   :  { %6390 = vmatpush.bf16.msra.mxu0 %v9669_v40  ;;  %6404 = vmatpush.bf16.msra.mxu1 %v10245_v54  ;;  %v11269_v40 = vld [vmem:[#allocation8 + $0x161c] sm:$0xf]  ;;  %v6076_v54 = vadd.f32 %v12114_v9, %v6062_v46  ;;  %v8590_v46 = vld [vmem:[#allocation8 + $0xbb0] sm:$0xf0]  ;;  %v11359_v16 = vld [vmem:[#allocation8 + $0x18ec] sm:$0xf]  ;;  %v9745_v2 = vor.u32 %v11215_v49, %v9742_v61 }
 0x314   :  { %6418 = vmatpush.bf16.msra.mxu2 %v7369_v56  ;;  %6432 = vmatpush.bf16.msra.mxu3 %v7945_v33  ;;  %v11413_v56 = vld [vmem:[#allocation8 + $0x1a9c] sm:$0xf]  ;;  %v10534_v33 = vld [vmem:[#allocation8 + $0x1ae0] sm:$0xf0]  ;;  %v6160_v17 = vadd.f32 %v6159_v38, %v6146_v1  ;;  %v9961_v36 = vor.u32 %v11269_v40, %v9958_v31  ;;  %v8521_v38 = vor.u32 %v10909_v29, %v8518_v58  ;;  %v8446_v31 = vld [vmem:[#allocation8 + $0xa90] sm:$0xf0] }
 0x315   :  { %v10537_v9 = vor.u32 %v11413_v56, %v10534_v33  ;;  %v11053_v8 = vld [vmem:[#allocation8 + $0xf5c] sm:$0xf]  ;;  %v9094_v1 = vld [vmem:[#allocation8 + $0xfa0] sm:$0xf0]  ;;  %v10855_v37 = vld [vmem:[#allocation8 + $0x92c] sm:$0xf] }
 0x316   :  { %v7029_v13 = vpack.c.bf16 %v6160_v17, %v6076_v54  ;;  %v11197_v52 = vld [vmem:[#allocation8 + $0x13dc] sm:$0xf]  ;;  %v10246_v54 = vld [vmem:[#allocation8 + $0x18a0] sm:$0xf0]  ;;  %v11035_v17 = vld [vmem:[#allocation8 + $0xecc] sm:$0xf] }
 0x317   :  { %6391 = vmatpush.bf16.msra.mxu0 %v9597_v21  ;;  %6405 = vmatpush.bf16.msra.mxu1 %v10173_v18  ;;  %v9886_v21 = vld [vmem:[#allocation8 + $0x15d0] sm:$0xf0]  ;;  %v11395_v18 = vld [vmem:[#allocation8 + $0x1a0c] sm:$0xf]  ;;  %v11341_v40 = vld [vmem:[#allocation8 + $0x185c] sm:$0xf]  ;;  %v9673_v56 = vor.u32 %v11197_v52, %v9670_v55 }
 0x318   :  { %6419 = vmatpush.bf16.msra.mxu2 %v7297_v10  ;;  %6433 = vmatpush.bf16.msra.mxu3 %v7873_v0  ;;  %v10462_v10 = vld [vmem:[#allocation8 + $0x1a50] sm:$0xf0]  ;;  %7035 = vst [vmem:[#allocation12 + $0x18] sm:$0xff] %v7029_v13  ;;  %v9889_v0 = vor.u32 %v11251_v23, %v9886_v21  ;;  %v10249_v33 = vor.u32 %v11341_v40, %v10246_v54  ;;  %v11017_v23 = vld [vmem:[#allocation8 + $0xe3c] sm:$0xf] }
 0x319   :  { %v10465_v11 = vor.u32 %v11395_v18, %v10462_v10  ;;  %v8950_v21 = vld [vmem:[#allocation8 + $0xe80] sm:$0xf0]  ;;  %v11161_v18 = vld [vmem:[#allocation8 + $0x12bc] sm:$0xf]  ;;  %v10999_v22 = vld [vmem:[#allocation8 + $0xdac] sm:$0xf] }
 0x31a   :  { %v9526_v10 = vld [vmem:[#allocation8 + $0x1300] sm:$0xf0]  ;;  %v8878_v27 = vld [vmem:[#allocation8 + $0xdf0] sm:$0xf0]  ;;  %v10991_v61 = vld [vmem:[#allocation8 + $0xd64] sm:$0xf0] }
 0x31b   :  { %6392 = vmatpush.bf16.msra.mxu0 %v9525_v3  ;;  %6406 = vmatpush.bf16.msra.mxu1 %v10101_v34  ;;  %v10393_v3 = vor.u32 %v11377_v30, %v10390_v19  ;;  %v11071_v34 = vld [vmem:[#allocation8 + $0xfec] sm:$0xf]  ;;  %v9529_v24 = vor.u32 %v11161_v18, %v9526_v10  ;;  %v9454_v19 = vld [vmem:[#allocation8 + $0x1270] sm:$0xf0]  ;;  %v8881_v49 = vor.u32 %v10999_v22, %v8878_v27  ;;  %v8164_v52 = vld [vmem:[#allocation8 + $0x810] sm:$0xf] }
 0x31c   :  { %6420 = vmatpush.bf16.msra.mxu2 %v7225_v35  ;;  %6434 = vmatpush.bf16.msra.mxu3 %v7801_v39  ;;  %v10318_v35 = vld [vmem:[#allocation8 + $0x1930] sm:$0xf0]  ;;  %v8593_v39 = vor.u32 %v10927_v14, %v8590_v46  ;;  %v9169_v45 = vor.u32 %v11071_v34, %v9166_v25  ;;  %v11143_v30 = vld [vmem:[#allocation8 + $0x122c] sm:$0xf]  ;;  %v7660_v14 = vld [vmem:[#allocation8 + $0x420] sm:$0xf] }
 0x31d   :  { %v10321_v20 = vor.u32 %v11359_v16, %v10318_v35  ;;  %v10703_v46 = vld [vmem:[#allocation8 + $0x464] sm:$0xf0]  ;;  %v8812_v34 = vld [vmem:[#allocation8 + $0xd20] sm:$0xf]  ;;  %v10829_v55 = vld [vmem:[#allocation8 + $0x854] sm:$0xf0] }
 0x31e   :  { %v9388_v16 = vld [vmem:[#allocation8 + $0x11a0] sm:$0xf]  ;;  %v11135_v35 = vld [vmem:[#allocation8 + $0x11e4] sm:$0xf0]  ;;  %v7661_v29 = vor.u32 %v10703_v46, %v7660_v14  ;;  %v8740_v40 = vld [vmem:[#allocation8 + $0xc90] sm:$0xf] }
 0x31f   :  { %6393 = vmatpush.bf16.msra.mxu0 %v9453_v42  ;;  %6407 = vmatpush.bf16.msra.mxu1 %v10029_v5  ;;  %v9097_v42 = vor.u32 %v11053_v8, %v9094_v1  ;;  %v10891_v5 = vld [vmem:[#allocation8 + $0xa4c] sm:$0xf]  ;;  %v8813_v8 = vor.u32 %v10991_v61, %v8812_v34  ;;  %v9389_v1 = vor.u32 %v11135_v35, %v9388_v16  ;;  %v10973_v54 = vld [vmem:[#allocation8 + $0xcd4] sm:$0xf0]  ;;  %v7948_v14 = vld [vmem:[#allocation8 + $0x660] sm:$0xf] }
 0x320   :  { %6421 = vmatpush.bf16.msra.mxu2 %v7153_v12  ;;  %6435 = vmatpush.bf16.msra.mxu3 %v7729_v7  ;;  %v9022_v12 = vld [vmem:[#allocation8 + $0xf10] sm:$0xf0]  ;;  %v11179_v7 = vld [vmem:[#allocation8 + $0x134c] sm:$0xf]  ;;  %v8449_v4 = vor.u32 %v10891_v5, %v8446_v31  ;;  %v8165_v31 = vor.u32 %v10829_v55, %v8164_v52  ;;  %v10775_v46 = vld [vmem:[#allocation8 + $0x6a4] sm:$0xf0] }
 0x321   :  { %v9025_v13 = vor.u32 %v11035_v17, %v9022_v12  ;;  %v12141_v17 = vpop.f32.mrf.mxu0  ;;  %v8741_v12 = vor.u32 %v10973_v54, %v8740_v40  ;;  %v9100_v34 = vld [vmem:[#allocation8 + $0xf60] sm:$0xf]  ;;  %v7949_v16 = vor.u32 %v10775_v46, %v7948_v14  ;;  %v7300_v35 = vld [vmem:[#allocation8 + $0x150] sm:$0xf]  ;;  %v11045_v55 = vld [vmem:[#allocation8 + $0xf14] sm:$0xf0] }
 0x322   :  { %6394 = vmatmul.bf16.vlgmr.msra.gmra.mxu0 %v11874_v6  ;;  %6408 = vmatmul.bf16.vlgmr.msra.gmra.mxu1 %v11876_v57  ;;  %v9028_v52 = vld [vmem:[#allocation8 + $0xed0] sm:$0xf]  ;;  %v12157_v40 = vld [vmem:[#allocation10 + $0x8] sm:$0xff]  ;;  %v10694_v14 = vld [vmem:[#allocation8 + $0x424] sm:$0xf] }
 0x323   :  { %6442 = vmatpush.bf16.msrb.mxu0 %v8809_v51  ;;  %6456 = vmatpush.bf16.msrb.mxu1 %v9385_v43  ;;  %v9598_v51 = vld [vmem:[#allocation8 + $0x1390] sm:$0xf0]  ;;  %v11323_v43 = vld [vmem:[#allocation8 + $0x17cc] sm:$0xf] }
 0x324   :  { %6470 = vmatpush.bf16.msrb.mxu2 %v9961_v36  ;;  %6484 = vmatpush.bf16.msrb.mxu3 %v10537_v9  ;;  %v10873_v36 = vld [vmem:[#allocation8 + $0x9bc] sm:$0xf]  ;;  %v8374_v9 = vld [vmem:[#allocation8 + $0xa00] sm:$0xf0]  ;;  %v9601_v15 = vor.u32 %v11179_v7, %v9598_v51  ;;  %v10177_v62 = vor.u32 %v11323_v43, %v10174_v44  ;;  %v8092_v51 = vld [vmem:[#allocation8 + $0x780] sm:$0xf] }
 0x325   :  { %6422 = vmatmul.bf16.vlgmr.msra.gmra.mxu2 %v11852_v47  ;;  %6436 = vmatmul.bf16.vlgmr.msra.gmra.mxu3 %v11854_v48  ;;  %v8377_v26 = vor.u32 %v10873_v36, %v8374_v9  ;;  %v10811_v43 = vld [vmem:[#allocation8 + $0x7c4] sm:$0xf0]  ;;  %v8668_v44 = vld [vmem:[#allocation8 + $0xc00] sm:$0xf]  ;;  %v12147_v9 = vpop.f32.mrf.mxu1 }
 0x326   :  { %v11099_v36 = vld [vmem:[#allocation8 + $0x10c4] sm:$0xf0] }
 0x327   :  { %6443 = vmatpush.bf16.msrb.mxu0 %v8737_v60  ;;  %6457 = vmatpush.bf16.msrb.mxu1 %v9313_v63  ;;  %v11305_v60 = vld [vmem:[#allocation8 + $0x173c] sm:$0xf]  ;;  %v10102_v63 = vld [vmem:[#allocation8 + $0x1780] sm:$0xf0] }
 0x328   :  { %6471 = vmatpush.bf16.msrb.mxu2 %v9889_v0  ;;  %6485 = vmatpush.bf16.msrb.mxu3 %v10465_v11  ;;  %v8953_v0 = vor.u32 %v11017_v23, %v8950_v21  ;;  %v8302_v11 = vld [vmem:[#allocation8 + $0x970] sm:$0xf0]  ;;  %v10105_v28 = vor.u32 %v11305_v60, %v10102_v63  ;;  %v7444_v23 = vld [vmem:[#allocation8 + $0x270] sm:$0xf]  ;;  %v10649_v21 = vld [vmem:[#allocation8 + $0x2b4] sm:$0xf0]  ;;  %v12149_v22 = vpop.f32.mrf.mxu2  ;;  %v12151_v27 = vpop.f32.mrf.mxu3 }
 0x329   :  { %v8305_v25 = vor.u32 %v10855_v37, %v8302_v11  ;;  %v8020_v60 = vld [vmem:[#allocation8 + $0x6f0] sm:$0xf]  ;;  %v10793_v63 = vld [vmem:[#allocation8 + $0x734] sm:$0xf0] }
 0x32a   :  { %v8596_v37 = vld [vmem:[#allocation8 + $0xb70] sm:$0xf]  ;;  %v11081_v11 = vld [vmem:[#allocation8 + $0x1034] sm:$0xf0] }
 0x32b   :  { %6444 = vmatpush.bf16.msrb.mxu0 %v8665_v32  ;;  %6458 = vmatpush.bf16.msrb.mxu1 %v9241_v41  ;;  %v11287_v32 = vld [vmem:[#allocation8 + $0x16ac] sm:$0xf]  ;;  %v10030_v41 = vld [vmem:[#allocation8 + $0x16f0] sm:$0xf0] }
 0x32c   :  { %6472 = vmatpush.bf16.msrb.mxu2 %v9817_v59  ;;  %6486 = vmatpush.bf16.msrb.mxu3 %v10393_v3  ;;  %v8236_v59 = vld [vmem:[#allocation8 + $0x8a0] sm:$0xf]  ;;  %v10847_v3 = vld [vmem:[#allocation8 + $0x8e4] sm:$0xf0] }
 0x32d   :  { %v8237_v58 = vor.u32 %v10847_v3, %v8236_v59  ;;  %v8524_v59 = vld [vmem:[#allocation8 + $0xae0] sm:$0xf]  ;;  %v10919_v3 = vld [vmem:[#allocation8 + $0xb24] sm:$0xf0] }
 0x32f   :  { %6445 = vmatpush.bf16.msrb.mxu0 %v8593_v39  ;;  %6459 = vmatpush.bf16.msrb.mxu1 %v9169_v45  ;;  %v9457_v39 = vor.u32 %v11143_v30, %v9454_v19  ;;  %v10033_v45 = vor.u32 %v11287_v32, %v10030_v41  ;;  %v7372_v30 = vld [vmem:[#allocation8 + $0x1e0] sm:$0xf]  ;;  %v10631_v19 = vld [vmem:[#allocation8 + $0x224] sm:$0xf0] }
 0x330   :  { %6473 = vmatpush.bf16.msrb.mxu2 %v9745_v2  ;;  %6487 = vmatpush.bf16.msrb.mxu3 %v10321_v20  ;;  %v7588_v2 = vld [vmem:[#allocation8 + $0x390] sm:$0xf]  ;;  %v10685_v20 = vld [vmem:[#allocation8 + $0x3d4] sm:$0xf0]  ;;  %v7373_v61 = vor.u32 %v10631_v19, %v7372_v30  ;;  %v9964_v30 = vld [vmem:[#allocation8 + $0x1620] sm:$0xf] }
 0x331   :  { %v7589_v5 = vor.u32 %v10685_v20, %v7588_v2  ;;  %v10757_v2 = vld [vmem:[#allocation8 + $0x614] sm:$0xf0]  ;;  %v8452_v20 = vld [vmem:[#allocation8 + $0xa50] sm:$0xf]  ;;  %v11279_v19 = vld [vmem:[#allocation8 + $0x1664] sm:$0xf0] }
 0x333   :  { %6446 = vmatpush.bf16.msrb.mxu0 %v8521_v38  ;;  %6460 = vmatpush.bf16.msrb.mxu1 %v9097_v42  ;;  %v9316_v38 = vld [vmem:[#allocation8 + $0x1110] sm:$0xf]  ;;  %v11117_v42 = vld [vmem:[#allocation8 + $0x1154] sm:$0xf0] }
 0x334   :  { %6474 = vmatpush.bf16.msrb.mxu2 %v9673_v56  ;;  %6488 = vmatpush.bf16.msrb.mxu3 %v10249_v33  ;;  %v7516_v56 = vld [vmem:[#allocation8 + $0x300] sm:$0xf]  ;;  %v10667_v33 = vld [vmem:[#allocation8 + $0x344] sm:$0xf0]  ;;  %v9317_v7 = vor.u32 %v11117_v42, %v9316_v38 }
 0x335   :  { %v7228_v42 = vld [vmem:[#allocation8 + $0xc0] sm:$0xf] }
 0x337   :  { %6447 = vmatpush.bf16.msrb.mxu0 %v8449_v4  ;;  %6461 = vmatpush.bf16.msrb.mxu1 %v9025_v13  ;;  %v10955_v4 = vld [vmem:[#allocation8 + $0xc44] sm:$0xf0]  ;;  %v9244_v13 = vld [vmem:[#allocation8 + $0x1080] sm:$0xf] }
 0x338   :  { %6475 = vmatpush.bf16.msrb.mxu2 %v9601_v15  ;;  %6489 = vmatpush.bf16.msrb.mxu3 %v10177_v62  ;;  %v7517_v15 = vor.u32 %v10667_v33, %v7516_v56  ;;  %v8093_v62 = vor.u32 %v10811_v43, %v8092_v51  ;;  %v8669_v18 = vor.u32 %v10955_v4, %v8668_v44  ;;  %v7804_v33 = vld [vmem:[#allocation8 + $0x540] sm:$0xf]  ;;  %v12159_v51 = vpop.f32.mrf.mxu2  ;;  %v12161_v43 = vpop.f32.mrf.mxu3  ;;  %v10883_v44 = vld [vmem:[#allocation8 + $0xa04] sm:$0xf0] }
 0x339   :  { %v9245_v10 = vor.u32 %v11099_v36, %v9244_v13  ;;  %v9029_v56 = vor.u32 %v11045_v55, %v9028_v52  ;;  %v8956_v4 = vld [vmem:[#allocation8 + $0xe40] sm:$0xf]  ;;  %v11027_v13 = vld [vmem:[#allocation8 + $0xe84] sm:$0xf0]  ;;  %v1142_v36 = vperm.slane %v12157_v40, 0 }
 0x33a   :  { %v10468_v52 = vld [vmem:[#allocation8 + $0x1a10] sm:$0xf]  ;;  %v11405_v55 = vld [vmem:[#allocation8 + $0x1a54] sm:$0xf0] }
 0x33b   :  { %6448 = vmatpush.bf16.msrb.mxu0 %v8377_v26  ;;  %6462 = vmatpush.bf16.msrb.mxu1 %v8953_v0  ;;  %v10937_v26 = vld [vmem:[#allocation8 + $0xbb4] sm:$0xf0]  ;;  %v9172_v0 = vld [vmem:[#allocation8 + $0xff0] sm:$0xf] }
 0x33c   :  { %6476 = vmatpush.bf16.msrb.mxu2 %v9529_v24  ;;  %6490 = vmatpush.bf16.msrb.mxu3 %v10105_v28  ;;  %v7445_v24 = vor.u32 %v10649_v21, %v7444_v23  ;;  %v8021_v28 = vor.u32 %v10793_v63, %v8020_v60  ;;  %v8597_v32 = vor.u32 %v10937_v26, %v8596_v37  ;;  %v10721_v60 = vld [vmem:[#allocation8 + $0x4f4] sm:$0xf0]  ;;  %v8308_v26 = vld [vmem:[#allocation8 + $0x930] sm:$0xf] }
 0x33d   :  { %v9173_v41 = vor.u32 %v11081_v11, %v9172_v0  ;;  %v8957_v37 = vor.u32 %v11027_v13, %v8956_v4  ;;  %v10865_v0 = vld [vmem:[#allocation8 + $0x974] sm:$0xf0]  ;;  %v8884_v11 = vld [vmem:[#allocation8 + $0xdb0] sm:$0xf]  ;;  %v11243_v4 = vld [vmem:[#allocation8 + $0x1544] sm:$0xf0] }
 0x33f   :  { %6449 = vmatpush.bf16.msrb.mxu0 %v8305_v25  ;;  %6463 = vmatpush.bf16.msrb.mxu1 %v8881_v49  ;;  %v11063_v25 = vld [vmem:[#allocation8 + $0xfa4] sm:$0xf0]  ;;  %v12153_v49 = vpop.f32.mrf.mxu0 }
 0x340   :  { %6477 = vmatpush.bf16.msrb.mxu2 %v9457_v39  ;;  %6491 = vmatpush.bf16.msrb.mxu3 %v10033_v45  ;;  %v10613_v39 = vld [vmem:[#allocation8 + $0x194] sm:$0xf0]  ;;  %v8525_v45 = vor.u32 %v10919_v3, %v8524_v59  ;;  %v7662_v3 = vld [vmem:[#allocation8 + $0x468] sm:$0xf0] }
 0x341   :  { %v7301_v54 = vor.u32 %v10613_v39, %v7300_v35 }
 0x342   :  { %6450 = vmatmul.bf16.vlgmr.msrb.gmra.mxu0 %v11856_v50  ;;  %6464 = vmatmul.bf16.vlgmr.msrb.gmra.mxu1 %v11858_v53 }
 0x343   :  { %6498 = vmatpush.bf16.msra.mxu0 %v7661_v29  ;;  %6512 = vmatpush.bf16.msra.mxu1 %v8237_v58  ;;  %v9101_v29 = vor.u32 %v11063_v25, %v9100_v34  ;;  %v7876_v58 = vld [vmem:[#allocation8 + $0x5d0] sm:$0xf]  ;;  %v10838_v34 = vld [vmem:[#allocation8 + $0x8a4] sm:$0xf]  ;;  %v8238_v25 = vld [vmem:[#allocation8 + $0x8e8] sm:$0xf0] }
 0x344   :  { %6526 = vmatpush.bf16.msra.mxu2 %v8813_v8  ;;  %6540 = vmatpush.bf16.msra.mxu3 %v9389_v1  ;;  %v12155_v8 = vpop.f32.mrf.mxu1  ;;  %v10901_v1 = vld [vmem:[#allocation8 + $0xa94] sm:$0xf0]  ;;  %v7877_v38 = vor.u32 %v10757_v2, %v7876_v58  ;;  %v9892_v58 = vld [vmem:[#allocation8 + $0x1590] sm:$0xf] }
 0x345   :  { %6478 = vmatmul.bf16.vlgmr.msrb.gmra.mxu2 %v11874_v6  ;;  %6492 = vmatmul.bf16.vlgmr.msrb.gmra.mxu3 %v11876_v57  ;;  %v11261_v2 = vld [vmem:[#allocation8 + $0x15d4] sm:$0xf0] }
 0x347   :  { %6499 = vmatpush.bf16.msra.mxu0 %v7589_v5  ;;  %6513 = vmatpush.bf16.msra.mxu1 %v8165_v31  ;;  %v10595_v5 = vld [vmem:[#allocation8 + $0x104] sm:$0xf0]  ;;  %v8453_v31 = vor.u32 %v10901_v1, %v8452_v20  ;;  %v7665_v20 = vor.u32 %v10694_v14, %v7662_v3  ;;  %v8241_v1 = vor.u32 %v10838_v34, %v8238_v25  ;;  %v11369_v14 = vld [vmem:[#allocation8 + $0x1934] sm:$0xf0]  ;;  %v7446_v34 = vld [vmem:[#allocation8 + $0x2b8] sm:$0xf0] }
 0x348   :  { %6527 = vmatpush.bf16.msra.mxu2 %v8741_v12  ;;  %6541 = vmatpush.bf16.msra.mxu3 %v9317_v7  ;;  %v10739_v12 = vld [vmem:[#allocation8 + $0x584] sm:$0xf0]  ;;  %v8380_v7 = vld [vmem:[#allocation8 + $0x9c0] sm:$0xf]  ;;  %v7229_v23 = vor.u32 %v10595_v5, %v7228_v42  ;;  %v6255_v35 = vpop.f32.mrf.mxu2  ;;  %v12168_v39 = vpop.f32.mrf.mxu3  ;;  %v7590_v42 = vld [vmem:[#allocation8 + $0x3d8] sm:$0xf0] }
 0x349   :  { %v7805_v21 = vor.u32 %v10739_v12, %v7804_v33  ;;  %v8381_v63 = vor.u32 %v10883_v44, %v8380_v7  ;;  %v10820_v5 = vld [vmem:[#allocation8 + $0x814] sm:$0xf]  ;;  %v9893_v12 = vor.u32 %v11261_v2, %v9892_v58  ;;  %v10469_v7 = vor.u32 %v11405_v55, %v10468_v52  ;;  %v9820_v44 = vld [vmem:[#allocation8 + $0x1500] sm:$0xf] }
 0x34a   :  { %v10784_v25 = vld [vmem:[#allocation8 + $0x6f4] sm:$0xf]  ;;  %v9676_v2 = vld [vmem:[#allocation8 + $0x13e0] sm:$0xf] }
 0x34b   :  { %6500 = vmatpush.bf16.msra.mxu0 %v7517_v15  ;;  %6514 = vmatpush.bf16.msra.mxu1 %v8093_v62  ;;  %v12164_v15 = vpop.f32.mrf.mxu0  ;;  %v7156_v62 = vld [vmem:[#allocation8 + $0x30] sm:$0xf] }
 0x34c   :  { %6528 = vmatpush.bf16.msra.mxu2 %v8669_v18  ;;  %6542 = vmatpush.bf16.msra.mxu3 %v9245_v10  ;;  %v10577_v18 = vld [vmem:[#allocation8 + $0x74] sm:$0xf0]  ;;  %v7732_v10 = vld [vmem:[#allocation8 + $0x4b0] sm:$0xf] }
 0x34d   :  { %v7157_v46 = vor.u32 %v10577_v18, %v7156_v62  ;;  %v7733_v59 = vor.u32 %v10721_v60, %v7732_v10  ;;  %v10396_v62 = vld [vmem:[#allocation8 + $0x1980] sm:$0xf]  ;;  %v7518_v60 = vld [vmem:[#allocation8 + $0x348] sm:$0xf0] }
 0x34f   :  { %6501 = vmatpush.bf16.msra.mxu0 %v7445_v24  ;;  %6515 = vmatpush.bf16.msra.mxu1 %v8021_v28  ;;  %v12166_v24 = vpop.f32.mrf.mxu1  ;;  %v11009_v28 = vld [vmem:[#allocation8 + $0xdf4] sm:$0xf0] }
 0x350   :  { %6529 = vmatpush.bf16.msra.mxu2 %v8597_v32  ;;  %6543 = vmatpush.bf16.msra.mxu3 %v9173_v41  ;;  %v10540_v32 = vld [vmem:[#allocation8 + $0x1aa0] sm:$0xf]  ;;  %v11423_v41 = vld [vmem:[#allocation8 + $0x1ae4] sm:$0xf0]  ;;  %v6271_v3 = vpop.f32.mrf.mxu3 }
 0x353   :  { %6502 = vmatpush.bf16.msra.mxu0 %v7373_v61  ;;  %6516 = vmatpush.bf16.msra.mxu1 %v7949_v16  ;;  %v8309_v61 = vor.u32 %v10865_v0, %v8308_v26  ;;  %v8885_v16 = vor.u32 %v11009_v28, %v8884_v11  ;;  %v12174_v33 = vpop.f32.mrf.mxu0  ;;  %v9748_v28 = vld [vmem:[#allocation8 + $0x1470] sm:$0xf] }
 0x354   :  { %6530 = vmatpush.bf16.msra.mxu2 %v8525_v45  ;;  %6544 = vmatpush.bf16.msra.mxu3 %v9101_v29  ;;  %v9965_v45 = vor.u32 %v11279_v19, %v9964_v30  ;;  %v10541_v29 = vor.u32 %v11423_v41, %v10540_v32  ;;  %v11225_v30 = vld [vmem:[#allocation8 + $0x14b4] sm:$0xf0]  ;;  %v10324_v41 = vld [vmem:[#allocation8 + $0x18f0] sm:$0xf] }
 0x355   :  { %v10325_v58 = vor.u32 %v11369_v14, %v10324_v41  ;;  %v9532_v41 = vld [vmem:[#allocation8 + $0x12c0] sm:$0xf]  ;;  %v11171_v14 = vld [vmem:[#allocation8 + $0x1304] sm:$0xf0] }
 0x357   :  { %6503 = vmatpush.bf16.msra.mxu0 %v7301_v54  ;;  %6517 = vmatpush.bf16.msra.mxu1 %v7877_v38  ;;  %v10676_v54 = vld [vmem:[#allocation8 + $0x394] sm:$0xf]  ;;  %v6172_v38 = vadd.f32 %v12141_v17, %v1142_v36  ;;  %v12177_v10 = vpop.f32.mrf.mxu1 }
 0x358   :  { %6531 = vmatpush.bf16.msra.mxu2 %v8453_v31  ;;  %6545 = vmatpush.bf16.msra.mxu3 %v9029_v56  ;;  %v8166_v31 = vld [vmem:[#allocation8 + $0x858] sm:$0xf0]  ;;  %v1143_v56 = vperm.slane %v12157_v40, 1  ;;  %v7593_v17 = vor.u32 %v10676_v54, %v7590_v42  ;;  %v10252_v54 = vld [vmem:[#allocation8 + $0x1860] sm:$0xf] }
 0x359   :  { %v8169_v13 = vor.u32 %v10820_v5, %v8166_v31  ;;  %v6186_v18 = vadd.f32 %v12147_v9, %v6172_v38  ;;  %v9821_v9 = vor.u32 %v11243_v4, %v9820_v44  ;;  %v11351_v38 = vld [vmem:[#allocation8 + $0x18a4] sm:$0xf0]  ;;  %v10622_v42 = vld [vmem:[#allocation8 + $0x1e4] sm:$0xf]  ;;  %v7950_v5 = vld [vmem:[#allocation8 + $0x6a8] sm:$0xf0] }
 0x35a   :  { %v6256_v26 = vadd.f32 %v6255_v35, %v1143_v56  ;;  %v10253_v44 = vor.u32 %v11351_v38, %v10252_v54  ;;  %v9604_v4 = vld [vmem:[#allocation8 + $0x1350] sm:$0xf]  ;;  %v10568_v54 = vld [vmem:[#allocation8 + $0x34] sm:$0xf] }
 0x35b   :  { %6504 = vmatpush.bf16.msra.mxu0 %v7229_v23  ;;  %6518 = vmatpush.bf16.msra.mxu1 %v7805_v21  ;;  %v11387_v23 = vld [vmem:[#allocation8 + $0x19c4] sm:$0xf0]  ;;  %v10658_v21 = vld [vmem:[#allocation8 + $0x304] sm:$0xf]  ;;  %v6200_v0 = vadd.f32 %v12149_v22, %v6186_v18  ;;  %v6174_v22 = vadd.f32 %v12153_v49, %v1142_v36  ;;  %v7374_v36 = vld [vmem:[#allocation8 + $0x228] sm:$0xf0] }
 0x35c   :  { %6532 = vmatpush.bf16.msra.mxu2 %v8381_v63  ;;  %6546 = vmatpush.bf16.msra.mxu3 %v8957_v37  ;;  %v10802_v63 = vld [vmem:[#allocation8 + $0x784] sm:$0xf]  ;;  %v8094_v37 = vld [vmem:[#allocation8 + $0x7c8] sm:$0xf0]  ;;  %v10397_v11 = vor.u32 %v11387_v23, %v10396_v62  ;;  %v7521_v19 = vor.u32 %v10658_v21, %v7518_v60  ;;  %v7377_v23 = vor.u32 %v10622_v42, %v7374_v36  ;;  %v11333_v18 = vld [vmem:[#allocation8 + $0x1814] sm:$0xf0] }
 0x35d   :  { %v8097_v32 = vor.u32 %v10802_v63, %v8094_v37  ;;  %v10604_v60 = vld [vmem:[#allocation8 + $0x154] sm:$0xf] }
 0x35e   :  { %v10712_v36 = vld [vmem:[#allocation8 + $0x4b4] sm:$0xf] }
 0x35f   :  { %6505 = vmatpush.bf16.msra.mxu0 %v7157_v46  ;;  %6519 = vmatpush.bf16.msra.mxu1 %v7733_v59  ;;  %v10640_v46 = vld [vmem:[#allocation8 + $0x274] sm:$0xf]  ;;  %v6257_v59 = vpop.f32.mrf.mxu2  ;;  %v6283_v35 = vpop.f32.mrf.mxu0 }
 0x360   :  { %6533 = vmatpush.bf16.msra.mxu2 %v8309_v61  ;;  %6547 = vmatpush.bf16.msra.mxu3 %v8885_v16  ;;  %v8022_v61 = vld [vmem:[#allocation8 + $0x738] sm:$0xf0]  ;;  %v6270_v16 = vadd.f32 %v12168_v39, %v6256_v26  ;;  %v7449_v52 = vor.u32 %v10640_v46, %v7446_v34  ;;  %v6297_v49 = vpop.f32.mrf.mxu1  ;;  %v10766_v39 = vld [vmem:[#allocation8 + $0x664] sm:$0xf]  ;;  %v6258_v31 = vadd.f32 %v6257_v59, %v1143_v56  ;;  %v10108_v34 = vld [vmem:[#allocation8 + $0x1740] sm:$0xf] }
 0x361   :  { %v8025_v55 = vor.u32 %v10784_v25, %v8022_v61  ;;  %v7953_v21 = vor.u32 %v10766_v39, %v7950_v5  ;;  %v7878_v26 = vld [vmem:[#allocation8 + $0x618] sm:$0xf0]  ;;  %v11315_v25 = vld [vmem:[#allocation8 + $0x1784] sm:$0xf0]  ;;  %v10586_v61 = vld [vmem:[#allocation8 + $0xc4] sm:$0xf] }
 0x362   :  { %6506 = vmatmul.bf16.vlgmr.msra.gmra.mxu0 %v11852_v47  ;;  %6520 = vmatmul.bf16.vlgmr.msra.gmra.mxu1 %v11854_v48  ;;  %v7734_v5 = vld [vmem:[#allocation8 + $0x4f8] sm:$0xf0] }
 0x363   :  { %6554 = vmatpush.bf16.msrb.mxu0 %v9965_v45  ;;  %6568 = vmatpush.bf16.msrb.mxu1 %v10541_v29  ;;  %v6214_v45 = vadd.f32 %v12151_v27, %v6200_v0  ;;  %v9749_v29 = vor.u32 %v11225_v30, %v9748_v28 }
 0x364   :  { %6582 = vmatpush.bf16.msrb.mxu2 %v7665_v20  ;;  %6596 = vmatpush.bf16.msrb.mxu3 %v8241_v1  ;;  %v11207_v20 = vld [vmem:[#allocation8 + $0x1424] sm:$0xf0]  ;;  %v6284_v1 = vadd.f32 %v6283_v35, %v6270_v16  ;;  %v7806_v16 = vld [vmem:[#allocation8 + $0x588] sm:$0xf0] }
 0x365   :  { %6534 = vmatmul.bf16.vlgmr.msra.gmra.mxu2 %v11856_v50  ;;  %6548 = vmatmul.bf16.vlgmr.msra.gmra.mxu3 %v11858_v53  ;;  %v6228_v27 = vadd.f32 %v12164_v15, %v6214_v45  ;;  %v7302_v15 = vld [vmem:[#allocation8 + $0x198] sm:$0xf0]  ;;  %v9460_v45 = vld [vmem:[#allocation8 + $0x1230] sm:$0xf] }
 0x366   :  { %v6298_v62 = vadd.f32 %v6297_v49, %v6284_v1  ;;  %v10109_v1 = vor.u32 %v11315_v25, %v10108_v34  ;;  %v7158_v49 = vld [vmem:[#allocation8 + $0x78] sm:$0xf0] }
 0x367   :  { %6555 = vmatpush.bf16.msrb.mxu0 %v9893_v12  ;;  %6569 = vmatpush.bf16.msrb.mxu1 %v10469_v7  ;;  %v6188_v12 = vadd.f32 %v12155_v8, %v6174_v22  ;;  %v9677_v7 = vor.u32 %v11207_v20, %v9676_v2  ;;  %v10748_v8 = vld [vmem:[#allocation8 + $0x5d4] sm:$0xf]  ;;  %v6242_v0 = vadd.f32 %v12166_v24, %v6228_v27  ;;  %v6285_v28 = vpop.f32.mrf.mxu0  ;;  %v10730_v22 = vld [vmem:[#allocation8 + $0x544] sm:$0xf] }
 0x368   :  { %6583 = vmatpush.bf16.msrb.mxu2 %v7593_v17  ;;  %6597 = vmatpush.bf16.msrb.mxu3 %v8169_v13  ;;  %v11189_v17 = vld [vmem:[#allocation8 + $0x1394] sm:$0xf0]  ;;  %v10180_v13 = vld [vmem:[#allocation8 + $0x17d0] sm:$0xf]  ;;  %v6311_v56 = vpop.f32.mrf.mxu2  ;;  %v6325_v37 = vpop.f32.mrf.mxu3  ;;  %v7881_v59 = vor.u32 %v10748_v8, %v7878_v26  ;;  %v9533_v20 = vor.u32 %v11171_v14, %v9532_v41  ;;  %v7809_v42 = vor.u32 %v10730_v22, %v7806_v16  ;;  %v10982_v27 = vld [vmem:[#allocation8 + $0xd24] sm:$0xf] }
 0x369   :  { %v6202_v63 = vadd.f32 %v12159_v51, %v6188_v12  ;;  %v9605_v30 = vor.u32 %v11189_v17, %v9604_v4  ;;  %v6299_v2 = vpop.f32.mrf.mxu1  ;;  %v11126_v12 = vld [vmem:[#allocation8 + $0x11a4] sm:$0xf]  ;;  %v10964_v8 = vld [vmem:[#allocation8 + $0xc94] sm:$0xf]  ;;  %v8742_v26 = vld [vmem:[#allocation8 + $0xcd8] sm:$0xf0] }
 0x36a   :  { %v10470_v41 = vld [vmem:[#allocation8 + $0x1a58] sm:$0xf0]  ;;  %v8745_v14 = vor.u32 %v10964_v8, %v8742_v26  ;;  %v9822_v22 = vld [vmem:[#allocation8 + $0x1548] sm:$0xf0]  ;;  %v11378_v16 = vld [vmem:[#allocation8 + $0x1984] sm:$0xf] }
 0x36b   :  { %6556 = vmatpush.bf16.msrb.mxu0 %v9821_v9  ;;  %6570 = vmatpush.bf16.msrb.mxu1 %v10397_v11  ;;  %v6272_v9 = vadd.f32 %v6271_v3, %v6258_v31  ;;  %v6312_v11 = vadd.f32 %v6311_v56, %v6298_v62  ;;  %v6216_v24 = vadd.f32 %v12161_v43, %v6202_v63  ;;  %v7230_v3 = vld [vmem:[#allocation8 + $0x108] sm:$0xf0]  ;;  %v11324_v8 = vld [vmem:[#allocation8 + $0x17d4] sm:$0xf]  ;;  %v10182_v26 = vld [vmem:[#allocation8 + $0x1818] sm:$0xf0] }
 0x36c   :  { %6584 = vmatpush.bf16.msrb.mxu2 %v7521_v19  ;;  %6598 = vmatpush.bf16.msrb.mxu3 %v8097_v32  ;;  %v10181_v19 = vor.u32 %v11333_v18, %v10180_v13  ;;  %v7305_v32 = vor.u32 %v10604_v60, %v7302_v15  ;;  %v7233_v43 = vor.u32 %v10586_v61, %v7230_v3  ;;  %v10542_v18 = vld [vmem:[#allocation8 + $0x1ae8] sm:$0xf0]  ;;  %v11090_v61 = vld [vmem:[#allocation8 + $0x1084] sm:$0xf] }
 0x36d   :  { %v6326_v46 = vadd.f32 %v6325_v37, %v6312_v11  ;;  %v6286_v51 = vadd.f32 %v6285_v28, %v6272_v9  ;;  %v7161_v15 = vor.u32 %v10568_v54, %v7158_v49  ;;  %v7737_v63 = vor.u32 %v10712_v36, %v7734_v5  ;;  %v11108_v11 = vld [vmem:[#allocation8 + $0x1114] sm:$0xf]  ;;  %v9318_v28 = vld [vmem:[#allocation8 + $0x1158] sm:$0xf0]  ;;  %v11234_v3 = vld [vmem:[#allocation8 + $0x1504] sm:$0xf] }
 0x36e   :  { %v11216_v54 = vld [vmem:[#allocation8 + $0x1474] sm:$0xf]  ;;  %v8526_v5 = vld [vmem:[#allocation8 + $0xb28] sm:$0xf0] }
 0x36f   :  { %6557 = vmatpush.bf16.msrb.mxu0 %v9749_v29  ;;  %6571 = vmatpush.bf16.msrb.mxu1 %v10325_v58  ;;  %v7027_v35 = vpack.c.bf16 %v6326_v46, %v6242_v0  ;;  %v11153_v29 = vld [vmem:[#allocation8 + $0x1274] sm:$0xf0]  ;;  %v6230_v58 = vadd.f32 %v12174_v33, %v6216_v24  ;;  %v6300_v38 = vadd.f32 %v6299_v2, %v6286_v51  ;;  %v8814_v33 = vld [vmem:[#allocation8 + $0xd68] sm:$0xf0]  ;;  %v10946_v51 = vld [vmem:[#allocation8 + $0xc04] sm:$0xf] }
 0x370   :  { %6585 = vmatpush.bf16.msrb.mxu2 %v7449_v52  ;;  %6599 = vmatpush.bf16.msrb.mxu3 %v8025_v55  ;;  %v10036_v52 = vld [vmem:[#allocation8 + $0x16b0] sm:$0xf]  ;;  %v11297_v55 = vld [vmem:[#allocation8 + $0x16f4] sm:$0xf0]  ;;  %v6313_v39 = vpop.f32.mrf.mxu2  ;;  %v6327_v17 = vpop.f32.mrf.mxu3  ;;  %v9461_v13 = vor.u32 %v11153_v29, %v9460_v45  ;;  %v8817_v56 = vor.u32 %v10982_v27, %v8814_v33  ;;  %v9321_v46 = vor.u32 %v11108_v11, %v9318_v28  ;;  %v9246_v24 = vld [vmem:[#allocation8 + $0x10c8] sm:$0xf0] }
 0x371   :  { %7033 = vst [vmem:[#allocation12 + $0x8] sm:$0xff] %v7027_v35  ;;  %v6314_v31 = vadd.f32 %v6313_v39, %v6300_v38  ;;  %v6244_v4 = vadd.f32 %v12177_v10, %v6230_v58  ;;  %v10037_v62 = vor.u32 %v11297_v55, %v10036_v52  ;;  %v10398_v35 = vld [vmem:[#allocation8 + $0x19c8] sm:$0xf0]  ;;  %v9249_v29 = vor.u32 %v11090_v61, %v9246_v24  ;;  %v10928_v58 = vld [vmem:[#allocation8 + $0xb74] sm:$0xf] }
 0x372   :  { %v8598_v2 = vld [vmem:[#allocation8 + $0xbb8] sm:$0xf0]  ;;  %v11072_v52 = vld [vmem:[#allocation8 + $0xff4] sm:$0xf]  ;;  %v10910_v39 = vld [vmem:[#allocation8 + $0xae4] sm:$0xf] }
 0x373   :  { %6558 = vmatpush.bf16.msrb.mxu0 %v9677_v7  ;;  %6572 = vmatpush.bf16.msrb.mxu1 %v10253_v44  ;;  %v9390_v7 = vld [vmem:[#allocation8 + $0x11e8] sm:$0xf0]  ;;  %v11270_v44 = vld [vmem:[#allocation8 + $0x1624] sm:$0xf]  ;;  %v6328_v60 = vadd.f32 %v6327_v17, %v6314_v31  ;;  %v9174_v55 = vld [vmem:[#allocation8 + $0x1038] sm:$0xf0]  ;;  %v8601_v49 = vor.u32 %v10928_v58, %v8598_v2 }
 0x374   :  { %6586 = vmatpush.bf16.msrb.mxu2 %v7377_v23  ;;  %6600 = vmatpush.bf16.msrb.mxu3 %v7953_v21  ;;  %v9966_v23 = vld [vmem:[#allocation8 + $0x1668] sm:$0xf0]  ;;  %v11414_v21 = vld [vmem:[#allocation8 + $0x1aa4] sm:$0xf]  ;;  %v9393_v37 = vor.u32 %v11126_v12, %v9390_v7  ;;  %v9750_v38 = vld [vmem:[#allocation8 + $0x14b8] sm:$0xf0]  ;;  %v9177_v36 = vor.u32 %v11072_v52, %v9174_v55 }
 0x375   :  { %v7030_v0 = vpack.c.bf16 %v6328_v60, %v6244_v4  ;;  %v9969_v9 = vor.u32 %v11270_v44, %v9966_v23  ;;  %v10545_v10 = vor.u32 %v11414_v21, %v10542_v18  ;;  %v9753_v27 = vor.u32 %v11216_v54, %v9750_v38  ;;  %v11054_v31 = vld [vmem:[#allocation8 + $0xf64] sm:$0xf]  ;;  %v9102_v12 = vld [vmem:[#allocation8 + $0xfa8] sm:$0xf0]  ;;  %v10892_v23 = vld [vmem:[#allocation8 + $0xa54] sm:$0xf] }
 0x376   :  { %v11198_v7 = vld [vmem:[#allocation8 + $0x13e4] sm:$0xf]  ;;  %v9678_v44 = vld [vmem:[#allocation8 + $0x1428] sm:$0xf0]  ;;  %v8454_v21 = vld [vmem:[#allocation8 + $0xa98] sm:$0xf0] }
 0x377   :  { %6559 = vmatpush.bf16.msrb.mxu0 %v9605_v30  ;;  %6573 = vmatpush.bf16.msrb.mxu1 %v10181_v19  ;;  %v11252_v30 = vld [vmem:[#allocation8 + $0x1594] sm:$0xf]  ;;  %v9894_v19 = vld [vmem:[#allocation8 + $0x15d8] sm:$0xf0]  ;;  %7036 = vst [vmem:[#allocation12 + $0x20] sm:$0xff] %v7030_v0  ;;  %v9681_v18 = vor.u32 %v11198_v7, %v9678_v44  ;;  %v8457_v0 = vor.u32 %v10892_v23, %v8454_v21 }
 0x378   :  { %6587 = vmatpush.bf16.msrb.mxu2 %v7305_v32  ;;  %6601 = vmatpush.bf16.msrb.mxu3 %v7881_v59  ;;  %v11396_v32 = vld [vmem:[#allocation8 + $0x1a14] sm:$0xf]  ;;  %v8670_v59 = vld [vmem:[#allocation8 + $0xc48] sm:$0xf0]  ;;  %v9897_v34 = vor.u32 %v11252_v30, %v9894_v19  ;;  %v11342_v4 = vld [vmem:[#allocation8 + $0x1864] sm:$0xf]  ;;  %v10185_v30 = vor.u32 %v11324_v8, %v10182_v26 }
 0x379   :  { %v10473_v25 = vor.u32 %v11396_v32, %v10470_v41  ;;  %v8673_v45 = vor.u32 %v10946_v51, %v8670_v59  ;;  %v10254_v17 = vld [vmem:[#allocation8 + $0x18a8] sm:$0xf0]  ;;  %v11018_v19 = vld [vmem:[#allocation8 + $0xe44] sm:$0xf]  ;;  %v10856_v59 = vld [vmem:[#allocation8 + $0x934] sm:$0xf] }
 0x37a   :  { %v10257_v60 = vor.u32 %v11342_v4, %v10254_v17  ;;  %v8382_v11 = vld [vmem:[#allocation8 + $0xa08] sm:$0xf0]  ;;  %v11162_v41 = vld [vmem:[#allocation8 + $0x12c4] sm:$0xf]  ;;  %v8310_v61 = vld [vmem:[#allocation8 + $0x978] sm:$0xf0] }
 0x37b   :  { %6560 = vmatpush.bf16.msrb.mxu0 %v9533_v20  ;;  %6574 = vmatpush.bf16.msrb.mxu1 %v10109_v1  ;;  %v9825_v20 = vor.u32 %v11234_v3, %v9822_v22  ;;  %v10401_v1 = vor.u32 %v11378_v16, %v10398_v35  ;;  %v8958_v32 = vld [vmem:[#allocation8 + $0xe88] sm:$0xf0]  ;;  %v11000_v24 = vld [vmem:[#allocation8 + $0xdb4] sm:$0xf]  ;;  %v8886_v3 = vld [vmem:[#allocation8 + $0xdf8] sm:$0xf0]  ;;  %v8313_v54 = vor.u32 %v10856_v59, %v8310_v61 }
 0x37c   :  { %6588 = vmatpush.bf16.msrb.mxu2 %v7233_v43  ;;  %6602 = vmatpush.bf16.msrb.mxu3 %v7809_v42  ;;  %v11360_v43 = vld [vmem:[#allocation8 + $0x18f4] sm:$0xf]  ;;  %v10326_v42 = vld [vmem:[#allocation8 + $0x1938] sm:$0xf0]  ;;  %v10110_v51 = vld [vmem:[#allocation8 + $0x1788] sm:$0xf0]  ;;  %v8889_v38 = vor.u32 %v11000_v24, %v8886_v3 }
 0x37d   :  { %v10329_v33 = vor.u32 %v11360_v43, %v10326_v42  ;;  %v11144_v35 = vld [vmem:[#allocation8 + $0x1234] sm:$0xf]  ;;  %v10038_v58 = vld [vmem:[#allocation8 + $0x16f8] sm:$0xf0]  ;;  %v7668_v2 = vld [vmem:[#allocation8 + $0x428] sm:$0xf] }
 0x37e   :  { %v10848_v52 = vld [vmem:[#allocation8 + $0x8ec] sm:$0xf0]  ;;  %v8820_v55 = vld [vmem:[#allocation8 + $0xd28] sm:$0xf]  ;;  %v8172_v44 = vld [vmem:[#allocation8 + $0x818] sm:$0xf] }
 0x37f   :  { %6561 = vmatpush.bf16.msrb.mxu0 %v9461_v13  ;;  %6575 = vmatpush.bf16.msrb.mxu1 %v10037_v62  ;;  %v8529_v13 = vor.u32 %v10910_v39, %v8526_v5  ;;  %v9105_v62 = vor.u32 %v11054_v31, %v9102_v12  ;;  %v10992_v43 = vld [vmem:[#allocation8 + $0xd6c] sm:$0xf0]  ;;  %v9396_v42 = vld [vmem:[#allocation8 + $0x11a8] sm:$0xf]  ;;  %v10686_v31 = vld [vmem:[#allocation8 + $0x3dc] sm:$0xf0] }
 0x380   :  { %6589 = vmatpush.bf16.msrb.mxu2 %v7161_v15  ;;  %6603 = vmatpush.bf16.msrb.mxu3 %v7737_v63  ;;  %v11036_v15 = vld [vmem:[#allocation8 + $0xed4] sm:$0xf]  ;;  %v9030_v63 = vld [vmem:[#allocation8 + $0xf18] sm:$0xf0]  ;;  %v8821_v12 = vor.u32 %v10992_v43, %v8820_v55  ;;  %v10830_v4 = vld [vmem:[#allocation8 + $0x85c] sm:$0xf0] }
 0x381   :  { %v8748_v17 = vld [vmem:[#allocation8 + $0xc98] sm:$0xf]  ;;  %v11118_v23 = vld [vmem:[#allocation8 + $0x115c] sm:$0xf0]  ;;  %v8100_v8 = vld [vmem:[#allocation8 + $0x788] sm:$0xf] }
 0x382   :  { %6562 = vmatmul.bf16.vlgmr.msrb.gmra.mxu0 %v11874_v6  ;;  %6576 = vmatmul.bf16.vlgmr.msrb.gmra.mxu1 %v11876_v57  ;;  %v10812_v26 = vld [vmem:[#allocation8 + $0x7cc] sm:$0xf0]  ;;  %v10794_v59 = vld [vmem:[#allocation8 + $0x73c] sm:$0xf0]  ;;  %v9180_v61 = vld [vmem:[#allocation8 + $0xff8] sm:$0xf] }
 0x383   :  { %6610 = vmatpush.bf16.msra.mxu0 %v8817_v56  ;;  %6624 = vmatpush.bf16.msra.mxu1 %v9393_v37  ;;  %v11180_v56 = vld [vmem:[#allocation8 + $0x1354] sm:$0xf]  ;;  %v9606_v37 = vld [vmem:[#allocation8 + $0x1398] sm:$0xf0]  ;;  %v11082_v24 = vld [vmem:[#allocation8 + $0x103c] sm:$0xf0] }
 0x384   :  { %6638 = vmatpush.bf16.msra.mxu2 %v9969_v9  ;;  %6652 = vmatpush.bf16.msra.mxu3 %v10545_v10  ;;  %v9033_v9 = vor.u32 %v11036_v15, %v9030_v63  ;;  %v10874_v10 = vld [vmem:[#allocation8 + $0x9c4] sm:$0xf]  ;;  %v9609_v28 = vor.u32 %v11180_v56, %v9606_v37  ;;  %v10668_v15 = vld [vmem:[#allocation8 + $0x34c] sm:$0xf0]  ;;  %v12204_v63 = vpop.f32.mrf.mxu0 }
 0x385   :  { %6590 = vmatmul.bf16.vlgmr.msrb.gmra.mxu2 %v11852_v47  ;;  %6604 = vmatmul.bf16.vlgmr.msrb.gmra.mxu3 %v11854_v48  ;;  %v10920_v55 = vld [vmem:[#allocation8 + $0xb2c] sm:$0xf0] }
 0x387   :  { %6611 = vmatpush.bf16.msra.mxu0 %v8745_v14  ;;  %6625 = vmatpush.bf16.msra.mxu1 %v9321_v46  ;;  %v9534_v14 = vld [vmem:[#allocation8 + $0x1308] sm:$0xf0]  ;;  %v11306_v46 = vld [vmem:[#allocation8 + $0x1744] sm:$0xf] }
 0x388   :  { %6639 = vmatpush.bf16.msra.mxu2 %v9897_v34  ;;  %6653 = vmatpush.bf16.msra.mxu3 %v10473_v25  ;;  %v8385_v34 = vor.u32 %v10874_v10, %v8382_v11  ;;  %v8961_v25 = vor.u32 %v11018_v19, %v8958_v32  ;;  %v9537_v22 = vor.u32 %v11162_v41, %v9534_v14  ;;  %v9252_v10 = vld [vmem:[#allocation8 + $0x1088] sm:$0xf]  ;;  %v11100_v11 = vld [vmem:[#allocation8 + $0x10cc] sm:$0xf0]  ;;  %v7452_v32 = vld [vmem:[#allocation8 + $0x278] sm:$0xf]  ;;  %v12212_v3 = vpop.f32.mrf.mxu2 }
 0x389   :  { %v10113_v16 = vor.u32 %v11306_v46, %v10110_v51  ;;  %v8101_v19 = vor.u32 %v10812_v26, %v8100_v8  ;;  %v10650_v41 = vld [vmem:[#allocation8 + $0x2bc] sm:$0xf0]  ;;  %v9253_v46 = vor.u32 %v11100_v11, %v9252_v10  ;;  %v8028_v51 = vld [vmem:[#allocation8 + $0x6f8] sm:$0xf]  ;;  %v11028_v10 = vld [vmem:[#allocation8 + $0xe8c] sm:$0xf0] }
 0x38a   :  { %v1144_v11 = vperm.slane %v12157_v40, 2  ;;  %v11352_v40 = vld [vmem:[#allocation8 + $0x18ac] sm:$0xf0] }
 0x38b   :  { %6612 = vmatpush.bf16.msra.mxu0 %v8673_v45  ;;  %6626 = vmatpush.bf16.msra.mxu1 %v9249_v29  ;;  %v9462_v45 = vld [vmem:[#allocation8 + $0x1278] sm:$0xf0]  ;;  %v11288_v29 = vld [vmem:[#allocation8 + $0x16b4] sm:$0xf] }
 0x38c   :  { %6640 = vmatpush.bf16.msra.mxu2 %v9825_v20  ;;  %6654 = vmatpush.bf16.msra.mxu3 %v10401_v1  ;;  %v10704_v20 = vld [vmem:[#allocation8 + $0x46c] sm:$0xf0]  ;;  %v8244_v1 = vld [vmem:[#allocation8 + $0x8a8] sm:$0xf]  ;;  %v10041_v39 = vor.u32 %v11288_v29, %v10038_v58  ;;  %v12216_v43 = vpop.f32.mrf.mxu0 }
 0x38d   :  { %v7669_v5 = vor.u32 %v10704_v20, %v7668_v2  ;;  %v10632_v29 = vld [vmem:[#allocation8 + $0x22c] sm:$0xf0]  ;;  %v9181_v2 = vor.u32 %v11082_v24, %v9180_v61  ;;  %v7956_v20 = vld [vmem:[#allocation8 + $0x668] sm:$0xf]  ;;  %v10866_v61 = vld [vmem:[#allocation8 + $0x97c] sm:$0xf0] }
 0x38e   :  { %v8892_v24 = vld [vmem:[#allocation8 + $0xdb8] sm:$0xf] }
 0x38f   :  { %6613 = vmatpush.bf16.msra.mxu0 %v8601_v49  ;;  %6627 = vmatpush.bf16.msra.mxu1 %v9177_v36  ;;  %v11136_v49 = vld [vmem:[#allocation8 + $0x11ec] sm:$0xf0]  ;;  %v9465_v36 = vor.u32 %v11144_v35, %v9462_v45  ;;  %v8029_v35 = vor.u32 %v10794_v59, %v8028_v51  ;;  %v7380_v45 = vld [vmem:[#allocation8 + $0x1e8] sm:$0xf]  ;;  %v10722_v51 = vld [vmem:[#allocation8 + $0x4fc] sm:$0xf0] }
 0x390   :  { %6641 = vmatpush.bf16.msra.mxu2 %v9753_v27  ;;  %6655 = vmatpush.bf16.msra.mxu3 %v10329_v33  ;;  %v8245_v27 = vor.u32 %v10848_v52, %v8244_v1  ;;  %v7596_v33 = vld [vmem:[#allocation8 + $0x398] sm:$0xf]  ;;  %v9397_v7 = vor.u32 %v11136_v49, %v9396_v42  ;;  %v10776_v1 = vld [vmem:[#allocation8 + $0x6ac] sm:$0xf0]  ;;  %v8532_v52 = vld [vmem:[#allocation8 + $0xae8] sm:$0xf]  ;;  %v7381_v42 = vor.u32 %v10632_v29, %v7380_v45  ;;  %v12220_v8 = vpop.f32.mrf.mxu2 }
 0x391   :  { %v7597_v21 = vor.u32 %v10686_v31, %v7596_v33  ;;  %v7957_v49 = vor.u32 %v10776_v1, %v7956_v20  ;;  %v7884_v33 = vld [vmem:[#allocation8 + $0x5d8] sm:$0xf]  ;;  %v10758_v31 = vld [vmem:[#allocation8 + $0x61c] sm:$0xf0]  ;;  %v9972_v45 = vld [vmem:[#allocation8 + $0x1628] sm:$0xf] }
 0x392   :  { %v11280_v29 = vld [vmem:[#allocation8 + $0x166c] sm:$0xf0]  ;;  %v10695_v20 = vld [vmem:[#allocation8 + $0x42c] sm:$0xf] }
 0x393   :  { %6614 = vmatpush.bf16.msra.mxu0 %v8529_v13  ;;  %6628 = vmatpush.bf16.msra.mxu1 %v9105_v62  ;;  %v10974_v13 = vld [vmem:[#allocation8 + $0xcdc] sm:$0xf0]  ;;  %v9324_v62 = vld [vmem:[#allocation8 + $0x1118] sm:$0xf] }
 0x394   :  { %6642 = vmatpush.bf16.msra.mxu2 %v9681_v18  ;;  %6656 = vmatpush.bf16.msra.mxu3 %v10257_v60  ;;  %v8173_v18 = vor.u32 %v10830_v4, %v8172_v44  ;;  %v7524_v60 = vld [vmem:[#allocation8 + $0x308] sm:$0xf]  ;;  %v8749_v56 = vor.u32 %v10974_v13, %v8748_v17  ;;  %v9325_v37 = vor.u32 %v11118_v23, %v9324_v62  ;;  %v10902_v44 = vld [vmem:[#allocation8 + $0xa9c] sm:$0xf0]  ;;  %v9036_v4 = vld [vmem:[#allocation8 + $0xed8] sm:$0xf] }
 0x395   :  { %v11046_v17 = vld [vmem:[#allocation8 + $0xf1c] sm:$0xf0]  ;;  %v7885_v62 = vor.u32 %v10758_v31, %v7884_v33  ;;  %v7236_v23 = vld [vmem:[#allocation8 + $0xc8] sm:$0xf]  ;;  %v9900_v33 = vld [vmem:[#allocation8 + $0x1598] sm:$0xf] }
 0x396   :  { %v11262_v31 = vld [vmem:[#allocation8 + $0x15dc] sm:$0xf0] }
 0x397   :  { %6615 = vmatpush.bf16.msra.mxu0 %v8457_v0  ;;  %6629 = vmatpush.bf16.msra.mxu1 %v9033_v9  ;;  %v8676_v0 = vld [vmem:[#allocation8 + $0xc08] sm:$0xf]  ;;  %v10956_v9 = vld [vmem:[#allocation8 + $0xc4c] sm:$0xf0] }
 0x398   :  { %6643 = vmatpush.bf16.msra.mxu2 %v9609_v28  ;;  %6657 = vmatpush.bf16.msra.mxu3 %v10185_v30  ;;  %v12210_v28 = vpop.f32.mrf.mxu1  ;;  %v7525_v30 = vor.u32 %v10668_v15, %v7524_v60  ;;  %v8677_v14 = vor.u32 %v10956_v9, %v8676_v0  ;;  %v9037_v60 = vor.u32 %v11046_v17, %v9036_v4  ;;  %v7812_v15 = vld [vmem:[#allocation8 + $0x548] sm:$0xf]  ;;  %v10884_v0 = vld [vmem:[#allocation8 + $0xa0c] sm:$0xf0]  ;;  %v10476_v4 = vld [vmem:[#allocation8 + $0x1a18] sm:$0xf] }
 0x399   :  { %v8964_v9 = vld [vmem:[#allocation8 + $0xe48] sm:$0xf]  ;;  %v11406_v17 = vld [vmem:[#allocation8 + $0x1a5c] sm:$0xf0] }
 0x39b   :  { %6616 = vmatpush.bf16.msra.mxu0 %v8385_v34  ;;  %6630 = vmatpush.bf16.msra.mxu1 %v8961_v25  ;;  %v8604_v34 = vld [vmem:[#allocation8 + $0xb78] sm:$0xf]  ;;  %v10938_v25 = vld [vmem:[#allocation8 + $0xbbc] sm:$0xf0] }
 0x39c   :  { %6644 = vmatpush.bf16.msra.mxu2 %v9537_v22  ;;  %6658 = vmatpush.bf16.msra.mxu3 %v10113_v16  ;;  %v12214_v22 = vpop.f32.mrf.mxu3  ;;  %v7453_v16 = vor.u32 %v10650_v41, %v7452_v32  ;;  %v8605_v58 = vor.u32 %v10938_v25, %v8604_v34  ;;  %v8965_v34 = vor.u32 %v11028_v10, %v8964_v9  ;;  %v8316_v25 = vld [vmem:[#allocation8 + $0x938] sm:$0xf]  ;;  %v9828_v9 = vld [vmem:[#allocation8 + $0x1508] sm:$0xf]  ;;  %v11244_v10 = vld [vmem:[#allocation8 + $0x154c] sm:$0xf0] }
 0x39f   :  { %6617 = vmatpush.bf16.msra.mxu0 %v8313_v54  ;;  %6631 = vmatpush.bf16.msra.mxu1 %v8889_v38  ;;  %v9108_v54 = vld [vmem:[#allocation8 + $0xf68] sm:$0xf]  ;;  %v11064_v38 = vld [vmem:[#allocation8 + $0xfac] sm:$0xf0] }
 0x3a0   :  { %6645 = vmatpush.bf16.msra.mxu2 %v9465_v36  ;;  %6659 = vmatpush.bf16.msra.mxu3 %v10041_v39  ;;  %v7308_v36 = vld [vmem:[#allocation8 + $0x158] sm:$0xf]  ;;  %v10614_v39 = vld [vmem:[#allocation8 + $0x19c] sm:$0xf0] }
 0x3a1   :  { %v7309_v13 = vor.u32 %v10614_v39, %v7308_v36 }
 0x3a2   :  { %6618 = vmatmul.bf16.vlgmr.msra.gmra.mxu0 %v11856_v50  ;;  %6632 = vmatmul.bf16.vlgmr.msra.gmra.mxu1 %v11858_v53 }
 0x3a3   :  { %6666 = vmatpush.bf16.msrb.mxu0 %v7669_v5  ;;  %6680 = vmatpush.bf16.msrb.mxu1 %v8245_v27  ;;  %v8533_v5 = vor.u32 %v10920_v55, %v8532_v52  ;;  %v9109_v27 = vor.u32 %v11064_v38, %v9108_v54  ;;  %v7670_v55 = vld [vmem:[#allocation8 + $0x470] sm:$0xf0]  ;;  %v10839_v54 = vld [vmem:[#allocation8 + $0x8ac] sm:$0xf] }
 0x3a4   :  { %6694 = vmatpush.bf16.msrb.mxu2 %v8821_v12  ;;  %6708 = vmatpush.bf16.msrb.mxu3 %v9397_v7  ;;  %v8460_v12 = vld [vmem:[#allocation8 + $0xa58] sm:$0xf]  ;;  %v12218_v7 = vpop.f32.mrf.mxu1  ;;  %v12222_v26 = vpop.f32.mrf.mxu3  ;;  %v8246_v38 = vld [vmem:[#allocation8 + $0x8f0] sm:$0xf0] }
 0x3a5   :  { %6646 = vmatmul.bf16.vlgmr.msra.gmra.mxu2 %v11874_v6  ;;  %6660 = vmatmul.bf16.vlgmr.msra.gmra.mxu3 %v11876_v57 }
 0x3a7   :  { %6667 = vmatpush.bf16.msrb.mxu0 %v7597_v21  ;;  %6681 = vmatpush.bf16.msrb.mxu1 %v8173_v18  ;;  %v10596_v21 = vld [vmem:[#allocation8 + $0x10c] sm:$0xf0]  ;;  %v8461_v18 = vor.u32 %v10902_v44, %v8460_v12  ;;  %v7673_v12 = vor.u32 %v10695_v20, %v7670_v55  ;;  %v8249_v44 = vor.u32 %v10839_v54, %v8246_v38  ;;  %v10332_v20 = vld [vmem:[#allocation8 + $0x18f8] sm:$0xf]  ;;  %v7454_v38 = vld [vmem:[#allocation8 + $0x2c0] sm:$0xf0] }
 0x3a8   :  { %6695 = vmatpush.bf16.msrb.mxu2 %v8749_v56  ;;  %6709 = vmatpush.bf16.msrb.mxu3 %v9325_v37  ;;  %v10740_v56 = vld [vmem:[#allocation8 + $0x58c] sm:$0xf0]  ;;  %v8388_v37 = vld [vmem:[#allocation8 + $0x9c8] sm:$0xf]  ;;  %v7237_v32 = vor.u32 %v10596_v21, %v7236_v23  ;;  %v6423_v36 = vpop.f32.mrf.mxu2  ;;  %v7598_v23 = vld [vmem:[#allocation8 + $0x3e0] sm:$0xf0] }
 0x3a9   :  { %v7813_v41 = vor.u32 %v10740_v56, %v7812_v15  ;;  %v8389_v59 = vor.u32 %v10884_v0, %v8388_v37  ;;  %v10821_v21 = vld [vmem:[#allocation8 + $0x81c] sm:$0xf]  ;;  %v9901_v37 = vor.u32 %v11262_v31, %v9900_v33  ;;  %v10477_v0 = vor.u32 %v11406_v17, %v10476_v4 }
 0x3ab   :  { %6668 = vmatpush.bf16.msrb.mxu0 %v7525_v30  ;;  %6682 = vmatpush.bf16.msrb.mxu1 %v8101_v19  ;;  %v12225_v30 = vpop.f32.mrf.mxu0  ;;  %v7164_v19 = vld [vmem:[#allocation8 + $0x38] sm:$0xf] }
 0x3ac   :  { %6696 = vmatpush.bf16.msrb.mxu2 %v8677_v14  ;;  %6710 = vmatpush.bf16.msrb.mxu3 %v9253_v46  ;;  %v10578_v14 = vld [vmem:[#allocation8 + $0x7c] sm:$0xf0]  ;;  %v7740_v46 = vld [vmem:[#allocation8 + $0x4b8] sm:$0xf]  ;;  %v12229_v39 = vpop.f32.mrf.mxu3 }
 0x3ad   :  { %v7165_v1 = vor.u32 %v10578_v14, %v7164_v19  ;;  %v7741_v52 = vor.u32 %v10722_v51, %v7740_v46  ;;  %v10659_v14 = vld [vmem:[#allocation8 + $0x30c] sm:$0xf] }
 0x3af   :  { %6669 = vmatpush.bf16.msrb.mxu0 %v7453_v16  ;;  %6683 = vmatpush.bf16.msrb.mxu1 %v8029_v35  ;;  %v12227_v16 = vpop.f32.mrf.mxu1  ;;  %v11010_v35 = vld [vmem:[#allocation8 + $0xdfc] sm:$0xf0] }
 0x3b0   :  { %6697 = vmatpush.bf16.msrb.mxu2 %v8605_v58  ;;  %6711 = vmatpush.bf16.msrb.mxu3 %v9181_v2  ;;  %v10548_v58 = vld [vmem:[#allocation8 + $0x1aa8] sm:$0xf]  ;;  %v11424_v2 = vld [vmem:[#allocation8 + $0x1aec] sm:$0xf0]  ;;  %v6425_v55 = vpop.f32.mrf.mxu2 }
 0x3b3   :  { %6670 = vmatpush.bf16.msrb.mxu0 %v7381_v42  ;;  %6684 = vmatpush.bf16.msrb.mxu1 %v7957_v49  ;;  %v8317_v42 = vor.u32 %v10866_v61, %v8316_v25  ;;  %v8893_v49 = vor.u32 %v11010_v35, %v8892_v24  ;;  %v12237_v56 = vpop.f32.mrf.mxu0  ;;  %v8102_v25 = vld [vmem:[#allocation8 + $0x7d0] sm:$0xf0] }
 0x3b4   :  { %6698 = vmatpush.bf16.msrb.mxu2 %v8533_v5  ;;  %6712 = vmatpush.bf16.msrb.mxu3 %v9109_v27  ;;  %v9973_v5 = vor.u32 %v11280_v29, %v9972_v45  ;;  %v10549_v27 = vor.u32 %v11424_v2, %v10548_v58  ;;  %v9756_v45 = vld [vmem:[#allocation8 + $0x1478] sm:$0xf]  ;;  %v11226_v29 = vld [vmem:[#allocation8 + $0x14bc] sm:$0xf0]  ;;  %v6439_v54 = vpop.f32.mrf.mxu3 }
 0x3b5   :  { %v9757_v33 = vor.u32 %v11226_v29, %v9756_v45 }
 0x3b7   :  { %6671 = vmatpush.bf16.msrb.mxu0 %v7309_v13  ;;  %6685 = vmatpush.bf16.msrb.mxu1 %v7885_v62  ;;  %v10677_v13 = vld [vmem:[#allocation8 + $0x39c] sm:$0xf]  ;;  %v6340_v62 = vadd.f32 %v12204_v63, %v1144_v11  ;;  %v12240_v51 = vpop.f32.mrf.mxu1 }
 0x3b8   :  { %6699 = vmatpush.bf16.msrb.mxu2 %v8461_v18  ;;  %6713 = vmatpush.bf16.msrb.mxu3 %v9037_v60  ;;  %v8174_v18 = vld [vmem:[#allocation8 + $0x860] sm:$0xf0]  ;;  %v12234_v60 = vld [vmem:[#allocation10 + $0x8] sm:$0xff]  ;;  %v7601_v63 = vor.u32 %v10677_v13, %v7598_v23 }
 0x3b9   :  { %v1145_v15 = vperm.slane %v12234_v60, 3  ;;  %v8177_v19 = vor.u32 %v10821_v21, %v8174_v18  ;;  %v6354_v46 = vadd.f32 %v12210_v28, %v6340_v62  ;;  %v9829_v28 = vor.u32 %v11244_v10, %v9828_v9  ;;  %v10260_v62 = vld [vmem:[#allocation8 + $0x1868] sm:$0xf]  ;;  %v10623_v23 = vld [vmem:[#allocation8 + $0x1ec] sm:$0xf] }
 0x3ba   :  { %v7958_v21 = vld [vmem:[#allocation8 + $0x6b0] sm:$0xf0]  ;;  %v10261_v9 = vor.u32 %v11352_v40, %v10260_v62  ;;  %v9612_v10 = vld [vmem:[#allocation8 + $0x1358] sm:$0xf]  ;;  %v10569_v62 = vld [vmem:[#allocation8 + $0x3c] sm:$0xf] }
 0x3bb   :  { %6672 = vmatpush.bf16.msrb.mxu0 %v7237_v32  ;;  %6686 = vmatpush.bf16.msrb.mxu1 %v7813_v41  ;;  %v10404_v32 = vld [vmem:[#allocation8 + $0x1988] sm:$0xf]  ;;  %v11388_v41 = vld [vmem:[#allocation8 + $0x19cc] sm:$0xf0]  ;;  %v6424_v61 = vadd.f32 %v6423_v36, %v1145_v15  ;;  %v6368_v24 = vadd.f32 %v12212_v3, %v6354_v46  ;;  %v6342_v3 = vadd.f32 %v12216_v43, %v1144_v11  ;;  %v7382_v11 = vld [vmem:[#allocation8 + $0x230] sm:$0xf0] }
 0x3bc   :  { %6700 = vmatpush.bf16.msrb.mxu2 %v8389_v59  ;;  %6714 = vmatpush.bf16.msrb.mxu3 %v8965_v34  ;;  %v7526_v59 = vld [vmem:[#allocation8 + $0x350] sm:$0xf0]  ;;  %v10803_v34 = vld [vmem:[#allocation8 + $0x78c] sm:$0xf]  ;;  %v10405_v35 = vor.u32 %v11388_v41, %v10404_v32  ;;  %v6426_v18 = vadd.f32 %v6425_v55, %v1145_v15  ;;  %v7385_v41 = vor.u32 %v10623_v23, %v7382_v11  ;;  %v11334_v46 = vld [vmem:[#allocation8 + $0x181c] sm:$0xf0] }
 0x3bd   :  { %v7529_v58 = vor.u32 %v10659_v14, %v7526_v59  ;;  %v8105_v2 = vor.u32 %v10803_v34, %v8102_v25  ;;  %v6438_v36 = vadd.f32 %v12229_v39, %v6424_v61  ;;  %v10767_v39 = vld [vmem:[#allocation8 + $0x66c] sm:$0xf]  ;;  %v10605_v59 = vld [vmem:[#allocation8 + $0x15c] sm:$0xf]  ;;  %v7886_v61 = vld [vmem:[#allocation8 + $0x620] sm:$0xf0] }
 0x3be   :  { %v7961_v14 = vor.u32 %v10767_v39, %v7958_v21  ;;  %v10713_v11 = vld [vmem:[#allocation8 + $0x4bc] sm:$0xf]  ;;  %v7742_v21 = vld [vmem:[#allocation8 + $0x500] sm:$0xf0] }
 0x3bf   :  { %6673 = vmatpush.bf16.msrb.mxu0 %v7165_v1  ;;  %6687 = vmatpush.bf16.msrb.mxu1 %v7741_v52  ;;  %v11370_v1 = vld [vmem:[#allocation8 + $0x193c] sm:$0xf0]  ;;  %v10641_v52 = vld [vmem:[#allocation8 + $0x27c] sm:$0xf]  ;;  %v6465_v43 = vpop.f32.mrf.mxu1 }
 0x3c0   :  { %6701 = vmatpush.bf16.msrb.mxu2 %v8317_v42  ;;  %6715 = vmatpush.bf16.msrb.mxu3 %v8893_v49  ;;  %v10785_v42 = vld [vmem:[#allocation8 + $0x6fc] sm:$0xf]  ;;  %v8030_v49 = vld [vmem:[#allocation8 + $0x740] sm:$0xf0]  ;;  %v10333_v31 = vor.u32 %v11370_v1, %v10332_v20  ;;  %v7457_v17 = vor.u32 %v10641_v52, %v7454_v38  ;;  %v9540_v20 = vld [vmem:[#allocation8 + $0x12c8] sm:$0xf] }
 0x3c1   :  { %v8033_v13 = vor.u32 %v10785_v42, %v8030_v49  ;;  %v11172_v1 = vld [vmem:[#allocation8 + $0x130c] sm:$0xf0]  ;;  %v10116_v38 = vld [vmem:[#allocation8 + $0x1748] sm:$0xf]  ;;  %v10587_v49 = vld [vmem:[#allocation8 + $0xcc] sm:$0xf] }
 0x3c2   :  { %6674 = vmatmul.bf16.vlgmr.msrb.gmra.mxu0 %v11852_v47  ;;  %6688 = vmatmul.bf16.vlgmr.msrb.gmra.mxu1 %v11854_v48  ;;  %v11316_v42 = vld [vmem:[#allocation8 + $0x178c] sm:$0xf0] }
 0x3c3   :  { %6722 = vmatpush.bf16.msra.mxu0 %v9973_v5  ;;  %6736 = vmatpush.bf16.msra.mxu1 %v10549_v27  ;;  %v6451_v5 = vpop.f32.mrf.mxu0  ;;  %v6382_v27 = vadd.f32 %v12214_v22, %v6368_v24 }
 0x3c4   :  { %6750 = vmatpush.bf16.msra.mxu2 %v7673_v12  ;;  %6764 = vmatpush.bf16.msra.mxu3 %v8249_v44  ;;  %v9684_v12 = vld [vmem:[#allocation8 + $0x13e8] sm:$0xf]  ;;  %v11208_v44 = vld [vmem:[#allocation8 + $0x142c] sm:$0xf0]  ;;  %v6452_v4 = vadd.f32 %v6451_v5, %v6438_v36  ;;  %v7814_v36 = vld [vmem:[#allocation8 + $0x590] sm:$0xf0] }
 0x3c5   :  { %6702 = vmatmul.bf16.vlgmr.msrb.gmra.mxu2 %v11856_v50  ;;  %6716 = vmatmul.bf16.vlgmr.msrb.gmra.mxu3 %v11858_v53  ;;  %v6396_v22 = vadd.f32 %v12225_v30, %v6382_v27  ;;  %v7310_v30 = vld [vmem:[#allocation8 + $0x1a0] sm:$0xf0]  ;;  %v9468_v27 = vld [vmem:[#allocation8 + $0x1238] sm:$0xf] }
 0x3c6   :  { %v6466_v32 = vadd.f32 %v6465_v43, %v6452_v4  ;;  %v10117_v4 = vor.u32 %v11316_v42, %v10116_v38  ;;  %v7166_v43 = vld [vmem:[#allocation8 + $0x80] sm:$0xf0] }
 0x3c7   :  { %6723 = vmatpush.bf16.msra.mxu0 %v9901_v37  ;;  %6737 = vmatpush.bf16.msra.mxu1 %v10477_v0  ;;  %v6356_v37 = vadd.f32 %v12218_v7, %v6342_v3  ;;  %v9685_v0 = vor.u32 %v11208_v44, %v9684_v12  ;;  %v10749_v7 = vld [vmem:[#allocation8 + $0x5dc] sm:$0xf]  ;;  %v6410_v24 = vadd.f32 %v12227_v16, %v6396_v22  ;;  %v10731_v3 = vld [vmem:[#allocation8 + $0x54c] sm:$0xf]  ;;  %v6467_v12 = vpop.f32.mrf.mxu1 }
 0x3c8   :  { %6751 = vmatpush.bf16.msra.mxu2 %v7601_v63  ;;  %6765 = vmatpush.bf16.msra.mxu3 %v8177_v19  ;;  %v11190_v63 = vld [vmem:[#allocation8 + $0x139c] sm:$0xf0]  ;;  %v10188_v19 = vld [vmem:[#allocation8 + $0x17d8] sm:$0xf]  ;;  %v6479_v15 = vpop.f32.mrf.mxu2  ;;  %v6493_v25 = vpop.f32.mrf.mxu3  ;;  %v7889_v55 = vor.u32 %v10749_v7, %v7886_v61  ;;  %v9541_v44 = vor.u32 %v11172_v1, %v9540_v20  ;;  %v7817_v23 = vor.u32 %v10731_v3, %v7814_v36  ;;  %v10983_v22 = vld [vmem:[#allocation8 + $0xd2c] sm:$0xf] }
 0x3c9   :  { %v6370_v34 = vadd.f32 %v12220_v8, %v6356_v37  ;;  %v9613_v29 = vor.u32 %v11190_v63, %v9612_v10  ;;  %v11127_v37 = vld [vmem:[#allocation8 + $0x11ac] sm:$0xf]  ;;  %v10965_v7 = vld [vmem:[#allocation8 + $0xc9c] sm:$0xf]  ;;  %v8750_v61 = vld [vmem:[#allocation8 + $0xce0] sm:$0xf0] }
 0x3ca   :  { %v10478_v20 = vld [vmem:[#allocation8 + $0x1a60] sm:$0xf0]  ;;  %v8753_v1 = vor.u32 %v10965_v7, %v8750_v61  ;;  %v9830_v3 = vld [vmem:[#allocation8 + $0x1550] sm:$0xf0]  ;;  %v11379_v36 = vld [vmem:[#allocation8 + $0x198c] sm:$0xf] }
 0x3cb   :  { %6724 = vmatpush.bf16.msra.mxu0 %v9829_v28  ;;  %6738 = vmatpush.bf16.msra.mxu1 %v10405_v35  ;;  %v6440_v28 = vadd.f32 %v6439_v54, %v6426_v18  ;;  %v6480_v35 = vadd.f32 %v6479_v15, %v6466_v32  ;;  %v6453_v45 = vpop.f32.mrf.mxu0  ;;  %v6384_v16 = vadd.f32 %v12222_v26, %v6370_v34  ;;  %v7238_v54 = vld [vmem:[#allocation8 + $0x110] sm:$0xf0]  ;;  %v11325_v7 = vld [vmem:[#allocation8 + $0x17dc] sm:$0xf]  ;;  %v10190_v61 = vld [vmem:[#allocation8 + $0x1820] sm:$0xf0] }
 0x3cc   :  { %6752 = vmatpush.bf16.msra.mxu2 %v7529_v58  ;;  %6766 = vmatpush.bf16.msra.mxu3 %v8105_v2  ;;  %v10189_v58 = vor.u32 %v11334_v46, %v10188_v19  ;;  %v7313_v2 = vor.u32 %v10605_v59, %v7310_v30  ;;  %v7241_v26 = vor.u32 %v10587_v49, %v7238_v54  ;;  %v10550_v46 = vld [vmem:[#allocation8 + $0x1af0] sm:$0xf0]  ;;  %v11091_v49 = vld [vmem:[#allocation8 + $0x108c] sm:$0xf] }
 0x3cd   :  { %v6494_v52 = vadd.f32 %v6493_v25, %v6480_v35  ;;  %v6454_v8 = vadd.f32 %v6453_v45, %v6440_v28  ;;  %v7169_v30 = vor.u32 %v10569_v62, %v7166_v43  ;;  %v7745_v34 = vor.u32 %v10713_v11, %v7742_v21  ;;  %v11109_v35 = vld [vmem:[#allocation8 + $0x111c] sm:$0xf]  ;;  %v9326_v45 = vld [vmem:[#allocation8 + $0x1160] sm:$0xf0]  ;;  %v11235_v54 = vld [vmem:[#allocation8 + $0x150c] sm:$0xf] }
 0x3ce   :  { %v11217_v62 = vld [vmem:[#allocation8 + $0x147c] sm:$0xf]  ;;  %v8534_v21 = vld [vmem:[#allocation8 + $0xb30] sm:$0xf0] }
 0x3cf   :  { %6725 = vmatpush.bf16.msra.mxu0 %v9757_v33  ;;  %6739 = vmatpush.bf16.msra.mxu1 %v10333_v31  ;;  %v7028_v5 = vpack.c.bf16 %v6494_v52, %v6410_v24  ;;  %v11154_v33 = vld [vmem:[#allocation8 + $0x127c] sm:$0xf0]  ;;  %v6398_v31 = vadd.f32 %v12237_v56, %v6384_v16  ;;  %v6468_v40 = vadd.f32 %v6467_v12, %v6454_v8  ;;  %v8822_v56 = vld [vmem:[#allocation8 + $0xd70] sm:$0xf0]  ;;  %v10947_v8 = vld [vmem:[#allocation8 + $0xc0c] sm:$0xf] }
 0x3d0   :  { %6753 = vmatpush.bf16.msra.mxu2 %v7457_v17  ;;  %6767 = vmatpush.bf16.msra.mxu3 %v8033_v13  ;;  %v10044_v17 = vld [vmem:[#allocation8 + $0x16b8] sm:$0xf]  ;;  %v11298_v13 = vld [vmem:[#allocation8 + $0x16fc] sm:$0xf0]  ;;  %v6481_v39 = vpop.f32.mrf.mxu2  ;;  %v6495_v63 = vpop.f32.mrf.mxu3  ;;  %v9469_v19 = vor.u32 %v11154_v33, %v9468_v27  ;;  %v8825_v15 = vor.u32 %v10983_v22, %v8822_v56  ;;  %v9329_v52 = vor.u32 %v11109_v35, %v9326_v45  ;;  %v9254_v16 = vld [vmem:[#allocation8 + $0x10d0] sm:$0xf0] }
 0x3d1   :  { %7034 = vst [vmem:[#allocation12 + $0x10] sm:$0xff] %v7028_v5  ;;  %v6482_v18 = vadd.f32 %v6481_v39, %v6468_v40  ;;  %v6412_v10 = vadd.f32 %v12240_v51, %v6398_v31  ;;  %v10045_v32 = vor.u32 %v11298_v13, %v10044_v17  ;;  %v10406_v5 = vld [vmem:[#allocation8 + $0x19d0] sm:$0xf0]  ;;  %v9257_v33 = vor.u32 %v11091_v49, %v9254_v16  ;;  %v10929_v31 = vld [vmem:[#allocation8 + $0xb7c] sm:$0xf] }
 0x3d2   :  { %v8606_v12 = vld [vmem:[#allocation8 + $0xbc0] sm:$0xf0]  ;;  %v11073_v17 = vld [vmem:[#allocation8 + $0xffc] sm:$0xf]  ;;  %v10911_v39 = vld [vmem:[#allocation8 + $0xaec] sm:$0xf] }
 0x3d3   :  { %6726 = vmatpush.bf16.msra.mxu0 %v9685_v0  ;;  %6740 = vmatpush.bf16.msra.mxu1 %v10261_v9  ;;  %v9398_v0 = vld [vmem:[#allocation8 + $0x11f0] sm:$0xf0]  ;;  %v11271_v9 = vld [vmem:[#allocation8 + $0x162c] sm:$0xf]  ;;  %v6496_v59 = vadd.f32 %v6495_v63, %v6482_v18  ;;  %v9182_v13 = vld [vmem:[#allocation8 + $0x1040] sm:$0xf0]  ;;  %v8609_v43 = vor.u32 %v10929_v31, %v8606_v12 }
 0x3d4   :  { %6754 = vmatpush.bf16.msra.mxu2 %v7385_v41  ;;  %6768 = vmatpush.bf16.msra.mxu3 %v7961_v14  ;;  %v9974_v41 = vld [vmem:[#allocation8 + $0x1670] sm:$0xf0]  ;;  %v11415_v14 = vld [vmem:[#allocation8 + $0x1aac] sm:$0xf]  ;;  %v9401_v25 = vor.u32 %v11127_v37, %v9398_v0  ;;  %v9758_v40 = vld [vmem:[#allocation8 + $0x14c0] sm:$0xf0]  ;;  %v9185_v11 = vor.u32 %v11073_v17, %v9182_v13 }
 0x3d5   :  { %v7031_v24 = vpack.c.bf16 %v6496_v59, %v6412_v10  ;;  %v9977_v28 = vor.u32 %v11271_v9, %v9974_v41  ;;  %v10553_v51 = vor.u32 %v11415_v14, %v10550_v46  ;;  %v9761_v22 = vor.u32 %v11217_v62, %v9758_v40  ;;  %v11055_v18 = vld [vmem:[#allocation8 + $0xf6c] sm:$0xf]  ;;  %v9110_v37 = vld [vmem:[#allocation8 + $0xfb0] sm:$0xf0]  ;;  %v10893_v41 = vld [vmem:[#allocation8 + $0xa5c] sm:$0xf] }
 0x3d6   :  { %v11199_v0 = vld [vmem:[#allocation8 + $0x13ec] sm:$0xf]  ;;  %v9686_v9 = vld [vmem:[#allocation8 + $0x1430] sm:$0xf0]  ;;  %v8462_v14 = vld [vmem:[#allocation8 + $0xaa0] sm:$0xf0] }
 0x3d7   :  { %6727 = vmatpush.bf16.msra.mxu0 %v9613_v29  ;;  %6741 = vmatpush.bf16.msra.mxu1 %v10189_v58  ;;  %v11253_v29 = vld [vmem:[#allocation8 + $0x159c] sm:$0xf]  ;;  %v9902_v58 = vld [vmem:[#allocation8 + $0x15e0] sm:$0xf0]  ;;  %7037 = vst [vmem:[#allocation12 + $0x28] sm:$0xff] %v7031_v24  ;;  %v9689_v46 = vor.u32 %v11199_v0, %v9686_v9  ;;  %v8465_v24 = vor.u32 %v10893_v41, %v8462_v14 }
 0x3d8   :  { %6755 = vmatpush.bf16.msra.mxu2 %v7313_v2  ;;  %6769 = vmatpush.bf16.msra.mxu3 %v7889_v55  ;;  %v11397_v2 = vld [vmem:[#allocation8 + $0x1a1c] sm:$0xf]  ;;  %v8678_v55 = vld [vmem:[#allocation8 + $0xc50] sm:$0xf0]  ;;  %v9905_v38 = vor.u32 %v11253_v29, %v9902_v58  ;;  %v11343_v10 = vld [vmem:[#allocation8 + $0x186c] sm:$0xf]  ;;  %v10193_v29 = vor.u32 %v11325_v7, %v10190_v61 }
 0x3d9   :  { %v10481_v42 = vor.u32 %v11397_v2, %v10478_v20  ;;  %v8681_v27 = vor.u32 %v10947_v8, %v8678_v55  ;;  %v10262_v63 = vld [vmem:[#allocation8 + $0x18b0] sm:$0xf0]  ;;  %v11019_v58 = vld [vmem:[#allocation8 + $0xe4c] sm:$0xf]  ;;  %v10857_v55 = vld [vmem:[#allocation8 + $0x93c] sm:$0xf] }
 0x3da   :  { %v10265_v59 = vor.u32 %v11343_v10, %v10262_v63  ;;  %v8390_v35 = vld [vmem:[#allocation8 + $0xa10] sm:$0xf0]  ;;  %v11163_v20 = vld [vmem:[#allocation8 + $0x12cc] sm:$0xf]  ;;  %v8318_v49 = vld [vmem:[#allocation8 + $0x980] sm:$0xf0] }
 0x3db   :  { %6728 = vmatpush.bf16.msra.mxu0 %v9541_v44  ;;  %6742 = vmatpush.bf16.msra.mxu1 %v10117_v4  ;;  %v9833_v44 = vor.u32 %v11235_v54, %v9830_v3  ;;  %v10409_v4 = vor.u32 %v11379_v36, %v10406_v5  ;;  %v8966_v2 = vld [vmem:[#allocation8 + $0xe90] sm:$0xf0]  ;;  %v11001_v16 = vld [vmem:[#allocation8 + $0xdbc] sm:$0xf]  ;;  %v8894_v54 = vld [vmem:[#allocation8 + $0xe00] sm:$0xf0]  ;;  %v8321_v62 = vor.u32 %v10857_v55, %v8318_v49 }
 0x3dc   :  { %6756 = vmatpush.bf16.msra.mxu2 %v7241_v26  ;;  %6770 = vmatpush.bf16.msra.mxu3 %v7817_v23  ;;  %v11361_v26 = vld [vmem:[#allocation8 + $0x18fc] sm:$0xf]  ;;  %v10334_v23 = vld [vmem:[#allocation8 + $0x1940] sm:$0xf0]  ;;  %v10118_v8 = vld [vmem:[#allocation8 + $0x1790] sm:$0xf0]  ;;  %v8897_v40 = vor.u32 %v11001_v16, %v8894_v54 }
 0x3dd   :  { %v10337_v56 = vor.u32 %v11361_v26, %v10334_v23  ;;  %v11145_v5 = vld [vmem:[#allocation8 + $0x123c] sm:$0xf]  ;;  %v10046_v31 = vld [vmem:[#allocation8 + $0x1700] sm:$0xf0]  ;;  %v7676_v12 = vld [vmem:[#allocation8 + $0x430] sm:$0xf] }
 0x3de   :  { %v10849_v17 = vld [vmem:[#allocation8 + $0x8f4] sm:$0xf0]  ;;  %v8828_v13 = vld [vmem:[#allocation8 + $0xd30] sm:$0xf]  ;;  %v8180_v9 = vld [vmem:[#allocation8 + $0x820] sm:$0xf] }
 0x3df   :  { %6729 = vmatpush.bf16.msra.mxu0 %v9469_v19  ;;  %6743 = vmatpush.bf16.msra.mxu1 %v10045_v32  ;;  %v8537_v19 = vor.u32 %v10911_v39, %v8534_v21  ;;  %v9113_v32 = vor.u32 %v11055_v18, %v9110_v37  ;;  %v10993_v26 = vld [vmem:[#allocation8 + $0xd74] sm:$0xf0]  ;;  %v9404_v23 = vld [vmem:[#allocation8 + $0x11b0] sm:$0xf]  ;;  %v10687_v18 = vld [vmem:[#allocation8 + $0x3e4] sm:$0xf0] }
 0x3e0   :  { %6757 = vmatpush.bf16.msra.mxu2 %v7169_v30  ;;  %6771 = vmatpush.bf16.msra.mxu3 %v7745_v34  ;;  %v11037_v30 = vld [vmem:[#allocation8 + $0xedc] sm:$0xf]  ;;  %v9038_v34 = vld [vmem:[#allocation8 + $0xf20] sm:$0xf0]  ;;  %v8829_v37 = vor.u32 %v10993_v26, %v8828_v13  ;;  %v10831_v10 = vld [vmem:[#allocation8 + $0x864] sm:$0xf0] }
 0x3e1   :  { %v8756_v63 = vld [vmem:[#allocation8 + $0xca0] sm:$0xf]  ;;  %v11119_v41 = vld [vmem:[#allocation8 + $0x1164] sm:$0xf0]  ;;  %v8108_v7 = vld [vmem:[#allocation8 + $0x790] sm:$0xf] }
 0x3e2   :  { %6730 = vmatmul.bf16.vlgmr.msra.gmra.mxu0 %v11874_v6  ;;  %6744 = vmatmul.bf16.vlgmr.msra.gmra.mxu1 %v11876_v57  ;;  %v10813_v61 = vld [vmem:[#allocation8 + $0x7d4] sm:$0xf0]  ;;  %v10795_v55 = vld [vmem:[#allocation8 + $0x744] sm:$0xf0]  ;;  %v9188_v49 = vld [vmem:[#allocation8 + $0x1000] sm:$0xf] }
 0x3e3   :  { %6778 = vmatpush.bf16.msrb.mxu0 %v8825_v15  ;;  %6792 = vmatpush.bf16.msrb.mxu1 %v9401_v25  ;;  %v11181_v15 = vld [vmem:[#allocation8 + $0x135c] sm:$0xf]  ;;  %v9614_v25 = vld [vmem:[#allocation8 + $0x13a0] sm:$0xf0]  ;;  %v11083_v16 = vld [vmem:[#allocation8 + $0x1044] sm:$0xf0] }
 0x3e4   :  { %6806 = vmatpush.bf16.msrb.mxu2 %v9977_v28  ;;  %6820 = vmatpush.bf16.msrb.mxu3 %v10553_v51  ;;  %v9041_v28 = vor.u32 %v11037_v30, %v9038_v34  ;;  %v10875_v51 = vld [vmem:[#allocation8 + $0x9cc] sm:$0xf]  ;;  %v9617_v45 = vor.u32 %v11181_v15, %v9614_v25  ;;  %v10669_v30 = vld [vmem:[#allocation8 + $0x354] sm:$0xf0]  ;;  %v12267_v34 = vpop.f32.mrf.mxu0  ;;  %7075 = dma.vmem_to_hbm [thread:$0]  %s7068_s4, 768, %s7070_s29, [#allocation13], %s11664_s30, %s11664_s30, %s11665_s8  }
 0x3e5   :  { %6758 = vmatmul.bf16.vlgmr.msra.gmra.mxu2 %v11852_v47  ;;  %6772 = vmatmul.bf16.vlgmr.msra.gmra.mxu3 %v11854_v48  ;;  %v10921_v13 = vld [vmem:[#allocation8 + $0xb34] sm:$0xf0] }
 0x3e7   :  { %6779 = vmatpush.bf16.msrb.mxu0 %v8753_v1  ;;  %6793 = vmatpush.bf16.msrb.mxu1 %v9329_v52  ;;  %v9542_v1 = vld [vmem:[#allocation8 + $0x1310] sm:$0xf0]  ;;  %v11307_v52 = vld [vmem:[#allocation8 + $0x174c] sm:$0xf] }
 0x3e8   :  { %6807 = vmatpush.bf16.msrb.mxu2 %v9905_v38  ;;  %6821 = vmatpush.bf16.msrb.mxu3 %v10481_v42  ;;  %v8393_v38 = vor.u32 %v10875_v51, %v8390_v35  ;;  %v8969_v42 = vor.u32 %v11019_v58, %v8966_v2  ;;  %v9545_v3 = vor.u32 %v11163_v20, %v9542_v1  ;;  %v9260_v51 = vld [vmem:[#allocation8 + $0x1090] sm:$0xf]  ;;  %v11101_v35 = vld [vmem:[#allocation8 + $0x10d4] sm:$0xf0]  ;;  %v7460_v2 = vld [vmem:[#allocation8 + $0x280] sm:$0xf]  ;;  %v12275_v54 = vpop.f32.mrf.mxu2 }
 0x3e9   :  { %v10121_v36 = vor.u32 %v11307_v52, %v10118_v8  ;;  %v8109_v58 = vor.u32 %v10813_v61, %v8108_v7  ;;  %v10651_v20 = vld [vmem:[#allocation8 + $0x2c4] sm:$0xf0]  ;;  %v9261_v52 = vor.u32 %v11101_v35, %v9260_v51  ;;  %v8036_v8 = vld [vmem:[#allocation8 + $0x700] sm:$0xf]  ;;  %v11029_v51 = vld [vmem:[#allocation8 + $0xe94] sm:$0xf0] }
 0x3ea   :  { %v1146_v35 = vperm.slane %v12234_v60, 4 }
 0x3eb   :  { %6780 = vmatpush.bf16.msrb.mxu0 %v8681_v27  ;;  %6794 = vmatpush.bf16.msrb.mxu1 %v9257_v33  ;;  %v9470_v27 = vld [vmem:[#allocation8 + $0x1280] sm:$0xf0]  ;;  %v11289_v33 = vld [vmem:[#allocation8 + $0x16bc] sm:$0xf] }
 0x3ec   :  { %6808 = vmatpush.bf16.msrb.mxu2 %v9833_v44  ;;  %6822 = vmatpush.bf16.msrb.mxu3 %v10409_v4  ;;  %v10705_v44 = vld [vmem:[#allocation8 + $0x474] sm:$0xf0]  ;;  %v8252_v4 = vld [vmem:[#allocation8 + $0x8b0] sm:$0xf]  ;;  %v10049_v39 = vor.u32 %v11289_v33, %v10046_v31  ;;  %v12279_v26 = vpop.f32.mrf.mxu0 }
 0x3ed   :  { %v7677_v21 = vor.u32 %v10705_v44, %v7676_v12  ;;  %v10633_v33 = vld [vmem:[#allocation8 + $0x234] sm:$0xf0]  ;;  %v9189_v12 = vor.u32 %v11083_v16, %v9188_v49  ;;  %v7964_v44 = vld [vmem:[#allocation8 + $0x670] sm:$0xf]  ;;  %v10867_v49 = vld [vmem:[#allocation8 + $0x984] sm:$0xf0] }
 0x3ee   :  { %v8900_v16 = vld [vmem:[#allocation8 + $0xdc0] sm:$0xf] }
 0x3ef   :  { %6781 = vmatpush.bf16.msrb.mxu0 %v8609_v43  ;;  %6795 = vmatpush.bf16.msrb.mxu1 %v9185_v11  ;;  %v11137_v43 = vld [vmem:[#allocation8 + $0x11f4] sm:$0xf0]  ;;  %v9473_v11 = vor.u32 %v11145_v5, %v9470_v27  ;;  %v8037_v5 = vor.u32 %v10795_v55, %v8036_v8  ;;  %v7388_v27 = vld [vmem:[#allocation8 + $0x1f0] sm:$0xf]  ;;  %v10723_v8 = vld [vmem:[#allocation8 + $0x504] sm:$0xf0] }
 0x3f0   :  { %6809 = vmatpush.bf16.msrb.mxu2 %v9761_v22  ;;  %6823 = vmatpush.bf16.msrb.mxu3 %v10337_v56  ;;  %v8253_v22 = vor.u32 %v10849_v17, %v8252_v4  ;;  %v7604_v56 = vld [vmem:[#allocation8 + $0x3a0] sm:$0xf]  ;;  %v9405_v0 = vor.u32 %v11137_v43, %v9404_v23  ;;  %v10777_v4 = vld [vmem:[#allocation8 + $0x6b4] sm:$0xf0]  ;;  %v8540_v17 = vld [vmem:[#allocation8 + $0xaf0] sm:$0xf]  ;;  %v7389_v23 = vor.u32 %v10633_v33, %v7388_v27  ;;  %v12283_v7 = vpop.f32.mrf.mxu2 }
 0x3f1   :  { %v7605_v14 = vor.u32 %v10687_v18, %v7604_v56  ;;  %v7965_v43 = vor.u32 %v10777_v4, %v7964_v44  ;;  %v7892_v56 = vld [vmem:[#allocation8 + $0x5e0] sm:$0xf]  ;;  %v10759_v18 = vld [vmem:[#allocation8 + $0x624] sm:$0xf0]  ;;  %v9980_v27 = vld [vmem:[#allocation8 + $0x1630] sm:$0xf] }
 0x3f2   :  { %v11281_v33 = vld [vmem:[#allocation8 + $0x1674] sm:$0xf0]  ;;  %v10696_v44 = vld [vmem:[#allocation8 + $0x434] sm:$0xf] }
 0x3f3   :  { %6782 = vmatpush.bf16.msrb.mxu0 %v8537_v19  ;;  %6796 = vmatpush.bf16.msrb.mxu1 %v9113_v32  ;;  %v10975_v19 = vld [vmem:[#allocation8 + $0xce4] sm:$0xf0]  ;;  %v9332_v32 = vld [vmem:[#allocation8 + $0x1120] sm:$0xf] }
 0x3f4   :  { %6810 = vmatpush.bf16.msrb.mxu2 %v9689_v46  ;;  %6824 = vmatpush.bf16.msrb.mxu3 %v10265_v59  ;;  %v8181_v46 = vor.u32 %v10831_v10, %v8180_v9  ;;  %v7532_v59 = vld [vmem:[#allocation8 + $0x310] sm:$0xf]  ;;  %v8757_v15 = vor.u32 %v10975_v19, %v8756_v63  ;;  %v9333_v25 = vor.u32 %v11119_v41, %v9332_v32  ;;  %v10903_v9 = vld [vmem:[#allocation8 + $0xaa4] sm:$0xf0]  ;;  %v9044_v10 = vld [vmem:[#allocation8 + $0xee0] sm:$0xf] }
 0x3f5   :  { %v11047_v63 = vld [vmem:[#allocation8 + $0xf24] sm:$0xf0]  ;;  %v7893_v32 = vor.u32 %v10759_v18, %v7892_v56  ;;  %v7244_v41 = vld [vmem:[#allocation8 + $0xd0] sm:$0xf]  ;;  %v9908_v56 = vld [vmem:[#allocation8 + $0x15a0] sm:$0xf] }
 0x3f6   :  { %v11263_v18 = vld [vmem:[#allocation8 + $0x15e4] sm:$0xf0] }
 0x3f7   :  { %6783 = vmatpush.bf16.msrb.mxu0 %v8465_v24  ;;  %6797 = vmatpush.bf16.msrb.mxu1 %v9041_v28  ;;  %v8684_v24 = vld [vmem:[#allocation8 + $0xc10] sm:$0xf]  ;;  %v10957_v28 = vld [vmem:[#allocation8 + $0xc54] sm:$0xf0] }
 0x3f8   :  { %6811 = vmatpush.bf16.msrb.mxu2 %v9617_v45  ;;  %6825 = vmatpush.bf16.msrb.mxu3 %v10193_v29  ;;  %v12273_v45 = vpop.f32.mrf.mxu1  ;;  %v7533_v29 = vor.u32 %v10669_v30, %v7532_v59  ;;  %v8685_v1 = vor.u32 %v10957_v28, %v8684_v24  ;;  %v9045_v59 = vor.u32 %v11047_v63, %v9044_v10  ;;  %v7820_v30 = vld [vmem:[#allocation8 + $0x550] sm:$0xf]  ;;  %v10885_v24 = vld [vmem:[#allocation8 + $0xa14] sm:$0xf0]  ;;  %v10484_v10 = vld [vmem:[#allocation8 + $0x1a20] sm:$0xf] }
 0x3f9   :  { %v8972_v28 = vld [vmem:[#allocation8 + $0xe50] sm:$0xf]  ;;  %v11407_v63 = vld [vmem:[#allocation8 + $0x1a64] sm:$0xf0] }
 0x3fb   :  { %6784 = vmatpush.bf16.msrb.mxu0 %v8393_v38  ;;  %6798 = vmatpush.bf16.msrb.mxu1 %v8969_v42  ;;  %v8612_v38 = vld [vmem:[#allocation8 + $0xb80] sm:$0xf]  ;;  %v10939_v42 = vld [vmem:[#allocation8 + $0xbc4] sm:$0xf0] }
 0x3fc   :  { %6812 = vmatpush.bf16.msrb.mxu2 %v9545_v3  ;;  %6826 = vmatpush.bf16.msrb.mxu3 %v10121_v36  ;;  %v12277_v3 = vpop.f32.mrf.mxu3  ;;  %v7461_v36 = vor.u32 %v10651_v20, %v7460_v2  ;;  %v8613_v31 = vor.u32 %v10939_v42, %v8612_v38  ;;  %v8973_v38 = vor.u32 %v11029_v51, %v8972_v28  ;;  %v8324_v42 = vld [vmem:[#allocation8 + $0x940] sm:$0xf]  ;;  %v11245_v28 = vld [vmem:[#allocation8 + $0x1554] sm:$0xf0] }
 0x3ff   :  { %6785 = vmatpush.bf16.msrb.mxu0 %v8321_v62  ;;  %6799 = vmatpush.bf16.msrb.mxu1 %v8897_v40  ;;  %v9116_v62 = vld [vmem:[#allocation8 + $0xf70] sm:$0xf]  ;;  %v11065_v40 = vld [vmem:[#allocation8 + $0xfb4] sm:$0xf0] }
 0x400   :  { %6813 = vmatpush.bf16.msrb.mxu2 %v9473_v11  ;;  %6827 = vmatpush.bf16.msrb.mxu3 %v10049_v39  ;;  %v7316_v11 = vld [vmem:[#allocation8 + $0x160] sm:$0xf]  ;;  %v10615_v39 = vld [vmem:[#allocation8 + $0x1a4] sm:$0xf0] }
 0x401   :  { %v7317_v19 = vor.u32 %v10615_v39, %v7316_v11 }
 0x402   :  { %6786 = vmatmul.bf16.vlgmr.msrb.gmra.mxu0 %v11856_v50  ;;  %6800 = vmatmul.bf16.vlgmr.msrb.gmra.mxu1 %v11858_v53 }
 0x403   :  { %6834 = vmatpush.bf16.msra.mxu0 %v7677_v21  ;;  %6848 = vmatpush.bf16.msra.mxu1 %v8253_v22  ;;  %v8541_v21 = vor.u32 %v10921_v13, %v8540_v17  ;;  %v9117_v22 = vor.u32 %v11065_v40, %v9116_v62  ;;  %v7678_v13 = vld [vmem:[#allocation8 + $0x478] sm:$0xf0]  ;;  %v10840_v62 = vld [vmem:[#allocation8 + $0x8b4] sm:$0xf] }
 0x404   :  { %6862 = vmatpush.bf16.msra.mxu2 %v8829_v37  ;;  %6876 = vmatpush.bf16.msra.mxu3 %v9405_v0  ;;  %v8468_v37 = vld [vmem:[#allocation8 + $0xa60] sm:$0xf]  ;;  %v12281_v0 = vpop.f32.mrf.mxu1  ;;  %v12285_v61 = vpop.f32.mrf.mxu3  ;;  %v8254_v40 = vld [vmem:[#allocation8 + $0x8f8] sm:$0xf0] }
 0x405   :  { %6814 = vmatmul.bf16.vlgmr.msrb.gmra.mxu2 %v11874_v6  ;;  %6828 = vmatmul.bf16.vlgmr.msrb.gmra.mxu3 %v11876_v57 }
 0x407   :  { %6835 = vmatpush.bf16.msra.mxu0 %v7605_v14  ;;  %6849 = vmatpush.bf16.msra.mxu1 %v8181_v46  ;;  %v10597_v14 = vld [vmem:[#allocation8 + $0x114] sm:$0xf0]  ;;  %v8469_v46 = vor.u32 %v10903_v9, %v8468_v37  ;;  %v7681_v37 = vor.u32 %v10696_v44, %v7678_v13  ;;  %v8257_v9 = vor.u32 %v10840_v62, %v8254_v40  ;;  %v11371_v44 = vld [vmem:[#allocation8 + $0x1944] sm:$0xf0]  ;;  %v7462_v62 = vld [vmem:[#allocation8 + $0x2c8] sm:$0xf0] }
 0x408   :  { %6863 = vmatpush.bf16.msra.mxu2 %v8757_v15  ;;  %6877 = vmatpush.bf16.msra.mxu3 %v9333_v25  ;;  %v10741_v15 = vld [vmem:[#allocation8 + $0x594] sm:$0xf0]  ;;  %v8396_v25 = vld [vmem:[#allocation8 + $0x9d0] sm:$0xf]  ;;  %v7245_v2 = vor.u32 %v10597_v14, %v7244_v41  ;;  %v6591_v11 = vpop.f32.mrf.mxu2  ;;  %v7606_v41 = vld [vmem:[#allocation8 + $0x3e8] sm:$0xf0] }
 0x409   :  { %v7821_v20 = vor.u32 %v10741_v15, %v7820_v30  ;;  %v8397_v55 = vor.u32 %v10885_v24, %v8396_v25  ;;  %v10822_v14 = vld [vmem:[#allocation8 + $0x824] sm:$0xf]  ;;  %v9909_v15 = vor.u32 %v11263_v18, %v9908_v56  ;;  %v10485_v25 = vor.u32 %v11407_v63, %v10484_v10  ;;  %v9836_v24 = vld [vmem:[#allocation8 + $0x1510] sm:$0xf] }
 0x40a   :  { %v10786_v40 = vld [vmem:[#allocation8 + $0x704] sm:$0xf]  ;;  %v9692_v18 = vld [vmem:[#allocation8 + $0x13f0] sm:$0xf] }
 0x40b   :  { %6836 = vmatpush.bf16.msra.mxu0 %v7533_v29  ;;  %6850 = vmatpush.bf16.msra.mxu1 %v8109_v58  ;;  %v12288_v29 = vpop.f32.mrf.mxu0  ;;  %v7172_v58 = vld [vmem:[#allocation8 + $0x40] sm:$0xf] }
 0x40c   :  { %6864 = vmatpush.bf16.msra.mxu2 %v8685_v1  ;;  %6878 = vmatpush.bf16.msra.mxu3 %v9261_v52  ;;  %v10579_v1 = vld [vmem:[#allocation8 + $0x84] sm:$0xf0]  ;;  %v7748_v52 = vld [vmem:[#allocation8 + $0x4c0] sm:$0xf]  ;;  %v12292_v39 = vpop.f32.mrf.mxu3 }
 0x40d   :  { %v7173_v4 = vor.u32 %v10579_v1, %v7172_v58  ;;  %v7749_v17 = vor.u32 %v10723_v8, %v7748_v52  ;;  %v10412_v58 = vld [vmem:[#allocation8 + $0x1990] sm:$0xf]  ;;  %v7534_v8 = vld [vmem:[#allocation8 + $0x358] sm:$0xf0] }
 0x40f   :  { %6837 = vmatpush.bf16.msra.mxu0 %v7461_v36  ;;  %6851 = vmatpush.bf16.msra.mxu1 %v8037_v5  ;;  %v12290_v36 = vpop.f32.mrf.mxu1  ;;  %v11011_v5 = vld [vmem:[#allocation8 + $0xe04] sm:$0xf0] }
 0x410   :  { %6865 = vmatpush.bf16.msra.mxu2 %v8613_v31  ;;  %6879 = vmatpush.bf16.msra.mxu3 %v9189_v12  ;;  %v10556_v31 = vld [vmem:[#allocation8 + $0x1ab0] sm:$0xf]  ;;  %v11425_v12 = vld [vmem:[#allocation8 + $0x1af4] sm:$0xf0] }
 0x413   :  { %6838 = vmatpush.bf16.msra.mxu0 %v7389_v23  ;;  %6852 = vmatpush.bf16.msra.mxu1 %v7965_v43  ;;  %v8325_v23 = vor.u32 %v10867_v49, %v8324_v42  ;;  %v8901_v43 = vor.u32 %v11011_v5, %v8900_v16  ;;  %v12298_v30 = vpop.f32.mrf.mxu0  ;;  %v9764_v5 = vld [vmem:[#allocation8 + $0x1480] sm:$0xf] }
 0x414   :  { %6866 = vmatpush.bf16.msra.mxu2 %v8541_v21  ;;  %6880 = vmatpush.bf16.msra.mxu3 %v9117_v22  ;;  %v9981_v21 = vor.u32 %v11281_v33, %v9980_v27  ;;  %v10557_v22 = vor.u32 %v11425_v12, %v10556_v31  ;;  %v11227_v27 = vld [vmem:[#allocation8 + $0x14c4] sm:$0xf0]  ;;  %v10340_v12 = vld [vmem:[#allocation8 + $0x1900] sm:$0xf]  ;;  %v6607_v13 = vpop.f32.mrf.mxu3 }
 0x415   :  { %v10341_v56 = vor.u32 %v11371_v44, %v10340_v12  ;;  %v11173_v12 = vld [vmem:[#allocation8 + $0x1314] sm:$0xf0] }
 0x417   :  { %6839 = vmatpush.bf16.msra.mxu0 %v7317_v19  ;;  %6853 = vmatpush.bf16.msra.mxu1 %v7893_v32  ;;  %v10678_v19 = vld [vmem:[#allocation8 + $0x3a4] sm:$0xf]  ;;  %v6508_v32 = vadd.f32 %v12267_v34, %v1146_v35  ;;  %v12301_v52 = vpop.f32.mrf.mxu1 }
 0x418   :  { %6867 = vmatpush.bf16.msra.mxu2 %v8469_v46  ;;  %6881 = vmatpush.bf16.msra.mxu3 %v9045_v59  ;;  %v8182_v46 = vld [vmem:[#allocation8 + $0x868] sm:$0xf0]  ;;  %v1147_v59 = vperm.slane %v12234_v60, 5  ;;  %v7609_v34 = vor.u32 %v10678_v19, %v7606_v41  ;;  %v10268_v19 = vld [vmem:[#allocation8 + $0x1870] sm:$0xf] }
 0x419   :  { %v8185_v51 = vor.u32 %v10822_v14, %v8182_v46  ;;  %v6522_v1 = vadd.f32 %v12273_v45, %v6508_v32  ;;  %v9837_v45 = vor.u32 %v11245_v28, %v9836_v24  ;;  %v11353_v32 = vld [vmem:[#allocation8 + $0x18b4] sm:$0xf0]  ;;  %v10624_v41 = vld [vmem:[#allocation8 + $0x1f4] sm:$0xf]  ;;  %v7966_v14 = vld [vmem:[#allocation8 + $0x6b8] sm:$0xf0] }
 0x41a   :  { %v6592_v42 = vadd.f32 %v6591_v11, %v1147_v59  ;;  %v10269_v24 = vor.u32 %v11353_v32, %v10268_v19  ;;  %v9620_v28 = vld [vmem:[#allocation8 + $0x1360] sm:$0xf] }
 0x41b   :  { %6840 = vmatpush.bf16.msra.mxu0 %v7245_v2  ;;  %6854 = vmatpush.bf16.msra.mxu1 %v7821_v20  ;;  %v11389_v2 = vld [vmem:[#allocation8 + $0x19d4] sm:$0xf0]  ;;  %v10660_v20 = vld [vmem:[#allocation8 + $0x314] sm:$0xf]  ;;  %v6536_v49 = vadd.f32 %v12275_v54, %v6522_v1  ;;  %v6510_v54 = vadd.f32 %v12279_v26, %v1146_v35  ;;  %v7390_v35 = vld [vmem:[#allocation8 + $0x238] sm:$0xf0] }
 0x41c   :  { %6868 = vmatpush.bf16.msra.mxu2 %v8397_v55  ;;  %6882 = vmatpush.bf16.msra.mxu3 %v8973_v38  ;;  %v10804_v55 = vld [vmem:[#allocation8 + $0x794] sm:$0xf]  ;;  %v8110_v38 = vld [vmem:[#allocation8 + $0x7d8] sm:$0xf0]  ;;  %v10413_v16 = vor.u32 %v11389_v2, %v10412_v58  ;;  %v7537_v33 = vor.u32 %v10660_v20, %v7534_v8  ;;  %v7393_v2 = vor.u32 %v10624_v41, %v7390_v35  ;;  %v11335_v1 = vld [vmem:[#allocation8 + $0x1824] sm:$0xf0] }
 0x41d   :  { %v8113_v31 = vor.u32 %v10804_v55, %v8110_v38  ;;  %v10606_v8 = vld [vmem:[#allocation8 + $0x164] sm:$0xf]  ;;  %v7894_v38 = vld [vmem:[#allocation8 + $0x628] sm:$0xf0] }
 0x41e   :  { %v7174_v41 = vld [vmem:[#allocation8 + $0x88] sm:$0xf0] }
 0x41f   :  { %6841 = vmatpush.bf16.msra.mxu0 %v7173_v4  ;;  %6855 = vmatpush.bf16.msra.mxu1 %v7749_v17  ;;  %v10642_v4 = vld [vmem:[#allocation8 + $0x284] sm:$0xf]  ;;  %v6593_v17 = vpop.f32.mrf.mxu2  ;;  %v6619_v11 = vpop.f32.mrf.mxu0 }
 0x420   :  { %6869 = vmatpush.bf16.msra.mxu2 %v8325_v23  ;;  %6883 = vmatpush.bf16.msra.mxu3 %v8901_v43  ;;  %v8038_v23 = vld [vmem:[#allocation8 + $0x748] sm:$0xf0]  ;;  %v6606_v43 = vadd.f32 %v12292_v39, %v6592_v42  ;;  %v7465_v10 = vor.u32 %v10642_v4, %v7462_v62  ;;  %v6633_v26 = vpop.f32.mrf.mxu1  ;;  %v10768_v39 = vld [vmem:[#allocation8 + $0x674] sm:$0xf]  ;;  %v6594_v46 = vadd.f32 %v6593_v17, %v1147_v59  ;;  %v10124_v17 = vld [vmem:[#allocation8 + $0x1750] sm:$0xf] }
 0x421   :  { %v8041_v63 = vor.u32 %v10786_v40, %v8038_v23  ;;  %v7969_v20 = vor.u32 %v10768_v39, %v7966_v14  ;;  %v11317_v62 = vld [vmem:[#allocation8 + $0x1794] sm:$0xf0]  ;;  %v10588_v40 = vld [vmem:[#allocation8 + $0xd4] sm:$0xf]  ;;  %v7750_v39 = vld [vmem:[#allocation8 + $0x508] sm:$0xf0] }
 0x422   :  { %6842 = vmatmul.bf16.vlgmr.msra.gmra.mxu0 %v11852_v47  ;;  %6856 = vmatmul.bf16.vlgmr.msra.gmra.mxu1 %v11854_v48  ;;  %v10732_v23 = vld [vmem:[#allocation8 + $0x554] sm:$0xf] }
 0x423   :  { %6890 = vmatpush.bf16.msrb.mxu0 %v9981_v21  ;;  %6904 = vmatpush.bf16.msrb.mxu1 %v10557_v22  ;;  %v6550_v21 = vadd.f32 %v12277_v3, %v6536_v49  ;;  %v9765_v22 = vor.u32 %v11227_v27, %v9764_v5  ;;  %v6608_v49 = vadd.f32 %v6607_v13, %v6594_v46  ;;  %v7246_v13 = vld [vmem:[#allocation8 + $0x118] sm:$0xf0]  ;;  %v10984_v14 = vld [vmem:[#allocation8 + $0xd34] sm:$0xf] }
 0x424   :  { %6918 = vmatpush.bf16.msrb.mxu2 %v7681_v37  ;;  %6932 = vmatpush.bf16.msrb.mxu3 %v8257_v9  ;;  %v11209_v37 = vld [vmem:[#allocation8 + $0x1434] sm:$0xf0]  ;;  %v6620_v9 = vadd.f32 %v6619_v11, %v6606_v43  ;;  %v9476_v11 = vld [vmem:[#allocation8 + $0x1240] sm:$0xf]  ;;  %v11128_v46 = vld [vmem:[#allocation8 + $0x11b4] sm:$0xf] }
 0x425   :  { %6870 = vmatmul.bf16.vlgmr.msra.gmra.mxu2 %v11856_v50  ;;  %6884 = vmatmul.bf16.vlgmr.msra.gmra.mxu3 %v11858_v53  ;;  %v6564_v3 = vadd.f32 %v12288_v29, %v6550_v21  ;;  %v7318_v29 = vld [vmem:[#allocation8 + $0x1a8] sm:$0xf0]  ;;  %v11155_v21 = vld [vmem:[#allocation8 + $0x1284] sm:$0xf0] }
 0x426   :  { %v6634_v58 = vadd.f32 %v6633_v26, %v6620_v9  ;;  %v10052_v9 = vld [vmem:[#allocation8 + $0x16c0] sm:$0xf]  ;;  %v10714_v26 = vld [vmem:[#allocation8 + $0x4c4] sm:$0xf] }
 0x427   :  { %6891 = vmatpush.bf16.msrb.mxu0 %v9909_v15  ;;  %6905 = vmatpush.bf16.msrb.mxu1 %v10485_v25  ;;  %v6524_v15 = vadd.f32 %v12281_v0, %v6510_v54  ;;  %v9693_v25 = vor.u32 %v11209_v37, %v9692_v18  ;;  %v10750_v0 = vld [vmem:[#allocation8 + $0x5e4] sm:$0xf]  ;;  %v6578_v42 = vadd.f32 %v12290_v36, %v6564_v3  ;;  %v7822_v54 = vld [vmem:[#allocation8 + $0x598] sm:$0xf0] }
 0x428   :  { %6919 = vmatpush.bf16.msrb.mxu2 %v7609_v34  ;;  %6933 = vmatpush.bf16.msrb.mxu3 %v8185_v51  ;;  %v11191_v34 = vld [vmem:[#allocation8 + $0x13a4] sm:$0xf0]  ;;  %v10196_v51 = vld [vmem:[#allocation8 + $0x17e0] sm:$0xf]  ;;  %v6647_v59 = vpop.f32.mrf.mxu2  ;;  %v6661_v55 = vpop.f32.mrf.mxu3  ;;  %v7897_v4 = vor.u32 %v10750_v0, %v7894_v38  ;;  %v10125_v37 = vor.u32 %v11317_v62, %v10124_v17  ;;  %v7825_v32 = vor.u32 %v10732_v23, %v7822_v54  ;;  %v8758_v0 = vld [vmem:[#allocation8 + $0xce8] sm:$0xf0] }
 0x429   :  { %v6538_v60 = vadd.f32 %v12283_v7, %v6524_v15  ;;  %v9621_v5 = vor.u32 %v11191_v34, %v9620_v28  ;;  %v10197_v27 = vor.u32 %v11335_v1, %v10196_v51  ;;  %v9406_v15 = vld [vmem:[#allocation8 + $0x11f8] sm:$0xf0]  ;;  %v9477_v34 = vor.u32 %v11155_v21, %v9476_v11  ;;  %v11092_v62 = vld [vmem:[#allocation8 + $0x1094] sm:$0xf]  ;;  %v10930_v21 = vld [vmem:[#allocation8 + $0xb84] sm:$0xf] }
 0x42a   :  { %v11380_v23 = vld [vmem:[#allocation8 + $0x1994] sm:$0xf]  ;;  %v10414_v54 = vld [vmem:[#allocation8 + $0x19d8] sm:$0xf0] }
 0x42b   :  { %6892 = vmatpush.bf16.msrb.mxu0 %v9837_v45  ;;  %6906 = vmatpush.bf16.msrb.mxu1 %v10413_v16  ;;  %v6648_v45 = vadd.f32 %v6647_v59, %v6634_v58  ;;  %v6621_v16 = vpop.f32.mrf.mxu0  ;;  %v6552_v36 = vadd.f32 %v12285_v61, %v6538_v60  ;;  %v7249_v61 = vor.u32 %v10588_v40, %v7246_v13  ;;  %v9982_v58 = vld [vmem:[#allocation8 + $0x1678] sm:$0xf0] }
 0x42c   :  { %6920 = vmatpush.bf16.msrb.mxu2 %v7537_v33  ;;  %6934 = vmatpush.bf16.msrb.mxu3 %v8113_v31  ;;  %v7321_v33 = vor.u32 %v10606_v8, %v7318_v29  ;;  %v9548_v31 = vld [vmem:[#allocation8 + $0x12d0] sm:$0xf]  ;;  %v6622_v7 = vadd.f32 %v6621_v16, %v6608_v49  ;;  %v7753_v29 = vor.u32 %v10714_v26, %v7750_v39  ;;  %v11110_v49 = vld [vmem:[#allocation8 + $0x1124] sm:$0xf]  ;;  %v9262_v40 = vld [vmem:[#allocation8 + $0x10d8] sm:$0xf0] }
 0x42d   :  { %v6662_v44 = vadd.f32 %v6661_v55, %v6648_v45  ;;  %v9549_v18 = vor.u32 %v11173_v12, %v9548_v31  ;;  %v9409_v59 = vor.u32 %v11128_v46, %v9406_v15  ;;  %v10966_v55 = vld [vmem:[#allocation8 + $0xca4] sm:$0xf]  ;;  %v9334_v45 = vld [vmem:[#allocation8 + $0x1168] sm:$0xf0]  ;;  %v9838_v13 = vld [vmem:[#allocation8 + $0x1558] sm:$0xf0]  ;;  %v9265_v11 = vor.u32 %v11092_v62, %v9262_v40 }
 0x42e   :  { %v11254_v16 = vld [vmem:[#allocation8 + $0x15a4] sm:$0xf]  ;;  %v8761_v31 = vor.u32 %v10966_v55, %v8758_v0  ;;  %v9337_v12 = vor.u32 %v11110_v49, %v9334_v45  ;;  %v11056_v39 = vld [vmem:[#allocation8 + $0xf74] sm:$0xf]  ;;  %v10270_v15 = vld [vmem:[#allocation8 + $0x18b8] sm:$0xf0] }
 0x42f   :  { %6893 = vmatpush.bf16.msrb.mxu0 %v9765_v22  ;;  %6907 = vmatpush.bf16.msrb.mxu1 %v10341_v56  ;;  %v7038_v43 = vpack.c.bf16 %v6662_v44, %v6578_v42  ;;  %v6566_v22 = vadd.f32 %v12298_v30, %v6552_v36  ;;  %v6635_v56 = vpop.f32.mrf.mxu1  ;;  %v8830_v30 = vld [vmem:[#allocation8 + $0xd78] sm:$0xf0]  ;;  %v10948_v44 = vld [vmem:[#allocation8 + $0xc14] sm:$0xf]  ;;  %v11002_v62 = vld [vmem:[#allocation8 + $0xdc4] sm:$0xf] }
 0x430   :  { %6921 = vmatpush.bf16.msrb.mxu2 %v7465_v10  ;;  %6935 = vmatpush.bf16.msrb.mxu3 %v8041_v63  ;;  %v11299_v10 = vld [vmem:[#allocation8 + $0x1704] sm:$0xf0]  ;;  %v10570_v63 = vld [vmem:[#allocation8 + $0x44] sm:$0xf]  ;;  %v6636_v19 = vadd.f32 %v6635_v56, %v6622_v7  ;;  %v6649_v35 = vpop.f32.mrf.mxu2  ;;  %v6663_v28 = vpop.f32.mrf.mxu3  ;;  %v8833_v60 = vor.u32 %v10984_v14, %v8830_v30  ;;  %v8686_v7 = vld [vmem:[#allocation8 + $0xc58] sm:$0xf0] }
 0x431   :  { %7044 = vst [vmem:[#allocation14] sm:$0xff] %v7038_v43  ;;  %v10053_v51 = vor.u32 %v11299_v10, %v10052_v9  ;;  %v7177_v8 = vor.u32 %v10570_v63, %v7174_v41  ;;  %v11236_v36 = vld [vmem:[#allocation8 + $0x1514] sm:$0xf]  ;;  %v8689_v43 = vor.u32 %v10948_v44, %v8686_v7  ;;  %v9190_v9 = vld [vmem:[#allocation8 + $0x1048] sm:$0xf0] }
 0x432   :  { %v6650_v3 = vadd.f32 %v6649_v35, %v6636_v19  ;;  %v9841_v56 = vor.u32 %v11236_v36, %v9838_v13  ;;  %v11218_v10 = vld [vmem:[#allocation8 + $0x1484] sm:$0xf]  ;;  %v9766_v63 = vld [vmem:[#allocation8 + $0x14c8] sm:$0xf0]  ;;  %v8542_v41 = vld [vmem:[#allocation8 + $0xb38] sm:$0xf0] }
 0x433   :  { %6894 = vmatpush.bf16.msrb.mxu0 %v9693_v25  ;;  %6908 = vmatpush.bf16.msrb.mxu1 %v10269_v24  ;;  %v11272_v25 = vld [vmem:[#allocation8 + $0x1634] sm:$0xf]  ;;  %v6580_v24 = vadd.f32 %v12301_v52, %v6566_v22  ;;  %v8614_v22 = vld [vmem:[#allocation8 + $0xbc8] sm:$0xf0]  ;;  %v11362_v19 = vld [vmem:[#allocation8 + $0x1904] sm:$0xf]  ;;  %v9769_v26 = vor.u32 %v11218_v10, %v9766_v63 }
 0x434   :  { %6922 = vmatpush.bf16.msrb.mxu2 %v7393_v2  ;;  %6936 = vmatpush.bf16.msrb.mxu3 %v7969_v20  ;;  %v11416_v2 = vld [vmem:[#allocation8 + $0x1ab4] sm:$0xf]  ;;  %v10558_v20 = vld [vmem:[#allocation8 + $0x1af8] sm:$0xf0]  ;;  %v6664_v1 = vadd.f32 %v6663_v28, %v6650_v3  ;;  %v9985_v42 = vor.u32 %v11272_v25, %v9982_v58  ;;  %v10894_v28 = vld [vmem:[#allocation8 + $0xa64] sm:$0xf] }
 0x435   :  { %v10561_v52 = vor.u32 %v11416_v2, %v10558_v20  ;;  %v9118_v14 = vld [vmem:[#allocation8 + $0xfb8] sm:$0xf0]  ;;  %v11200_v30 = vld [vmem:[#allocation8 + $0x13f4] sm:$0xf]  ;;  %v11038_v2 = vld [vmem:[#allocation8 + $0xee4] sm:$0xf] }
 0x436   :  { %v7041_v38 = vpack.c.bf16 %v6664_v1, %v6580_v24  ;;  %v9694_v3 = vld [vmem:[#allocation8 + $0x1438] sm:$0xf0]  ;;  %v11344_v46 = vld [vmem:[#allocation8 + $0x1874] sm:$0xf]  ;;  %v9121_v24 = vor.u32 %v11056_v39, %v9118_v14  ;;  %v9046_v20 = vld [vmem:[#allocation8 + $0xf28] sm:$0xf0] }
 0x437   :  { %6895 = vmatpush.bf16.msrb.mxu0 %v9621_v5  ;;  %6909 = vmatpush.bf16.msrb.mxu1 %v10197_v27  ;;  %v9910_v5 = vld [vmem:[#allocation8 + $0x15e8] sm:$0xf0]  ;;  %v11398_v27 = vld [vmem:[#allocation8 + $0x1a24] sm:$0xf]  ;;  %v10273_v58 = vor.u32 %v11344_v46, %v10270_v15  ;;  %v9049_v55 = vor.u32 %v11038_v2, %v9046_v20  ;;  %v10876_v0 = vld [vmem:[#allocation8 + $0x9d4] sm:$0xf] }
 0x438   :  { %6923 = vmatpush.bf16.msrb.mxu2 %v7321_v33  ;;  %6937 = vmatpush.bf16.msrb.mxu3 %v7897_v4  ;;  %v10486_v33 = vld [vmem:[#allocation8 + $0x1a68] sm:$0xf0]  ;;  %7047 = vst [vmem:[#allocation14 + $0x18] sm:$0xff] %v7041_v38  ;;  %v9913_v4 = vor.u32 %v11254_v16, %v9910_v5  ;;  %v11182_v1 = vld [vmem:[#allocation8 + $0x1364] sm:$0xf] }
 0x439   :  { %v10489_v17 = vor.u32 %v11398_v27, %v10486_v33  ;;  %v8398_v38 = vld [vmem:[#allocation8 + $0xa18] sm:$0xf0]  ;;  %v11020_v49 = vld [vmem:[#allocation8 + $0xe54] sm:$0xf]  ;;  %v10858_v44 = vld [vmem:[#allocation8 + $0x944] sm:$0xf] }
 0x43a   :  { %v8974_v45 = vld [vmem:[#allocation8 + $0xe98] sm:$0xf0]  ;;  %v11164_v16 = vld [vmem:[#allocation8 + $0x12d4] sm:$0xf]  ;;  %v8326_v7 = vld [vmem:[#allocation8 + $0x988] sm:$0xf0] }
 0x43b   :  { %6896 = vmatpush.bf16.msrb.mxu0 %v9549_v18  ;;  %6910 = vmatpush.bf16.msrb.mxu1 %v10125_v37  ;;  %v10417_v18 = vor.u32 %v11380_v23, %v10414_v54  ;;  %v11074_v37 = vld [vmem:[#allocation8 + $0x1004] sm:$0xf]  ;;  %v9550_v5 = vld [vmem:[#allocation8 + $0x1318] sm:$0xf0]  ;;  %v11308_v27 = vld [vmem:[#allocation8 + $0x1754] sm:$0xf] }
 0x43c   :  { %6924 = vmatpush.bf16.msrb.mxu2 %v7249_v61  ;;  %6938 = vmatpush.bf16.msrb.mxu3 %v7825_v32  ;;  %v10342_v61 = vld [vmem:[#allocation8 + $0x1948] sm:$0xf0]  ;;  %v10912_v32 = vld [vmem:[#allocation8 + $0xaf4] sm:$0xf]  ;;  %v10126_v33 = vld [vmem:[#allocation8 + $0x1798] sm:$0xf0] }
 0x43d   :  { %v10345_v35 = vor.u32 %v11362_v19, %v10342_v61  ;;  %v8545_v25 = vor.u32 %v10912_v32, %v8542_v41  ;;  %v8902_v40 = vld [vmem:[#allocation8 + $0xe08] sm:$0xf0]  ;;  %v11146_v36 = vld [vmem:[#allocation8 + $0x1244] sm:$0xf] }
 0x43e   :  { %v9478_v13 = vld [vmem:[#allocation8 + $0x1288] sm:$0xf0]  ;;  %v11290_v23 = vld [vmem:[#allocation8 + $0x16c4] sm:$0xf] }
 0x43f   :  { %6897 = vmatpush.bf16.msrb.mxu0 %v9477_v34  ;;  %6911 = vmatpush.bf16.msrb.mxu1 %v10053_v51  ;;  %v8470_v34 = vld [vmem:[#allocation8 + $0xaa8] sm:$0xf0]  ;;  %v9697_v51 = vor.u32 %v11200_v30, %v9694_v3 }
 0x440   :  { %6925 = vmatpush.bf16.msrb.mxu2 %v7177_v8  ;;  %6939 = vmatpush.bf16.msrb.mxu3 %v7753_v29  ;;  %v9622_v8 = vld [vmem:[#allocation8 + $0x13a8] sm:$0xf0]  ;;  %v11326_v29 = vld [vmem:[#allocation8 + $0x17e4] sm:$0xf] }
 0x441   :  { %v10054_v54 = vld [vmem:[#allocation8 + $0x1708] sm:$0xf0] }
 0x442   :  { %6898 = vmatmul.bf16.vlgmr.msrb.gmra.mxu0 %v11874_v6  ;;  %6912 = vmatmul.bf16.vlgmr.msrb.gmra.mxu1 %v11876_v57 }
 0x443   :  { %6946 = vmatpush.bf16.msra.mxu0 %v8833_v60  ;;  %6960 = vmatpush.bf16.msra.mxu1 %v9409_v59  ;;  %v10198_v60 = vld [vmem:[#allocation8 + $0x1828] sm:$0xf0]  ;;  %v8473_v59 = vor.u32 %v10894_v28, %v8470_v34 }
 0x444   :  { %6974 = vmatpush.bf16.msra.mxu2 %v9985_v42  ;;  %6988 = vmatpush.bf16.msra.mxu3 %v10561_v52  ;;  %v9625_v42 = vor.u32 %v11182_v1, %v9622_v8  ;;  %v10201_v52 = vor.u32 %v11326_v29, %v10198_v60 }
 0x445   :  { %6926 = vmatmul.bf16.vlgmr.msrb.gmra.mxu2 %v11852_v47  ;;  %6940 = vmatmul.bf16.vlgmr.msrb.gmra.mxu3 %v11854_v48  ;;  %v8617_v47 = vor.u32 %v10930_v21, %v8614_v22  ;;  %v9193_v48 = vor.u32 %v11074_v37, %v9190_v9  ;;  %v9481_v21 = vor.u32 %v11146_v36, %v9478_v13 }
 0x446   :  { %v10057_v22 = vor.u32 %v11290_v23, %v10054_v54 }
 0x447   :  { %6947 = vmatpush.bf16.msra.mxu0 %v8761_v31  ;;  %6961 = vmatpush.bf16.msra.mxu1 %v9337_v12  ;;  %v8401_v31 = vor.u32 %v10876_v0, %v8398_v38  ;;  %v8977_v12 = vor.u32 %v11020_v49, %v8974_v45 }
 0x448   :  { %6975 = vmatpush.bf16.msra.mxu2 %v9913_v4  ;;  %6989 = vmatpush.bf16.msra.mxu3 %v10489_v17  ;;  %v9553_v4 = vor.u32 %v11164_v16, %v9550_v5  ;;  %v10129_v17 = vor.u32 %v11308_v27, %v10126_v33  ;;  %v6703_v37 = vpop.f32.mrf.mxu2  ;;  %v6717_v9 = vpop.f32.mrf.mxu3 }
 0x44b   :  { %6948 = vmatpush.bf16.msra.mxu0 %v8689_v43  ;;  %6962 = vmatpush.bf16.msra.mxu1 %v9265_v11  ;;  %v8329_v43 = vor.u32 %v10858_v44, %v8326_v7  ;;  %v8905_v11 = vor.u32 %v11002_v62, %v8902_v40 }
 0x44c   :  { %6976 = vmatpush.bf16.msra.mxu2 %v9841_v56  ;;  %6990 = vmatpush.bf16.msra.mxu3 %v10417_v18  ;;  %v6675_v56 = vpop.f32.mrf.mxu0  ;;  %v6689_v18 = vpop.f32.mrf.mxu1 }
 0x44f   :  { %6949 = vmatpush.bf16.msra.mxu0 %v8617_v47  ;;  %6963 = vmatpush.bf16.msra.mxu1 %v9193_v48  ;;  %v11450_v47 = vld [vmem:[#allocation10 + $0x8] sm:$0xff] }
 0x450   :  { %6977 = vmatpush.bf16.msra.mxu2 %v9769_v26  ;;  %6991 = vmatpush.bf16.msra.mxu3 %v10345_v35  ;;  %v6705_v19 = vpop.f32.mrf.mxu2  ;;  %v6719_v61 = vpop.f32.mrf.mxu3  ;;  %v1148_v48 = vperm.slane %v11450_v47, 6  ;;  %v1149_v32 = vperm.slane %v11450_v47, 7 }
 0x452   :  { %v6676_v26 = vadd.f32 %v6675_v56, %v1148_v48 }
 0x453   :  { %6950 = vmatpush.bf16.msra.mxu0 %v8545_v25  ;;  %6964 = vmatpush.bf16.msra.mxu1 %v9121_v24 }
 0x454   :  { %6978 = vmatpush.bf16.msra.mxu2 %v9697_v51  ;;  %6992 = vmatpush.bf16.msra.mxu3 %v10273_v58  ;;  %v6677_v10 = vpop.f32.mrf.mxu0  ;;  %v6691_v63 = vpop.f32.mrf.mxu1  ;;  %v6690_v14 = vadd.f32 %v6689_v18, %v6676_v26 }
 0x455   :  { %v6678_v24 = vadd.f32 %v6677_v10, %v1148_v48 }
 0x456   :  { %v6704_v46 = vadd.f32 %v6703_v37, %v6690_v14 }
 0x457   :  { %6951 = vmatpush.bf16.msra.mxu0 %v8473_v59  ;;  %6965 = vmatpush.bf16.msra.mxu1 %v9049_v55  ;;  %v6692_v2 = vadd.f32 %v6691_v63, %v6678_v24 }
 0x458   :  { %6979 = vmatpush.bf16.msra.mxu2 %v9625_v42  ;;  %6993 = vmatpush.bf16.msra.mxu3 %v10201_v52  ;;  %v6718_v51 = vadd.f32 %v6717_v9, %v6704_v46 }
 0x459   :  { %v6706_v60 = vadd.f32 %v6705_v19, %v6692_v2 }
 0x45b   :  { %6952 = vmatpush.bf16.msra.mxu0 %v8401_v31  ;;  %6966 = vmatpush.bf16.msra.mxu1 %v8977_v12  ;;  %v6720_v49 = vadd.f32 %v6719_v61, %v6706_v60 }
 0x45c   :  { %6980 = vmatpush.bf16.msra.mxu2 %v9553_v4  ;;  %6994 = vmatpush.bf16.msra.mxu3 %v10129_v17 }
 0x45f   :  { %6953 = vmatpush.bf16.msra.mxu0 %v8329_v43  ;;  %6967 = vmatpush.bf16.msra.mxu1 %v8905_v11 }
 0x460   :  { %6981 = vmatpush.bf16.msra.mxu2 %v9481_v21  ;;  %6995 = vmatpush.bf16.msra.mxu3 %v10057_v22  ;;  %v1130_v22 = vld [vmem:[#allocation10 + $0x10] sm:$0x3] }
 0x461   :  { %v1150_v37 = vperm.slane %v1130_v22, 0  ;;  %v1151_v9 = vperm.slane %v1130_v22, 1 }
 0x462   :  { %6954 = vmatmul.bf16.vlgmr.msra.gmra.mxu0 %v11856_v50  ;;  %6968 = vmatmul.bf16.vlgmr.msra.gmra.mxu1 %v11858_v53  ;;  %v6731_v50 = vpop.f32.mrf.mxu0  ;;  %v6745_v53 = vpop.f32.mrf.mxu1 }
 0x463   :  { %6982 = vmatmul.bf16.vlgmr.msra.gmra.mxu2 %v11874_v6  ;;  %6996 = vmatmul.bf16.vlgmr.msra.gmra.mxu3 %v11876_v57  ;;  %v6732_v20 = vadd.f32 %v6731_v50, %v6718_v51 }
 0x465   :  { %v6746_v38 = vadd.f32 %v6745_v53, %v6732_v20 }
 0x468   :  { %v6759_v6 = vpop.f32.mrf.mxu2  ;;  %v6773_v57 = vpop.f32.mrf.mxu3 }
 0x469   :  { %v6760_v39 = vadd.f32 %v6759_v6, %v1149_v32 }
 0x46a   :  { %v6733_v41 = vpop.f32.mrf.mxu0  ;;  %v6747_v35 = vpop.f32.mrf.mxu1 }
 0x46b   :  { %v6774_v15 = vadd.f32 %v6773_v57, %v6760_v39  ;;  %v6734_v5 = vadd.f32 %v6733_v41, %v6720_v49 }
 0x46d   :  { %v6748_v44 = vadd.f32 %v6747_v35, %v6734_v5 }
 0x470   :  { %v6761_v30 = vpop.f32.mrf.mxu2  ;;  %v6775_v3 = vpop.f32.mrf.mxu3 }
 0x471   :  { %v6762_v58 = vadd.f32 %v6761_v30, %v1149_v32 }
 0x473   :  { %v6776_v59 = vadd.f32 %v6775_v3, %v6762_v58 }
 0x47f   :  { %v6787_v25 = vpop.f32.mrf.mxu0  ;;  %v6801_v34 = vpop.f32.mrf.mxu1 }
 0x480   :  { %v6788_v28 = vadd.f32 %v6787_v25, %v6774_v15 }
 0x482   :  { %v6802_v1 = vadd.f32 %v6801_v34, %v6788_v28 }
 0x487   :  { %v6789_v0 = vpop.f32.mrf.mxu0  ;;  %v6803_v16 = vpop.f32.mrf.mxu1 }
 0x488   :  { %v6815_v8 = vpop.f32.mrf.mxu2  ;;  %v6829_v29 = vpop.f32.mrf.mxu3  ;;  %v6790_v52 = vadd.f32 %v6789_v0, %v6776_v59 }
 0x489   :  { %v6816_v55 = vadd.f32 %v6815_v8, %v6802_v1 }
 0x48a   :  { %v6804_v27 = vadd.f32 %v6803_v16, %v6790_v52 }
 0x48b   :  { %v6830_v42 = vadd.f32 %v6829_v29, %v6816_v55 }
 0x48d   :  { %v7039_v45 = vpack.c.bf16 %v6830_v42, %v6746_v38 }
 0x48f   :  { %7045 = vst [vmem:[#allocation14 + $0x8] sm:$0xff] %v7039_v45 }
 0x490   :  { %v6817_v33 = vpop.f32.mrf.mxu2  ;;  %v6831_v12 = vpop.f32.mrf.mxu3 }
 0x491   :  { %v6818_v31 = vadd.f32 %v6817_v33, %v6804_v27 }
 0x493   :  { %v6832_v7 = vadd.f32 %v6831_v12, %v6818_v31 }
 0x495   :  { %v7042_v4 = vpack.c.bf16 %v6832_v7, %v6748_v44 }
 0x497   :  { %7048 = vst [vmem:[#allocation14 + $0x20] sm:$0xff] %v7042_v4 }
 0x49f   :  { %v6843_v17 = vpop.f32.mrf.mxu0  ;;  %v6857_v62 = vpop.f32.mrf.mxu1 }
 0x4a0   :  { %v6844_v63 = vadd.f32 %v6843_v17, %v1150_v37 }
 0x4a2   :  { %v6858_v50 = vadd.f32 %v6857_v62, %v6844_v63 }
 0x4a7   :  { %v6845_v13 = vpop.f32.mrf.mxu0  ;;  %v6859_v23 = vpop.f32.mrf.mxu1 }
 0x4a8   :  { %v6871_v40 = vpop.f32.mrf.mxu2  ;;  %v6885_v36 = vpop.f32.mrf.mxu3  ;;  %v6846_v32 = vadd.f32 %v6845_v13, %v1150_v37 }
 0x4a9   :  { %v6872_v57 = vadd.f32 %v6871_v40, %v6858_v50 }
 0x4aa   :  { %v6860_v14 = vadd.f32 %v6859_v23, %v6846_v32 }
 0x4ab   :  { %v6886_v35 = vadd.f32 %v6885_v36, %v6872_v57 }
 0x4b0   :  { %v6873_v54 = vpop.f32.mrf.mxu2  ;;  %v6887_v43 = vpop.f32.mrf.mxu3 }
 0x4b1   :  { %v6874_v25 = vadd.f32 %v6873_v54, %v6860_v14 }
 0x4b3   :  { %v6888_v20 = vadd.f32 %v6887_v43, %v6874_v25 }
 0x4bf   :  { %v6899_v11 = vpop.f32.mrf.mxu0  ;;  %v6913_v21 = vpop.f32.mrf.mxu1 }
 0x4c0   :  { %v6900_v30 = vadd.f32 %v6899_v11, %v6886_v35 }
 0x4c2   :  { %v6914_v51 = vadd.f32 %v6913_v21, %v6900_v30 }
 0x4c7   :  { %v6901_v10 = vpop.f32.mrf.mxu0  ;;  %v6915_v19 = vpop.f32.mrf.mxu1 }
 0x4c8   :  { %v6927_v56 = vpop.f32.mrf.mxu2  ;;  %v6941_v18 = vpop.f32.mrf.mxu3  ;;  %v6902_v29 = vadd.f32 %v6901_v10, %v6888_v20 }
 0x4c9   :  { %v6928_v61 = vadd.f32 %v6927_v56, %v1151_v9 }
 0x4ca   :  { %v6916_v38 = vadd.f32 %v6915_v19, %v6902_v29 }
 0x4cb   :  { %v6942_v47 = vadd.f32 %v6941_v18, %v6928_v61 }
 0x4d0   :  { %v6929_v53 = vpop.f32.mrf.mxu2  ;;  %v6943_v6 = vpop.f32.mrf.mxu3 }
 0x4d1   :  { %v6930_v39 = vadd.f32 %v6929_v53, %v1151_v9 }
 0x4d3   :  { %v6944_v24 = vadd.f32 %v6943_v6, %v6930_v39 }
 0x4df   :  { %v6955_v48 = vpop.f32.mrf.mxu0  ;;  %v6969_v26 = vpop.f32.mrf.mxu1 }
 0x4e0   :  { %v6956_v41 = vadd.f32 %v6955_v48, %v6942_v47 }
 0x4e2   :  { %v6970_v3 = vadd.f32 %v6969_v26, %v6956_v41 }
 0x4e6   :  { %v6983_v46 = vpop.f32.mrf.mxu2  ;;  %v6997_v15 = vpop.f32.mrf.mxu3 }
 0x4e7   :  { %v6984_v28 = vadd.f32 %v6983_v46, %v6970_v3  ;;  %v6957_v34 = vpop.f32.mrf.mxu0  ;;  %v6971_v8 = vpop.f32.mrf.mxu1 }
 0x4e8   :  { %v6958_v2 = vadd.f32 %v6957_v34, %v6944_v24 }
 0x4e9   :  { %v6998_v58 = vadd.f32 %v6997_v15, %v6984_v28 }
 0x4ea   :  { %v6972_v60 = vadd.f32 %v6971_v8, %v6958_v2 }
 0x4eb   :  { %v7040_v1 = vpack.c.bf16 %v6998_v58, %v6914_v51 }
 0x4ed   :  { %7046 = vst [vmem:[#allocation14 + $0x10] sm:$0xff] %v7040_v1 }
 0x4ee   :  { %v6985_v59 = vpop.f32.mrf.mxu2  ;;  %v6999_v0 = vpop.f32.mrf.mxu3 }
 0x4ef   :  { %v6986_v55 = vadd.f32 %v6985_v59, %v6972_v60 }
 0x4f1   :  { %v7000_v42 = vadd.f32 %v6999_v0, %v6986_v55 }
 0x4f3   :  { %v7043_v52 = vpack.c.bf16 %v7000_v42, %v6916_v38 }
 0x4f5   :  { %7049 = vst [vmem:[#allocation14 + $0x28] sm:$0xff] %v7043_v52 }
 0x4f6   :  { %7088 = dma.vmem_to_hbm [thread:$0]  %s7081_s6, 768, %s7083_s15, [#allocation13], %s11664_s30, %s11664_s30, %s11665_s8  }
 0x4f7   :  { %11649 = dma.done.wait [#allocation4], 768  }
 0x4f8   :  { %11650 = vsyncadd [#allocation4], 4294966528 }
 0x4f9   :  { %11651 = dma.done.wait [#allocation13], 1536  }
 0x4fa   :  { %11652 = vsyncadd [#allocation13], 4294965760 }
 0x4fb   :  { %7101 = vsyncpa [#allocation3], 1 }
 0x4fc   :  { %7102 = vsyncpa [#allocation6], 1 }
 0x4fd   :  { %7103 = vsyncpa [#allocation9], 1 }
 0x4fe   :  { %7104 = vsyncpa [#allocation4], 1 }
 0x4ff   :  { %7105 = vsyncpa [#allocation13], 1 }

</bundles_post_ra>
